<compile_context>
chip_gen: v7x
topology: tpu7x:2x2x1
jax: 0.10.0
libtpu: 0.0.40
codegen_flags: <defaults>
</compile_context>

<pallas_src>
import functools

import jax
import jax.numpy as jnp
from jax.experimental import pallas as pl
from jax.experimental.pallas import tpu as pltpu


# Rows of the im2col matrix processed per grid step.  256 fills the 256x256
# MXU of v6e / v7x; use 128 on v5e (4x 128x128 MXU).
TM_MAX = 256


# ---------------- Pallas kernels (hot paths) ----------------

def _nin_block_kernel(a_ref, w0_ref, b0_ref, w1_ref, b1_ref, w2_ref, b2_ref,
                      o_ref):
    """Fused NiN block on one M-tile of the im2col matrix.

    relu(A @ W0 + b0) -> relu(. @ W1 + b1) -> relu(. @ W2 + b2), all in VMEM.
    MXU inputs are bf16; accumulation / bias / ReLU in fp32.
    """
    a = a_ref[...].astype(jnp.bfloat16)
    acc = jnp.dot(a, w0_ref[...], preferred_element_type=jnp.float32)
    acc = jnp.maximum(acc + b0_ref[...], 0.0)
    acc = jnp.dot(acc.astype(jnp.bfloat16), w1_ref[...],
                  preferred_element_type=jnp.float32)
    acc = jnp.maximum(acc + b1_ref[...], 0.0)
    acc = jnp.dot(acc.astype(jnp.bfloat16), w2_ref[...],
                  preferred_element_type=jnp.float32)
    acc = jnp.maximum(acc + b2_ref[...], 0.0)
    o_ref[...] = acc.astype(o_ref.dtype)


def _maxpool_kernel(x_ref, o_ref):
    # x: (9, tm, C) = the 9 shifted 3x3/stride-2 windows; reduce over windows.
    o_ref[...] = jnp.max(x_ref[...], axis=0)


# ---------------- wrappers ----------------

def nin_block_matmul(a, w0, b0, w1, b1, w2, b2, out_dtype):
    """Fused relu((relu((relu(a@W0+b0))@W1+b1))@W2+b2), tiled over rows."""
    M, K = a.shape
    C = w0.shape[1]
    tm = TM_MAX if M >= TM_MAX else M          # full-extent block when M small
    grid = (pl.cdiv(M, tm),)
    flops = 2 * M * (K * C + 2 * C * C)
    bytes_accessed = (a.size * a.dtype.itemsize
                      + (w0.size + w1.size + w2.size) * w0.dtype.itemsize
                      + (b0.size + b1.size + b2.size) * b0.dtype.itemsize
                      + M * C * jnp.dtype(out_dtype).itemsize)
    return pl.pallas_call(
        _nin_block_kernel,
        out_shape=jax.ShapeDtypeStruct((M, C), out_dtype),
        grid=grid,
        in_specs=[
            pl.BlockSpec((tm, K), lambda i: (i, 0)),   # A row-tile
            pl.BlockSpec((K, C), lambda i: (0, 0)),    # W0 (resident)
            pl.BlockSpec((1, C), lambda i: (0, 0)),    # b0
            pl.BlockSpec((C, C), lambda i: (0, 0)),    # W1 (resident)
            pl.BlockSpec((1, C), lambda i: (0, 0)),    # b1
            pl.BlockSpec((C, C), lambda i: (0, 0)),    # W2 (resident)
            pl.BlockSpec((1, C), lambda i: (0, 0)),    # b2
        ],
        out_specs=pl.BlockSpec((tm, C), lambda i: (i, 0)),
        compiler_params=pltpu.CompilerParams(
            dimension_semantics=("parallel",)),
        cost_estimate=pl.CostEstimate(flops=flops, transcendentals=0,
                                      bytes_accessed=bytes_accessed),
    )(a, w0, b0, w1, b1, w2, b2)


def _im2col(x, k, s):
    # x: NHWC (already zero-padded).  Returns (N*Ho*Wo, k*k*C), Ho, Wo.
    # Slices are concatenated along the lane (channel) axis so the (ki,kj,cin)
    # row ordering comes out directly, with no stack+reshape relayout.
    N, H, W, C = x.shape
    Ho = (H - k) // s + 1
    Wo = (W - k) // s + 1
    cols = [x[:, ki:ki + s * (Ho - 1) + 1:s, kj:kj + s * (Wo - 1) + 1:s, :]
            for ki in range(k) for kj in range(k)]
    patches = jnp.concatenate(cols, axis=-1)           # (N, Ho, Wo, k*k*C)
    return patches.reshape(N * Ho * Wo, k * k * C), Ho, Wo


def nin_block(x, layers, k, s, p, out_dtype=jnp.bfloat16):
    # Conv(k,s,p)+ReLU then two 1x1 Conv+ReLU (NiN_block's Sequential), fused
    # into a single Pallas kernel per block.
    (w0, b0), (w1, b1), (w2, b2) = layers
    N = x.shape[0]
    if p > 0:
        x = jnp.pad(x, ((0, 0), (p, p), (p, p), (0, 0)))
    a, Ho, Wo = _im2col(x, k, s)
    out = nin_block_matmul(a, w0, b0, w1, b1, w2, b2, out_dtype)
    return out.reshape(N, Ho, Wo, -1)


def maxpool3x3s2(x):
    # nn.MaxPool2d(kernel_size=3, stride=2), no padding.  The 9 shifted
    # windows are gathered in plain JAX (a few hundred KB in bf16 at these
    # shapes) and reduced by a row-gridded Pallas kernel; for large inputs the
    # gather could move in-kernel (strided window reads) to drop the stacked
    # intermediate entirely.
    N, H, W, C = x.shape
    Ho = (H - 3) // 2 + 1
    Wo = (W - 3) // 2 + 1
    wins = [x[:, ki:ki + 2 * (Ho - 1) + 1:2, kj:kj + 2 * (Wo - 1) + 1:2, :]
            for ki in range(3) for kj in range(3)]
    M = N * Ho * Wo
    stacked = jnp.stack(wins, axis=0).reshape(9, M, C)
    tm = 512 if M >= 512 else M
    out = pl.pallas_call(
        _maxpool_kernel,
        out_shape=jax.ShapeDtypeStruct((M, C), x.dtype),
        grid=(pl.cdiv(M, tm),),
        in_specs=[pl.BlockSpec((9, tm, C), lambda i: (0, i, 0))],
        out_specs=pl.BlockSpec((tm, C), lambda i: (i, 0)),
        compiler_params=pltpu.CompilerParams(
            dimension_semantics=("parallel",)),
    )(stacked)
    return out.reshape(N, Ho, Wo, C)


def global_avgpool_flatten(x):
    # AdaptiveAvgPool2d((1,1)) + Flatten.  Spatial extent is 1x1 at this point
    # and the class dim is tiny, so a dedicated pallas_call is pure overhead
    # (per-call ~0.35us + masked narrow store); plain jnp.mean fuses into the
    # surrounding XLA graph.
    return jnp.mean(x.astype(jnp.float32), axis=(1, 2))


def init_params(key, num_classes):
    # Deterministic kaiming-normal (fan_out, relu) weights, zero biases, stored
    # directly in (k*k*Cin, Cout) im2col layout as bf16 (MXU-native inputs).
    # The final block's tiny class dim is zero-padded ONCE here to a 128-lane
    # tile so its matmuls / stores stay lane-dense; the forward pass slices the
    # logits back to num_classes.  Zero pad keeps the math exact.
    blocks = {
        "b1": (3, 96, 11),
        "b2": (96, 256, 5),
        "b3": (256, 384, 3),
        "b4": (384, num_classes, 3),
    }
    params = {}
    for name, (cin, cout, k) in blocks.items():
        cpad = 128 if (name == "b4" and cout < 128) else cout
        # (true_cin, padded_cin, kernel) for the kxk conv and the two 1x1 convs.
        layer_dims = [(cin, cin, k), (cout, cpad, 1), (cout, cpad, 1)]
        blk = []
        for true_cin, pad_cin, kk in layer_dims:
            key, wk = jax.random.split(key)
            std = (2.0 / (kk * kk * cout)) ** 0.5
            w = jax.random.normal(wk, (kk * kk * true_cin, cout),
                                  jnp.float32) * std
            w_pad = jnp.zeros((kk * kk * pad_cin, cpad), jnp.float32)
            w_pad = w_pad.at[:kk * kk * true_cin, :cout].set(w)
            blk.append((w_pad.astype(jnp.bfloat16),
                        jnp.zeros((1, cpad), jnp.float32)))
        params[name] = blk
    return params


@functools.partial(jax.jit, static_argnums=2)
def nin_forward(x_nchw, params, num_classes):
    x = jnp.transpose(x_nchw, (0, 2, 3, 1)).astype(jnp.bfloat16)  # NCHW -> NHWC
    x = nin_block(x, params["b1"], 11, 4, 2)
    x = maxpool3x3s2(x)
    x = nin_block(x, params["b2"], 5, 1, 2)
    x = maxpool3x3s2(x)
    x = nin_block(x, params["b3"], 3, 1, 1)
    x = maxpool3x3s2(x)
    # nn.Dropout(0.5) is identity in eval mode.
    # TODO(synk): training-mode stochastic dropout (RNG masking) not implemented.
    x = nin_block(x, params["b4"], 3, 1, 1, out_dtype=jnp.float32)
    logits = global_avgpool_flatten(x)        # (N, padded classes)
    return logits[:, :num_classes]            # strip the lane padding


if __name__ == "__main__":
    num_classes = 10
    key = jax.random.PRNGKey(0)
    pkey, xkey = jax.random.split(key)
    params = init_params(pkey, num_classes)
    # 3 input channels; 67x67 is the smallest spatial size that survives the
    # 11x11/stride-4 conv and all three 3x3/stride-2 maxpools down to 1x1.
    x = jax.random.normal(xkey, (2, 3, 67, 67), jnp.float32)   # NCHW, like PyTorch
    out = jax.block_until_ready(nin_forward(x, params, num_classes))
    assert out.shape == (2, num_classes), out.shape
    assert bool(jnp.all(jnp.isfinite(out)))
    print("KERNEL_OK")
</pallas_src>

<mosaic_0001>
module attributes {stable_mosaic.version = 11 : i64} {
  func.func @_nin_block_kernel(%arg0: i32, %arg1: memref<256x363xbf16, #tpu.memory_space<vmem>>, %arg2: memref<363x96xbf16, #tpu.memory_space<vmem>>, %arg3: memref<1x96xf32, #tpu.memory_space<vmem>>, %arg4: memref<96x96xbf16, #tpu.memory_space<vmem>>, %arg5: memref<1x96xf32, #tpu.memory_space<vmem>>, %arg6: memref<96x96xbf16, #tpu.memory_space<vmem>>, %arg7: memref<1x96xf32, #tpu.memory_space<vmem>>, %arg8: memref<256x96xbf16, #tpu.memory_space<vmem>>) attributes {dimension_semantics = [#tpu.dimension_semantics<parallel>], iteration_bounds = array<i64: 2>, scalar_prefetch = 0 : i64, scratch_operands = 0 : i64, tpu.core_type = #tpu.core_type<tc>, window_params = [{transform_indices = @transform_0, window_bounds = array<i64: 256, 363>}, {pipeline_mode = #tpu.pipeline_mode<synchronous>, transform_indices = @transform_1, window_bounds = array<i64: 363, 96>}, {pipeline_mode = #tpu.pipeline_mode<synchronous>, transform_indices = @transform_2, window_bounds = array<i64: 1, 96>}, {pipeline_mode = #tpu.pipeline_mode<synchronous>, transform_indices = @transform_3, window_bounds = array<i64: 96, 96>}, {pipeline_mode = #tpu.pipeline_mode<synchronous>, transform_indices = @transform_4, window_bounds = array<i64: 1, 96>}, {pipeline_mode = #tpu.pipeline_mode<synchronous>, transform_indices = @transform_5, window_bounds = array<i64: 96, 96>}, {pipeline_mode = #tpu.pipeline_mode<synchronous>, transform_indices = @transform_6, window_bounds = array<i64: 1, 96>}, {transform_indices = @transform_7, window_bounds = array<i64: 256, 96>}]} {
    %c0 = arith.constant 0 : index
    %c0_0 = arith.constant 0 : index
    %0 = vector.load %arg1[%c0, %c0_0] : memref<256x363xbf16, #tpu.memory_space<vmem>>, vector<256x363xbf16>
    %c0_1 = arith.constant 0 : index
    %c0_2 = arith.constant 0 : index
    %1 = vector.load %arg2[%c0_1, %c0_2] : memref<363x96xbf16, #tpu.memory_space<vmem>>, vector<363x96xbf16>
    %cst = arith.constant dense<0.000000e+00> : vector<256x96xf32>
    %2 = tpu.matmul %0, %1, %cst {dimension_numbers = #tpu.dot_dimension_numbers<[1], [0], [0], [1], [0, 0, 1, 1], [], []>} : vector<256x363xbf16>, vector<363x96xbf16>, vector<256x96xf32> -> vector<256x96xf32>
    %c0_3 = arith.constant 0 : index
    %c0_4 = arith.constant 0 : index
    %3 = vector.load %arg3[%c0_3, %c0_4] : memref<1x96xf32, #tpu.memory_space<vmem>>, vector<1x96xf32>
    %4 = vector.broadcast %3 : vector<1x96xf32> to vector<256x96xf32>
    %5 = arith.addf %2, %4 : vector<256x96xf32>
    %cst_5 = arith.constant 0.000000e+00 : f32
    %6 = vector.broadcast %cst_5 : f32 to vector<256x96xf32>
    %7 = arith.maximumf %5, %6 : vector<256x96xf32>
    %8 = arith.truncf %7 : vector<256x96xf32> to vector<256x96xbf16>
    %c0_6 = arith.constant 0 : index
    %c0_7 = arith.constant 0 : index
    %9 = vector.load %arg4[%c0_6, %c0_7] : memref<96x96xbf16, #tpu.memory_space<vmem>>, vector<96x96xbf16>
    %cst_8 = arith.constant dense<0.000000e+00> : vector<256x96xf32>
    %10 = tpu.matmul %8, %9, %cst_8 {dimension_numbers = #tpu.dot_dimension_numbers<[1], [0], [0], [1], [0, 0, 1, 1], [], []>} : vector<256x96xbf16>, vector<96x96xbf16>, vector<256x96xf32> -> vector<256x96xf32>
    %c0_9 = arith.constant 0 : index
    %c0_10 = arith.constant 0 : index
    %11 = vector.load %arg5[%c0_9, %c0_10] : memref<1x96xf32, #tpu.memory_space<vmem>>, vector<1x96xf32>
    %12 = vector.broadcast %11 : vector<1x96xf32> to vector<256x96xf32>
    %13 = arith.addf %10, %12 : vector<256x96xf32>
    %cst_11 = arith.constant 0.000000e+00 : f32
    %14 = vector.broadcast %cst_11 : f32 to vector<256x96xf32>
    %15 = arith.maximumf %13, %14 : vector<256x96xf32>
    %16 = arith.truncf %15 : vector<256x96xf32> to vector<256x96xbf16>
    %c0_12 = arith.constant 0 : index
    %c0_13 = arith.constant 0 : index
    %17 = vector.load %arg6[%c0_12, %c0_13] : memref<96x96xbf16, #tpu.memory_space<vmem>>, vector<96x96xbf16>
    %cst_14 = arith.constant dense<0.000000e+00> : vector<256x96xf32>
    %18 = tpu.matmul %16, %17, %cst_14 {dimension_numbers = #tpu.dot_dimension_numbers<[1], [0], [0], [1], [0, 0, 1, 1], [], []>} : vector<256x96xbf16>, vector<96x96xbf16>, vector<256x96xf32> -> vector<256x96xf32>
    %c0_15 = arith.constant 0 : index
    %c0_16 = arith.constant 0 : index
    %19 = vector.load %arg7[%c0_15, %c0_16] : memref<1x96xf32, #tpu.memory_space<vmem>>, vector<1x96xf32>
    %20 = vector.broadcast %19 : vector<1x96xf32> to vector<256x96xf32>
    %21 = arith.addf %18, %20 : vector<256x96xf32>
    %cst_17 = arith.constant 0.000000e+00 : f32
    %22 = vector.broadcast %cst_17 : f32 to vector<256x96xf32>
    %23 = arith.maximumf %21, %22 : vector<256x96xf32>
    %24 = arith.truncf %23 : vector<256x96xf32> to vector<256x96xbf16>
    %c0_18 = arith.constant 0 : index
    %c0_19 = arith.constant 0 : index
    %25 = vector.load %arg8[%c0_18, %c0_19] : memref<256x96xbf16, #tpu.memory_space<vmem>>, vector<256x96xbf16>
    tpu.vector_store %arg8[%c0_18, %c0_19], %24 {strides = array<i32>} : memref<256x96xbf16, #tpu.memory_space<vmem>>, vector<256x96xbf16>,
    return
  }
  func.func @transform_0(%arg0: i32) -> (i32, i32) {
    %c0_i32 = arith.constant 0 : i32
    %c0_i32_0 = arith.constant 0 : i32
    return %arg0, %c0_i32 : i32, i32
  }
  func.func @transform_1(%arg0: i32) -> (i32, i32) {
    %c0_i32 = arith.constant 0 : i32
    %c0_i32_0 = arith.constant 0 : i32
    %c0_i32_1 = arith.constant 0 : i32
    return %c0_i32, %c0_i32_0 : i32, i32
  }
  func.func @transform_2(%arg0: i32) -> (i32, i32) {
    %c0_i32 = arith.constant 0 : i32
    %c0_i32_0 = arith.constant 0 : i32
    %c0_i32_1 = arith.constant 0 : i32
    return %c0_i32, %c0_i32_0 : i32, i32
  }
  func.func @transform_3(%arg0: i32) -> (i32, i32) {
    %c0_i32 = arith.constant 0 : i32
    %c0_i32_0 = arith.constant 0 : i32
    %c0_i32_1 = arith.constant 0 : i32
    return %c0_i32, %c0_i32_0 : i32, i32
  }
  func.func @transform_4(%arg0: i32) -> (i32, i32) {
    %c0_i32 = arith.constant 0 : i32
    %c0_i32_0 = arith.constant 0 : i32
    %c0_i32_1 = arith.constant 0 : i32
    return %c0_i32, %c0_i32_0 : i32, i32
  }
  func.func @transform_5(%arg0: i32) -> (i32, i32) {
    %c0_i32 = arith.constant 0 : i32
    %c0_i32_0 = arith.constant 0 : i32
    %c0_i32_1 = arith.constant 0 : i32
    return %c0_i32, %c0_i32_0 : i32, i32
  }
  func.func @transform_6(%arg0: i32) -> (i32, i32) {
    %c0_i32 = arith.constant 0 : i32
    %c0_i32_0 = arith.constant 0 : i32
    %c0_i32_1 = arith.constant 0 : i32
    return %c0_i32, %c0_i32_0 : i32, i32
  }
  func.func @transform_7(%arg0: i32) -> (i32, i32) {
    %c0_i32 = arith.constant 0 : i32
    %c0_i32_0 = arith.constant 0 : i32
    return %arg0, %c0_i32 : i32, i32
  }
}

module attributes {stable_mosaic.version = 11 : i64} {
  func.func @_maxpool_kernel(%arg0: i32, %arg1: memref<9x98x96xbf16, #tpu.memory_space<vmem>>, %arg2: memref<98x96xbf16, #tpu.memory_space<vmem>>) attributes {dimension_semantics = [#tpu.dimension_semantics<parallel>], iteration_bounds = array<i64: 1>, scalar_prefetch = 0 : i64, scratch_operands = 0 : i64, tpu.core_type = #tpu.core_type<tc>, window_params = [{transform_indices = @transform_0, window_bounds = array<i64: 9, 98, 96>}, {transform_indices = @transform_1, window_bounds = array<i64: 98, 96>}]} {
    %c0 = arith.constant 0 : index
    %c0_0 = arith.constant 0 : index
    %c0_1 = arith.constant 0 : index
    %0 = vector.load %arg1[%c0, %c0_0, %c0_1] : memref<9x98x96xbf16, #tpu.memory_space<vmem>>, vector<9x98x96xbf16>
    %cst = arith.constant dense<0xFF80> : vector<98x96xbf16>
    %1 = vector.multi_reduction <maximumf>, %0, %cst [0] : vector<9x98x96xbf16> to vector<98x96xbf16>
    %c0_2 = arith.constant 0 : index
    %c0_3 = arith.constant 0 : index
    %2 = vector.load %arg2[%c0_2, %c0_3] : memref<98x96xbf16, #tpu.memory_space<vmem>>, vector<98x96xbf16>
    tpu.vector_store %arg2[%c0_2, %c0_3], %1 {strides = array<i32>} : memref<98x96xbf16, #tpu.memory_space<vmem>>, vector<98x96xbf16>,
    return
  }
  func.func @transform_0(%arg0: i32) -> (i32, i32, i32) {
    %c0_i32 = arith.constant 0 : i32
    %c0_i32_0 = arith.constant 0 : i32
    %c0_i32_1 = arith.constant 0 : i32
    return %c0_i32, %arg0, %c0_i32_0 : i32, i32, i32
  }
  func.func @transform_1(%arg0: i32) -> (i32, i32) {
    %c0_i32 = arith.constant 0 : i32
    %c0_i32_0 = arith.constant 0 : i32
    return %arg0, %c0_i32 : i32, i32
  }
}

module attributes {stable_mosaic.version = 11 : i64} {
  func.func @_nin_block_kernel(%arg0: i32, %arg1: memref<98x2400xbf16, #tpu.memory_space<vmem>>, %arg2: memref<2400x256xbf16, #tpu.memory_space<vmem>>, %arg3: memref<1x256xf32, #tpu.memory_space<vmem>>, %arg4: memref<256x256xbf16, #tpu.memory_space<vmem>>, %arg5: memref<1x256xf32, #tpu.memory_space<vmem>>, %arg6: memref<256x256xbf16, #tpu.memory_space<vmem>>, %arg7: memref<1x256xf32, #tpu.memory_space<vmem>>, %arg8: memref<98x256xbf16, #tpu.memory_space<vmem>>) attributes {dimension_semantics = [#tpu.dimension_semantics<parallel>], iteration_bounds = array<i64: 1>, scalar_prefetch = 0 : i64, scratch_operands = 0 : i64, tpu.core_type = #tpu.core_type<tc>, window_params = [{transform_indices = @transform_0, window_bounds = array<i64: 98, 2400>}, {pipeline_mode = #tpu.pipeline_mode<synchronous>, transform_indices = @transform_1, window_bounds = array<i64: 2400, 256>}, {pipeline_mode = #tpu.pipeline_mode<synchronous>, transform_indices = @transform_2, window_bounds = array<i64: 1, 256>}, {pipeline_mode = #tpu.pipeline_mode<synchronous>, transform_indices = @transform_3, window_bounds = array<i64: 256, 256>}, {pipeline_mode = #tpu.pipeline_mode<synchronous>, transform_indices = @transform_4, window_bounds = array<i64: 1, 256>}, {pipeline_mode = #tpu.pipeline_mode<synchronous>, transform_indices = @transform_5, window_bounds = array<i64: 256, 256>}, {pipeline_mode = #tpu.pipeline_mode<synchronous>, transform_indices = @transform_6, window_bounds = array<i64: 1, 256>}, {transform_indices = @transform_7, window_bounds = array<i64: 98, 256>}]} {
    %c0 = arith.constant 0 : index
    %c0_0 = arith.constant 0 : index
    %0 = vector.load %arg1[%c0, %c0_0] : memref<98x2400xbf16, #tpu.memory_space<vmem>>, vector<98x2400xbf16>
    %c0_1 = arith.constant 0 : index
    %c0_2 = arith.constant 0 : index
    %1 = vector.load %arg2[%c0_1, %c0_2] : memref<2400x256xbf16, #tpu.memory_space<vmem>>, vector<2400x256xbf16>
    %cst = arith.constant dense<0.000000e+00> : vector<98x256xf32>
    %2 = tpu.matmul %0, %1, %cst {dimension_numbers = #tpu.dot_dimension_numbers<[1], [0], [0], [1], [0, 0, 1, 1], [], []>} : vector<98x2400xbf16>, vector<2400x256xbf16>, vector<98x256xf32> -> vector<98x256xf32>
    %c0_3 = arith.constant 0 : index
    %c0_4 = arith.constant 0 : index
    %3 = vector.load %arg3[%c0_3, %c0_4] : memref<1x256xf32, #tpu.memory_space<vmem>>, vector<1x256xf32>
    %4 = vector.broadcast %3 : vector<1x256xf32> to vector<98x256xf32>
    %5 = arith.addf %2, %4 : vector<98x256xf32>
    %cst_5 = arith.constant 0.000000e+00 : f32
    %6 = vector.broadcast %cst_5 : f32 to vector<98x256xf32>
    %7 = arith.maximumf %5, %6 : vector<98x256xf32>
    %8 = arith.truncf %7 : vector<98x256xf32> to vector<98x256xbf16>
    %c0_6 = arith.constant 0 : index
    %c0_7 = arith.constant 0 : index
    %9 = vector.load %arg4[%c0_6, %c0_7] : memref<256x256xbf16, #tpu.memory_space<vmem>>, vector<256x256xbf16>
    %cst_8 = arith.constant dense<0.000000e+00> : vector<98x256xf32>
    %10 = tpu.matmul %8, %9, %cst_8 {dimension_numbers = #tpu.dot_dimension_numbers<[1], [0], [0], [1], [0, 0, 1, 1], [], []>} : vector<98x256xbf16>, vector<256x256xbf16>, vector<98x256xf32> -> vector<98x256xf32>
    %c0_9 = arith.constant 0 : index
    %c0_10 = arith.constant 0 : index
    %11 = vector.load %arg5[%c0_9, %c0_10] : memref<1x256xf32, #tpu.memory_space<vmem>>, vector<1x256xf32>
    %12 = vector.broadcast %11 : vector<1x256xf32> to vector<98x256xf32>
    %13 = arith.addf %10, %12 : vector<98x256xf32>
    %cst_11 = arith.constant 0.000000e+00 : f32
    %14 = vector.broadcast %cst_11 : f32 to vector<98x256xf32>
    %15 = arith.maximumf %13, %14 : vector<98x256xf32>
    %16 = arith.truncf %15 : vector<98x256xf32> to vector<98x256xbf16>
    %c0_12 = arith.constant 0 : index
    %c0_13 = arith.constant 0 : index
    %17 = vector.load %arg6[%c0_12, %c0_13] : memref<256x256xbf16, #tpu.memory_space<vmem>>, vector<256x256xbf16>
    %cst_14 = arith.constant dense<0.000000e+00> : vector<98x256xf32>
    %18 = tpu.matmul %16, %17, %cst_14 {dimension_numbers = #tpu.dot_dimension_numbers<[1], [0], [0], [1], [0, 0, 1, 1], [], []>} : vector<98x256xbf16>, vector<256x256xbf16>, vector<98x256xf32> -> vector<98x256xf32>
    %c0_15 = arith.constant 0 : index
    %c0_16 = arith.constant 0 : index
    %19 = vector.load %arg7[%c0_15, %c0_16] : memref<1x256xf32, #tpu.memory_space<vmem>>, vector<1x256xf32>
    %20 = vector.broadcast %19 : vector<1x256xf32> to vector<98x256xf32>
    %21 = arith.addf %18, %20 : vector<98x256xf32>
    %cst_17 = arith.constant 0.000000e+00 : f32
    %22 = vector.broadcast %cst_17 : f32 to vector<98x256xf32>
    %23 = arith.maximumf %21, %22 : vector<98x256xf32>
    %24 = arith.truncf %23 : vector<98x256xf32> to vector<98x256xbf16>
    %c0_18 = arith.constant 0 : index
    %c0_19 = arith.constant 0 : index
    %25 = vector.load %arg8[%c0_18, %c0_19] : memref<98x256xbf16, #tpu.memory_space<vmem>>, vector<98x256xbf16>
    tpu.vector_store %arg8[%c0_18, %c0_19], %24 {strides = array<i32>} : memref<98x256xbf16, #tpu.memory_space<vmem>>, vector<98x256xbf16>,
    return
  }
  func.func @transform_0(%arg0: i32) -> (i32, i32) {
    %c0_i32 = arith.constant 0 : i32
    %c0_i32_0 = arith.constant 0 : i32
    return %arg0, %c0_i32 : i32, i32
  }
  func.func @transform_1(%arg0: i32) -> (i32, i32) {
    %c0_i32 = arith.constant 0 : i32
    %c0_i32_0 = arith.constant 0 : i32
    %c0_i32_1 = arith.constant 0 : i32
    return %c0_i32, %c0_i32_0 : i32, i32
  }
  func.func @transform_2(%arg0: i32) -> (i32, i32) {
    %c0_i32 = arith.constant 0 : i32
    %c0_i32_0 = arith.constant 0 : i32
    %c0_i32_1 = arith.constant 0 : i32
    return %c0_i32, %c0_i32_0 : i32, i32
  }
  func.func @transform_3(%arg0: i32) -> (i32, i32) {
    %c0_i32 = arith.constant 0 : i32
    %c0_i32_0 = arith.constant 0 : i32
    %c0_i32_1 = arith.constant 0 : i32
    return %c0_i32, %c0_i32_0 : i32, i32
  }
  func.func @transform_4(%arg0: i32) -> (i32, i32) {
    %c0_i32 = arith.constant 0 : i32
    %c0_i32_0 = arith.constant 0 : i32
    %c0_i32_1 = arith.constant 0 : i32
    return %c0_i32, %c0_i32_0 : i32, i32
  }
  func.func @transform_5(%arg0: i32) -> (i32, i32) {
    %c0_i32 = arith.constant 0 : i32
    %c0_i32_0 = arith.constant 0 : i32
    %c0_i32_1 = arith.constant 0 : i32
    return %c0_i32, %c0_i32_0 : i32, i32
  }
  func.func @transform_6(%arg0: i32) -> (i32, i32) {
    %c0_i32 = arith.constant 0 : i32
    %c0_i32_0 = arith.constant 0 : i32
    %c0_i32_1 = arith.constant 0 : i32
    return %c0_i32, %c0_i32_0 : i32, i32
  }
  func.func @transform_7(%arg0: i32) -> (i32, i32) {
    %c0_i32 = arith.constant 0 : i32
    %c0_i32_0 = arith.constant 0 : i32
    return %arg0, %c0_i32 : i32, i32
  }
}

module attributes {stable_mosaic.version = 11 : i64} {
  func.func @_maxpool_kernel(%arg0: i32, %arg1: memref<9x18x256xbf16, #tpu.memory_space<vmem>>, %arg2: memref<18x256xbf16, #tpu.memory_space<vmem>>) attributes {dimension_semantics = [#tpu.dimension_semantics<parallel>], iteration_bounds = array<i64: 1>, scalar_prefetch = 0 : i64, scratch_operands = 0 : i64, tpu.core_type = #tpu.core_type<tc>, window_params = [{transform_indices = @transform_0, window_bounds = array<i64: 9, 18, 256>}, {transform_indices = @transform_1, window_bounds = array<i64: 18, 256>}]} {
    %c0 = arith.constant 0 : index
    %c0_0 = arith.constant 0 : index
    %c0_1 = arith.constant 0 : index
    %0 = vector.load %arg1[%c0, %c0_0, %c0_1] : memref<9x18x256xbf16, #tpu.memory_space<vmem>>, vector<9x18x256xbf16>
    %cst = arith.constant dense<0xFF80> : vector<18x256xbf16>
    %1 = vector.multi_reduction <maximumf>, %0, %cst [0] : vector<9x18x256xbf16> to vector<18x256xbf16>
    %c0_2 = arith.constant 0 : index
    %c0_3 = arith.constant 0 : index
    %2 = vector.load %arg2[%c0_2, %c0_3] : memref<18x256xbf16, #tpu.memory_space<vmem>>, vector<18x256xbf16>
    tpu.vector_store %arg2[%c0_2, %c0_3], %1 {strides = array<i32>} : memref<18x256xbf16, #tpu.memory_space<vmem>>, vector<18x256xbf16>,
    return
  }
  func.func @transform_0(%arg0: i32) -> (i32, i32, i32) {
    %c0_i32 = arith.constant 0 : i32
    %c0_i32_0 = arith.constant 0 : i32
    %c0_i32_1 = arith.constant 0 : i32
    return %c0_i32, %arg0, %c0_i32_0 : i32, i32, i32
  }
  func.func @transform_1(%arg0: i32) -> (i32, i32) {
    %c0_i32 = arith.constant 0 : i32
    %c0_i32_0 = arith.constant 0 : i32
    return %arg0, %c0_i32 : i32, i32
  }
}

module attributes {stable_mosaic.version = 11 : i64} {
  func.func @_nin_block_kernel(%arg0: i32, %arg1: memref<18x2304xbf16, #tpu.memory_space<vmem>>, %arg2: memref<2304x384xbf16, #tpu.memory_space<vmem>>, %arg3: memref<1x384xf32, #tpu.memory_space<vmem>>, %arg4: memref<384x384xbf16, #tpu.memory_space<vmem>>, %arg5: memref<1x384xf32, #tpu.memory_space<vmem>>, %arg6: memref<384x384xbf16, #tpu.memory_space<vmem>>, %arg7: memref<1x384xf32, #tpu.memory_space<vmem>>, %arg8: memref<18x384xbf16, #tpu.memory_space<vmem>>) attributes {dimension_semantics = [#tpu.dimension_semantics<parallel>], iteration_bounds = array<i64: 1>, scalar_prefetch = 0 : i64, scratch_operands = 0 : i64, tpu.core_type = #tpu.core_type<tc>, window_params = [{transform_indices = @transform_0, window_bounds = array<i64: 18, 2304>}, {pipeline_mode = #tpu.pipeline_mode<synchronous>, transform_indices = @transform_1, window_bounds = array<i64: 2304, 384>}, {pipeline_mode = #tpu.pipeline_mode<synchronous>, transform_indices = @transform_2, window_bounds = array<i64: 1, 384>}, {pipeline_mode = #tpu.pipeline_mode<synchronous>, transform_indices = @transform_3, window_bounds = array<i64: 384, 384>}, {pipeline_mode = #tpu.pipeline_mode<synchronous>, transform_indices = @transform_4, window_bounds = array<i64: 1, 384>}, {pipeline_mode = #tpu.pipeline_mode<synchronous>, transform_indices = @transform_5, window_bounds = array<i64: 384, 384>}, {pipeline_mode = #tpu.pipeline_mode<synchronous>, transform_indices = @transform_6, window_bounds = array<i64: 1, 384>}, {transform_indices = @transform_7, window_bounds = array<i64: 18, 384>}]} {
    %c0 = arith.constant 0 : index
    %c0_0 = arith.constant 0 : index
    %0 = vector.load %arg1[%c0, %c0_0] : memref<18x2304xbf16, #tpu.memory_space<vmem>>, vector<18x2304xbf16>
    %c0_1 = arith.constant 0 : index
    %c0_2 = arith.constant 0 : index
    %1 = vector.load %arg2[%c0_1, %c0_2] : memref<2304x384xbf16, #tpu.memory_space<vmem>>, vector<2304x384xbf16>
    %cst = arith.constant dense<0.000000e+00> : vector<18x384xf32>
    %2 = tpu.matmul %0, %1, %cst {dimension_numbers = #tpu.dot_dimension_numbers<[1], [0], [0], [1], [0, 0, 1, 1], [], []>} : vector<18x2304xbf16>, vector<2304x384xbf16>, vector<18x384xf32> -> vector<18x384xf32>
    %c0_3 = arith.constant 0 : index
    %c0_4 = arith.constant 0 : index
    %3 = vector.load %arg3[%c0_3, %c0_4] : memref<1x384xf32, #tpu.memory_space<vmem>>, vector<1x384xf32>
    %4 = vector.broadcast %3 : vector<1x384xf32> to vector<18x384xf32>
    %5 = arith.addf %2, %4 : vector<18x384xf32>
    %cst_5 = arith.constant 0.000000e+00 : f32
    %6 = vector.broadcast %cst_5 : f32 to vector<18x384xf32>
    %7 = arith.maximumf %5, %6 : vector<18x384xf32>
    %8 = arith.truncf %7 : vector<18x384xf32> to vector<18x384xbf16>
    %c0_6 = arith.constant 0 : index
    %c0_7 = arith.constant 0 : index
    %9 = vector.load %arg4[%c0_6, %c0_7] : memref<384x384xbf16, #tpu.memory_space<vmem>>, vector<384x384xbf16>
    %cst_8 = arith.constant dense<0.000000e+00> : vector<18x384xf32>
    %10 = tpu.matmul %8, %9, %cst_8 {dimension_numbers = #tpu.dot_dimension_numbers<[1], [0], [0], [1], [0, 0, 1, 1], [], []>} : vector<18x384xbf16>, vector<384x384xbf16>, vector<18x384xf32> -> vector<18x384xf32>
    %c0_9 = arith.constant 0 : index
    %c0_10 = arith.constant 0 : index
    %11 = vector.load %arg5[%c0_9, %c0_10] : memref<1x384xf32, #tpu.memory_space<vmem>>, vector<1x384xf32>
    %12 = vector.broadcast %11 : vector<1x384xf32> to vector<18x384xf32>
    %13 = arith.addf %10, %12 : vector<18x384xf32>
    %cst_11 = arith.constant 0.000000e+00 : f32
    %14 = vector.broadcast %cst_11 : f32 to vector<18x384xf32>
    %15 = arith.maximumf %13, %14 : vector<18x384xf32>
    %16 = arith.truncf %15 : vector<18x384xf32> to vector<18x384xbf16>
    %c0_12 = arith.constant 0 : index
    %c0_13 = arith.constant 0 : index
    %17 = vector.load %arg6[%c0_12, %c0_13] : memref<384x384xbf16, #tpu.memory_space<vmem>>, vector<384x384xbf16>
    %cst_14 = arith.constant dense<0.000000e+00> : vector<18x384xf32>
    %18 = tpu.matmul %16, %17, %cst_14 {dimension_numbers = #tpu.dot_dimension_numbers<[1], [0], [0], [1], [0, 0, 1, 1], [], []>} : vector<18x384xbf16>, vector<384x384xbf16>, vector<18x384xf32> -> vector<18x384xf32>
    %c0_15 = arith.constant 0 : index
    %c0_16 = arith.constant 0 : index
    %19 = vector.load %arg7[%c0_15, %c0_16] : memref<1x384xf32, #tpu.memory_space<vmem>>, vector<1x384xf32>
    %20 = vector.broadcast %19 : vector<1x384xf32> to vector<18x384xf32>
    %21 = arith.addf %18, %20 : vector<18x384xf32>
    %cst_17 = arith.constant 0.000000e+00 : f32
    %22 = vector.broadcast %cst_17 : f32 to vector<18x384xf32>
    %23 = arith.maximumf %21, %22 : vector<18x384xf32>
    %24 = arith.truncf %23 : vector<18x384xf32> to vector<18x384xbf16>
    %c0_18 = arith.constant 0 : index
    %c0_19 = arith.constant 0 : index
    %25 = vector.load %arg8[%c0_18, %c0_19] : memref<18x384xbf16, #tpu.memory_space<vmem>>, vector<18x384xbf16>
    tpu.vector_store %arg8[%c0_18, %c0_19], %24 {strides = array<i32>} : memref<18x384xbf16, #tpu.memory_space<vmem>>, vector<18x384xbf16>,
    return
  }
  func.func @transform_0(%arg0: i32) -> (i32, i32) {
    %c0_i32 = arith.constant 0 : i32
    %c0_i32_0 = arith.constant 0 : i32
    return %arg0, %c0_i32 : i32, i32
  }
  func.func @transform_1(%arg0: i32) -> (i32, i32) {
    %c0_i32 = arith.constant 0 : i32
    %c0_i32_0 = arith.constant 0 : i32
    %c0_i32_1 = arith.constant 0 : i32
    return %c0_i32, %c0_i32_0 : i32, i32
  }
  func.func @transform_2(%arg0: i32) -> (i32, i32) {
    %c0_i32 = arith.constant 0 : i32
    %c0_i32_0 = arith.constant 0 : i32
    %c0_i32_1 = arith.constant 0 : i32
    return %c0_i32, %c0_i32_0 : i32, i32
  }
  func.func @transform_3(%arg0: i32) -> (i32, i32) {
    %c0_i32 = arith.constant 0 : i32
    %c0_i32_0 = arith.constant 0 : i32
    %c0_i32_1 = arith.constant 0 : i32
    return %c0_i32, %c0_i32_0 : i32, i32
  }
  func.func @transform_4(%arg0: i32) -> (i32, i32) {
    %c0_i32 = arith.constant 0 : i32
    %c0_i32_0 = arith.constant 0 : i32
    %c0_i32_1 = arith.constant 0 : i32
    return %c0_i32, %c0_i32_0 : i32, i32
  }
  func.func @transform_5(%arg0: i32) -> (i32, i32) {
    %c0_i32 = arith.constant 0 : i32
    %c0_i32_0 = arith.constant 0 : i32
    %c0_i32_1 = arith.constant 0 : i32
    return %c0_i32, %c0_i32_0 : i32, i32
  }
  func.func @transform_6(%arg0: i32) -> (i32, i32) {
    %c0_i32 = arith.constant 0 : i32
    %c0_i32_0 = arith.constant 0 : i32
    %c0_i32_1 = arith.constant 0 : i32
    return %c0_i32, %c0_i32_0 : i32, i32
  }
  func.func @transform_7(%arg0: i32) -> (i32, i32) {
    %c0_i32 = arith.constant 0 : i32
    %c0_i32_0 = arith.constant 0 : i32
    return %arg0, %c0_i32 : i32, i32
  }
}

module attributes {stable_mosaic.version = 11 : i64} {
  func.func @_maxpool_kernel(%arg0: i32, %arg1: memref<9x2x384xbf16, #tpu.memory_space<vmem>>, %arg2: memref<2x384xbf16, #tpu.memory_space<vmem>>) attributes {dimension_semantics = [#tpu.dimension_semantics<parallel>], iteration_bounds = array<i64: 1>, scalar_prefetch = 0 : i64, scratch_operands = 0 : i64, tpu.core_type = #tpu.core_type<tc>, window_params = [{transform_indices = @transform_0, window_bounds = array<i64: 9, 2, 384>}, {transform_indices = @transform_1, window_bounds = array<i64: 2, 384>}]} {
    %c0 = arith.constant 0 : index
    %c0_0 = arith.constant 0 : index
    %c0_1 = arith.constant 0 : index
    %0 = vector.load %arg1[%c0, %c0_0, %c0_1] : memref<9x2x384xbf16, #tpu.memory_space<vmem>>, vector<9x2x384xbf16>
    %cst = arith.constant dense<0xFF80> : vector<2x384xbf16>
    %1 = vector.multi_reduction <maximumf>, %0, %cst [0] : vector<9x2x384xbf16> to vector<2x384xbf16>
    %c0_2 = arith.constant 0 : index
    %c0_3 = arith.constant 0 : index
    %2 = vector.load %arg2[%c0_2, %c0_3] : memref<2x384xbf16, #tpu.memory_space<vmem>>, vector<2x384xbf16>
    tpu.vector_store %arg2[%c0_2, %c0_3], %1 {strides = array<i32>} : memref<2x384xbf16, #tpu.memory_space<vmem>>, vector<2x384xbf16>,
    return
  }
  func.func @transform_0(%arg0: i32) -> (i32, i32, i32) {
    %c0_i32 = arith.constant 0 : i32
    %c0_i32_0 = arith.constant 0 : i32
    %c0_i32_1 = arith.constant 0 : i32
    return %c0_i32, %arg0, %c0_i32_0 : i32, i32, i32
  }
  func.func @transform_1(%arg0: i32) -> (i32, i32) {
    %c0_i32 = arith.constant 0 : i32
    %c0_i32_0 = arith.constant 0 : i32
    return %arg0, %c0_i32 : i32, i32
  }
}

module attributes {stable_mosaic.version = 11 : i64} {
  func.func @_nin_block_kernel(%arg0: i32, %arg1: memref<2x3456xbf16, #tpu.memory_space<vmem>>, %arg2: memref<3456x128xbf16, #tpu.memory_space<vmem>>, %arg3: memref<1x128xf32, #tpu.memory_space<vmem>>, %arg4: memref<128x128xbf16, #tpu.memory_space<vmem>>, %arg5: memref<1x128xf32, #tpu.memory_space<vmem>>, %arg6: memref<128x128xbf16, #tpu.memory_space<vmem>>, %arg7: memref<1x128xf32, #tpu.memory_space<vmem>>, %arg8: memref<2x128xf32, #tpu.memory_space<vmem>>) attributes {dimension_semantics = [#tpu.dimension_semantics<parallel>], iteration_bounds = array<i64: 1>, scalar_prefetch = 0 : i64, scratch_operands = 0 : i64, tpu.core_type = #tpu.core_type<tc>, window_params = [{transform_indices = @transform_0, window_bounds = array<i64: 2, 3456>}, {pipeline_mode = #tpu.pipeline_mode<synchronous>, transform_indices = @transform_1, window_bounds = array<i64: 3456, 128>}, {pipeline_mode = #tpu.pipeline_mode<synchronous>, transform_indices = @transform_2, window_bounds = array<i64: 1, 128>}, {pipeline_mode = #tpu.pipeline_mode<synchronous>, transform_indices = @transform_3, window_bounds = array<i64: 128, 128>}, {pipeline_mode = #tpu.pipeline_mode<synchronous>, transform_indices = @transform_4, window_bounds = array<i64: 1, 128>}, {pipeline_mode = #tpu.pipeline_mode<synchronous>, transform_indices = @transform_5, window_bounds = array<i64: 128, 128>}, {pipeline_mode = #tpu.pipeline_mode<synchronous>, transform_indices = @transform_6, window_bounds = array<i64: 1, 128>}, {transform_indices = @transform_7, window_bounds = array<i64: 2, 128>}]} {
    %c0 = arith.constant 0 : index
    %c0_0 = arith.constant 0 : index
    %0 = vector.load %arg1[%c0, %c0_0] : memref<2x3456xbf16, #tpu.memory_space<vmem>>, vector<2x3456xbf16>
    %c0_1 = arith.constant 0 : index
    %c0_2 = arith.constant 0 : index
    %1 = vector.load %arg2[%c0_1, %c0_2] : memref<3456x128xbf16, #tpu.memory_space<vmem>>, vector<3456x128xbf16>
    %cst = arith.constant dense<0.000000e+00> : vector<2x128xf32>
    %2 = tpu.matmul %0, %1, %cst {dimension_numbers = #tpu.dot_dimension_numbers<[1], [0], [0], [1], [0, 0, 1, 1], [], []>} : vector<2x3456xbf16>, vector<3456x128xbf16>, vector<2x128xf32> -> vector<2x128xf32>
    %c0_3 = arith.constant 0 : index
    %c0_4 = arith.constant 0 : index
    %3 = vector.load %arg3[%c0_3, %c0_4] : memref<1x128xf32, #tpu.memory_space<vmem>>, vector<1x128xf32>
    %4 = vector.broadcast %3 : vector<1x128xf32> to vector<2x128xf32>
    %5 = arith.addf %2, %4 : vector<2x128xf32>
    %cst_5 = arith.constant 0.000000e+00 : f32
    %6 = vector.broadcast %cst_5 : f32 to vector<2x128xf32>
    %7 = arith.maximumf %5, %6 : vector<2x128xf32>
    %8 = arith.truncf %7 : vector<2x128xf32> to vector<2x128xbf16>
    %c0_6 = arith.constant 0 : index
    %c0_7 = arith.constant 0 : index
    %9 = vector.load %arg4[%c0_6, %c0_7] : memref<128x128xbf16, #tpu.memory_space<vmem>>, vector<128x128xbf16>
    %cst_8 = arith.constant dense<0.000000e+00> : vector<2x128xf32>
    %10 = tpu.matmul %8, %9, %cst_8 {dimension_numbers = #tpu.dot_dimension_numbers<[1], [0], [0], [1], [0, 0, 1, 1], [], []>} : vector<2x128xbf16>, vector<128x128xbf16>, vector<2x128xf32> -> vector<2x128xf32>
    %c0_9 = arith.constant 0 : index
    %c0_10 = arith.constant 0 : index
    %11 = vector.load %arg5[%c0_9, %c0_10] : memref<1x128xf32, #tpu.memory_space<vmem>>, vector<1x128xf32>
    %12 = vector.broadcast %11 : vector<1x128xf32> to vector<2x128xf32>
    %13 = arith.addf %10, %12 : vector<2x128xf32>
    %cst_11 = arith.constant 0.000000e+00 : f32
    %14 = vector.broadcast %cst_11 : f32 to vector<2x128xf32>
    %15 = arith.maximumf %13, %14 : vector<2x128xf32>
    %16 = arith.truncf %15 : vector<2x128xf32> to vector<2x128xbf16>
    %c0_12 = arith.constant 0 : index
    %c0_13 = arith.constant 0 : index
    %17 = vector.load %arg6[%c0_12, %c0_13] : memref<128x128xbf16, #tpu.memory_space<vmem>>, vector<128x128xbf16>
    %cst_14 = arith.constant dense<0.000000e+00> : vector<2x128xf32>
    %18 = tpu.matmul %16, %17, %cst_14 {dimension_numbers = #tpu.dot_dimension_numbers<[1], [0], [0], [1], [0, 0, 1, 1], [], []>} : vector<2x128xbf16>, vector<128x128xbf16>, vector<2x128xf32> -> vector<2x128xf32>
    %c0_15 = arith.constant 0 : index
    %c0_16 = arith.constant 0 : index
    %19 = vector.load %arg7[%c0_15, %c0_16] : memref<1x128xf32, #tpu.memory_space<vmem>>, vector<1x128xf32>
    %20 = vector.broadcast %19 : vector<1x128xf32> to vector<2x128xf32>
    %21 = arith.addf %18, %20 : vector<2x128xf32>
    %cst_17 = arith.constant 0.000000e+00 : f32
    %22 = vector.broadcast %cst_17 : f32 to vector<2x128xf32>
    %23 = arith.maximumf %21, %22 : vector<2x128xf32>
    %c0_18 = arith.constant 0 : index
    %c0_19 = arith.constant 0 : index
    %24 = vector.load %arg8[%c0_18, %c0_19] : memref<2x128xf32, #tpu.memory_space<vmem>>, vector<2x128xf32>
    tpu.vector_store %arg8[%c0_18, %c0_19], %23 {strides = array<i32>} : memref<2x128xf32, #tpu.memory_space<vmem>>, vector<2x128xf32>,
    return
  }
  func.func @transform_0(%arg0: i32) -> (i32, i32) {
    %c0_i32 = arith.constant 0 : i32
    %c0_i32_0 = arith.constant 0 : i32
    return %arg0, %c0_i32 : i32, i32
  }
  func.func @transform_1(%arg0: i32) -> (i32, i32) {
    %c0_i32 = arith.constant 0 : i32
    %c0_i32_0 = arith.constant 0 : i32
    %c0_i32_1 = arith.constant 0 : i32
    return %c0_i32, %c0_i32_0 : i32, i32
  }
  func.func @transform_2(%arg0: i32) -> (i32, i32) {
    %c0_i32 = arith.constant 0 : i32
    %c0_i32_0 = arith.constant 0 : i32
    %c0_i32_1 = arith.constant 0 : i32
    return %c0_i32, %c0_i32_0 : i32, i32
  }
  func.func @transform_3(%arg0: i32) -> (i32, i32) {
    %c0_i32 = arith.constant 0 : i32
    %c0_i32_0 = arith.constant 0 : i32
    %c0_i32_1 = arith.constant 0 : i32
    return %c0_i32, %c0_i32_0 : i32, i32
  }
  func.func @transform_4(%arg0: i32) -> (i32, i32) {
    %c0_i32 = arith.constant 0 : i32
    %c0_i32_0 = arith.constant 0 : i32
    %c0_i32_1 = arith.constant 0 : i32
    return %c0_i32, %c0_i32_0 : i32, i32
  }
  func.func @transform_5(%arg0: i32) -> (i32, i32) {
    %c0_i32 = arith.constant 0 : i32
    %c0_i32_0 = arith.constant 0 : i32
    %c0_i32_1 = arith.constant 0 : i32
    return %c0_i32, %c0_i32_0 : i32, i32
  }
  func.func @transform_6(%arg0: i32) -> (i32, i32) {
    %c0_i32 = arith.constant 0 : i32
    %c0_i32_0 = arith.constant 0 : i32
    %c0_i32_1 = arith.constant 0 : i32
    return %c0_i32, %c0_i32_0 : i32, i32
  }
  func.func @transform_7(%arg0: i32) -> (i32, i32) {
    %c0_i32 = arith.constant 0 : i32
    %c0_i32_0 = arith.constant 0 : i32
    return %arg0, %c0_i32 : i32, i32
  }
}

</mosaic_0001>

<bundles_post_ra>
// kernel: nin_forward.8
= control target key start
LH: loop header
LB: loop body
LE: loop exit
PB: predicated region body
PF: predicated region fallthrough
CT: control target
= control target key end

     0   :  { %vm126_vm0 = vcmask 781312   ;;  %vm548_vm1 = vcmask 778240   ;;  %s1131_s0 = inlined_call_operand.vmem [shape: bf16[9,98,96], index: 0, kind: input, shape index: {}]   ;;  %s1132_s1 = inlined_call_operand.vmem [shape: bf16[98,96], index: 1, kind: output, shape index: {}]  }
   0x1   :  { %v9_v0 = vld [vmem:[%s1131_s0] sm:$0xf]  ;;  %v22_v1 = vld [vmem:[%s1131_s0 + $0x34] sm:$0xf]  ;;  %v35_v2 = vld [vmem:[%s1131_s0 + $0x68] sm:$0xf] }
   0x2   :  { %v48_v3 = vld [vmem:[%s1131_s0 + $0x9c] sm:$0xf]  ;;  %v129_v4 = vsel %vm126_vm0, %v9_v0, 4286644096  ;;  %v132_v5 = vsel %vm126_vm0, %v22_v1, 4286644096 }
   0x3   :  { %v136_v6 = vsel %vm126_vm0, %v35_v2, 4286644096  ;;  %v61_v7 = vld [vmem:[%s1131_s0 + $0xd0] sm:$0xf]  ;;  %v134_v8 = vmax.bf16 %v132_v5, %v129_v4  ;;  %v74_v9 = vld [vmem:[%s1131_s0 + $0x104] sm:$0xf] }
   0x4   :  { %v140_v10 = vsel %vm126_vm0, %v48_v3, 4286644096  ;;  %v10_v12 = vld [vmem:[%s1131_s0 + $0x4] sm:$0xf]  ;;  %v23_v13 = vld [vmem:[%s1131_s0 + $0x38] sm:$0xf] }
   0x5   :  { %v138_v11 = vmax.bf16 %v136_v6, %v134_v8  ;;  %v36_v14 = vld [vmem:[%s1131_s0 + $0x6c] sm:$0xf]  ;;  %v144_v15 = vsel %vm126_vm0, %v61_v7, 4286644096  ;;  %v87_v16 = vld [vmem:[%s1131_s0 + $0x138] sm:$0xf] }
   0x6   :  { %v148_v18 = vsel %vm126_vm0, %v74_v9, 4286644096  ;;  %v49_v19 = vld [vmem:[%s1131_s0 + $0xa0] sm:$0xf]  ;;  %v164_v20 = vsel %vm126_vm0, %v10_v12, 4286644096 }
   0x7   :  { %v142_v17 = vmax.bf16 %v140_v10, %v138_v11  ;;  %v167_v21 = vsel %vm126_vm0, %v23_v13, 4286644096  ;;  %v171_v22 = vsel %vm126_vm0, %v36_v14, 4286644096  ;;  %v100_v23 = vld [vmem:[%s1131_s0 + $0x16c] sm:$0xf] }
   0x8   :  { %v113_v24 = vld [vmem:[%s1131_s0 + $0x1a0] sm:$0xf]  ;;  %v62_v26 = vld [vmem:[%s1131_s0 + $0xd4] sm:$0xf]  ;;  %v169_v27 = vmax.bf16 %v167_v21, %v164_v20  ;;  %v152_v28 = vsel %vm126_vm0, %v87_v16, 4286644096 }
   0x9   :  { %v146_v25 = vmax.bf16 %v144_v15, %v142_v17  ;;  %v75_v29 = vld [vmem:[%s1131_s0 + $0x108] sm:$0xf]  ;;  %v175_v30 = vsel %vm126_vm0, %v49_v19, 4286644096  ;;  %v24_v34 = vld [vmem:[%s1131_s0 + $0x3c] sm:$0xf] }
   0xa   :  { %v173_v32 = vmax.bf16 %v171_v22, %v169_v27  ;;  %v11_v33 = vld [vmem:[%s1131_s0 + $0x8] sm:$0xf]  ;;  %v37_v35 = vld [vmem:[%s1131_s0 + $0x70] sm:$0xf]  ;;  %v156_v36 = vsel %vm126_vm0, %v100_v23, 4286644096 }
   0xb   :  { %v150_v31 = vmax.bf16 %v148_v18, %v146_v25  ;;  %v160_v37 = vsel %vm126_vm0, %v113_v24, 4286644096  ;;  %v179_v38 = vsel %vm126_vm0, %v62_v26, 4286644096  ;;  %v88_v40 = vld [vmem:[%s1131_s0 + $0x13c] sm:$0xf] }
   0xc   :  { %v177_v41 = vmax.bf16 %v175_v30, %v173_v32  ;;  %v183_v42 = vsel %vm126_vm0, %v75_v29, 4286644096  ;;  %v50_v43 = vld [vmem:[%s1131_s0 + $0xa4] sm:$0xf]  ;;  %v199_v44 = vsel %vm126_vm0, %v11_v33, 4286644096 }
   0xd   :  { %v154_v39 = vmax.bf16 %v152_v28, %v150_v31  ;;  %v202_v45 = vsel %vm126_vm0, %v24_v34, 4286644096  ;;  %v206_v46 = vsel %vm126_vm0, %v37_v35, 4286644096  ;;  %v101_v48 = vld [vmem:[%s1131_s0 + $0x170] sm:$0xf] }
   0xe   :  { %v114_v49 = vld [vmem:[%s1131_s0 + $0x1a4] sm:$0xf]  ;;  %v181_v50 = vmax.bf16 %v179_v38, %v177_v41  ;;  %v63_v51 = vld [vmem:[%s1131_s0 + $0xd8] sm:$0xf]  ;;  %v204_v52 = vmax.bf16 %v202_v45, %v199_v44  ;;  %v187_v53 = vsel %vm126_vm0, %v88_v40, 4286644096 }
   0xf   :  { %v158_v47 = vmax.bf16 %v156_v36, %v154_v39  ;;  %v76_v54 = vld [vmem:[%s1131_s0 + $0x10c] sm:$0xf]  ;;  %v210_v55 = vsel %vm126_vm0, %v50_v43, 4286644096  ;;  %v25_v60 = vld [vmem:[%s1131_s0 + $0x40] sm:$0xf] }
  0x10   :  { %v185_v57 = vmax.bf16 %v183_v42, %v181_v50  ;;  %v208_v58 = vmax.bf16 %v206_v46, %v204_v52  ;;  %v12_v59 = vld [vmem:[%s1131_s0 + $0xc] sm:$0xf]  ;;  %v38_v61 = vld [vmem:[%s1131_s0 + $0x74] sm:$0xf]  ;;  %v191_v62 = vsel %vm126_vm0, %v101_v48, 4286644096 }
  0x11   :  { %v162_v56 = vmax.bf16 %v160_v37, %v158_v47  ;;  %v195_v63 = vsel %vm126_vm0, %v114_v49, 4286644096  ;;  %v214_v0 = vsel %vm126_vm0, %v63_v51, 4286644096  ;;  %v89_v2 = vld [vmem:[%s1131_s0 + $0x140] sm:$0xf] }
  0x12   :  { %v189_v1 = vmax.bf16 %v187_v53, %v185_v57  ;;  %v212_v3 = vmax.bf16 %v210_v55, %v208_v58  ;;  %v218_v4 = vsel %vm126_vm0, %v76_v54, 4286644096  ;;  %v51_v5 = vld [vmem:[%s1131_s0 + $0xa8] sm:$0xf]  ;;  %v234_v6 = vsel %vm126_vm0, %v12_v59, 4286644096 }
  0x13   :  { %584 = vst.msk [vmem:[%s1132_s1] sm:$0xf] %vm126_vm0, %v162_v56  ;;  %v237_v7 = vsel %vm126_vm0, %v25_v60, 4286644096  ;;  %v241_v8 = vsel %vm126_vm0, %v38_v61, 4286644096 }
  0x14   :  { %v193_v9 = vmax.bf16 %v191_v62, %v189_v1  ;;  %v102_v10 = vld [vmem:[%s1131_s0 + $0x174] sm:$0xf]  ;;  %v115_v11 = vld [vmem:[%s1131_s0 + $0x1a8] sm:$0xf]  ;;  %v216_v12 = vmax.bf16 %v214_v0, %v212_v3  ;;  %v64_v13 = vld [vmem:[%s1131_s0 + $0xdc] sm:$0xf]  ;;  %v239_v14 = vmax.bf16 %v237_v7, %v234_v6 }
  0x15   :  { %v222_v15 = vsel %vm126_vm0, %v89_v2, 4286644096  ;;  %v77_v16 = vld [vmem:[%s1131_s0 + $0x110] sm:$0xf]  ;;  %v245_v17 = vsel %vm126_vm0, %v51_v5, 4286644096 }
  0x16   :  { %v197_v18 = vmax.bf16 %v195_v63, %v193_v9  ;;  %v220_v19 = vmax.bf16 %v218_v4, %v216_v12  ;;  %v243_v20 = vmax.bf16 %v241_v8, %v239_v14  ;;  %v13_v21 = vld [vmem:[%s1131_s0 + $0x10] sm:$0xf]  ;;  %v26_v22 = vld [vmem:[%s1131_s0 + $0x44] sm:$0xf]  ;;  %v39_v23 = vld [vmem:[%s1131_s0 + $0x78] sm:$0xf] }
  0x17   :  { %v226_v24 = vsel %vm126_vm0, %v102_v10, 4286644096  ;;  %v230_v25 = vsel %vm126_vm0, %v115_v11, 4286644096  ;;  %v249_v26 = vsel %vm126_vm0, %v64_v13, 4286644096 }
  0x18   :  { %585 = vst.msk [vmem:[%s1132_s1 + $0x4] sm:$0xf] %vm126_vm0, %v197_v18  ;;  %v224_v27 = vmax.bf16 %v222_v15, %v220_v19  ;;  %v90_v28 = vld [vmem:[%s1131_s0 + $0x144] sm:$0xf]  ;;  %v247_v29 = vmax.bf16 %v245_v17, %v243_v20  ;;  %v253_v30 = vsel %vm126_vm0, %v77_v16, 4286644096 }
  0x19   :  { %v52_v31 = vld [vmem:[%s1131_s0 + $0xac] sm:$0xf]  ;;  %v269_v32 = vsel %vm126_vm0, %v13_v21, 4286644096  ;;  %v272_v33 = vsel %vm126_vm0, %v26_v22, 4286644096 }
  0x1a   :  { %v276_v34 = vsel %vm126_vm0, %v39_v23, 4286644096  ;;  %v228_v35 = vmax.bf16 %v226_v24, %v224_v27  ;;  %v103_v36 = vld [vmem:[%s1131_s0 + $0x178] sm:$0xf]  ;;  %v116_v37 = vld [vmem:[%s1131_s0 + $0x1ac] sm:$0xf]  ;;  %v251_v38 = vmax.bf16 %v249_v26, %v247_v29  ;;  %v274_v40 = vmax.bf16 %v272_v33, %v269_v32 }
  0x1b   :  { %v65_v39 = vld [vmem:[%s1131_s0 + $0xe0] sm:$0xf]  ;;  %v257_v41 = vsel %vm126_vm0, %v90_v28, 4286644096  ;;  %v78_v42 = vld [vmem:[%s1131_s0 + $0x114] sm:$0xf] }
  0x1c   :  { %v280_v43 = vsel %vm126_vm0, %v52_v31, 4286644096  ;;  %v232_v44 = vmax.bf16 %v230_v25, %v228_v35  ;;  %v255_v45 = vmax.bf16 %v253_v30, %v251_v38  ;;  %v278_v46 = vmax.bf16 %v276_v34, %v274_v40  ;;  %v14_v47 = vld [vmem:[%s1131_s0 + $0x14] sm:$0xf]  ;;  %v27_v48 = vld [vmem:[%s1131_s0 + $0x48] sm:$0xf] }
  0x1d   :  { %v40_v49 = vld [vmem:[%s1131_s0 + $0x7c] sm:$0xf]  ;;  %v261_v50 = vsel %vm126_vm0, %v103_v36, 4286644096  ;;  %v265_v51 = vsel %vm126_vm0, %v116_v37, 4286644096 }
  0x1e   :  { %v284_v52 = vsel %vm126_vm0, %v65_v39, 4286644096  ;;  %586 = vst.msk [vmem:[%s1132_s1 + $0x8] sm:$0xf] %vm126_vm0, %v232_v44  ;;  %v259_v53 = vmax.bf16 %v257_v41, %v255_v45  ;;  %v91_v54 = vld [vmem:[%s1131_s0 + $0x148] sm:$0xf]  ;;  %v282_v55 = vmax.bf16 %v280_v43, %v278_v46 }
  0x1f   :  { %v288_v56 = vsel %vm126_vm0, %v78_v42, 4286644096  ;;  %v53_v57 = vld [vmem:[%s1131_s0 + $0xb0] sm:$0xf]  ;;  %v304_v58 = vsel %vm126_vm0, %v14_v47, 4286644096 }
  0x20   :  { %v307_v59 = vsel %vm126_vm0, %v27_v48, 4286644096  ;;  %v311_v60 = vsel %vm126_vm0, %v40_v49, 4286644096  ;;  %v263_v61 = vmax.bf16 %v261_v50, %v259_v53  ;;  %v104_v62 = vld [vmem:[%s1131_s0 + $0x17c] sm:$0xf]  ;;  %v286_v0 = vmax.bf16 %v284_v52, %v282_v55 }
  0x21   :  { %v117_v63 = vld [vmem:[%s1131_s0 + $0x1b0] sm:$0xf]  ;;  %v66_v1 = vld [vmem:[%s1131_s0 + $0xe4] sm:$0xf]  ;;  %v309_v2 = vmax.bf16 %v307_v59, %v304_v58  ;;  %v292_v3 = vsel %vm126_vm0, %v91_v54, 4286644096 }
  0x22   :  { %v79_v4 = vld [vmem:[%s1131_s0 + $0x118] sm:$0xf]  ;;  %v315_v5 = vsel %vm126_vm0, %v53_v57, 4286644096  ;;  %v267_v6 = vmax.bf16 %v265_v51, %v263_v61  ;;  %v290_v7 = vmax.bf16 %v288_v56, %v286_v0  ;;  %v28_v10 = vld [vmem:[%s1131_s0 + $0x4c] sm:$0xf] }
  0x23   :  { %v313_v8 = vmax.bf16 %v311_v60, %v309_v2  ;;  %v15_v9 = vld [vmem:[%s1131_s0 + $0x18] sm:$0xf]  ;;  %v41_v11 = vld [vmem:[%s1131_s0 + $0x80] sm:$0xf]  ;;  %v296_v12 = vsel %vm126_vm0, %v104_v62, 4286644096 }
  0x24   :  { %v300_v13 = vsel %vm126_vm0, %v117_v63, 4286644096  ;;  %v319_v14 = vsel %vm126_vm0, %v66_v1, 4286644096  ;;  %587 = vst.msk [vmem:[%s1132_s1 + $0xc] sm:$0xf] %vm126_vm0, %v267_v6  ;;  %v294_v15 = vmax.bf16 %v292_v3, %v290_v7 }
  0x25   :  { %v92_v16 = vld [vmem:[%s1131_s0 + $0x14c] sm:$0xf]  ;;  %v317_v17 = vmax.bf16 %v315_v5, %v313_v8  ;;  %v323_v18 = vsel %vm126_vm0, %v79_v4, 4286644096  ;;  %v54_v19 = vld [vmem:[%s1131_s0 + $0xb4] sm:$0xf] }
  0x26   :  { %v339_v20 = vsel %vm126_vm0, %v15_v9, 4286644096  ;;  %v342_v21 = vsel %vm126_vm0, %v28_v10, 4286644096  ;;  %v346_v22 = vsel %vm126_vm0, %v41_v11, 4286644096  ;;  %v298_v23 = vmax.bf16 %v296_v12, %v294_v15 }
  0x27   :  { %v105_v24 = vld [vmem:[%s1131_s0 + $0x180] sm:$0xf]  ;;  %v118_v25 = vld [vmem:[%s1131_s0 + $0x1b4] sm:$0xf]  ;;  %v321_v26 = vmax.bf16 %v319_v14, %v317_v17  ;;  %v67_v27 = vld [vmem:[%s1131_s0 + $0xe8] sm:$0xf]  ;;  %v344_v28 = vmax.bf16 %v342_v21, %v339_v20 }
  0x28   :  { %v327_v29 = vsel %vm126_vm0, %v92_v16, 4286644096  ;;  %v80_v30 = vld [vmem:[%s1131_s0 + $0x11c] sm:$0xf]  ;;  %v350_v31 = vsel %vm126_vm0, %v54_v19, 4286644096  ;;  %v302_v32 = vmax.bf16 %v300_v13, %v298_v23 }
  0x29   :  { %v325_v33 = vmax.bf16 %v323_v18, %v321_v26  ;;  %v348_v34 = vmax.bf16 %v346_v22, %v344_v28  ;;  %v16_v35 = vld [vmem:[%s1131_s0 + $0x1c] sm:$0xf]  ;;  %v29_v36 = vld [vmem:[%s1131_s0 + $0x50] sm:$0xf]  ;;  %v42_v37 = vld [vmem:[%s1131_s0 + $0x84] sm:$0xf] }
  0x2a   :  { %v331_v38 = vsel %vm126_vm0, %v105_v24, 4286644096  ;;  %v335_v39 = vsel %vm126_vm0, %v118_v25, 4286644096  ;;  %v354_v40 = vsel %vm126_vm0, %v67_v27, 4286644096 }
  0x2b   :  { %588 = vst.msk [vmem:[%s1132_s1 + $0x10] sm:$0xf] %vm126_vm0, %v302_v32  ;;  %v329_v41 = vmax.bf16 %v327_v29, %v325_v33  ;;  %v93_v42 = vld [vmem:[%s1131_s0 + $0x150] sm:$0xf]  ;;  %v352_v43 = vmax.bf16 %v350_v31, %v348_v34  ;;  %v358_v44 = vsel %vm126_vm0, %v80_v30, 4286644096 }
  0x2c   :  { %v55_v45 = vld [vmem:[%s1131_s0 + $0xb8] sm:$0xf]  ;;  %v374_v46 = vsel %vm126_vm0, %v16_v35, 4286644096  ;;  %v377_v47 = vsel %vm126_vm0, %v29_v36, 4286644096 }
  0x2d   :  { %v381_v48 = vsel %vm126_vm0, %v42_v37, 4286644096  ;;  %v333_v49 = vmax.bf16 %v331_v38, %v329_v41  ;;  %v106_v50 = vld [vmem:[%s1131_s0 + $0x184] sm:$0xf]  ;;  %v119_v51 = vld [vmem:[%s1131_s0 + $0x1b8] sm:$0xf]  ;;  %v356_v52 = vmax.bf16 %v354_v40, %v352_v43  ;;  %v379_v54 = vmax.bf16 %v377_v47, %v374_v46 }
  0x2e   :  { %v68_v53 = vld [vmem:[%s1131_s0 + $0xec] sm:$0xf]  ;;  %v362_v55 = vsel %vm126_vm0, %v93_v42, 4286644096  ;;  %v81_v56 = vld [vmem:[%s1131_s0 + $0x120] sm:$0xf] }
  0x2f   :  { %v385_v57 = vsel %vm126_vm0, %v55_v45, 4286644096  ;;  %v337_v58 = vmax.bf16 %v335_v39, %v333_v49  ;;  %v360_v59 = vmax.bf16 %v358_v44, %v356_v52  ;;  %v383_v60 = vmax.bf16 %v381_v48, %v379_v54  ;;  %v17_v61 = vld [vmem:[%s1131_s0 + $0x20] sm:$0xf]  ;;  %v30_v62 = vld [vmem:[%s1131_s0 + $0x54] sm:$0xf] }
  0x30   :  { %v43_v63 = vld [vmem:[%s1131_s0 + $0x88] sm:$0xf]  ;;  %v366_v0 = vsel %vm126_vm0, %v106_v50, 4286644096  ;;  %v370_v1 = vsel %vm126_vm0, %v119_v51, 4286644096 }
  0x31   :  { %v389_v2 = vsel %vm126_vm0, %v68_v53, 4286644096  ;;  %589 = vst.msk [vmem:[%s1132_s1 + $0x14] sm:$0xf] %vm126_vm0, %v337_v58  ;;  %v364_v3 = vmax.bf16 %v362_v55, %v360_v59  ;;  %v94_v4 = vld [vmem:[%s1131_s0 + $0x154] sm:$0xf]  ;;  %v387_v5 = vmax.bf16 %v385_v57, %v383_v60 }
  0x32   :  { %v393_v6 = vsel %vm126_vm0, %v81_v56, 4286644096  ;;  %v56_v7 = vld [vmem:[%s1131_s0 + $0xbc] sm:$0xf]  ;;  %v409_v8 = vsel %vm126_vm0, %v17_v61, 4286644096 }
  0x33   :  { %v412_v9 = vsel %vm126_vm0, %v30_v62, 4286644096  ;;  %v416_v10 = vsel %vm126_vm0, %v43_v63, 4286644096  ;;  %v368_v11 = vmax.bf16 %v366_v0, %v364_v3  ;;  %v107_v12 = vld [vmem:[%s1131_s0 + $0x188] sm:$0xf]  ;;  %v391_v14 = vmax.bf16 %v389_v2, %v387_v5 }
  0x34   :  { %v120_v13 = vld [vmem:[%s1131_s0 + $0x1bc] sm:$0xf]  ;;  %v69_v15 = vld [vmem:[%s1131_s0 + $0xf0] sm:$0xf]  ;;  %v414_v16 = vmax.bf16 %v412_v9, %v409_v8  ;;  %v397_v17 = vsel %vm126_vm0, %v94_v4, 4286644096 }
  0x35   :  { %v82_v18 = vld [vmem:[%s1131_s0 + $0x124] sm:$0xf]  ;;  %v420_v19 = vsel %vm126_vm0, %v56_v7, 4286644096  ;;  %v372_v20 = vmax.bf16 %v370_v1, %v368_v11  ;;  %v395_v21 = vmax.bf16 %v393_v6, %v391_v14  ;;  %v31_v24 = vld [vmem:[%s1131_s0 + $0x58] sm:$0xf] }
  0x36   :  { %v418_v22 = vmax.bf16 %v416_v10, %v414_v16  ;;  %v18_v23 = vld [vmem:[%s1131_s0 + $0x24] sm:$0xf]  ;;  %v44_v25 = vld [vmem:[%s1131_s0 + $0x8c] sm:$0xf]  ;;  %v401_v26 = vsel %vm126_vm0, %v107_v12, 4286644096 }
  0x37   :  { %v405_v27 = vsel %vm126_vm0, %v120_v13, 4286644096  ;;  %v424_v28 = vsel %vm126_vm0, %v69_v15, 4286644096  ;;  %590 = vst.msk [vmem:[%s1132_s1 + $0x18] sm:$0xf] %vm126_vm0, %v372_v20  ;;  %v399_v29 = vmax.bf16 %v397_v17, %v395_v21 }
  0x38   :  { %v95_v30 = vld [vmem:[%s1131_s0 + $0x158] sm:$0xf]  ;;  %v422_v31 = vmax.bf16 %v420_v19, %v418_v22  ;;  %v428_v32 = vsel %vm126_vm0, %v82_v18, 4286644096  ;;  %v57_v33 = vld [vmem:[%s1131_s0 + $0xc0] sm:$0xf] }
  0x39   :  { %v444_v34 = vsel %vm126_vm0, %v18_v23, 4286644096  ;;  %v447_v35 = vsel %vm126_vm0, %v31_v24, 4286644096  ;;  %v451_v36 = vsel %vm126_vm0, %v44_v25, 4286644096  ;;  %v403_v37 = vmax.bf16 %v401_v26, %v399_v29 }
  0x3a   :  { %v108_v38 = vld [vmem:[%s1131_s0 + $0x18c] sm:$0xf]  ;;  %v121_v39 = vld [vmem:[%s1131_s0 + $0x1c0] sm:$0xf]  ;;  %v426_v40 = vmax.bf16 %v424_v28, %v422_v31  ;;  %v70_v41 = vld [vmem:[%s1131_s0 + $0xf4] sm:$0xf]  ;;  %v449_v42 = vmax.bf16 %v447_v35, %v444_v34 }
  0x3b   :  { %v432_v43 = vsel %vm126_vm0, %v95_v30, 4286644096  ;;  %v83_v44 = vld [vmem:[%s1131_s0 + $0x128] sm:$0xf]  ;;  %v455_v45 = vsel %vm126_vm0, %v57_v33, 4286644096  ;;  %v407_v46 = vmax.bf16 %v405_v27, %v403_v37 }
  0x3c   :  { %v430_v47 = vmax.bf16 %v428_v32, %v426_v40  ;;  %v453_v48 = vmax.bf16 %v451_v36, %v449_v42  ;;  %v19_v49 = vld [vmem:[%s1131_s0 + $0x28] sm:$0xf]  ;;  %v32_v50 = vld [vmem:[%s1131_s0 + $0x5c] sm:$0xf]  ;;  %v45_v51 = vld [vmem:[%s1131_s0 + $0x90] sm:$0xf] }
  0x3d   :  { %v436_v52 = vsel %vm126_vm0, %v108_v38, 4286644096  ;;  %v440_v53 = vsel %vm126_vm0, %v121_v39, 4286644096  ;;  %v459_v54 = vsel %vm126_vm0, %v70_v41, 4286644096 }
  0x3e   :  { %591 = vst.msk [vmem:[%s1132_s1 + $0x1c] sm:$0xf] %vm126_vm0, %v407_v46  ;;  %v434_v55 = vmax.bf16 %v432_v43, %v430_v47  ;;  %v96_v56 = vld [vmem:[%s1131_s0 + $0x15c] sm:$0xf]  ;;  %v457_v57 = vmax.bf16 %v455_v45, %v453_v48  ;;  %v463_v58 = vsel %vm126_vm0, %v83_v44, 4286644096 }
  0x3f   :  { %v58_v59 = vld [vmem:[%s1131_s0 + $0xc4] sm:$0xf]  ;;  %v479_v60 = vsel %vm126_vm0, %v19_v49, 4286644096  ;;  %v482_v61 = vsel %vm126_vm0, %v32_v50, 4286644096 }
  0x40   :  { %v486_v62 = vsel %vm126_vm0, %v45_v51, 4286644096  ;;  %v438_v63 = vmax.bf16 %v436_v52, %v434_v55  ;;  %v109_v0 = vld [vmem:[%s1131_s0 + $0x190] sm:$0xf]  ;;  %v122_v1 = vld [vmem:[%s1131_s0 + $0x1c4] sm:$0xf]  ;;  %v461_v2 = vmax.bf16 %v459_v54, %v457_v57  ;;  %v484_v4 = vmax.bf16 %v482_v61, %v479_v60 }
  0x41   :  { %v71_v3 = vld [vmem:[%s1131_s0 + $0xf8] sm:$0xf]  ;;  %v467_v5 = vsel %vm126_vm0, %v96_v56, 4286644096  ;;  %v84_v6 = vld [vmem:[%s1131_s0 + $0x12c] sm:$0xf] }
  0x42   :  { %v490_v7 = vsel %vm126_vm0, %v58_v59, 4286644096  ;;  %v442_v8 = vmax.bf16 %v440_v53, %v438_v63  ;;  %v465_v9 = vmax.bf16 %v463_v58, %v461_v2  ;;  %v488_v10 = vmax.bf16 %v486_v62, %v484_v4  ;;  %v20_v11 = vld [vmem:[%s1131_s0 + $0x2c] sm:$0xf]  ;;  %v33_v12 = vld [vmem:[%s1131_s0 + $0x60] sm:$0xf] }
  0x43   :  { %v46_v13 = vld [vmem:[%s1131_s0 + $0x94] sm:$0xf]  ;;  %v471_v14 = vsel %vm126_vm0, %v109_v0, 4286644096  ;;  %v475_v15 = vsel %vm126_vm0, %v122_v1, 4286644096 }
  0x44   :  { %v494_v16 = vsel %vm126_vm0, %v71_v3, 4286644096  ;;  %592 = vst.msk [vmem:[%s1132_s1 + $0x20] sm:$0xf] %vm126_vm0, %v442_v8  ;;  %v469_v17 = vmax.bf16 %v467_v5, %v465_v9  ;;  %v97_v18 = vld [vmem:[%s1131_s0 + $0x160] sm:$0xf]  ;;  %v492_v19 = vmax.bf16 %v490_v7, %v488_v10 }
  0x45   :  { %v498_v20 = vsel %vm126_vm0, %v84_v6, 4286644096  ;;  %v59_v21 = vld [vmem:[%s1131_s0 + $0xc8] sm:$0xf]  ;;  %v514_v22 = vsel %vm126_vm0, %v20_v11, 4286644096 }
  0x46   :  { %v517_v23 = vsel %vm126_vm0, %v33_v12, 4286644096  ;;  %v521_v24 = vsel %vm126_vm0, %v46_v13, 4286644096  ;;  %v473_v25 = vmax.bf16 %v471_v14, %v469_v17  ;;  %v110_v26 = vld [vmem:[%s1131_s0 + $0x194] sm:$0xf]  ;;  %v496_v28 = vmax.bf16 %v494_v16, %v492_v19 }
  0x47   :  { %v123_v27 = vld [vmem:[%s1131_s0 + $0x1c8] sm:$0xf]  ;;  %v72_v29 = vld [vmem:[%s1131_s0 + $0xfc] sm:$0xf]  ;;  %v519_v30 = vmax.bf16 %v517_v23, %v514_v22  ;;  %v502_v31 = vsel %vm126_vm0, %v97_v18, 4286644096 }
  0x48   :  { %v85_v32 = vld [vmem:[%s1131_s0 + $0x130] sm:$0xf]  ;;  %v525_v33 = vsel %vm126_vm0, %v59_v21, 4286644096  ;;  %v477_v34 = vmax.bf16 %v475_v15, %v473_v25  ;;  %v500_v35 = vmax.bf16 %v498_v20, %v496_v28  ;;  %v34_v38 = vld [vmem:[%s1131_s0 + $0x64] sm:$0x1] }
  0x49   :  { %v523_v36 = vmax.bf16 %v521_v24, %v519_v30  ;;  %v21_v37 = vld [vmem:[%s1131_s0 + $0x30] sm:$0x1]  ;;  %v47_v39 = vld [vmem:[%s1131_s0 + $0x98] sm:$0x1]  ;;  %v506_v40 = vsel %vm126_vm0, %v110_v26, 4286644096 }
  0x4a   :  { %v510_v41 = vsel %vm126_vm0, %v123_v27, 4286644096  ;;  %v529_v42 = vsel %vm126_vm0, %v72_v29, 4286644096  ;;  %593 = vst.msk [vmem:[%s1132_s1 + $0x24] sm:$0xf] %vm126_vm0, %v477_v34  ;;  %v504_v43 = vmax.bf16 %v502_v31, %v500_v35 }
  0x4b   :  { %v98_v44 = vld [vmem:[%s1131_s0 + $0x164] sm:$0xf]  ;;  %v527_v45 = vmax.bf16 %v525_v33, %v523_v36  ;;  %v533_v46 = vsel %vm126_vm0, %v85_v32, 4286644096  ;;  %v60_v47 = vld [vmem:[%s1131_s0 + $0xcc] sm:$0x1] }
  0x4c   :  { %v550_v48 = vsel %vm548_vm1, %v21_v37, 4286644096  ;;  %v553_v49 = vsel %vm548_vm1, %v34_v38, 4286644096  ;;  %v557_v50 = vsel %vm548_vm1, %v47_v39, 4286644096  ;;  %v508_v51 = vmax.bf16 %v506_v40, %v504_v43 }
  0x4d   :  { %v111_v52 = vld [vmem:[%s1131_s0 + $0x198] sm:$0xf]  ;;  %v531_v53 = vmax.bf16 %v529_v42, %v527_v45  ;;  %v73_v54 = vld [vmem:[%s1131_s0 + $0x100] sm:$0x1]  ;;  %v555_v55 = vmax.bf16 %v553_v49, %v550_v48  ;;  %v537_v56 = vsel %vm126_vm0, %v98_v44, 4286644096 }
  0x4e   :  { %v561_v57 = vsel %vm548_vm1, %v60_v47, 4286644096  ;;  %v512_v58 = vmax.bf16 %v510_v41, %v508_v51  ;;  %v124_v59 = vld [vmem:[%s1131_s0 + $0x1cc] sm:$0xf]  ;;  %v86_v61 = vld [vmem:[%s1131_s0 + $0x134] sm:$0x1] }
  0x4f   :  { %v535_v60 = vmax.bf16 %v533_v46, %v531_v53  ;;  %v559_v62 = vmax.bf16 %v557_v50, %v555_v55  ;;  %v541_v63 = vsel %vm126_vm0, %v111_v52, 4286644096  ;;  %v565_v0 = vsel %vm548_vm1, %v73_v54, 4286644096  ;;  %v99_v2 = vld [vmem:[%s1131_s0 + $0x168] sm:$0x1] }
  0x50   :  { %594 = vst.msk [vmem:[%s1132_s1 + $0x28] sm:$0xf] %vm126_vm0, %v512_v58  ;;  %v545_v4 = vsel %vm126_vm0, %v124_v59, 4286644096  ;;  %v569_v5 = vsel %vm548_vm1, %v86_v61, 4286644096 }
  0x51   :  { %v539_v1 = vmax.bf16 %v537_v56, %v535_v60  ;;  %v563_v3 = vmax.bf16 %v561_v57, %v559_v62  ;;  %v112_v7 = vld [vmem:[%s1131_s0 + $0x19c] sm:$0x1]  ;;  %v573_v9 = vsel %vm548_vm1, %v99_v2, 4286644096  ;;  %v125_v11 = vld [vmem:[%s1131_s0 + $0x1d0] sm:$0x1] }
  0x52   :  { %v577_v13 = vsel %vm548_vm1, %v112_v7, 4286644096  ;;  %v581_v15 = vsel %vm548_vm1, %v125_v11, 4286644096 }
  0x53   :  { %v543_v6 = vmax.bf16 %v541_v63, %v539_v1  ;;  %v567_v8 = vmax.bf16 %v565_v0, %v563_v3 }
  0x55   :  { %v547_v10 = vmax.bf16 %v545_v4, %v543_v6  ;;  %v571_v12 = vmax.bf16 %v569_v5, %v567_v8 }
  0x57   :  { %595 = vst.msk [vmem:[%s1132_s1 + $0x2c] sm:$0xf] %vm126_vm0, %v547_v10  ;;  %v575_v14 = vmax.bf16 %v573_v9, %v571_v12 }
  0x59   :  { %v579_v16 = vmax.bf16 %v577_v13, %v575_v14 }
  0x5b   :  { %v583_v17 = vmax.bf16 %v581_v15, %v579_v16 }
  0x5d   :  { %596 = vst.msk [vmem:[%s1132_s1 + $0x30] sm:$0x1] %vm548_vm1, %v583_v17 }

// kernel: nin_forward.7
= control target key start
LH: loop header
LB: loop body
LE: loop exit
PB: predicated region body
PF: predicated region fallthrough
CT: control target
= control target key end

     0   :  { %s2726_s24 = smov 0   ;;  %s3251_s0 = inlined_call_operand.vmem [shape: bf16[512,363], index: 0, kind: input, shape index: {}]   ;;  %s3252_s1 = inlined_call_operand.vmem [shape: bf16[363,96], index: 1, kind: input, shape index: {}]   ;;  %s3253_s2 = inlined_call_operand.vmem [shape: f32[1,96], index: 2, kind: input, shape index: {}]   ;;  %s3254_s3 = inlined_call_operand.vmem [shape: bf16[96,96], index: 3, kind: input, shape index: {}]   ;;  %s3255_s4 = inlined_call_operand.vmem [shape: f32[1,96], index: 4, kind: input, shape index: {}]   ;;  %s3256_s5 = inlined_call_operand.vmem [shape: bf16[96,96], index: 5, kind: input, shape index: {}]   ;;  %s3257_s6 = inlined_call_operand.vmem [shape: f32[1,96], index: 6, kind: input, shape index: {}]   ;;  %s3258_s7 = inlined_call_operand.vmem [shape: bf16[512,96], index: 7, kind: output, shape index: {}]  }
   0x1 LB: > { %s2032_s25 = sadd.s32 4294967295, %s2683_s24   ;;  %p2036_p0 = scmp.ge.s32.totalorder %s2683_s24, 1  ;;  %s2683_s24 = sphi %s2726_s24, %s17_s24  }
   0x2   : > { %p239_p1 = scmp.lt.s32.totalorder %s2683_s24, 3 }
   0x4   : > { %p240_p2 = pnand %p2036_p0, %p239_p1 }
   0x5   : > { %v2578_v0 = vld [vmem:[%s3252_s1 + $0x40] sm:$0xff] (!%p240_p2)   ;;  %s2037_s28 = sshll.u32 (!%p240_p2), %s2032_s25, 5  ;;  %v2580_v2 = vld [vmem:[%s3252_s1 + $0x48] sm:$0xff] (!%p240_p2)   ;;  %v2582_v4 = vld [vmem:[%s3252_s1 + $0x50] sm:$0xff] (!%p240_p2)   ;;  %vm829_vm0 = vcmask (!%p240_p2), 1044480   ;;  %vm830_vm1 = vcmask (!%p240_p2), 1045504  }
   0x6   : > { %243 = sbr.rel (%p240_p2) target bundleno = 888 (0x378), region = 48  ;;  %v2579_v1 = vld [vmem:[%s3252_s1] sm:$0xff] (!%p240_p2)   ;;  %2241 = vmatprep.subr.bf16.mxu0 (!%p240_p2), %v2578_v0  ;;  %p273_p3 = scmp.lt.s32.totalorder (!%p240_p2), %s2037_s28, 63  ;;  %v2581_v3 = vld [vmem:[%s3252_s1 + $0x8] sm:$0xff] (!%p240_p2)   ;;  %v2583_v5 = vld [vmem:[%s3252_s1 + $0x10] sm:$0xff] (!%p240_p2)   ;;  %v2685_v23 = vmov (!%p240_p2), 65535  }
   0x7   : > { %2242 = vmatpush3.bf16.msra.mxu0 (!%p240_p2), %v2579_v1  ;;  %v2584_v6 = vld [vmem:[%s3252_s1 + $0x58] sm:$0xff] (!%p240_p2)   ;;  %v2586_v8 = vld [vmem:[%s3252_s1 + $0x60] sm:$0xff] (!%p240_p2)   ;;  %v2588_v10 = vld [vmem:[%s3252_s1 + $0x68] sm:$0xff] (!%p240_p2)   ;;  %v831_v24 = vsel (!%p240_p2), %vm829_vm0, 4294967295, %v2685_v23  ;;  %vm780_vm2 = vcmask (!%p240_p2), 875520   ;;  %vm1261_vm3 = vcmask (!%p240_p2), 785408  }
   0x8   : > { %2243 = vmatprep.subr.bf16.mxu0 (!%p240_p2), %v2580_v2  ;;  %v2585_v7 = vld [vmem:[%s3252_s1 + $0x18] sm:$0xff] (!%p240_p2)   ;;  %v2587_v9 = vld [vmem:[%s3252_s1 + $0x20] sm:$0xff] (!%p240_p2)   ;;  %v2589_v13 = vld [vmem:[%s3252_s1 + $0x28] sm:$0xff] (!%p240_p2)   ;;  %v832_v29 = vsel (!%p240_p2), %vm830_vm1, %v831_v24, 0  ;;  %vm1943_vm4 = vcmask (!%p240_p2), 781312  }
   0x9   : > { %v2597_v12 = vld [vmem:[%s3252_s1 + $0x80] sm:$0xff] (!%p240_p2)   ;;  %v2590_v14 = vld [vmem:[%s3252_s1 + $0x70] sm:$0xff] (!%p240_p2)   ;;  %v2604_v15 = vld [vmem:[%s3252_s1 + $0x88] sm:$0xff] (!%p240_p2)  }
   0xa   : > { %2554 = vmatprep.subr.bf16.mxu1 (!%p240_p2), %v2597_v12  ;;  %v2591_v16 = vld [vmem:[%s3252_s1 + $0x30] sm:$0xff] (!%p240_p2)   ;;  %v2592_v17 = vld [vmem:[%s3252_s1 + $0x78] sm:$0xff] (!%p240_p2)   ;;  %v2616_v22 = vld [vmem:[%s3252_s1 + $0xa0] sm:$0xff] (!%p240_p2)  }
   0xb   : > { %2244 = vmatpush3.bf16.msra.mxu0 (!%p240_p2), %v2581_v3  ;;  %2561 = vmatpush3.bf16.msra.mxu1 (!%p240_p2), %v2597_v12  ;;  %v2611_v18 = vld [vmem:[%s3252_s1 + $0x90] sm:$0xff] (!%p240_p2)   ;;  %v2612_v19 = vld [vmem:[%s3252_s1 + $0x98] sm:$0xff] (!%p240_p2)   ;;  %v2617_v26 = vld [vmem:[%s3252_s1 + $0xa8] sm:$0xff] (!%p240_p2)  }
   0xc   : > { %2245 = vmatprep.subr.bf16.mxu0 (!%p240_p2), %v2582_v4  ;;  %2555 = vmatprep.subr.bf16.mxu1 (!%p240_p2), %v2604_v15  ;;  %v2593_v20 = vld [vmem:[%s3252_s1 + $0x38] sm:$0xff] (!%p240_p2)   ;;  %v2621_v28 = vld [vmem:[%s3252_s1 + $0xb0] sm:$0x3f] (!%p240_p2)  }
   0xd   : > { %s3260_s28 = smov (!%p273_p3, %s2037_s28), 63  ;;  %v834_v31 = vand.u32 %v2621_v28, %v832_v29 }
   0xe   : > { %s2568_s18 = smul.u32 12, %s3260_s28  ;;  %s2040_s21 = sshll.u32 %s3260_s28, 2 }
   0xf   : > { %2246 = vmatpush3.bf16.msra.mxu0 %v2583_v5  ;;  %2562 = vmatpush3.bf16.msra.mxu1 %v2604_v15  ;;  %s3153_s25 = scalar_lea.vmem %s3258_s7, %s2040_s21 }
  0x10   : > { %2247 = vmatprep.subr.bf16.mxu0 %v2584_v6  ;;  %s2767_s26 = scalar_lea.vmem %s3251_s0, %s2568_s18  ;;  %2556 = vmatprep.subr.bf16.mxu1 %v2611_v18 }
  0x11   : > { %v2596_v11 = vld [vmem:[%s2767_s26 + $0x4] ss:$12 sps:$4 sm:$0xff]   ;;  %v2594_v21 = vld [vmem:[%s2767_s26] ss:$12 sps:$4 sm:$0xff]   ;;  %v2598_v25 = vld [vmem:[%s2767_s26 + $0x1c] ss:$12 sps:$4 sm:$0xff]  }
  0x12   : > { %868 = vmatprep.mubr.bf16.mxu0 %v2596_v11  ;;  %v2622_v27 = vld [vmem:[%s2767_s26 + $0x98] ss:$12 sps:$4 sm:$0xff]   ;;  %v2601_v32 = vld [vmem:[%s2767_s26 + $0x34] ss:$12 sps:$4 sm:$0xff]   ;;  %v2623_v33 = vld [vmem:[%s2767_s26 + $0xb0] ss:$12 sps:$4 sm:$0xff]  }
  0x13   : > { %2248 = vmatpush3.bf16.msra.mxu0 %v2585_v7  ;;  %2563 = vmatpush3.bf16.msra.mxu1 %v2611_v18  ;;  %v2600_v30 = vld [vmem:[%s2767_s26 + $0x18] ss:$12 sps:$4 sm:$0xff]   ;;  %v2630_v34 = vld [vmem:[%s2767_s26 + $0xc8] ss:$12 sps:$4 sm:$0xff]   ;;  %v2603_v35 = vld [vmem:[%s2767_s26 + $0x30] ss:$12 sps:$4 sm:$0xff]  }
  0x14   : > { %2249 = vmatprep.subr.bf16.mxu0 %v2586_v8  ;;  %2557 = vmatprep.subr.bf16.mxu1 %v2612_v19  ;;  %v2605_v36 = vld [vmem:[%s2767_s26 + $0x4c] ss:$12 sps:$4 sm:$0xff]   ;;  %v2607_v39 = vld [vmem:[%s2767_s26 + $0x48] ss:$12 sps:$4 sm:$0xff]   ;;  %v2608_v40 = vld [vmem:[%s2767_s26 + $0x64] ss:$12 sps:$4 sm:$0xff]  }
  0x15   : > { %2446 = vmatprep.mubr.msk.bf16.mxu1 %vm780_vm2, %v2622_v27  ;;  %v2631_v37 = vld [vmem:[%s2767_s26 + $0xe0] ss:$12 sps:$4 sm:$0xff]   ;;  %v2638_v38 = vld [vmem:[%s2767_s26 + $0xf8] ss:$12 sps:$4 sm:$0xff]   ;;  %v2639_v41 = vld [vmem:[%s2767_s26 + $0x110] ss:$12 sps:$4 sm:$0xff]  }
  0x16   : > { %v2610_v42 = vld [vmem:[%s2767_s26 + $0x60] ss:$12 sps:$4 sm:$0xff]   ;;  %v2646_v43 = vld [vmem:[%s2767_s26 + $0x128] ss:$12 sps:$4 sm:$0xff]   ;;  %v2654_v46 = vld [vmem:[%s2767_s26 + $0x158] ss:$12 sps:$4 sm:$0xff]  }
  0x17   : > { %2250 = vmatpush3.bf16.msra.mxu0 %v2587_v9  ;;  %2564 = vmatpush3.bf16.msra.mxu1 %v2612_v19  ;;  %v2613_v44 = vld [vmem:[%s2767_s26 + $0x7c] ss:$12 sps:$4 sm:$0xff]   ;;  %v2647_v45 = vld [vmem:[%s2767_s26 + $0x140] ss:$12 sps:$4 sm:$0xff]   ;;  %v2615_v47 = vld [vmem:[%s2767_s26 + $0x78] ss:$12 sps:$4 sm:$0xff]  }
  0x18   : > { %2251 = vmatprep.subr.bf16.mxu0 %v2588_v10  ;;  %2558 = vmatprep.subr.bf16.mxu1 %v2616_v22  ;;  %v2618_v48 = vld [vmem:[%s2767_s26 + $0x94] ss:$12 sps:$4 sm:$0xff]   ;;  %v2655_v49 = vld [vmem:[%s2767_s26 + $0x170] ss:$12 sps:$4 sm:$0xff]   ;;  %v2624_v51 = vld [vmem:[%s2767_s26 + $0xac] ss:$12 sps:$4 sm:$0xff]  }
  0x19   : > { %v2620_v50 = vld [vmem:[%s2767_s26 + $0x90] ss:$12 sps:$4 sm:$0xff]   ;;  %v2626_v52 = vld [vmem:[%s2767_s26 + $0xa8] ss:$12 sps:$4 sm:$0xff]   ;;  %v2629_v54 = vld [vmem:[%s2767_s26 + $0xc0] ss:$12 sps:$4 sm:$0xff]  }
  0x1a   : > { %v2627_v53 = vld [vmem:[%s2767_s26 + $0xc4] ss:$12 sps:$4 sm:$0xff]   ;;  %v2632_v55 = vld [vmem:[%s2767_s26 + $0xdc] ss:$12 sps:$4 sm:$0xff]   ;;  %v2635_v57 = vld [vmem:[%s2767_s26 + $0xf4] ss:$12 sps:$4 sm:$0xff]  }
  0x1b   : > { %2252 = vmatpush3.bf16.msra.mxu0 %v2589_v13  ;;  %2565 = vmatpush3.bf16.msra.mxu1 %v2616_v22  ;;  %v2634_v56 = vld [vmem:[%s2767_s26 + $0xd8] ss:$12 sps:$4 sm:$0xff]   ;;  %v2637_v58 = vld [vmem:[%s2767_s26 + $0xf0] ss:$12 sps:$4 sm:$0xff]   ;;  %v2642_v60 = vld [vmem:[%s2767_s26 + $0x108] ss:$12 sps:$4 sm:$0xff]  }
  0x1c   : > { %2253 = vmatprep.subr.bf16.mxu0 %v2590_v14  ;;  %2559 = vmatprep.subr.bf16.mxu1 %v2617_v26  ;;  %v2640_v59 = vld [vmem:[%s2767_s26 + $0x10c] ss:$12 sps:$4 sm:$0xff]   ;;  %v2643_v61 = vld [vmem:[%s2767_s26 + $0x124] ss:$12 sps:$4 sm:$0xff]   ;;  %v2648_v63 = vld [vmem:[%s2767_s26 + $0x13c] ss:$12 sps:$4 sm:$0xff]  }
  0x1d   : > { %v2645_v62 = vld [vmem:[%s2767_s26 + $0x120] ss:$12 sps:$4 sm:$0xff]   ;;  %v2650_v0 = vld [vmem:[%s2767_s26 + $0x138] ss:$12 sps:$4 sm:$0xff]   ;;  %v2653_v2 = vld [vmem:[%s2767_s26 + $0x150] ss:$12 sps:$4 sm:$0xff]  }
  0x1e   : > { %v2651_v1 = vld [vmem:[%s2767_s26 + $0x154] ss:$12 sps:$4 sm:$0xff]   ;;  %v2656_v3 = vld [vmem:[%s2767_s26 + $0x16c] ss:$12 sps:$4 sm:$0xff]   ;;  %v2662_v8 = vld [vmem:[%s2767_s26 + $0x50] ss:$12 sps:$4 sm:$0xff]  }
  0x1f   : > { %2254 = vmatpush3.bf16.msra.mxu0 %v2591_v16  ;;  %2566 = vmatpush3.bf16.msra.mxu1 %v2617_v26  ;;  %v2658_v4 = vld [vmem:[%s2767_s26 + $0x168] ss:$12 sps:$4 sm:$0xff]   ;;  %v2660_v6 = vld [vmem:[%s2767_s26 + $0x20] ss:$12 sps:$4 sm:$0xff]   ;;  %v2661_v7 = vld [vmem:[%s2767_s26 + $0x38] ss:$12 sps:$4 sm:$0xff]  }
  0x20   : > { %2255 = vmatprep.subr.bf16.mxu0 %v2592_v17  ;;  %2560 = vmatprep.subr.bf16.mxu1 %v834_v31  ;;  %v2659_v5 = vld [vmem:[%s2767_s26 + $0x8] ss:$12 sps:$4 sm:$0xff]   ;;  %v2664_v10 = vld [vmem:[%s2767_s26 + $0x80] ss:$12 sps:$4 sm:$0xff]   ;;  %v2668_v14 = vld [vmem:[%s3254_s3 + $0x18] sm:$0xff]  }
  0x21   : > { %v2663_v9 = vld [vmem:[%s2767_s26 + $0x68] ss:$12 sps:$4 sm:$0xff]   ;;  %v2665_v11 = vld [vmem:[%s3254_s3] sm:$0xff]  }
  0x22   : > { %v2667_v13 = vld [vmem:[%s3254_s3 + $0x10] sm:$0xff]   ;;  %v2669_v17 = vld [vmem:[%s3254_s3 + $0x20] sm:$0xff]  }
  0x23   : > { %2256 = vmatpush3.bf16.msra.mxu0 %v2593_v20  ;;  %2567 = vmatpush3.bf16.msra.mxu1 %v834_v31 }
  0x24   : > { %2420 = vmatprep.subr.bf16.mxu0 %v2597_v12  ;;  %2466 = vmatprep.subr.bf16.mxu1 %v2665_v11 }
  0x26   : > { %869 = vmatmul.mubr.bf16.vlgmr.msra.gmra.mrb[0].mxu0 %v2594_v21  ;;  %2447 = vmatmul.mubr.msk.bf16.vlgmr.msra.gmra.mrb[0].mxu1 %vm780_vm2, %v2623_v33 }
  0x27   : > { %2421 = vmatpush3.bf16.msra.mxu0 %v2597_v12  ;;  %876 = vmatprep.mubr.bf16.mxu0 %v2598_v25  ;;  %v2666_v12 = vld [vmem:[%s3254_s3 + $0x8] sm:$0xff]  }
  0x28   : > { %2422 = vmatprep.subr.bf16.mxu0 %v2604_v15  ;;  %2450 = vmatprep.mubr.msk.bf16.mxu1 %vm780_vm2, %v2630_v34 }
  0x29   : > { %2467 = vmatpush3.bf16.msra.mxu1 %v2665_v11 }
  0x2a   : > { %2468 = vmatprep.subr.bf16.mxu1 %v2666_v12 }
  0x2b   : > { %2423 = vmatpush3.bf16.msra.mxu0 %v2604_v15 }
  0x2c   : > { %2424 = vmatprep.subr.bf16.mxu0 %v2611_v18 }
  0x2d   : > { %2469 = vmatpush3.bf16.msra.mxu1 %v2666_v12 }
  0x2e   : > { %877 = vmatmul.mubr.bf16.gmra.mrb[4].mxu0 %v2600_v30  ;;  %2451 = vmatmul.mubr.msk.bf16.gmra.mrb[4].mxu1 %vm780_vm2, %v2631_v37 }
  0x2f   : > { %884 = vmatprep.mubr.bf16.mxu0 %v2601_v32  ;;  %2425 = vmatpush3.bf16.msra.mxu0 %v2611_v18 }
  0x30   : > { %2426 = vmatprep.subr.bf16.mxu0 %v2612_v19  ;;  %2454 = vmatprep.mubr.msk.bf16.mxu1 %vm780_vm2, %v2638_v38 }
  0x31   : > { %2470 = vmatprep.subr.bf16.mxu1 %v2667_v13 }
  0x32   : > { %2471 = vmatpush3.bf16.msra.mxu1 %v2667_v13 }
  0x33   : > { %2427 = vmatpush3.bf16.msra.mxu0 %v2612_v19  ;;  %2472 = vmatprep.subr.bf16.mxu1 %v2668_v14 }
  0x34   : > { %2428 = vmatprep.subr.bf16.mxu0 %v2616_v22 }
  0x36   : > { %885 = vmatmul.mubr.bf16.gmra.mrb[8].mxu0 %v2603_v35  ;;  %2455 = vmatmul.mubr.msk.bf16.gmra.mrb[8].mxu1 %vm780_vm2, %v2639_v41 }
  0x37   : > { %892 = vmatprep.mubr.bf16.mxu0 %v2605_v36  ;;  %2429 = vmatpush3.bf16.msra.mxu0 %v2616_v22  ;;  %v2670_v22 = vld [vmem:[%s3254_s3 + $0x28] sm:$0xff]  }
  0x38   : > { %2430 = vmatprep.subr.bf16.mxu0 %v2617_v26  ;;  %2458 = vmatprep.mubr.msk.bf16.mxu1 %vm780_vm2, %v2646_v43 }
  0x39   : > { %2473 = vmatpush3.bf16.msra.mxu1 %v2668_v14  ;;  %v2956_v14 = vld [vmem:[%s3253_s2] ss:$0 sm:$0xff] }
  0x3a   : > { %2474 = vmatprep.subr.bf16.mxu1 %v2669_v17 }
  0x3b   : > { %2431 = vmatpush3.bf16.msra.mxu0 %v2617_v26 }
  0x3c   : > { %2432 = vmatprep.subr.bf16.mxu0 %v834_v31 }
  0x3d   : > { %2475 = vmatpush3.bf16.msra.mxu1 %v2669_v17 }
  0x3e   : > { %893 = vmatmul.mubr.bf16.gmra.mrb[12].mxu0 %v2607_v39  ;;  %2459 = vmatmul.mubr.msk.bf16.gmra.mrb[12].mxu1 %vm780_vm2, %v2647_v45 }
  0x3f   : > { %900 = vmatprep.mubr.bf16.mxu0 %v2608_v40  ;;  %2433 = vmatpush3.bf16.msra.mxu0 %v834_v31 }
  0x40   : > { %2462 = vmatprep.mubr.msk.bf16.mxu1 %vm780_vm2, %v2654_v46  ;;  %2476 = vmatprep.subr.bf16.mxu1 %v2670_v22 }
  0x41   : > { %2477 = vmatpush3.bf16.msra.mxu1 %v2670_v22 }
  0x46   : > { %901 = vmatmul.mubr.bf16.gmra.mrb[16].mxu0 %v2610_v42  ;;  %2463 = vmatmul.mubr.msk.bf16.gmra.mrb[16].mxu1 %vm780_vm2, %v2655_v49 }
  0x47   : > { %908 = vmatprep.mubr.bf16.mxu0 %v2613_v44 }
  0x4e   : > { %909 = vmatmul.mubr.bf16.gmra.mrb[20].mxu0 %v2615_v47 }
  0x4f   : > { %916 = vmatprep.mubr.bf16.mxu0 %v2618_v48 }
  0x56   : > { %917 = vmatmul.mubr.bf16.gmra.mrb[24].mxu0 %v2620_v50 }
  0x57   : > { %924 = vmatprep.mubr.bf16.mxu0 %v2624_v51 }
  0x5e   : > { %925 = vmatmul.mubr.bf16.gmra.mrb[28].mxu0 %v2626_v52 }
  0x5f   : > { %932 = vmatprep.mubr.bf16.mxu0 %v2627_v53 }
  0x66   : > { %933 = vmatmul.mubr.bf16.gmra.mrb[32].mxu0 %v2629_v54 }
  0x67   : > { %940 = vmatprep.mubr.bf16.mxu0 %v2632_v55 }
  0x6e   : > { %941 = vmatmul.mubr.bf16.gmra.mrb[36].mxu0 %v2634_v56 }
  0x6f   : > { %948 = vmatprep.mubr.bf16.mxu0 %v2635_v57 }
  0x76   : > { %949 = vmatmul.mubr.bf16.gmra.mrb[40].mxu0 %v2637_v58 }
  0x77   : > { %956 = vmatprep.mubr.bf16.mxu0 %v2640_v59 }
  0x7e   : > { %957 = vmatmul.mubr.bf16.gmra.mrb[44].mxu0 %v2642_v60 }
  0x7f   : > { %964 = vmatprep.mubr.bf16.mxu0 %v2643_v61 }
  0x86   : > { %965 = vmatmul.mubr.bf16.gmra.mrb[48].mxu0 %v2645_v62 }
  0x87   : > { %972 = vmatprep.mubr.bf16.mxu0 %v2648_v63 }
  0x8e   : > { %973 = vmatmul.mubr.bf16.gmra.mrb[52].mxu0 %v2650_v0 }
  0x8f   : > { %980 = vmatprep.mubr.bf16.mxu0 %v2651_v1 }
  0x96   : > { %981 = vmatmul.mubr.bf16.gmra.mrb[56].mxu0 %v2653_v2 }
  0x97   : > { %988 = vmatprep.mubr.bf16.mxu0 %v2656_v3 }
  0x9e   : > { %989 = vmatmul.mubr.bf16.gmra.mrb[60].mxu0 %v2658_v4 }
  0x9f   : > { %2434 = vmatprep.mubr.msk.bf16.mxu0 %vm780_vm2, %v2659_v5 }
  0xa6   : > { %2435 = vmatmul.mubr.msk.bf16.vlgmr.msra.gmra.mrb[64].mxu0 %vm780_vm2, %v2660_v6 }
  0xa7   : > { %2438 = vmatprep.mubr.msk.bf16.mxu0 %vm780_vm2, %v2661_v7 }
  0xae   : > { %2439 = vmatmul.mubr.msk.bf16.gmra.mrb[68].mxu0 %vm780_vm2, %v2662_v8 }
  0xaf   : > { %2442 = vmatprep.mubr.msk.bf16.mxu0 %vm780_vm2, %v2663_v9 }
  0xb6   : > { %2443 = vmatmul.mubr.msk.bf16.gmra.mrb[72].mxu0 %vm780_vm2, %v2664_v10 }
  0xf9   : > { %v2257_v15 = vpop.f32.mrb[0].mxu0  ;;  %v2901_v29 = vpop.f32.mrb[0].mxu1 }
  0xfa   : > { %v2258_v16 = vpop.f32.mrb[1].mxu0  ;;  %v1079_v30 = vpop.f32.mrb[1].mxu1 }
  0xfb   : > { %v2890_v18 = vadd.f32 %v2258_v16, %v2257_v15  ;;  %v2260_v19 = vpop.f32.mrb[2].mxu0  ;;  %v2903_v32 = vpop.f32.mrb[2].mxu1 }
  0xfc   : > { %v2261_v20 = vpop.f32.mrb[3].mxu0  ;;  %v1082_v34 = vpop.f32.mrb[3].mxu1 }
  0xfd   : > { %v2892_v21 = vadd.f32 %v2261_v20, %v2260_v19 }
 0x101   : > { %v2263_v23 = vpop.f32.mrb[4].mxu0  ;;  %v2909_v39 = vpop.f32.mrb[4].mxu1 }
 0x102   : > { %v2264_v24 = vpop.f32.mrb[5].mxu0  ;;  %v2911_v40 = vpop.f32.mrb[5].mxu1 }
 0x103   : > { %v2897_v25 = vadd.f32 %v2264_v24, %v2263_v23  ;;  %v2266_v26 = vpop.f32.mrb[6].mxu0  ;;  %v2913_v42 = vpop.f32.mrb[6].mxu1 }
 0x104   : > { %v2267_v27 = vpop.f32.mrb[7].mxu0  ;;  %v2915_v44 = vpop.f32.mrb[7].mxu1 }
 0x105   : > { %v2899_v28 = vadd.f32 %v2267_v27, %v2266_v26 }
 0x109   : > { %v2269_v31 = vpop.f32.mrb[8].mxu0  ;;  %v2921_v49 = vpop.f32.mrb[8].mxu1 }
 0x10a   : > { %v2270_v33 = vpop.f32.mrb[9].mxu0  ;;  %v2923_v50 = vpop.f32.mrb[9].mxu1 }
 0x10b   : > { %v2905_v35 = vadd.f32 %v2270_v33, %v2269_v31  ;;  %v2272_v36 = vpop.f32.mrb[10].mxu0  ;;  %v2925_v52 = vpop.f32.mrb[10].mxu1 }
 0x10c   : > { %v2273_v37 = vpop.f32.mrb[11].mxu0  ;;  %v2927_v54 = vpop.f32.mrb[11].mxu1 }
 0x10d   : > { %v2907_v38 = vadd.f32 %v2273_v37, %v2272_v36 }
 0x111   : > { %v2275_v41 = vpop.f32.mrb[12].mxu0  ;;  %v2933_v59 = vpop.f32.mrb[12].mxu1 }
 0x112   : > { %v2276_v43 = vpop.f32.mrb[13].mxu0  ;;  %v2935_v60 = vpop.f32.mrb[13].mxu1 }
 0x113   : > { %v2917_v45 = vadd.f32 %v2276_v43, %v2275_v41  ;;  %v2278_v46 = vpop.f32.mrb[14].mxu0  ;;  %v2937_v62 = vpop.f32.mrb[14].mxu1 }
 0x114   : > { %v2279_v47 = vpop.f32.mrb[15].mxu0  ;;  %v2939_v0 = vpop.f32.mrb[15].mxu1 }
 0x115   : > { %v2919_v48 = vadd.f32 %v2279_v47, %v2278_v46 }
 0x119   : > { %v2281_v51 = vpop.f32.mrb[16].mxu0  ;;  %v2945_v5 = vpop.f32.mrb[16].mxu1 }
 0x11a   : > { %v2282_v53 = vpop.f32.mrb[17].mxu0  ;;  %v2947_v6 = vpop.f32.mrb[17].mxu1 }
 0x11b   : > { %v2929_v55 = vadd.f32 %v2282_v53, %v2281_v51  ;;  %v2284_v56 = vpop.f32.mrb[18].mxu0  ;;  %v2949_v8 = vpop.f32.mrb[18].mxu1 }
 0x11c   : > { %v2285_v57 = vpop.f32.mrb[19].mxu0  ;;  %v2951_v10 = vpop.f32.mrb[19].mxu1 }
 0x11d   : > { %v2931_v58 = vadd.f32 %v2285_v57, %v2284_v56 }
 0x121   : > { %v2287_v61 = vpop.f32.mrb[20].mxu0 }
 0x122   : > { %v2288_v63 = vpop.f32.mrb[21].mxu0 }
 0x123   : > { %v2941_v1 = vadd.f32 %v2288_v63, %v2287_v61  ;;  %v2290_v2 = vpop.f32.mrb[22].mxu0  ;;  %v2969_v63 = vld [vmem:[%s3256_s5] sm:$0xff]  }
 0x124   : > { %v2291_v3 = vpop.f32.mrb[23].mxu0  ;;  %2510 = vmatprep.subr.bf16.mxu1 %v2969_v63 }
 0x125   : > { %v2943_v4 = vadd.f32 %v2291_v3, %v2290_v2 }
 0x129   : > { %v2293_v7 = vpop.f32.mrb[24].mxu0 }
 0x12a   : > { %v2294_v9 = vpop.f32.mrb[25].mxu0 }
 0x12b   : > { %v2295_v11 = vadd.f32 %v2294_v9, %v2293_v7  ;;  %v2296_v12 = vpop.f32.mrb[26].mxu0 }
 0x12c   : > { %v2297_v13 = vpop.f32.mrb[27].mxu0 }
 0x12d   : > { %v2298_v15 = vadd.f32 %v2297_v13, %v2296_v12  ;;  %v919_v16 = vadd.f32 %v2295_v11, %v2956_v14 }
 0x12f   : > { %v1080_v17 = vadd.f32 %v1079_v30, %v919_v16  ;;  %v922_v19 = vadd.f32 %v2298_v15, %v2956_v14 }
 0x131   : > { %v1083_v20 = vadd.f32 %v1082_v34, %v922_v19  ;;  %v2299_v22 = vpop.f32.mrb[28].mxu0  ;;  %v1170_v24 = vmax.f32 %v1080_v17, 0.0 }
 0x132   : > { %v2300_v23 = vpop.f32.mrb[29].mxu0 }
 0x133   : > { %v1171_v26 = vmax.f32 %v1083_v20, 0.0  ;;  %v2301_v27 = vadd.f32 %v2300_v23, %v2299_v22  ;;  %v2302_v31 = vpop.f32.mrb[30].mxu0 }
 0x134   : > { %v2303_v33 = vpop.f32.mrb[31].mxu0 }
 0x135   : > { %v2960_v36 = vpack.c.bf16 %v1171_v26, %v1170_v24  ;;  %v927_v37 = vadd.f32 %v2301_v27, %v2956_v14  ;;  %v2304_v41 = vadd.f32 %v2303_v33, %v2302_v31 }
 0x137   : > { %v1088_v43 = vadd.f32 %v2901_v29, %v927_v37  ;;  %v930_v46 = vadd.f32 %v2304_v41, %v2956_v14 }
 0x139   : > { %v1091_v30 = vadd.f32 %v2903_v32, %v930_v46  ;;  %v2305_v47 = vpop.f32.mrb[32].mxu0  ;;  %v1172_v51 = vmax.f32 %v1088_v43, 0.0 }
 0x13a   : > { %v2306_v34 = vpop.f32.mrb[33].mxu0 }
 0x13b   : > { %v1173_v53 = vmax.f32 %v1091_v30, 0.0  ;;  %v2307_v56 = vadd.f32 %v2306_v34, %v2305_v47  ;;  %v2308_v57 = vpop.f32.mrb[34].mxu0 }
 0x13c   : > { %v2309_v61 = vpop.f32.mrb[35].mxu0 }
 0x13d   : > { %v2971_v2 = vpack.c.bf16 %v1173_v53, %v1172_v51  ;;  %v2310_v3 = vadd.f32 %v2309_v61, %v2308_v57  ;;  %v935_v29 = vadd.f32 %v2307_v56, %v2956_v14 }
 0x13f   : > { %v1096_v32 = vadd.f32 %v2911_v40, %v935_v29  ;;  %v938_v7 = vadd.f32 %v2310_v3, %v2956_v14 }
 0x141   : > { %v1099_v9 = vadd.f32 %v2915_v44, %v938_v7  ;;  %v2311_v11 = vpop.f32.mrb[36].mxu0  ;;  %v1174_v13 = vmax.f32 %v1096_v32, 0.0 }
 0x142   : > { %v2312_v12 = vpop.f32.mrb[37].mxu0 }
 0x143   : > { %v1175_v15 = vmax.f32 %v1099_v9, 0.0  ;;  %v2313_v16 = vadd.f32 %v2312_v12, %v2311_v11  ;;  %v2314_v17 = vpop.f32.mrb[38].mxu0 }
 0x144   : > { %v2315_v19 = vpop.f32.mrb[39].mxu0 }
 0x145   : > { %v2978_v20 = vpack.c.bf16 %v1175_v15, %v1174_v13  ;;  %v943_v22 = vadd.f32 %v2313_v16, %v2956_v14  ;;  %v2316_v23 = vadd.f32 %v2315_v19, %v2314_v17 }
 0x147   : > { %v1104_v24 = vadd.f32 %v2909_v39, %v943_v22  ;;  %v946_v40 = vadd.f32 %v2316_v23, %v2956_v14 }
 0x149   : > { %v1107_v26 = vadd.f32 %v2913_v42, %v946_v40  ;;  %v2317_v27 = vpop.f32.mrb[40].mxu0  ;;  %v1176_v31 = vmax.f32 %v1104_v24, 0.0 }
 0x14a   : > { %v2318_v44 = vpop.f32.mrb[41].mxu0 }
 0x14b   : > { %v1177_v33 = vmax.f32 %v1107_v26, 0.0  ;;  %v2319_v37 = vadd.f32 %v2318_v44, %v2317_v27  ;;  %v2320_v41 = vpop.f32.mrb[42].mxu0 }
 0x14c   : > { %v2321_v43 = vpop.f32.mrb[43].mxu0 }
 0x14d   : > { %v2984_v46 = vpack.c.bf16 %v1177_v33, %v1176_v31  ;;  %v2322_v30 = vadd.f32 %v2321_v43, %v2320_v41  ;;  %v951_v47 = vadd.f32 %v2319_v37, %v2956_v14 }
 0x14f   : > { %v1112_v34 = vadd.f32 %v2923_v50, %v951_v47  ;;  %v954_v39 = vadd.f32 %v2322_v30, %v2956_v14 }
 0x151   : > { %v1115_v51 = vadd.f32 %v2927_v54, %v954_v39  ;;  %v2323_v53 = vpop.f32.mrb[44].mxu0  ;;  %v1178_v56 = vmax.f32 %v1112_v34, 0.0 }
 0x152   : > { %v2324_v42 = vpop.f32.mrb[45].mxu0 }
 0x153   : > { %v1179_v57 = vmax.f32 %v1115_v51, 0.0  ;;  %v2325_v61 = vadd.f32 %v2324_v42, %v2323_v53  ;;  %v2326_v3 = vpop.f32.mrb[46].mxu0 }
 0x154   : > { %v2327_v29 = vpop.f32.mrb[47].mxu0 }
 0x155   : > { %v2990_v32 = vpack.c.bf16 %v1179_v57, %v1178_v56  ;;  %v959_v7 = vadd.f32 %v2325_v61, %v2956_v14  ;;  %v2328_v9 = vadd.f32 %v2327_v29, %v2326_v3 }
 0x157   : > { %v1120_v11 = vadd.f32 %v2921_v49, %v959_v7  ;;  %v962_v50 = vadd.f32 %v2328_v9, %v2956_v14 }
 0x159   : > { %v1123_v12 = vadd.f32 %v2925_v52, %v962_v50  ;;  %v2329_v13 = vpop.f32.mrb[48].mxu0  ;;  %v1180_v15 = vmax.f32 %v1120_v11, 0.0 }
 0x15a   : > { %v2330_v54 = vpop.f32.mrb[49].mxu0 }
 0x15b   : > { %v1181_v16 = vmax.f32 %v1123_v12, 0.0  ;;  %v2331_v17 = vadd.f32 %v2330_v54, %v2329_v13  ;;  %v2332_v19 = vpop.f32.mrb[50].mxu0 }
 0x15c   : > { %v2333_v22 = vpop.f32.mrb[51].mxu0 }
 0x15d   : > { %v2996_v23 = vpack.c.bf16 %v1181_v16, %v1180_v15  ;;  %v2334_v24 = vadd.f32 %v2333_v22, %v2332_v19  ;;  %v967_v40 = vadd.f32 %v2331_v17, %v2956_v14 }
 0x15f   : > { %v1128_v26 = vadd.f32 %v2935_v60, %v967_v40  ;;  %v970_v49 = vadd.f32 %v2334_v24, %v2956_v14 }
 0x161   : > { %v1131_v27 = vadd.f32 %v2939_v0, %v970_v49  ;;  %v2335_v44 = vpop.f32.mrb[52].mxu0  ;;  %v1182_v31 = vmax.f32 %v1128_v26, 0.0  ;;  %v879_v26 = vadd.f32 %v2897_v25, %v2956_v14 }
 0x162   : > { %v2336_v52 = vpop.f32.mrb[53].mxu0 }
 0x163   : > { %v1183_v33 = vmax.f32 %v1131_v27, 0.0  ;;  %v2337_v37 = vadd.f32 %v2336_v52, %v2335_v44  ;;  %v2338_v41 = vpop.f32.mrb[54].mxu0  ;;  %v871_v27 = vadd.f32 %v2890_v18, %v2956_v14 }
 0x164   : > { %v2339_v43 = vpop.f32.mrb[55].mxu0 }
 0x165   : > { %v3002_v30 = vpack.c.bf16 %v1183_v33, %v1182_v31  ;;  %v975_v47 = vadd.f32 %v2337_v37, %v2956_v14  ;;  %v2340_v34 = vadd.f32 %v2339_v43, %v2338_v41  ;;  %v882_v31 = vadd.f32 %v2899_v28, %v2956_v14 }
 0x166   : > { %v874_v43 = vadd.f32 %v2892_v21, %v2956_v14  ;;  %v895_v28 = vadd.f32 %v2917_v45, %v2956_v14  ;;  %v890_v45 = vadd.f32 %v2907_v38, %v2956_v14  ;;  %v911_v38 = vadd.f32 %v2941_v1, %v2956_v14 }
 0x167   : > { %v1136_v39 = vadd.f32 %v2933_v59, %v975_v47  ;;  %v978_v60 = vadd.f32 %v2340_v34, %v2956_v14  ;;  %v906_v1 = vadd.f32 %v2931_v58, %v2956_v14  ;;  %v2676_v58 = vld [vmem:[%s3256_s5 + $0x28] sm:$0xff]  }
 0x169   : > { %v1139_v51 = vadd.f32 %v2937_v62, %v978_v60  ;;  %v2341_v53 = vpop.f32.mrb[56].mxu0  ;;  %v1184_v42 = vmax.f32 %v1136_v39, 0.0 }
 0x16a   : > { %v2342_v0 = vpop.f32.mrb[57].mxu0 }
 0x16b   : > { %v1185_v56 = vmax.f32 %v1139_v51, 0.0  ;;  %v2343_v57 = vadd.f32 %v2342_v0, %v2341_v53  ;;  %v2344_v61 = vpop.f32.mrb[58].mxu0 }
 0x16c   : > { %v2345_v3 = vpop.f32.mrb[59].mxu0 }
 0x16d   : > { %v3008_v29 = vpack.c.bf16 %v1185_v56, %v1184_v42  ;;  %v2346_v7 = vadd.f32 %v2345_v3, %v2344_v61  ;;  %v983_v9 = vadd.f32 %v2343_v57, %v2956_v14  ;;  %v887_v56 = vadd.f32 %v2905_v35, %v2956_v14  ;;  %v2672_v3 = vld [vmem:[%s3256_s5 + $0x8] sm:$0xff]  }
 0x16e   : > { %v898_v61 = vadd.f32 %v2919_v48, %v2956_v14 }
 0x16f   : > { %v1144_v11 = vadd.f32 %v2947_v6, %v983_v9  ;;  %v986_v59 = vadd.f32 %v2346_v7, %v2956_v14 }
 0x171   : > { %v1147_v50 = vadd.f32 %v2951_v10, %v986_v59  ;;  %v2347_v12 = vpop.f32.mrb[60].mxu0  ;;  %v1186_v13 = vmax.f32 %v1144_v11, 0.0 }
 0x172   : > { %v2348_v62 = vpop.f32.mrb[61].mxu0 }
 0x173   : > { %v1187_v54 = vmax.f32 %v1147_v50, 0.0  ;;  %v2349_v15 = vadd.f32 %v2348_v62, %v2347_v12  ;;  %v2350_v16 = vpop.f32.mrb[62].mxu0  ;;  %v2673_v12 = vld [vmem:[%s3256_s5 + $0x10] sm:$0xff]  }
 0x174   : > { %v2351_v17 = vpop.f32.mrb[63].mxu0 }
 0x175   : > { %v3014_v19 = vpack.c.bf16 %v1187_v54, %v1186_v13  ;;  %v991_v22 = vadd.f32 %v2349_v15, %v2956_v14  ;;  %v2352_v24 = vadd.f32 %v2351_v17, %v2350_v16  ;;  %v903_v17 = vadd.f32 %v2929_v55, %v2956_v14 }
 0x177   : > { %v1152_v40 = vadd.f32 %v2945_v5, %v991_v22  ;;  %v994_v6 = vadd.f32 %v2352_v24, %v2956_v14  ;;  %v914_v24 = vadd.f32 %v2943_v4, %v2956_v14  ;;  %v3091_v14 = vld [vmem:[%s3255_s4] ss:$0 sm:$0xff] }
 0x179   : > { %v1155_v10 = vadd.f32 %v2949_v8, %v994_v6  ;;  %v2436_v49 = vpop.f32.mrb[64].mxu0  ;;  %v1188_v33 = vmax.f32 %v1152_v40, 0.0  ;;  %v2674_v40 = vld [vmem:[%s3256_s5 + $0x18] sm:$0xff]  }
 0x17a   : > { %v1040_v44 = vadd.f32 %v2436_v49, %v879_v26  ;;  %v1031_v52 = vpop.f32.mrb[65].mxu0 }
 0x17b   : > { %v1189_v37 = vmax.f32 %v1155_v10, 0.0  ;;  %v1032_v41 = vadd.f32 %v1031_v52, %v871_v27  ;;  %v2437_v5 = vpop.f32.mrb[66].mxu0 }
 0x17c   : > { %v1043_v47 = vadd.f32 %v2437_v5, %v882_v31  ;;  %v1034_v25 = vpop.f32.mrb[67].mxu0  ;;  %v1160_v39 = vmax.f32 %v1040_v44, 0.0  ;;  %v2675_v44 = vld [vmem:[%s3256_s5 + $0x20] sm:$0xff]  }
 0x17d   : > { %v3028_v34 = vpack.c.bf16 %v1189_v37, %v1188_v33  ;;  %v1035_v8 = vadd.f32 %v1034_v25, %v874_v43  ;;  %v1158_v18 = vmax.f32 %v1032_v41, 0.0 }
 0x17e   : > { %v1161_v60 = vmax.f32 %v1043_v47, 0.0 }
 0x17f   : > { %v1159_v51 = vmax.f32 %v1035_v8, 0.0 }
 0x180   : > { %v1191_v53 = vpack.c.bf16 %v1161_v60, %v1160_v39 }
 0x181   : > { %v1190_v0 = vpack.c.bf16 %v1159_v51, %v1158_v18  ;;  %v2440_v42 = vpop.f32.mrb[68].mxu0 }
 0x182   : > { %v1056_v21 = vadd.f32 %v2440_v42, %v895_v28  ;;  %v1047_v57 = vpop.f32.mrb[69].mxu0 }
 0x183   : > { %v1048_v7 = vadd.f32 %v1047_v57, %v887_v56  ;;  %v2441_v9 = vpop.f32.mrb[70].mxu0  ;;  %2478 = vmatprep.mubr.msk.bf16.mxu1 %vm1261_vm3, %v1190_v0 }
 0x184   : > { %v1059_v11 = vadd.f32 %v2441_v9, %v898_v61  ;;  %v1050_v59 = vpop.f32.mrb[71].mxu0  ;;  %2479 = vmatmul.mubr.msk.bf16.vlgmr.msra.gmra.mrb[20].mxu1 %vm1261_vm3, %v1191_v53  ;;  %v1164_v50 = vmax.f32 %v1056_v21, 0.0 }
 0x185   : > { %v1051_v35 = vadd.f32 %v1050_v59, %v890_v45  ;;  %2511 = vmatpush3.bf16.msra.mxu1 %v2969_v63  ;;  %v1162_v62 = vmax.f32 %v1048_v7, 0.0 }
 0x186   : > { %v1165_v48 = vmax.f32 %v1059_v11, 0.0  ;;  %2512 = vmatprep.subr.bf16.mxu1 %v2672_v3 }
 0x187   : > { %v1163_v13 = vmax.f32 %v1051_v35, 0.0 }
 0x188   : > { %v1193_v54 = vpack.c.bf16 %v1165_v48, %v1164_v50 }
 0x189   : > { %v1192_v15 = vpack.c.bf16 %v1163_v13, %v1162_v62  ;;  %v2444_v16 = vpop.f32.mrb[72].mxu0  ;;  %2513 = vmatpush3.bf16.msra.mxu1 %v2672_v3 }
 0x18a   : > { %v1072_v63 = vadd.f32 %v2444_v16, %v911_v38  ;;  %v1063_v22 = vpop.f32.mrb[73].mxu0  ;;  %2514 = vmatprep.subr.bf16.mxu1 %v2673_v12 }
 0x18b   : > { %v1064_v6 = vadd.f32 %v1063_v22, %v903_v17  ;;  %v2445_v26 = vpop.f32.mrb[74].mxu0  ;;  %2482 = vmatprep.mubr.msk.bf16.mxu1 %vm1261_vm3, %v1192_v15 }
 0x18c   : > { %v1075_v10 = vadd.f32 %v2445_v26, %v914_v24  ;;  %v1066_v55 = vpop.f32.mrb[75].mxu0  ;;  %2483 = vmatmul.mubr.msk.bf16.gmra.mrb[24].mxu1 %vm1261_vm3, %v1193_v54  ;;  %v1168_v27 = vmax.f32 %v1072_v63, 0.0 }
 0x18d   : > { %v1067_v49 = vadd.f32 %v1066_v55, %v906_v1  ;;  %2515 = vmatpush3.bf16.msra.mxu1 %v2673_v12  ;;  %v1166_v52 = vmax.f32 %v1064_v6, 0.0 }
 0x18e   : > { %v1169_v4 = vmax.f32 %v1075_v10, 0.0  ;;  %2516 = vmatprep.subr.bf16.mxu1 %v2674_v40 }
 0x18f   : > { %v1167_v31 = vmax.f32 %v1067_v49, 0.0 }
 0x190   : > { %v1195_v33 = vpack.c.bf16 %v1169_v4, %v1168_v27 }
 0x191   : > { %v1194_v37 = vpack.c.bf16 %v1167_v31, %v1166_v52  ;;  %2517 = vmatpush3.bf16.msra.mxu1 %v2674_v40 }
 0x192   : > { %2518 = vmatprep.subr.bf16.mxu1 %v2675_v44 }
 0x193   : > { %2486 = vmatprep.mubr.msk.bf16.mxu1 %vm1261_vm3, %v1194_v37 }
 0x194   : > { %2487 = vmatmul.mubr.msk.bf16.gmra.mrb[28].mxu1 %vm1261_vm3, %v1195_v33 }
 0x195   : > { %2490 = vmatprep.mubr.msk.bf16.mxu1 %vm1261_vm3, %v2960_v36  ;;  %2519 = vmatpush3.bf16.msra.mxu1 %v2675_v44 }
 0x196   : > { %2520 = vmatprep.subr.bf16.mxu1 %v2676_v58 }
 0x199   : > { %2521 = vmatpush3.bf16.msra.mxu1 %v2676_v58 }
 0x19c   : > { %2491 = vmatmul.mubr.msk.bf16.gmra.mrb[32].mxu1 %vm1261_vm3, %v2971_v2 }
 0x19d   : > { %2494 = vmatprep.mubr.msk.bf16.mxu1 %vm1261_vm3, %v2978_v20 }
 0x1a4   : > { %2495 = vmatmul.mubr.msk.bf16.gmra.mrb[36].mxu1 %vm1261_vm3, %v2984_v46 }
 0x1a5   : > { %2498 = vmatprep.mubr.msk.bf16.mxu1 %vm1261_vm3, %v2990_v32 }
 0x1ac   : > { %2499 = vmatmul.mubr.msk.bf16.gmra.mrb[40].mxu1 %vm1261_vm3, %v2996_v23 }
 0x1ad   : > { %2502 = vmatprep.mubr.msk.bf16.mxu1 %vm1261_vm3, %v3002_v30 }
 0x1b4   : > { %2503 = vmatmul.mubr.msk.bf16.gmra.mrb[44].mxu1 %vm1261_vm3, %v3008_v29 }
 0x1b5   : > { %2506 = vmatprep.mubr.msk.bf16.mxu1 %vm1261_vm3, %v3014_v19 }
 0x1bc   : > { %2507 = vmatmul.mubr.msk.bf16.gmra.mrb[48].mxu1 %vm1261_vm3, %v3028_v34 }
 0x257   : > { %v2480_v36 = vpop.f32.mrb[20].mxu1 }
 0x258   : > { %v1353_v2 = vadd.f32 %v2480_v36, %v3091_v14  ;;  %v1344_v20 = vpop.f32.mrb[21].mxu1 }
 0x259   : > { %v1345_v46 = vadd.f32 %v3091_v14, %v1344_v20  ;;  %v2481_v32 = vpop.f32.mrb[22].mxu1 }
 0x25a   : > { %v1356_v23 = vadd.f32 %v2481_v32, %v3091_v14  ;;  %v1347_v30 = vpop.f32.mrb[23].mxu1  ;;  %v1473_v19 = vmax.f32 %v1353_v2, 0.0 }
 0x25b   : > { %v1348_v29 = vadd.f32 %v3091_v14, %v1347_v30  ;;  %v1471_v5 = vmax.f32 %v1345_v46, 0.0 }
 0x25c   : > { %v1474_v41 = vmax.f32 %v1356_v23, 0.0 }
 0x25d   : > { %v1472_v43 = vmax.f32 %v1348_v29, 0.0 }
 0x25e   : > { %v1504_v47 = vpack.c.bf16 %v1474_v41, %v1473_v19 }
 0x25f   : > { %v1503_v25 = vpack.c.bf16 %v1472_v43, %v1471_v5  ;;  %v2484_v34 = vpop.f32.mrb[24].mxu1 }
 0x260   : > { %v1369_v8 = vadd.f32 %v2484_v34, %v3091_v14  ;;  %v1360_v39 = vpop.f32.mrb[25].mxu1 }
 0x261   : > { %v1361_v60 = vadd.f32 %v3091_v14, %v1360_v39  ;;  %v2485_v18 = vpop.f32.mrb[26].mxu1  ;;  %2522 = vmatprep.mubr.msk.bf16.mxu1 %vm1261_vm3, %v1503_v25 }
 0x262   : > { %v1372_v51 = vadd.f32 %v2485_v18, %v3091_v14  ;;  %v1363_v53 = vpop.f32.mrb[27].mxu1  ;;  %2523 = vmatmul.mubr.msk.bf16.vlgmr.msra.gmra.mrb[52].mxu1 %vm1261_vm3, %v1504_v47  ;;  %v1477_v0 = vmax.f32 %v1369_v8, 0.0 }
 0x263   : > { %v1364_v28 = vadd.f32 %v3091_v14, %v1363_v53  ;;  %v1475_v56 = vmax.f32 %v1361_v60, 0.0 }
 0x264   : > { %v1478_v42 = vmax.f32 %v1372_v51, 0.0 }
 0x265   : > { %v1476_v21 = vmax.f32 %v1364_v28, 0.0 }
 0x266   : > { %v1506_v57 = vpack.c.bf16 %v1478_v42, %v1477_v0 }
 0x267   : > { %v1505_v61 = vpack.c.bf16 %v1476_v21, %v1475_v56  ;;  %v2488_v3 = vpop.f32.mrb[28].mxu1 }
 0x268   : > { %v1385_v7 = vadd.f32 %v2488_v3, %v3091_v14  ;;  %v1376_v9 = vpop.f32.mrb[29].mxu1 }
 0x269   : > { %v1377_v45 = vadd.f32 %v3091_v14, %v1376_v9  ;;  %v2489_v11 = vpop.f32.mrb[30].mxu1  ;;  %2526 = vmatprep.mubr.msk.bf16.mxu1 %vm1261_vm3, %v1505_v61 }
 0x26a   : > { %v1388_v59 = vadd.f32 %v2489_v11, %v3091_v14  ;;  %v1379_v35 = vpop.f32.mrb[31].mxu1  ;;  %2527 = vmatmul.mubr.msk.bf16.gmra.mrb[56].mxu1 %vm1261_vm3, %v1506_v57  ;;  %v1481_v48 = vmax.f32 %v1385_v7, 0.0 }
 0x26b   : > { %v1380_v50 = vadd.f32 %v3091_v14, %v1379_v35  ;;  %v1479_v62 = vmax.f32 %v1377_v45, 0.0 }
 0x26c   : > { %v1482_v12 = vmax.f32 %v1388_v59, 0.0 }
 0x26d   : > { %v1480_v13 = vmax.f32 %v1380_v50, 0.0 }
 0x26e   : > { %v1508_v54 = vpack.c.bf16 %v1482_v12, %v1481_v48 }
 0x26f   : > { %v1507_v38 = vpack.c.bf16 %v1480_v13, %v1479_v62  ;;  %v2492_v15 = vpop.f32.mrb[32].mxu1 }
 0x270   : > { %v1401_v16 = vadd.f32 %v2492_v15, %v3091_v14  ;;  %v1392_v17 = vpop.f32.mrb[33].mxu1 }
 0x271   : > { %v1393_v63 = vadd.f32 %v3091_v14, %v1392_v17  ;;  %v2493_v22 = vpop.f32.mrb[34].mxu1  ;;  %2530 = vmatprep.mubr.msk.bf16.mxu1 %vm1261_vm3, %v1507_v38 }
 0x272   : > { %v1404_v24 = vadd.f32 %v2493_v22, %v3091_v14  ;;  %v1395_v40 = vpop.f32.mrb[35].mxu1  ;;  %2531 = vmatmul.mubr.msk.bf16.gmra.mrb[60].mxu1 %vm1261_vm3, %v1508_v54  ;;  %v1485_v26 = vmax.f32 %v1401_v16, 0.0 }
 0x273   : > { %v1396_v6 = vadd.f32 %v3091_v14, %v1395_v40  ;;  %v1483_v10 = vmax.f32 %v1393_v63, 0.0 }
 0x274   : > { %v1486_v1 = vmax.f32 %v1404_v24, 0.0 }
 0x275   : > { %v1484_v55 = vmax.f32 %v1396_v6, 0.0  ;;  %v3144_v6 = vld [vmem:[%s3257_s6] ss:$0 sm:$0xff] }
 0x276   : > { %v1510_v49 = vpack.c.bf16 %v1486_v1, %v1485_v26 }
 0x277   : > { %v1509_v27 = vpack.c.bf16 %v1484_v55, %v1483_v10  ;;  %v2496_v4 = vpop.f32.mrb[36].mxu1 }
 0x278   : > { %v1417_v44 = vadd.f32 %v2496_v4, %v3091_v14  ;;  %v1408_v52 = vpop.f32.mrb[37].mxu1 }
 0x279   : > { %v1409_v31 = vadd.f32 %v3091_v14, %v1408_v52  ;;  %v2497_v33 = vpop.f32.mrb[38].mxu1  ;;  %2534 = vmatprep.mubr.msk.bf16.mxu1 %vm1261_vm3, %v1509_v27 }
 0x27a   : > { %v1420_v37 = vadd.f32 %v2497_v33, %v3091_v14  ;;  %v1411_v58 = vpop.f32.mrb[39].mxu1  ;;  %2535 = vmatmul.mubr.msk.bf16.gmra.mrb[64].mxu1 %vm1261_vm3, %v1510_v49  ;;  %v1489_v2 = vmax.f32 %v1417_v44, 0.0 }
 0x27b   : > { %v1412_v36 = vadd.f32 %v3091_v14, %v1411_v58  ;;  %v1487_v46 = vmax.f32 %v1409_v31, 0.0 }
 0x27c   : > { %v1490_v20 = vmax.f32 %v1420_v37, 0.0 }
 0x27d   : > { %v1488_v32 = vmax.f32 %v1412_v36, 0.0 }
 0x27e   : > { %v1512_v23 = vpack.c.bf16 %v1490_v20, %v1489_v2 }
 0x27f   : > { %v1511_v30 = vpack.c.bf16 %v1488_v32, %v1487_v46  ;;  %v2500_v29 = vpop.f32.mrb[40].mxu1 }
 0x280   : > { %v1433_v19 = vadd.f32 %v2500_v29, %v3091_v14  ;;  %v1424_v41 = vpop.f32.mrb[41].mxu1 }
 0x281   : > { %v1425_v5 = vadd.f32 %v3091_v14, %v1424_v41  ;;  %v2501_v43 = vpop.f32.mrb[42].mxu1  ;;  %2538 = vmatprep.mubr.msk.bf16.mxu1 %vm1261_vm3, %v1511_v30 }
 0x282   : > { %v1436_v47 = vadd.f32 %v2501_v43, %v3091_v14  ;;  %v1427_v25 = vpop.f32.mrb[43].mxu1  ;;  %2539 = vmatmul.mubr.msk.bf16.gmra.mrb[68].mxu1 %vm1261_vm3, %v1512_v23  ;;  %v1493_v8 = vmax.f32 %v1433_v19, 0.0 }
 0x283   : > { %v1428_v34 = vadd.f32 %v3091_v14, %v1427_v25  ;;  %v1491_v60 = vmax.f32 %v1425_v5, 0.0 }
 0x284   : > { %v1494_v39 = vmax.f32 %v1436_v47, 0.0 }
 0x285   : > { %v1492_v18 = vmax.f32 %v1428_v34, 0.0 }
 0x286   : > { %v1514_v51 = vpack.c.bf16 %v1494_v39, %v1493_v8 }
 0x287   : > { %v1513_v53 = vpack.c.bf16 %v1492_v18, %v1491_v60  ;;  %v2504_v28 = vpop.f32.mrb[44].mxu1 }
 0x288   : > { %v1449_v0 = vadd.f32 %v2504_v28, %v3091_v14  ;;  %v1440_v42 = vpop.f32.mrb[45].mxu1 }
 0x289   : > { %v1441_v56 = vadd.f32 %v3091_v14, %v1440_v42  ;;  %v2505_v21 = vpop.f32.mrb[46].mxu1  ;;  %2542 = vmatprep.mubr.msk.bf16.mxu1 %vm1261_vm3, %v1513_v53 }
 0x28a   : > { %v1452_v57 = vadd.f32 %v2505_v21, %v3091_v14  ;;  %v1443_v61 = vpop.f32.mrb[47].mxu1  ;;  %2543 = vmatmul.mubr.msk.bf16.gmra.mrb[72].mxu1 %vm1261_vm3, %v1514_v51  ;;  %v1497_v7 = vmax.f32 %v1449_v0, 0.0 }
 0x28b   : > { %v1444_v3 = vadd.f32 %v3091_v14, %v1443_v61  ;;  %v1495_v45 = vmax.f32 %v1441_v56, 0.0 }
 0x28c   : > { %v1498_v9 = vmax.f32 %v1452_v57, 0.0 }
 0x28d   : > { %v1496_v11 = vmax.f32 %v1444_v3, 0.0 }
 0x28e   : > { %v1516_v59 = vpack.c.bf16 %v1498_v9, %v1497_v7 }
 0x28f   : > { %v1515_v35 = vpack.c.bf16 %v1496_v11, %v1495_v45  ;;  %v2508_v50 = vpop.f32.mrb[48].mxu1 }
 0x290   : > { %v1465_v48 = vadd.f32 %v2508_v50, %v3091_v14  ;;  %v1456_v12 = vpop.f32.mrb[49].mxu1 }
 0x291   : > { %v1457_v62 = vadd.f32 %v3091_v14, %v1456_v12  ;;  %v2509_v13 = vpop.f32.mrb[50].mxu1  ;;  %2546 = vmatprep.mubr.msk.bf16.mxu1 %vm1261_vm3, %v1515_v35 }
 0x292   : > { %v1468_v54 = vadd.f32 %v2509_v13, %v3091_v14  ;;  %v1459_v38 = vpop.f32.mrb[51].mxu1  ;;  %2547 = vmatmul.mubr.msk.bf16.gmra.mrb[76].mxu1 %vm1261_vm3, %v1516_v59  ;;  %v1501_v16 = vmax.f32 %v1465_v48, 0.0 }
 0x293   : > { %v1460_v15 = vadd.f32 %v3091_v14, %v1459_v38  ;;  %v1499_v63 = vmax.f32 %v1457_v62, 0.0 }
 0x294   : > { %v1502_v17 = vmax.f32 %v1468_v54, 0.0 }
 0x295   : > { %v1500_v22 = vmax.f32 %v1460_v15, 0.0 }
 0x296   : > { %v1518_v24 = vpack.c.bf16 %v1502_v17, %v1501_v16 }
 0x297   : > { %v1517_v40 = vpack.c.bf16 %v1500_v22, %v1499_v63 }
 0x299   : > { %2550 = vmatprep.mubr.msk.bf16.mxu1 %vm1261_vm3, %v1517_v40 }
 0x29a   : > { %2551 = vmatmul.mubr.msk.bf16.gmra.mrb[80].mxu1 %vm1261_vm3, %v1518_v24 }
 0x335   : > { %v2524_v26 = vpop.f32.mrb[52].mxu1 }
 0x336   : > { %v1665_v1 = vadd.f32 %v2524_v26, %v3144_v6  ;;  %v1656_v14 = vpop.f32.mrb[53].mxu1 }
 0x337   : > { %v1657_v10 = vadd.f32 %v3144_v6, %v1656_v14  ;;  %v2525_v55 = vpop.f32.mrb[54].mxu1 }
 0x338   : > { %v1785_v49 = vmax.f32 %v1665_v1, 0.0  ;;  %v1668_v27 = vadd.f32 %v2525_v55, %v3144_v6  ;;  %v1659_v4 = vpop.f32.mrb[55].mxu1 }
 0x339   : > { %v1783_v44 = vmax.f32 %v1657_v10, 0.0  ;;  %v1660_v52 = vadd.f32 %v3144_v6, %v1659_v4 }
 0x33a   : > { %v2211_v31 = vpack.c.bf16 %v1785_v49, %v1785_v49  ;;  %v1786_v33 = vmax.f32 %v1668_v27, 0.0 }
 0x33b   : > { %v2209_v37 = vpack.c.bf16 %v1783_v44, %v1783_v44  ;;  %v1784_v58 = vmax.f32 %v1660_v52, 0.0 }
 0x33c   : > { %1946 = vst.msk [vmem:[%s3153_s25 + $0x8] sm:$0xf] %vm1943_vm4, %v2211_v31  ;;  %v2212_v36 = vpack.c.bf16 %v1786_v33, %v1786_v33 }
 0x33d   : > { %1944 = vst.msk [vmem:[%s3153_s25] sm:$0xf] %vm1943_vm4, %v2209_v37  ;;  %v2210_v2 = vpack.c.bf16 %v1784_v58, %v1784_v58  ;;  %v2528_v20 = vpop.f32.mrb[56].mxu1 }
 0x33e   : > { %1947 = vst.msk [vmem:[%s3153_s25 + $0xc] sm:$0xf] %vm1943_vm4, %v2212_v36  ;;  %v1681_v46 = vadd.f32 %v2528_v20, %v3144_v6  ;;  %v1672_v32 = vpop.f32.mrb[57].mxu1 }
 0x33f   : > { %1945 = vst.msk [vmem:[%s3153_s25 + $0x4] sm:$0xf] %vm1943_vm4, %v2210_v2  ;;  %v1673_v23 = vadd.f32 %v3144_v6, %v1672_v32  ;;  %v2529_v30 = vpop.f32.mrb[58].mxu1 }
 0x340   : > { %v1789_v29 = vmax.f32 %v1681_v46, 0.0  ;;  %v1684_v19 = vadd.f32 %v2529_v30, %v3144_v6  ;;  %v1675_v41 = vpop.f32.mrb[59].mxu1 }
 0x341   : > { %v1787_v5 = vmax.f32 %v1673_v23, 0.0  ;;  %v1676_v43 = vadd.f32 %v3144_v6, %v1675_v41 }
 0x342   : > { %v2215_v47 = vpack.c.bf16 %v1789_v29, %v1789_v29  ;;  %v1790_v25 = vmax.f32 %v1684_v19, 0.0 }
 0x343   : > { %v2213_v34 = vpack.c.bf16 %v1787_v5, %v1787_v5  ;;  %v1788_v8 = vmax.f32 %v1676_v43, 0.0 }
 0x344   : > { %1950 = vst.msk [vmem:[%s3153_s25 + $0x18] sm:$0xf] %vm1943_vm4, %v2215_v47  ;;  %v2216_v39 = vpack.c.bf16 %v1790_v25, %v1790_v25 }
 0x345   : > { %1948 = vst.msk [vmem:[%s3153_s25 + $0x10] sm:$0xf] %vm1943_vm4, %v2213_v34  ;;  %v2214_v60 = vpack.c.bf16 %v1788_v8, %v1788_v8  ;;  %v2532_v18 = vpop.f32.mrb[60].mxu1 }
 0x346   : > { %1951 = vst.msk [vmem:[%s3153_s25 + $0x1c] sm:$0xf] %vm1943_vm4, %v2216_v39  ;;  %v1697_v51 = vadd.f32 %v2532_v18, %v3144_v6  ;;  %v1688_v53 = vpop.f32.mrb[61].mxu1 }
 0x347   : > { %1949 = vst.msk [vmem:[%s3153_s25 + $0x14] sm:$0xf] %vm1943_vm4, %v2214_v60  ;;  %v1689_v28 = vadd.f32 %v3144_v6, %v1688_v53  ;;  %v2533_v0 = vpop.f32.mrb[62].mxu1 }
 0x348   : > { %v1793_v42 = vmax.f32 %v1697_v51, 0.0  ;;  %v1700_v56 = vadd.f32 %v2533_v0, %v3144_v6  ;;  %v1691_v21 = vpop.f32.mrb[63].mxu1 }
 0x349   : > { %v1791_v57 = vmax.f32 %v1689_v28, 0.0  ;;  %v1692_v61 = vadd.f32 %v3144_v6, %v1691_v21 }
 0x34a   : > { %v2219_v3 = vpack.c.bf16 %v1793_v42, %v1793_v42  ;;  %v1794_v7 = vmax.f32 %v1700_v56, 0.0 }
 0x34b   : > { %v2217_v9 = vpack.c.bf16 %v1791_v57, %v1791_v57  ;;  %v1792_v45 = vmax.f32 %v1692_v61, 0.0 }
 0x34c   : > { %1954 = vst.msk [vmem:[%s3153_s25 + $0x28] sm:$0xf] %vm1943_vm4, %v2219_v3  ;;  %v2220_v11 = vpack.c.bf16 %v1794_v7, %v1794_v7 }
 0x34d   : > { %1952 = vst.msk [vmem:[%s3153_s25 + $0x20] sm:$0xf] %vm1943_vm4, %v2217_v9  ;;  %v2218_v59 = vpack.c.bf16 %v1792_v45, %v1792_v45  ;;  %v2536_v35 = vpop.f32.mrb[64].mxu1 }
 0x34e   : > { %1955 = vst.msk [vmem:[%s3153_s25 + $0x2c] sm:$0xf] %vm1943_vm4, %v2220_v11  ;;  %v1713_v50 = vadd.f32 %v2536_v35, %v3144_v6  ;;  %v1704_v48 = vpop.f32.mrb[65].mxu1 }
 0x34f   : > { %1953 = vst.msk [vmem:[%s3153_s25 + $0x24] sm:$0xf] %vm1943_vm4, %v2218_v59  ;;  %v1705_v12 = vadd.f32 %v3144_v6, %v1704_v48  ;;  %v2537_v62 = vpop.f32.mrb[66].mxu1 }
 0x350   : > { %v1797_v13 = vmax.f32 %v1713_v50, 0.0  ;;  %v1716_v54 = vadd.f32 %v2537_v62, %v3144_v6  ;;  %v1707_v38 = vpop.f32.mrb[67].mxu1 }
 0x351   : > { %v1795_v15 = vmax.f32 %v1705_v12, 0.0  ;;  %v1708_v16 = vadd.f32 %v3144_v6, %v1707_v38 }
 0x352   : > { %v2223_v17 = vpack.c.bf16 %v1797_v13, %v1797_v13  ;;  %v1798_v63 = vmax.f32 %v1716_v54, 0.0 }
 0x353   : > { %v2221_v22 = vpack.c.bf16 %v1795_v15, %v1795_v15  ;;  %v1796_v24 = vmax.f32 %v1708_v16, 0.0 }
 0x354   : > { %1958 = vst.msk [vmem:[%s3153_s25 + $0x38] sm:$0xf] %vm1943_vm4, %v2223_v17  ;;  %v2224_v40 = vpack.c.bf16 %v1798_v63, %v1798_v63 }
 0x355   : > { %1956 = vst.msk [vmem:[%s3153_s25 + $0x30] sm:$0xf] %vm1943_vm4, %v2221_v22  ;;  %v2222_v26 = vpack.c.bf16 %v1796_v24, %v1796_v24  ;;  %v2540_v1 = vpop.f32.mrb[68].mxu1 }
 0x356   : > { %1959 = vst.msk [vmem:[%s3153_s25 + $0x3c] sm:$0xf] %vm1943_vm4, %v2224_v40  ;;  %v1729_v14 = vadd.f32 %v2540_v1, %v3144_v6  ;;  %v1720_v10 = vpop.f32.mrb[69].mxu1 }
 0x357   : > { %1957 = vst.msk [vmem:[%s3153_s25 + $0x34] sm:$0xf] %vm1943_vm4, %v2222_v26  ;;  %v1721_v55 = vadd.f32 %v3144_v6, %v1720_v10  ;;  %v2541_v49 = vpop.f32.mrb[70].mxu1 }
 0x358   : > { %v1801_v27 = vmax.f32 %v1729_v14, 0.0  ;;  %v1732_v4 = vadd.f32 %v2541_v49, %v3144_v6  ;;  %v1723_v44 = vpop.f32.mrb[71].mxu1 }
 0x359   : > { %v1799_v52 = vmax.f32 %v1721_v55, 0.0  ;;  %v1724_v31 = vadd.f32 %v3144_v6, %v1723_v44 }
 0x35a   : > { %v2227_v33 = vpack.c.bf16 %v1801_v27, %v1801_v27  ;;  %v1802_v37 = vmax.f32 %v1732_v4, 0.0 }
 0x35b   : > { %v2225_v58 = vpack.c.bf16 %v1799_v52, %v1799_v52  ;;  %v1800_v36 = vmax.f32 %v1724_v31, 0.0 }
 0x35c   : > { %1962 = vst.msk [vmem:[%s3153_s25 + $0x48] sm:$0xf] %vm1943_vm4, %v2227_v33  ;;  %v2228_v2 = vpack.c.bf16 %v1802_v37, %v1802_v37 }
 0x35d   : > { %1960 = vst.msk [vmem:[%s3153_s25 + $0x40] sm:$0xf] %vm1943_vm4, %v2225_v58  ;;  %v2226_v20 = vpack.c.bf16 %v1800_v36, %v1800_v36  ;;  %v2544_v46 = vpop.f32.mrb[72].mxu1 }
 0x35e   : > { %1963 = vst.msk [vmem:[%s3153_s25 + $0x4c] sm:$0xf] %vm1943_vm4, %v2228_v2  ;;  %v1745_v32 = vadd.f32 %v2544_v46, %v3144_v6  ;;  %v1736_v23 = vpop.f32.mrb[73].mxu1 }
 0x35f   : > { %1961 = vst.msk [vmem:[%s3153_s25 + $0x44] sm:$0xf] %vm1943_vm4, %v2226_v20  ;;  %v1737_v30 = vadd.f32 %v3144_v6, %v1736_v23  ;;  %v2545_v29 = vpop.f32.mrb[74].mxu1 }
 0x360   : > { %v1805_v19 = vmax.f32 %v1745_v32, 0.0  ;;  %v1748_v41 = vadd.f32 %v2545_v29, %v3144_v6  ;;  %v1739_v5 = vpop.f32.mrb[75].mxu1 }
 0x361   : > { %v1803_v43 = vmax.f32 %v1737_v30, 0.0  ;;  %v1740_v47 = vadd.f32 %v3144_v6, %v1739_v5 }
 0x362   : > { %v2231_v25 = vpack.c.bf16 %v1805_v19, %v1805_v19  ;;  %v1806_v34 = vmax.f32 %v1748_v41, 0.0 }
 0x363   : > { %v2229_v8 = vpack.c.bf16 %v1803_v43, %v1803_v43  ;;  %v1804_v39 = vmax.f32 %v1740_v47, 0.0 }
 0x364   : > { %1966 = vst.msk [vmem:[%s3153_s25 + $0x58] sm:$0xf] %vm1943_vm4, %v2231_v25  ;;  %v2232_v60 = vpack.c.bf16 %v1806_v34, %v1806_v34 }
 0x365   : > { %1964 = vst.msk [vmem:[%s3153_s25 + $0x50] sm:$0xf] %vm1943_vm4, %v2229_v8  ;;  %v2230_v18 = vpack.c.bf16 %v1804_v39, %v1804_v39  ;;  %v2548_v51 = vpop.f32.mrb[76].mxu1 }
 0x366   : > { %1967 = vst.msk [vmem:[%s3153_s25 + $0x5c] sm:$0xf] %vm1943_vm4, %v2232_v60  ;;  %v1761_v53 = vadd.f32 %v2548_v51, %v3144_v6  ;;  %v1752_v28 = vpop.f32.mrb[77].mxu1 }
 0x367   : > { %1965 = vst.msk [vmem:[%s3153_s25 + $0x54] sm:$0xf] %vm1943_vm4, %v2230_v18  ;;  %v1753_v0 = vadd.f32 %v3144_v6, %v1752_v28  ;;  %v2549_v42 = vpop.f32.mrb[78].mxu1 }
 0x368   : > { %v1809_v56 = vmax.f32 %v1761_v53, 0.0  ;;  %v1764_v21 = vadd.f32 %v2549_v42, %v3144_v6  ;;  %v1755_v57 = vpop.f32.mrb[79].mxu1 }
 0x369   : > { %v1807_v61 = vmax.f32 %v1753_v0, 0.0  ;;  %v1756_v3 = vadd.f32 %v3144_v6, %v1755_v57 }
 0x36a   : > { %v2235_v7 = vpack.c.bf16 %v1809_v56, %v1809_v56  ;;  %v1810_v9 = vmax.f32 %v1764_v21, 0.0 }
 0x36b   : > { %v2233_v45 = vpack.c.bf16 %v1807_v61, %v1807_v61  ;;  %v1808_v11 = vmax.f32 %v1756_v3, 0.0 }
 0x36c   : > { %1970 = vst.msk [vmem:[%s3153_s25 + $0x68] sm:$0xf] %vm1943_vm4, %v2235_v7  ;;  %v2236_v59 = vpack.c.bf16 %v1810_v9, %v1810_v9 }
 0x36d   : > { %1968 = vst.msk [vmem:[%s3153_s25 + $0x60] sm:$0xf] %vm1943_vm4, %v2233_v45  ;;  %v2234_v35 = vpack.c.bf16 %v1808_v11, %v1808_v11  ;;  %v2552_v50 = vpop.f32.mrb[80].mxu1 }
 0x36e   : > { %1971 = vst.msk [vmem:[%s3153_s25 + $0x6c] sm:$0xf] %vm1943_vm4, %v2236_v59  ;;  %v1777_v48 = vadd.f32 %v2552_v50, %v3144_v6  ;;  %v1768_v12 = vpop.f32.mrb[81].mxu1 }
 0x36f   : > { %1969 = vst.msk [vmem:[%s3153_s25 + $0x64] sm:$0xf] %vm1943_vm4, %v2234_v35  ;;  %v1769_v62 = vadd.f32 %v3144_v6, %v1768_v12  ;;  %v2553_v13 = vpop.f32.mrb[82].mxu1 }
 0x370   : > { %v1813_v54 = vmax.f32 %v1777_v48, 0.0  ;;  %v1780_v38 = vadd.f32 %v2553_v13, %v3144_v6  ;;  %v1771_v15 = vpop.f32.mrb[83].mxu1 }
 0x371   : > { %v1811_v16 = vmax.f32 %v1769_v62, 0.0  ;;  %v1772_v17 = vadd.f32 %v3144_v6, %v1771_v15 }
 0x372   : > { %v2239_v63 = vpack.c.bf16 %v1813_v54, %v1813_v54  ;;  %v1814_v22 = vmax.f32 %v1780_v38, 0.0 }
 0x373   : > { %v2237_v24 = vpack.c.bf16 %v1811_v16, %v1811_v16  ;;  %v1812_v40 = vmax.f32 %v1772_v17, 0.0 }
 0x374   : > { %1974 = vst.msk [vmem:[%s3153_s25 + $0x78] sm:$0xf] %vm1943_vm4, %v2239_v63  ;;  %v2240_v26 = vpack.c.bf16 %v1814_v22, %v1814_v22 }
 0x375   : > { %1972 = vst.msk [vmem:[%s3153_s25 + $0x70] sm:$0xf] %vm1943_vm4, %v2237_v24  ;;  %v2238_v1 = vpack.c.bf16 %v1812_v40, %v1812_v40 }
 0x376   : > { %1975 = vst.msk [vmem:[%s3153_s25 + $0x7c] sm:$0xf] %vm1943_vm4, %v2240_v26 }
 0x377   : > { %1973 = vst.msk [vmem:[%s3153_s25 + $0x74] sm:$0xf] %vm1943_vm4, %v2238_v1 }
 0x378 PF: > { %s17_s24 = sadd.s32 1, %s2683_s24  }
 0x379   : > { %p14_p4 = scmp.ge.s32.totalorder %s17_s24, 4  }
 0x37b   :  { %16 = sbr.rel (!%p14_p4) target bundleno = 1 (0x1), region = 78 }

// kernel: nin_forward.9
= control target key start
LH: loop header
LB: loop body
LE: loop exit
PB: predicated region body
PF: predicated region fallthrough
CT: control target
= control target key end

     0   :  { %vm2605_vm0 = vcmask 785408   ;;  %s7704_s1 = inlined_call_operand.vmem [shape: bf16[2400,256], index: 1, kind: input, shape index: {}]   ;;  %s7705_s0 = inlined_call_operand.vmem [shape: bf16[98,2400], index: 0, kind: input, shape index: {}]   ;;  %s7706_s3 = inlined_call_operand.vmem [shape: bf16[256,256], index: 3, kind: input, shape index: {}]   ;;  %s7707_s5 = inlined_call_operand.vmem [shape: bf16[256,256], index: 5, kind: input, shape index: {}]   ;;  %s7708_s2 = inlined_call_operand.vmem [shape: f32[1,256], index: 2, kind: input, shape index: {}]   ;;  %s7709_s4 = inlined_call_operand.vmem [shape: f32[1,256], index: 4, kind: input, shape index: {}]   ;;  %s7710_s6 = inlined_call_operand.vmem [shape: f32[1,256], index: 6, kind: input, shape index: {}]   ;;  %s7711_s7 = inlined_call_operand.vmem [shape: bf16[98,256], index: 7, kind: output, shape index: {}]  }
   0x1   :  { %v5257_v0 = vld [vmem:[%s7704_s1 + $0x4] ss:$8 sps:$4 sm:$0xff]   ;;  %v5261_v2 = vld [vmem:[%s7704_s1] ss:$8 sps:$4 sm:$0xff]   ;;  %v5263_v4 = vld [vmem:[%s7704_s1 + $0x14] ss:$8 sps:$4 sm:$0xff]  }
   0x2   :  { %v5259_v1 = vld [vmem:[%s7704_s1 + $0x404] ss:$8 sps:$4 sm:$0xff]   ;;  %2627 = vmatprep.subr.bf16.mxu1 %v5257_v0  ;;  %v5262_v3 = vld [vmem:[%s7704_s1 + $0x400] ss:$8 sps:$4 sm:$0xff]   ;;  %v5265_v5 = vld [vmem:[%s7704_s1 + $0x414] ss:$8 sps:$4 sm:$0xff]  }
   0x3   :  { %3031 = vmatprep.subr.bf16.mxu0 %v5259_v1  ;;  %2628 = vmatpush1.bf16.msra.mxu1 %v5261_v2  ;;  %v5267_v6 = vld [vmem:[%s7704_s1 + $0x10] ss:$8 sps:$4 sm:$0xff]   ;;  %v5269_v8 = vld [vmem:[%s7704_s1 + $0x24] ss:$8 sps:$4 sm:$0xff]   ;;  %v5273_v10 = vld [vmem:[%s7704_s1 + $0x20] ss:$8 sps:$4 sm:$0xff]  }
   0x4   :  { %3032 = vmatpush1.bf16.msra.mxu0 %v5262_v3  ;;  %2629 = vmatprep.subr.bf16.mxu1 %v5263_v4  ;;  %v5268_v7 = vld [vmem:[%s7704_s1 + $0x410] ss:$8 sps:$4 sm:$0xff]   ;;  %v5271_v9 = vld [vmem:[%s7704_s1 + $0x424] ss:$8 sps:$4 sm:$0xff]   ;;  %v5274_v11 = vld [vmem:[%s7704_s1 + $0x420] ss:$8 sps:$4 sm:$0xff]  }
   0x5   :  { %3033 = vmatprep.subr.bf16.mxu0 %v5265_v5  ;;  %v5275_v12 = vld [vmem:[%s7704_s1 + $0x34] ss:$8 sps:$4 sm:$0xff]   ;;  %v5279_v14 = vld [vmem:[%s7704_s1 + $0x30] ss:$8 sps:$4 sm:$0xff]   ;;  %v5281_v16 = vld [vmem:[%s7704_s1 + $0x44] ss:$8 sps:$4 sm:$0xff]  }
   0x6   :  { %v5277_v13 = vld [vmem:[%s7704_s1 + $0x434] ss:$8 sps:$4 sm:$0xff]   ;;  %v5280_v15 = vld [vmem:[%s7704_s1 + $0x430] ss:$8 sps:$4 sm:$0xff]   ;;  %v5283_v17 = vld [vmem:[%s7704_s1 + $0x444] ss:$8 sps:$4 sm:$0xff]  }
   0x7   :  { %2630 = vmatpush1.bf16.msra.mxu1 %v5267_v6  ;;  %v5285_v18 = vld [vmem:[%s7704_s1 + $0x40] ss:$8 sps:$4 sm:$0xff]   ;;  %v5287_v20 = vld [vmem:[%s7704_s1 + $0x54] ss:$8 sps:$4 sm:$0xff]   ;;  %v5291_v22 = vld [vmem:[%s7704_s1 + $0x50] ss:$8 sps:$4 sm:$0xff]  }
   0x8   :  { %3034 = vmatpush1.bf16.msra.mxu0 %v5268_v7  ;;  %2631 = vmatprep.subr.bf16.mxu1 %v5269_v8  ;;  %v5286_v19 = vld [vmem:[%s7704_s1 + $0x440] ss:$8 sps:$4 sm:$0xff]   ;;  %v5289_v21 = vld [vmem:[%s7704_s1 + $0x454] ss:$8 sps:$4 sm:$0xff]   ;;  %v5292_v23 = vld [vmem:[%s7704_s1 + $0x450] ss:$8 sps:$4 sm:$0xff]  }
   0x9   :  { %3035 = vmatprep.subr.bf16.mxu0 %v5271_v9  ;;  %v5293_v24 = vld [vmem:[%s7704_s1 + $0x64] ss:$8 sps:$4 sm:$0xff]   ;;  %v5297_v26 = vld [vmem:[%s7704_s1 + $0x60] ss:$8 sps:$4 sm:$0xff]   ;;  %v5299_v28 = vld [vmem:[%s7704_s1 + $0x74] ss:$8 sps:$4 sm:$0xff]  }
   0xa   :  { %v5295_v25 = vld [vmem:[%s7704_s1 + $0x464] ss:$8 sps:$4 sm:$0xff]   ;;  %v5298_v27 = vld [vmem:[%s7704_s1 + $0x460] ss:$8 sps:$4 sm:$0xff]   ;;  %v5301_v29 = vld [vmem:[%s7704_s1 + $0x474] ss:$8 sps:$4 sm:$0xff]  }
   0xb   :  { %2632 = vmatpush1.bf16.msra.mxu1 %v5273_v10  ;;  %v5303_v30 = vld [vmem:[%s7704_s1 + $0x70] ss:$8 sps:$4 sm:$0xff]   ;;  %v5305_v32 = vld [vmem:[%s7704_s1 + $0x84] ss:$8 sps:$4 sm:$0xff]   ;;  %v5309_v34 = vld [vmem:[%s7704_s1 + $0x80] ss:$8 sps:$4 sm:$0xff]  }
   0xc   :  { %3036 = vmatpush1.bf16.msra.mxu0 %v5274_v11  ;;  %2633 = vmatprep.subr.bf16.mxu1 %v5275_v12  ;;  %v5304_v31 = vld [vmem:[%s7704_s1 + $0x470] ss:$8 sps:$4 sm:$0xff]   ;;  %v5307_v33 = vld [vmem:[%s7704_s1 + $0x484] ss:$8 sps:$4 sm:$0xff]   ;;  %v5310_v35 = vld [vmem:[%s7704_s1 + $0x480] ss:$8 sps:$4 sm:$0xff]  }
   0xd   :  { %3037 = vmatprep.subr.bf16.mxu0 %v5277_v13  ;;  %v5311_v36 = vld [vmem:[%s7704_s1 + $0x94] ss:$8 sps:$4 sm:$0xff]   ;;  %v5315_v38 = vld [vmem:[%s7704_s1 + $0x90] ss:$8 sps:$4 sm:$0xff]   ;;  %v5317_v40 = vld [vmem:[%s7704_s1 + $0xa4] ss:$8 sps:$4 sm:$0xff]  }
   0xe   :  { %v5313_v37 = vld [vmem:[%s7704_s1 + $0x494] ss:$8 sps:$4 sm:$0xff]   ;;  %v5316_v39 = vld [vmem:[%s7704_s1 + $0x490] ss:$8 sps:$4 sm:$0xff]   ;;  %v5319_v41 = vld [vmem:[%s7704_s1 + $0x4a4] ss:$8 sps:$4 sm:$0xff]  }
   0xf   :  { %2634 = vmatpush1.bf16.msra.mxu1 %v5279_v14  ;;  %v5321_v42 = vld [vmem:[%s7704_s1 + $0xa0] ss:$8 sps:$4 sm:$0xff]   ;;  %v5323_v44 = vld [vmem:[%s7704_s1 + $0xb4] ss:$8 sps:$4 sm:$0xff]   ;;  %v5327_v46 = vld [vmem:[%s7704_s1 + $0xb0] ss:$8 sps:$4 sm:$0xff]  }
  0x10   :  { %3038 = vmatpush1.bf16.msra.mxu0 %v5280_v15  ;;  %2635 = vmatprep.subr.bf16.mxu1 %v5281_v16  ;;  %v5322_v43 = vld [vmem:[%s7704_s1 + $0x4a0] ss:$8 sps:$4 sm:$0xff]   ;;  %v5325_v45 = vld [vmem:[%s7704_s1 + $0x4b4] ss:$8 sps:$4 sm:$0xff]   ;;  %v5328_v47 = vld [vmem:[%s7704_s1 + $0x4b0] ss:$8 sps:$4 sm:$0xff]  }
  0x11   :  { %3039 = vmatprep.subr.bf16.mxu0 %v5283_v17  ;;  %v5355_v48 = vld [vmem:[%s7705_s0 + $0x4] ss:$76 sps:$4 sm:$0xff]   ;;  %v5333_v52 = vld [vmem:[%s7704_s1 + $0xc0] ss:$8 sps:$4 sm:$0xff]   ;;  %v5335_v54 = vld [vmem:[%s7704_s1 + $0xd4] ss:$8 sps:$4 sm:$0xff]  }
  0x12   :  { %v5329_v49 = vld [vmem:[%s7704_s1 + $0xc4] ss:$8 sps:$4 sm:$0xff]   ;;  %2659 = vmatprep.mubr.bf16.mxu1 %v5355_v48  ;;  %v5334_v53 = vld [vmem:[%s7704_s1 + $0x4c0] ss:$8 sps:$4 sm:$0xff]   ;;  %v5337_v55 = vld [vmem:[%s7704_s1 + $0x4d4] ss:$8 sps:$4 sm:$0xff]  }
  0x13   :  { %2636 = vmatpush1.bf16.msra.mxu1 %v5285_v18  ;;  %v5331_v50 = vld [vmem:[%s7704_s1 + $0x4c4] ss:$8 sps:$4 sm:$0xff]   ;;  %v5339_v56 = vld [vmem:[%s7704_s1 + $0xd0] ss:$8 sps:$4 sm:$0xff]   ;;  %v5345_v60 = vld [vmem:[%s7704_s1 + $0xe0] ss:$8 sps:$4 sm:$0xff]  }
  0x14   :  { %3040 = vmatpush1.bf16.msra.mxu0 %v5286_v19  ;;  %2637 = vmatprep.subr.bf16.mxu1 %v5287_v20  ;;  %v5361_v51 = vld [vmem:[%s7705_s0 + $0x24] ss:$76 sps:$4 sm:$0xff]   ;;  %v5346_v61 = vld [vmem:[%s7704_s1 + $0x4e0] ss:$8 sps:$4 sm:$0xff]   ;;  %v5347_v62 = vld [vmem:[%s7704_s1 + $0xf4] ss:$8 sps:$4 sm:$0xff]  }
  0x15   :  { %3041 = vmatprep.subr.bf16.mxu0 %v5289_v21  ;;  %3063 = vmatprep.mubr.bf16.mxu0 %v5361_v51  ;;  %v5340_v57 = vld [vmem:[%s7704_s1 + $0x4d0] ss:$8 sps:$4 sm:$0xff]   ;;  %v5341_v58 = vld [vmem:[%s7704_s1 + $0xe4] ss:$8 sps:$4 sm:$0xff]   ;;  %v5349_v63 = vld [vmem:[%s7704_s1 + $0x4f4] ss:$8 sps:$4 sm:$0xff]  }
  0x16   :  { %v5343_v59 = vld [vmem:[%s7704_s1 + $0x4e4] ss:$8 sps:$4 sm:$0xff]   ;;  %v5351_v0 = vld [vmem:[%s7704_s1 + $0xf0] ss:$8 sps:$4 sm:$0xff]   ;;  %v5356_v5 = vld [vmem:[%s7704_s1 + $0x100] ss:$8 sps:$4 sm:$0xff]  }
  0x17   :  { %2638 = vmatpush1.bf16.msra.mxu1 %v5291_v22  ;;  %v5352_v1 = vld [vmem:[%s7704_s1 + $0x4f0] ss:$8 sps:$4 sm:$0xff]   ;;  %v5358_v2 = vld [vmem:[%s7704_s1 + $0x104] ss:$8 sps:$4 sm:$0xff]   ;;  %v5362_v7 = vld [vmem:[%s7704_s1 + $0x500] ss:$8 sps:$4 sm:$0xff]  }
  0x18   :  { %3042 = vmatpush1.bf16.msra.mxu0 %v5292_v23  ;;  %2639 = vmatprep.subr.bf16.mxu1 %v5293_v24  ;;  %v5353_v3 = vld [vmem:[%s7705_s0] ss:$76 sps:$4 sm:$0xff]   ;;  %v5367_v8 = vld [vmem:[%s7704_s1 + $0x114] ss:$8 sps:$4 sm:$0xff]   ;;  %v5365_v12 = vld [vmem:[%s7704_s1 + $0x110] ss:$8 sps:$4 sm:$0xff]  }
  0x19   :  { %3043 = vmatprep.subr.bf16.mxu0 %v5295_v25  ;;  %v5364_v4 = vld [vmem:[%s7704_s1 + $0x504] ss:$8 sps:$4 sm:$0xff]   ;;  %v5370_v9 = vld [vmem:[%s7704_s1 + $0x514] ss:$8 sps:$4 sm:$0xff]   ;;  %v5368_v13 = vld [vmem:[%s7704_s1 + $0x510] ss:$8 sps:$4 sm:$0xff]  }
  0x1a   :  { %v5359_v6 = vld [vmem:[%s7705_s0 + $0x20] ss:$76 sps:$4 sm:$0xff]   ;;  %v5383_v10 = vld [vmem:[%s7705_s0 + $0x9c] ss:$76 sps:$4 sm:$0xff]   ;;  %v5393_v19 = vld [vmem:[%s7705_s0 + $0x98] ss:$76 sps:$4 sm:$0xff]  }
  0x1b   :  { %2640 = vmatpush1.bf16.msra.mxu1 %v5297_v26  ;;  %v5388_v11 = vld [vmem:[%s7705_s0 + $0xbc] ss:$76 sps:$4 sm:$0xff]   ;;  %v5373_v14 = vld [vmem:[%s7704_s1 + $0x124] ss:$8 sps:$4 sm:$0xff]   ;;  %v5401_v22 = vld [vmem:[%s7705_s0 + $0x134] ss:$76 sps:$4 sm:$0xff]  }
  0x1c   :  { %3044 = vmatpush1.bf16.msra.mxu0 %v5298_v27  ;;  %2641 = vmatprep.subr.bf16.mxu1 %v5299_v28  ;;  %v5376_v15 = vld [vmem:[%s7704_s1 + $0x524] ss:$8 sps:$4 sm:$0xff]   ;;  %v5371_v16 = vld [vmem:[%s7704_s1 + $0x120] ss:$8 sps:$4 sm:$0xff]   ;;  %v5379_v18 = vld [vmem:[%s7704_s1 + $0x134] ss:$8 sps:$4 sm:$0xff]  }
  0x1d   :  { %3045 = vmatprep.subr.bf16.mxu0 %v5301_v29  ;;  %v5374_v17 = vld [vmem:[%s7704_s1 + $0x520] ss:$8 sps:$4 sm:$0xff]   ;;  %v5394_v20 = vld [vmem:[%s7705_s0 + $0xb8] ss:$76 sps:$4 sm:$0xff]   ;;  %v5382_v21 = vld [vmem:[%s7704_s1 + $0x534] ss:$8 sps:$4 sm:$0xff]  }
  0x1e   :  { %v5406_v23 = vld [vmem:[%s7705_s0 + $0x154] ss:$76 sps:$4 sm:$0xff]   ;;  %v5377_v24 = vld [vmem:[%s7704_s1 + $0x130] ss:$8 sps:$4 sm:$0xff]   ;;  %v5387_v26 = vld [vmem:[%s7704_s1 + $0x144] ss:$8 sps:$4 sm:$0xff]  }
  0x1f   :  { %2642 = vmatpush1.bf16.msra.mxu1 %v5303_v30  ;;  %v5380_v25 = vld [vmem:[%s7704_s1 + $0x530] ss:$8 sps:$4 sm:$0xff]   ;;  %v5392_v27 = vld [vmem:[%s7704_s1 + $0x544] ss:$8 sps:$4 sm:$0xff]   ;;  %v5385_v28 = vld [vmem:[%s7704_s1 + $0x140] ss:$8 sps:$4 sm:$0xff]  }
  0x20   :  { %3046 = vmatpush1.bf16.msra.mxu0 %v5304_v31  ;;  %2643 = vmatprep.subr.bf16.mxu1 %v5305_v32  ;;  %v5390_v29 = vld [vmem:[%s7704_s1 + $0x540] ss:$8 sps:$4 sm:$0xff]   ;;  %v5397_v30 = vld [vmem:[%s7704_s1 + $0x154] ss:$8 sps:$4 sm:$0xff]   ;;  %v5413_v48 = vld [vmem:[%s7704_s1 + $0x170] ss:$8 sps:$4 sm:$0xff]  }
  0x21   :  { %3047 = vmatprep.subr.bf16.mxu0 %v5307_v33  ;;  %v5411_v31 = vld [vmem:[%s7705_s0 + $0x130] ss:$76 sps:$4 sm:$0xff]   ;;  %v5428_v51 = vld [vmem:[%s7704_s1 + $0x584] ss:$8 sps:$4 sm:$0xff]  }
  0x22   :  { %v5412_v32 = vld [vmem:[%s7705_s0 + $0x150] ss:$76 sps:$4 sm:$0xff]  }
  0x23   :  { %2644 = vmatpush1.bf16.msra.mxu1 %v5309_v34  ;;  %v5400_v33 = vld [vmem:[%s7704_s1 + $0x554] ss:$8 sps:$4 sm:$0xff]   ;;  %v5419_v34 = vld [vmem:[%s7705_s0 + $0x1cc] ss:$76 sps:$4 sm:$0xff]  }
  0x24   :  { %3048 = vmatpush1.bf16.msra.mxu0 %v5310_v35  ;;  %2645 = vmatprep.subr.bf16.mxu1 %v5311_v36  ;;  %v5424_v35 = vld [vmem:[%s7705_s0 + $0x1ec] ss:$76 sps:$4 sm:$0xff]  }
  0x25   :  { %3049 = vmatprep.subr.bf16.mxu0 %v5313_v37  ;;  %v5395_v36 = vld [vmem:[%s7704_s1 + $0x150] ss:$8 sps:$4 sm:$0xff]  }
  0x26   :  { %v5398_v37 = vld [vmem:[%s7704_s1 + $0x550] ss:$8 sps:$4 sm:$0xff]  }
  0x27   :  { %2646 = vmatpush1.bf16.msra.mxu1 %v5315_v38  ;;  %v5405_v38 = vld [vmem:[%s7704_s1 + $0x164] ss:$8 sps:$4 sm:$0xff]  }
  0x28   :  { %3050 = vmatpush1.bf16.msra.mxu0 %v5316_v39  ;;  %2647 = vmatprep.subr.bf16.mxu1 %v5317_v40  ;;  %v5410_v39 = vld [vmem:[%s7704_s1 + $0x564] ss:$8 sps:$4 sm:$0xff]   ;;  %v5403_v40 = vld [vmem:[%s7704_s1 + $0x160] ss:$8 sps:$4 sm:$0xff]  }
  0x29   :  { %3051 = vmatprep.subr.bf16.mxu0 %v5319_v41  ;;  %v5408_v41 = vld [vmem:[%s7704_s1 + $0x560] ss:$8 sps:$4 sm:$0xff]  }
  0x2b   :  { %2648 = vmatpush1.bf16.msra.mxu1 %v5321_v42  ;;  %v5415_v42 = vld [vmem:[%s7704_s1 + $0x174] ss:$8 sps:$4 sm:$0xff]  }
  0x2c   :  { %3052 = vmatpush1.bf16.msra.mxu0 %v5322_v43  ;;  %2649 = vmatprep.subr.bf16.mxu1 %v5323_v44  ;;  %v5429_v43 = vld [vmem:[%s7705_s0 + $0x1c8] ss:$76 sps:$4 sm:$0xff]  }
  0x2d   :  { %3053 = vmatprep.subr.bf16.mxu0 %v5325_v45  ;;  %v5430_v44 = vld [vmem:[%s7705_s0 + $0x1e8] ss:$76 sps:$4 sm:$0xff]  }
  0x2e   :  { %v5418_v45 = vld [vmem:[%s7704_s1 + $0x574] ss:$8 sps:$4 sm:$0xff]  }
  0x2f   :  { %2650 = vmatpush1.bf16.msra.mxu1 %v5327_v46  ;;  %v5437_v46 = vld [vmem:[%s7705_s0 + $0x264] ss:$76 sps:$4 sm:$0xff]  }
  0x30   :  { %3054 = vmatpush1.bf16.msra.mxu0 %v5328_v47  ;;  %2651 = vmatprep.subr.bf16.mxu1 %v5329_v49  ;;  %v5442_v47 = vld [vmem:[%s7705_s0 + $0x284] ss:$76 sps:$4 sm:$0xff]  }
  0x31   :  { %3055 = vmatprep.subr.bf16.mxu0 %v5331_v50  ;;  %v5416_v49 = vld [vmem:[%s7704_s1 + $0x570] ss:$8 sps:$4 sm:$0xff]   ;;  %v5423_v50 = vld [vmem:[%s7704_s1 + $0x184] ss:$8 sps:$4 sm:$0xff]  }
  0x33   :  { %2652 = vmatpush1.bf16.msra.mxu1 %v5333_v52  ;;  %v5421_v52 = vld [vmem:[%s7704_s1 + $0x180] ss:$8 sps:$4 sm:$0xff]  }
  0x34   :  { %3056 = vmatpush1.bf16.msra.mxu0 %v5334_v53  ;;  %2653 = vmatprep.subr.bf16.mxu1 %v5335_v54  ;;  %v5447_v53 = vld [vmem:[%s7705_s0 + $0x260] ss:$76 sps:$4 sm:$0xff]  }
  0x35   :  { %3057 = vmatprep.subr.bf16.mxu0 %v5337_v55  ;;  %v5448_v54 = vld [vmem:[%s7705_s0 + $0x280] ss:$76 sps:$4 sm:$0xff]  }
  0x36   :  { %v5426_v55 = vld [vmem:[%s7704_s1 + $0x580] ss:$8 sps:$4 sm:$0xff]  }
  0x37   :  { %2654 = vmatpush1.bf16.msra.mxu1 %v5339_v56  ;;  %v5433_v56 = vld [vmem:[%s7704_s1 + $0x194] ss:$8 sps:$4 sm:$0xff]  }
  0x38   :  { %3058 = vmatpush1.bf16.msra.mxu0 %v5340_v57  ;;  %2655 = vmatprep.subr.bf16.mxu1 %v5341_v58  ;;  %v5436_v57 = vld [vmem:[%s7704_s1 + $0x594] ss:$8 sps:$4 sm:$0xff]  }
  0x39   :  { %3059 = vmatprep.subr.bf16.mxu0 %v5343_v59  ;;  %v5455_v58 = vld [vmem:[%s7705_s0 + $0x2fc] ss:$76 sps:$4 sm:$0xff]   ;;  %v5431_v59 = vld [vmem:[%s7704_s1 + $0x190] ss:$8 sps:$4 sm:$0xff]  }
  0x3b   :  { %2656 = vmatpush1.bf16.msra.mxu1 %v5345_v60  ;;  %v5460_v60 = vld [vmem:[%s7705_s0 + $0x31c] ss:$76 sps:$4 sm:$0xff]  }
  0x3c   :  { %3060 = vmatpush1.bf16.msra.mxu0 %v5346_v61  ;;  %2657 = vmatprep.subr.bf16.mxu1 %v5347_v62  ;;  %v5434_v61 = vld [vmem:[%s7704_s1 + $0x590] ss:$8 sps:$4 sm:$0xff]   ;;  %v5441_v62 = vld [vmem:[%s7704_s1 + $0x1a4] ss:$8 sps:$4 sm:$0xff]  }
  0x3d   :  { %3061 = vmatprep.subr.bf16.mxu0 %v5349_v63  ;;  %v5446_v63 = vld [vmem:[%s7704_s1 + $0x5a4] ss:$8 sps:$4 sm:$0xff]  }
  0x3f   :  { %2658 = vmatpush1.bf16.msra.mxu1 %v5351_v0  ;;  %v5465_v0 = vld [vmem:[%s7705_s0 + $0x2f8] ss:$76 sps:$4 sm:$0xff]  }
  0x40   :  { %3062 = vmatpush1.bf16.msra.mxu0 %v5352_v1  ;;  %2728 = vmatprep.subr.bf16.mxu1 %v5358_v2  ;;  %v5466_v1 = vld [vmem:[%s7705_s0 + $0x318] ss:$76 sps:$4 sm:$0xff]   ;;  %v147_v2 = vld [vmem:[%s7705_s0 + $0x390] sm:$0x11] }
  0x41   :  { %3132 = vmatprep.subr.bf16.mxu0 %v5364_v4  ;;  %v5439_v4 = vld [vmem:[%s7704_s1 + $0x1a0] ss:$8 sps:$4 sm:$0xff]  }
  0x42   :  { %2660 = vmatmul.mubr.bf16.vlgmr.msra.gmra.mrb[0].mxu1 %v5353_v3  ;;  %v151_v3 = vld [vmem:[%s7705_s0 + $0x3b0] sm:$0x11] }
  0x43   :  { %3064 = vmatmul.mubr.bf16.vlgmr.msra.gmra.mrb[0].mxu0 %v5359_v6  ;;  %2729 = vmatpush1.bf16.msra.mxu1 %v5356_v5  ;;  %v5444_v5 = vld [vmem:[%s7704_s1 + $0x5a0] ss:$8 sps:$4 sm:$0xff]   ;;  %v5451_v6 = vld [vmem:[%s7704_s1 + $0x1b4] ss:$8 sps:$4 sm:$0xff]  }
  0x44   :  { %3133 = vmatpush1.bf16.msra.mxu0 %v5362_v7  ;;  %2730 = vmatprep.subr.bf16.mxu1 %v5367_v8  ;;  %v5454_v7 = vld [vmem:[%s7704_s1 + $0x5b4] ss:$8 sps:$4 sm:$0xff]   ;;  %v4565_v8 = vcombine.high %v147_v2, %v147_v2 }
  0x45   :  { %3134 = vmatprep.subr.bf16.mxu0 %v5370_v9  ;;  %2669 = vmatprep.mubr.bf16.mxu1 %v5383_v10  ;;  %v4573_v9 = vcombine.high %v151_v3, %v151_v3  ;;  %v5449_v10 = vld [vmem:[%s7704_s1 + $0x1b0] ss:$8 sps:$4 sm:$0xff]  }
  0x46   :  { %3073 = vmatprep.mubr.bf16.mxu0 %v5388_v11  ;;  %v5452_v11 = vld [vmem:[%s7704_s1 + $0x5b0] ss:$8 sps:$4 sm:$0xff]  }
  0x47   :  { %2731 = vmatpush1.bf16.msra.mxu1 %v5365_v12  ;;  %v5459_v12 = vld [vmem:[%s7704_s1 + $0x1c4] ss:$8 sps:$4 sm:$0xff]  }
  0x48   :  { %3135 = vmatpush1.bf16.msra.mxu0 %v5368_v13  ;;  %2732 = vmatprep.subr.bf16.mxu1 %v5373_v14  ;;  %v5464_v13 = vld [vmem:[%s7704_s1 + $0x5c4] ss:$8 sps:$4 sm:$0xff]   ;;  %v5457_v14 = vld [vmem:[%s7704_s1 + $0x1c0] ss:$8 sps:$4 sm:$0xff]  }
  0x49   :  { %3136 = vmatprep.subr.bf16.mxu0 %v5376_v15  ;;  %v4564_v15 = vcombine.low %v147_v2, %v147_v2  ;;  %v5531_v2 = vld [vmem:[%s7704_s1 + $0x250] ss:$8 sps:$4 sm:$0xff]  }
  0x4a   :  { %2670 = vmatmul.mubr.bf16.gmra.mrb[4].mxu1 %v5393_v19  ;;  %v5472_v19 = vld [vmem:[%s7704_s1 + $0x5d4] ss:$8 sps:$4 sm:$0xff]  }
  0x4b   :  { %3074 = vmatmul.mubr.bf16.gmra.mrb[4].mxu0 %v5394_v20  ;;  %2733 = vmatpush1.bf16.msra.mxu1 %v5371_v16  ;;  %v4572_v16 = vcombine.low %v151_v3, %v151_v3  ;;  %v5491_v20 = vld [vmem:[%s7705_s0 + $0xc] ss:$76 sps:$4 sm:$0xff]  }
  0x4c   :  { %3137 = vmatpush1.bf16.msra.mxu0 %v5374_v17  ;;  %2734 = vmatprep.subr.bf16.mxu1 %v5379_v18  ;;  %v5462_v17 = vld [vmem:[%s7704_s1 + $0x5c0] ss:$8 sps:$4 sm:$0xff]   ;;  %v5469_v18 = vld [vmem:[%s7704_s1 + $0x1d4] ss:$8 sps:$4 sm:$0xff]   ;;  %v5534_v3 = vld [vmem:[%s7704_s1 + $0x650] ss:$8 sps:$4 sm:$0xff]  }
  0x4d   :  { %3138 = vmatprep.subr.bf16.mxu0 %v5382_v21  ;;  %2679 = vmatprep.mubr.bf16.mxu1 %v5401_v22  ;;  %v5497_v21 = vld [vmem:[%s7705_s0 + $0x2c] ss:$76 sps:$4 sm:$0xff]  }
  0x4e   :  { %3083 = vmatprep.mubr.bf16.mxu0 %v5406_v23  ;;  %v5467_v22 = vld [vmem:[%s7704_s1 + $0x1d0] ss:$8 sps:$4 sm:$0xff]  }
  0x4f   :  { %2735 = vmatpush1.bf16.msra.mxu1 %v5377_v24  ;;  %v5470_v23 = vld [vmem:[%s7704_s1 + $0x5d0] ss:$8 sps:$4 sm:$0xff]   ;;  %v5476_v24 = vld [vmem:[%s7704_s1 + $0x1e4] ss:$8 sps:$4 sm:$0xff]  }
  0x50   :  { %3139 = vmatpush1.bf16.msra.mxu0 %v5380_v25  ;;  %2736 = vmatprep.subr.bf16.mxu1 %v5387_v26  ;;  %v5480_v25 = vld [vmem:[%s7704_s1 + $0x5e4] ss:$8 sps:$4 sm:$0xff]   ;;  %v5474_v26 = vld [vmem:[%s7704_s1 + $0x1e0] ss:$8 sps:$4 sm:$0xff]  }
  0x51   :  { %3140 = vmatprep.subr.bf16.mxu0 %v5392_v27  ;;  %v5478_v27 = vld [vmem:[%s7704_s1 + $0x5e0] ss:$8 sps:$4 sm:$0xff]  }
  0x52   :  { %2680 = vmatmul.mubr.bf16.gmra.mrb[8].mxu1 %v5411_v31  ;;  %v5486_v31 = vld [vmem:[%s7704_s1 + $0x5f0] ss:$8 sps:$4 sm:$0xff]  }
  0x53   :  { %3084 = vmatmul.mubr.bf16.gmra.mrb[8].mxu0 %v5412_v32  ;;  %2737 = vmatpush1.bf16.msra.mxu1 %v5385_v28  ;;  %v5485_v28 = vld [vmem:[%s7704_s1 + $0x1f4] ss:$8 sps:$4 sm:$0xff]   ;;  %v5494_v32 = vld [vmem:[%s7704_s1 + $0x204] ss:$8 sps:$4 sm:$0xff]  }
  0x54   :  { %3141 = vmatpush1.bf16.msra.mxu0 %v5390_v29  ;;  %2738 = vmatprep.subr.bf16.mxu1 %v5397_v30  ;;  %v5488_v29 = vld [vmem:[%s7704_s1 + $0x5f4] ss:$8 sps:$4 sm:$0xff]   ;;  %v5483_v30 = vld [vmem:[%s7704_s1 + $0x1f0] ss:$8 sps:$4 sm:$0xff]  }
  0x55   :  { %3142 = vmatprep.subr.bf16.mxu0 %v5400_v33  ;;  %2689 = vmatprep.mubr.bf16.mxu1 %v5419_v34  ;;  %v5500_v33 = vld [vmem:[%s7704_s1 + $0x604] ss:$8 sps:$4 sm:$0xff]   ;;  %v5489_v34 = vld [vmem:[%s7705_s0 + $0x8] ss:$76 sps:$4 sm:$0xff]  }
  0x56   :  { %3093 = vmatprep.mubr.bf16.mxu0 %v5424_v35  ;;  %v5492_v35 = vld [vmem:[%s7704_s1 + $0x200] ss:$8 sps:$4 sm:$0xff]  }
  0x57   :  { %2739 = vmatpush1.bf16.msra.mxu1 %v5395_v36  ;;  %v5495_v36 = vld [vmem:[%s7705_s0 + $0x28] ss:$76 sps:$4 sm:$0xff]  }
  0x58   :  { %3143 = vmatpush1.bf16.msra.mxu0 %v5398_v37  ;;  %2740 = vmatprep.subr.bf16.mxu1 %v5405_v38  ;;  %v5498_v37 = vld [vmem:[%s7704_s1 + $0x600] ss:$8 sps:$4 sm:$0xff]   ;;  %v5503_v38 = vld [vmem:[%s7704_s1 + $0x214] ss:$8 sps:$4 sm:$0xff]  }
  0x59   :  { %3144 = vmatprep.subr.bf16.mxu0 %v5410_v39  ;;  %v5506_v39 = vld [vmem:[%s7704_s1 + $0x614] ss:$8 sps:$4 sm:$0xff]  }
  0x5a   :  { %2690 = vmatmul.mubr.bf16.gmra.mrb[12].mxu1 %v5429_v43  ;;  %v5504_v43 = vld [vmem:[%s7704_s1 + $0x610] ss:$8 sps:$4 sm:$0xff]  }
  0x5b   :  { %3094 = vmatmul.mubr.bf16.gmra.mrb[12].mxu0 %v5430_v44  ;;  %2741 = vmatpush1.bf16.msra.mxu1 %v5403_v40  ;;  %v5519_v40 = vld [vmem:[%s7705_s0 + $0xa4] ss:$76 sps:$4 sm:$0xff]  }
  0x5c   :  { %3145 = vmatpush1.bf16.msra.mxu0 %v5408_v41  ;;  %2742 = vmatprep.subr.bf16.mxu1 %v5415_v42  ;;  %v5524_v41 = vld [vmem:[%s7705_s0 + $0xc4] ss:$76 sps:$4 sm:$0xff]  }
  0x5d   :  { %3146 = vmatprep.subr.bf16.mxu0 %v5418_v45  ;;  %2699 = vmatprep.mubr.bf16.mxu1 %v5437_v46  ;;  %v5501_v42 = vld [vmem:[%s7704_s1 + $0x210] ss:$8 sps:$4 sm:$0xff]   ;;  %v5509_v44 = vld [vmem:[%s7704_s1 + $0x224] ss:$8 sps:$4 sm:$0xff]   ;;  %v5507_v46 = vld [vmem:[%s7704_s1 + $0x220] ss:$8 sps:$4 sm:$0xff]  }
  0x5e   :  { %3103 = vmatprep.mubr.bf16.mxu0 %v5442_v47  ;;  %v5512_v45 = vld [vmem:[%s7704_s1 + $0x624] ss:$8 sps:$4 sm:$0xff]  }
  0x5f   :  { %2743 = vmatpush1.bf16.msra.mxu1 %v5413_v48  ;;  %v5529_v47 = vld [vmem:[%s7705_s0 + $0xa0] ss:$76 sps:$4 sm:$0xff]  }
  0x60   :  { %3147 = vmatpush1.bf16.msra.mxu0 %v5416_v49  ;;  %2744 = vmatprep.subr.bf16.mxu1 %v5423_v50  ;;  %v5530_v48 = vld [vmem:[%s7705_s0 + $0xc0] ss:$76 sps:$4 sm:$0xff]   ;;  %v5515_v50 = vld [vmem:[%s7704_s1 + $0x234] ss:$8 sps:$4 sm:$0xff]  }
  0x61   :  { %3148 = vmatprep.subr.bf16.mxu0 %v5428_v51  ;;  %v5510_v49 = vld [vmem:[%s7704_s1 + $0x620] ss:$8 sps:$4 sm:$0xff]   ;;  %v5518_v51 = vld [vmem:[%s7704_s1 + $0x634] ss:$8 sps:$4 sm:$0xff]  }
  0x62   :  { %2700 = vmatmul.mubr.bf16.gmra.mrb[16].mxu1 %v5447_v53  ;;  %v5542_v53 = vld [vmem:[%s7705_s0 + $0x15c] ss:$76 sps:$4 sm:$0xff]  }
  0x63   :  { %3104 = vmatmul.mubr.bf16.gmra.mrb[16].mxu0 %v5448_v54  ;;  %2745 = vmatpush1.bf16.msra.mxu1 %v5421_v52  ;;  %v5537_v52 = vld [vmem:[%s7705_s0 + $0x13c] ss:$76 sps:$4 sm:$0xff]   ;;  %v5513_v54 = vld [vmem:[%s7704_s1 + $0x230] ss:$8 sps:$4 sm:$0xff]  }
  0x64   :  { %3149 = vmatpush1.bf16.msra.mxu0 %v5426_v55  ;;  %2746 = vmatprep.subr.bf16.mxu1 %v5433_v56  ;;  %v5516_v55 = vld [vmem:[%s7704_s1 + $0x630] ss:$8 sps:$4 sm:$0xff]   ;;  %v5523_v56 = vld [vmem:[%s7704_s1 + $0x244] ss:$8 sps:$4 sm:$0xff]  }
  0x65   :  { %3150 = vmatprep.subr.bf16.mxu0 %v5436_v57  ;;  %2709 = vmatprep.mubr.bf16.mxu1 %v5455_v58  ;;  %v5528_v57 = vld [vmem:[%s7704_s1 + $0x644] ss:$8 sps:$4 sm:$0xff]   ;;  %v5521_v58 = vld [vmem:[%s7704_s1 + $0x240] ss:$8 sps:$4 sm:$0xff]  }
  0x66   :  { %3113 = vmatprep.mubr.bf16.mxu0 %v5460_v60  ;;  %v5548_v60 = vld [vmem:[%s7705_s0 + $0x158] ss:$76 sps:$4 sm:$0xff]  }
  0x67   :  { %2747 = vmatpush1.bf16.msra.mxu1 %v5431_v59  ;;  %v5547_v59 = vld [vmem:[%s7705_s0 + $0x138] ss:$76 sps:$4 sm:$0xff]  }
  0x68   :  { %3151 = vmatpush1.bf16.msra.mxu0 %v5434_v61  ;;  %2748 = vmatprep.subr.bf16.mxu1 %v5441_v62  ;;  %v5526_v61 = vld [vmem:[%s7704_s1 + $0x640] ss:$8 sps:$4 sm:$0xff]   ;;  %v5533_v62 = vld [vmem:[%s7704_s1 + $0x254] ss:$8 sps:$4 sm:$0xff]  }
  0x69   :  { %3152 = vmatprep.subr.bf16.mxu0 %v5446_v63  ;;  %v5536_v63 = vld [vmem:[%s7704_s1 + $0x654] ss:$8 sps:$4 sm:$0xff]  }
  0x6a   :  { %2710 = vmatmul.mubr.bf16.gmra.mrb[20].mxu1 %v5465_v0  ;;  %v5555_v0 = vld [vmem:[%s7705_s0 + $0x1d4] ss:$76 sps:$4 sm:$0xff]  }
  0x6b   :  { %3114 = vmatmul.mubr.bf16.gmra.mrb[20].mxu0 %v5466_v1  ;;  %2749 = vmatpush1.bf16.msra.mxu1 %v5439_v4  ;;  %v5560_v1 = vld [vmem:[%s7705_s0 + $0x1f4] ss:$76 sps:$4 sm:$0xff]   ;;  %v5541_v4 = vld [vmem:[%s7704_s1 + $0x264] ss:$8 sps:$4 sm:$0xff]  }
  0x6c   :  { %3153 = vmatpush1.bf16.msra.mxu0 %v5444_v5  ;;  %2750 = vmatprep.subr.bf16.mxu1 %v5451_v6  ;;  %v5546_v5 = vld [vmem:[%s7704_s1 + $0x664] ss:$8 sps:$4 sm:$0xff]   ;;  %v5539_v6 = vld [vmem:[%s7704_s1 + $0x260] ss:$8 sps:$4 sm:$0xff]  }
  0x6d   :  { %3154 = vmatprep.subr.bf16.mxu0 %v5454_v7  ;;  %2719 = vmatprep.mubr.bf16.mxu1 %v4565_v8  ;;  %v5565_v7 = vld [vmem:[%s7705_s0 + $0x1d0] ss:$76 sps:$4 sm:$0xff]  }
  0x6e   :  { %3123 = vmatprep.mubr.bf16.mxu0 %v4573_v9  ;;  %v5566_v8 = vld [vmem:[%s7705_s0 + $0x1f0] ss:$76 sps:$4 sm:$0xff]   ;;  %v5544_v9 = vld [vmem:[%s7704_s1 + $0x660] ss:$8 sps:$4 sm:$0xff]  }
  0x6f   :  { %2751 = vmatpush1.bf16.msra.mxu1 %v5449_v10  ;;  %v5551_v10 = vld [vmem:[%s7704_s1 + $0x274] ss:$8 sps:$4 sm:$0xff]  }
  0x70   :  { %3155 = vmatpush1.bf16.msra.mxu0 %v5452_v11  ;;  %2752 = vmatprep.subr.bf16.mxu1 %v5459_v12  ;;  %v5554_v11 = vld [vmem:[%s7704_s1 + $0x674] ss:$8 sps:$4 sm:$0xff]   ;;  %v5573_v12 = vld [vmem:[%s7705_s0 + $0x26c] ss:$76 sps:$4 sm:$0xff]  }
  0x71   :  { %3156 = vmatprep.subr.bf16.mxu0 %v5464_v13  ;;  %v5578_v13 = vld [vmem:[%s7705_s0 + $0x28c] ss:$76 sps:$4 sm:$0xff]  }
  0x72   :  { %2720 = vmatmul.mubr.bf16.gmra.mrb[24].mxu1 %v4564_v15  ;;  %v5552_v15 = vld [vmem:[%s7704_s1 + $0x670] ss:$8 sps:$4 sm:$0xff]  }
  0x73   :  { %3124 = vmatmul.mubr.bf16.gmra.mrb[24].mxu0 %v4572_v16  ;;  %2753 = vmatpush1.bf16.msra.mxu1 %v5457_v14  ;;  %v5549_v14 = vld [vmem:[%s7704_s1 + $0x270] ss:$8 sps:$4 sm:$0xff]   ;;  %v5559_v16 = vld [vmem:[%s7704_s1 + $0x284] ss:$8 sps:$4 sm:$0xff]  }
  0x74   :  { %3157 = vmatpush1.bf16.msra.mxu0 %v5462_v17  ;;  %2754 = vmatprep.subr.bf16.mxu1 %v5469_v18  ;;  %v5564_v17 = vld [vmem:[%s7704_s1 + $0x684] ss:$8 sps:$4 sm:$0xff]   ;;  %v5557_v18 = vld [vmem:[%s7704_s1 + $0x280] ss:$8 sps:$4 sm:$0xff]  }
  0x75   :  { %3158 = vmatprep.subr.bf16.mxu0 %v5472_v19  ;;  %2760 = vmatprep.mubr.bf16.mxu1 %v5491_v20  ;;  %v5562_v19 = vld [vmem:[%s7704_s1 + $0x680] ss:$8 sps:$4 sm:$0xff]  }
  0x76   :  { %3164 = vmatprep.mubr.bf16.mxu0 %v5497_v21  ;;  %v5583_v20 = vld [vmem:[%s7705_s0 + $0x268] ss:$76 sps:$4 sm:$0xff]  }
  0x77   :  { %2755 = vmatpush1.bf16.msra.mxu1 %v5467_v22  ;;  %v5584_v21 = vld [vmem:[%s7705_s0 + $0x288] ss:$76 sps:$4 sm:$0xff]  }
  0x78   :  { %3159 = vmatpush1.bf16.msra.mxu0 %v5470_v23  ;;  %2756 = vmatprep.subr.bf16.mxu1 %v5476_v24  ;;  %v5569_v22 = vld [vmem:[%s7704_s1 + $0x294] ss:$8 sps:$4 sm:$0xff]   ;;  %v5591_v24 = vld [vmem:[%s7705_s0 + $0x304] ss:$76 sps:$4 sm:$0xff]  }
  0x79   :  { %3160 = vmatprep.subr.bf16.mxu0 %v5480_v25  ;;  %v5572_v23 = vld [vmem:[%s7704_s1 + $0x694] ss:$8 sps:$4 sm:$0xff]   ;;  %v5596_v25 = vld [vmem:[%s7705_s0 + $0x324] ss:$76 sps:$4 sm:$0xff]  }
  0x7b   :  { %2757 = vmatpush1.bf16.msra.mxu1 %v5474_v26  ;;  %v5567_v26 = vld [vmem:[%s7704_s1 + $0x290] ss:$8 sps:$4 sm:$0xff]  }
  0x7c   :  { %3161 = vmatpush1.bf16.msra.mxu0 %v5478_v27  ;;  %2758 = vmatprep.subr.bf16.mxu1 %v5485_v28  ;;  %v5570_v27 = vld [vmem:[%s7704_s1 + $0x690] ss:$8 sps:$4 sm:$0xff]   ;;  %v5577_v28 = vld [vmem:[%s7704_s1 + $0x2a4] ss:$8 sps:$4 sm:$0xff]  }
  0x7d   :  { %3162 = vmatprep.subr.bf16.mxu0 %v5488_v29  ;;  %v5582_v29 = vld [vmem:[%s7704_s1 + $0x6a4] ss:$8 sps:$4 sm:$0xff]  }
  0x7f   :  { %2759 = vmatpush1.bf16.msra.mxu1 %v5483_v30  ;;  %v5575_v30 = vld [vmem:[%s7704_s1 + $0x2a0] ss:$8 sps:$4 sm:$0xff]  }
  0x80   :  { %3163 = vmatpush1.bf16.msra.mxu0 %v5486_v31  ;;  %2829 = vmatprep.subr.bf16.mxu1 %v5494_v32  ;;  %v5580_v31 = vld [vmem:[%s7704_s1 + $0x6a0] ss:$8 sps:$4 sm:$0xff]  }
  0x81   :  { %3233 = vmatprep.subr.bf16.mxu0 %v5500_v33  ;;  %v5601_v32 = vld [vmem:[%s7705_s0 + $0x300] ss:$76 sps:$4 sm:$0xff]  }
  0x82   :  { %2761 = vmatmul.mubr.bf16.vlgmr.msra.gmra.mrb[0].mxu1 %v5489_v34  ;;  %v5602_v33 = vld [vmem:[%s7705_s0 + $0x320] ss:$76 sps:$4 sm:$0xff]   ;;  %v148_v34 = vld [vmem:[%s7705_s0 + $0x398] sm:$0x11] }
  0x83   :  { %3165 = vmatmul.mubr.bf16.vlgmr.msra.gmra.mrb[0].mxu0 %v5495_v36  ;;  %2830 = vmatpush1.bf16.msra.mxu1 %v5492_v35  ;;  %v152_v35 = vld [vmem:[%s7705_s0 + $0x3b8] sm:$0x11] }
  0x84   :  { %3234 = vmatpush1.bf16.msra.mxu0 %v5498_v37  ;;  %2831 = vmatprep.subr.bf16.mxu1 %v5503_v38  ;;  %v5587_v36 = vld [vmem:[%s7704_s1 + $0x2b4] ss:$8 sps:$4 sm:$0xff]   ;;  %v4567_v38 = vcombine.high %v148_v34, %v148_v34 }
  0x85   :  { %3235 = vmatprep.subr.bf16.mxu0 %v5506_v39  ;;  %2770 = vmatprep.mubr.bf16.mxu1 %v5519_v40  ;;  %v5590_v37 = vld [vmem:[%s7704_s1 + $0x6b4] ss:$8 sps:$4 sm:$0xff]   ;;  %v4575_v39 = vcombine.high %v152_v35, %v152_v35  ;;  %v5585_v40 = vld [vmem:[%s7704_s1 + $0x2b0] ss:$8 sps:$4 sm:$0xff]  }
  0x86   :  { %3174 = vmatprep.mubr.bf16.mxu0 %v5524_v41  ;;  %v5588_v41 = vld [vmem:[%s7704_s1 + $0x6b0] ss:$8 sps:$4 sm:$0xff]  }
  0x87   :  { %2832 = vmatpush1.bf16.msra.mxu1 %v5501_v42  ;;  %v5595_v42 = vld [vmem:[%s7704_s1 + $0x2c4] ss:$8 sps:$4 sm:$0xff]  }
  0x88   :  { %3236 = vmatpush1.bf16.msra.mxu0 %v5504_v43  ;;  %2833 = vmatprep.subr.bf16.mxu1 %v5509_v44  ;;  %v5600_v43 = vld [vmem:[%s7704_s1 + $0x6c4] ss:$8 sps:$4 sm:$0xff]   ;;  %v5593_v44 = vld [vmem:[%s7704_s1 + $0x2c0] ss:$8 sps:$4 sm:$0xff]  }
  0x89   :  { %3237 = vmatprep.subr.bf16.mxu0 %v5512_v45  ;;  %v5598_v45 = vld [vmem:[%s7704_s1 + $0x6c0] ss:$8 sps:$4 sm:$0xff]  }
  0x8a   :  { %2771 = vmatmul.mubr.bf16.gmra.mrb[4].mxu1 %v5529_v47  ;;  %v4566_v47 = vcombine.low %v148_v34, %v148_v34  ;;  %v5678_v34 = vld [vmem:[%s7704_s1 + $0x364] ss:$8 sps:$4 sm:$0xff]  }
  0x8b   :  { %3175 = vmatmul.mubr.bf16.gmra.mrb[4].mxu0 %v5530_v48  ;;  %2834 = vmatpush1.bf16.msra.mxu1 %v5507_v46  ;;  %v5605_v46 = vld [vmem:[%s7704_s1 + $0x2d4] ss:$8 sps:$4 sm:$0xff]   ;;  %v4574_v48 = vcombine.low %v152_v35, %v152_v35  ;;  %v5683_v35 = vld [vmem:[%s7704_s1 + $0x764] ss:$8 sps:$4 sm:$0xff]  }
  0x8c   :  { %3238 = vmatpush1.bf16.msra.mxu0 %v5510_v49  ;;  %2835 = vmatprep.subr.bf16.mxu1 %v5515_v50  ;;  %v5608_v49 = vld [vmem:[%s7704_s1 + $0x6d4] ss:$8 sps:$4 sm:$0xff]  }
  0x8d   :  { %3239 = vmatprep.subr.bf16.mxu0 %v5518_v51  ;;  %2780 = vmatprep.mubr.bf16.mxu1 %v5537_v52  ;;  %v5627_v50 = vld [vmem:[%s7705_s0 + $0x14] ss:$76 sps:$4 sm:$0xff]   ;;  %v5603_v52 = vld [vmem:[%s7704_s1 + $0x2d0] ss:$8 sps:$4 sm:$0xff]  }
  0x8e   :  { %3184 = vmatprep.mubr.bf16.mxu0 %v5542_v53  ;;  %v5633_v51 = vld [vmem:[%s7705_s0 + $0x34] ss:$76 sps:$4 sm:$0xff]   ;;  %v5606_v53 = vld [vmem:[%s7704_s1 + $0x6d0] ss:$8 sps:$4 sm:$0xff]  }
  0x8f   :  { %2836 = vmatpush1.bf16.msra.mxu1 %v5513_v54  ;;  %v5612_v54 = vld [vmem:[%s7704_s1 + $0x2e4] ss:$8 sps:$4 sm:$0xff]  }
  0x90   :  { %3240 = vmatpush1.bf16.msra.mxu0 %v5516_v55  ;;  %2837 = vmatprep.subr.bf16.mxu1 %v5523_v56  ;;  %v5616_v55 = vld [vmem:[%s7704_s1 + $0x6e4] ss:$8 sps:$4 sm:$0xff]   ;;  %v5610_v56 = vld [vmem:[%s7704_s1 + $0x2e0] ss:$8 sps:$4 sm:$0xff]  }
  0x91   :  { %3241 = vmatprep.subr.bf16.mxu0 %v5528_v57  ;;  %v5614_v57 = vld [vmem:[%s7704_s1 + $0x6e0] ss:$8 sps:$4 sm:$0xff]  }
  0x92   :  { %2781 = vmatmul.mubr.bf16.gmra.mrb[8].mxu1 %v5547_v59  ;;  %v5624_v59 = vld [vmem:[%s7704_s1 + $0x6f4] ss:$8 sps:$4 sm:$0xff]  }
  0x93   :  { %3185 = vmatmul.mubr.bf16.gmra.mrb[8].mxu0 %v5548_v60  ;;  %2838 = vmatpush1.bf16.msra.mxu1 %v5521_v58  ;;  %v5621_v58 = vld [vmem:[%s7704_s1 + $0x2f4] ss:$8 sps:$4 sm:$0xff]   ;;  %v5619_v60 = vld [vmem:[%s7704_s1 + $0x2f0] ss:$8 sps:$4 sm:$0xff]  }
  0x94   :  { %3242 = vmatpush1.bf16.msra.mxu0 %v5526_v61  ;;  %2839 = vmatprep.subr.bf16.mxu1 %v5533_v62  ;;  %v5622_v61 = vld [vmem:[%s7704_s1 + $0x6f0] ss:$8 sps:$4 sm:$0xff]   ;;  %v5630_v62 = vld [vmem:[%s7704_s1 + $0x304] ss:$8 sps:$4 sm:$0xff]  }
  0x95   :  { %3243 = vmatprep.subr.bf16.mxu0 %v5536_v63  ;;  %2790 = vmatprep.mubr.bf16.mxu1 %v5555_v0  ;;  %v5625_v63 = vld [vmem:[%s7705_s0 + $0x10] ss:$76 sps:$4 sm:$0xff]   ;;  %v5636_v0 = vld [vmem:[%s7704_s1 + $0x704] ss:$8 sps:$4 sm:$0xff]  }
  0x96   :  { %3194 = vmatprep.mubr.bf16.mxu0 %v5560_v1  ;;  %v5628_v1 = vld [vmem:[%s7704_s1 + $0x300] ss:$8 sps:$4 sm:$0xff]  }
  0x97   :  { %2840 = vmatpush1.bf16.msra.mxu1 %v5531_v2  ;;  %v5631_v2 = vld [vmem:[%s7705_s0 + $0x30] ss:$76 sps:$4 sm:$0xff]  }
  0x98   :  { %3244 = vmatpush1.bf16.msra.mxu0 %v5534_v3  ;;  %2841 = vmatprep.subr.bf16.mxu1 %v5541_v4  ;;  %v5634_v3 = vld [vmem:[%s7704_s1 + $0x700] ss:$8 sps:$4 sm:$0xff]   ;;  %v5639_v4 = vld [vmem:[%s7704_s1 + $0x314] ss:$8 sps:$4 sm:$0xff]  }
  0x99   :  { %3245 = vmatprep.subr.bf16.mxu0 %v5546_v5  ;;  %v5642_v5 = vld [vmem:[%s7704_s1 + $0x714] ss:$8 sps:$4 sm:$0xff]  }
  0x9a   :  { %2791 = vmatmul.mubr.bf16.gmra.mrb[12].mxu1 %v5565_v7  ;;  %v5661_v7 = vld [vmem:[%s7705_s0 + $0xcc] ss:$76 sps:$4 sm:$0xff]  }
  0x9b   :  { %3195 = vmatmul.mubr.bf16.gmra.mrb[12].mxu0 %v5566_v8  ;;  %2842 = vmatpush1.bf16.msra.mxu1 %v5539_v6  ;;  %v5655_v6 = vld [vmem:[%s7705_s0 + $0xac] ss:$76 sps:$4 sm:$0xff]  }
  0x9c   :  { %3246 = vmatpush1.bf16.msra.mxu0 %v5544_v9  ;;  %2843 = vmatprep.subr.bf16.mxu1 %v5551_v10  ;;  %v5637_v8 = vld [vmem:[%s7704_s1 + $0x310] ss:$8 sps:$4 sm:$0xff]   ;;  %v5645_v10 = vld [vmem:[%s7704_s1 + $0x324] ss:$8 sps:$4 sm:$0xff]  }
  0x9d   :  { %3247 = vmatprep.subr.bf16.mxu0 %v5554_v11  ;;  %2800 = vmatprep.mubr.bf16.mxu1 %v5573_v12  ;;  %v5640_v9 = vld [vmem:[%s7704_s1 + $0x710] ss:$8 sps:$4 sm:$0xff]   ;;  %v5648_v11 = vld [vmem:[%s7704_s1 + $0x724] ss:$8 sps:$4 sm:$0xff]   ;;  %v5643_v12 = vld [vmem:[%s7704_s1 + $0x320] ss:$8 sps:$4 sm:$0xff]  }
  0x9e   :  { %3204 = vmatprep.mubr.bf16.mxu0 %v5578_v13  ;;  %v5646_v13 = vld [vmem:[%s7704_s1 + $0x720] ss:$8 sps:$4 sm:$0xff]  }
  0x9f   :  { %2844 = vmatpush1.bf16.msra.mxu1 %v5549_v14  ;;  %v5651_v14 = vld [vmem:[%s7704_s1 + $0x334] ss:$8 sps:$4 sm:$0xff]  }
  0xa0   :  { %3248 = vmatpush1.bf16.msra.mxu0 %v5552_v15  ;;  %2845 = vmatprep.subr.bf16.mxu1 %v5559_v16  ;;  %v5657_v15 = vld [vmem:[%s7705_s0 + $0xa8] ss:$76 sps:$4 sm:$0xff]  }
  0xa1   :  { %3249 = vmatprep.subr.bf16.mxu0 %v5564_v17  ;;  %v5666_v16 = vld [vmem:[%s7705_s0 + $0xc8] ss:$76 sps:$4 sm:$0xff]  }
  0xa2   :  { %2801 = vmatmul.mubr.bf16.gmra.mrb[16].mxu1 %v5583_v20  ;;  %v5654_v17 = vld [vmem:[%s7704_s1 + $0x734] ss:$8 sps:$4 sm:$0xff]   ;;  %v5649_v20 = vld [vmem:[%s7704_s1 + $0x330] ss:$8 sps:$4 sm:$0xff]  }
  0xa3   :  { %3205 = vmatmul.mubr.bf16.gmra.mrb[16].mxu0 %v5584_v21  ;;  %2846 = vmatpush1.bf16.msra.mxu1 %v5557_v18  ;;  %v5673_v18 = vld [vmem:[%s7705_s0 + $0x144] ss:$76 sps:$4 sm:$0xff]  }
  0xa4   :  { %3250 = vmatpush1.bf16.msra.mxu0 %v5562_v19  ;;  %2847 = vmatprep.subr.bf16.mxu1 %v5569_v22  ;;  %v5679_v19 = vld [vmem:[%s7705_s0 + $0x164] ss:$76 sps:$4 sm:$0xff]  }
  0xa5   :  { %3251 = vmatprep.subr.bf16.mxu0 %v5572_v23  ;;  %2810 = vmatprep.mubr.bf16.mxu1 %v5591_v24  ;;  %v5652_v21 = vld [vmem:[%s7704_s1 + $0x730] ss:$8 sps:$4 sm:$0xff]   ;;  %v5660_v22 = vld [vmem:[%s7704_s1 + $0x344] ss:$8 sps:$4 sm:$0xff]   ;;  %v5658_v24 = vld [vmem:[%s7704_s1 + $0x340] ss:$8 sps:$4 sm:$0xff]  }
  0xa6   :  { %3214 = vmatprep.mubr.bf16.mxu0 %v5596_v25  ;;  %v5665_v23 = vld [vmem:[%s7704_s1 + $0x744] ss:$8 sps:$4 sm:$0xff]   ;;  %v5663_v25 = vld [vmem:[%s7704_s1 + $0x740] ss:$8 sps:$4 sm:$0xff]  }
  0xa7   :  { %2848 = vmatpush1.bf16.msra.mxu1 %v5567_v26  ;;  %v5669_v26 = vld [vmem:[%s7704_s1 + $0x354] ss:$8 sps:$4 sm:$0xff]  }
  0xa8   :  { %3252 = vmatpush1.bf16.msra.mxu0 %v5570_v27  ;;  %2849 = vmatprep.subr.bf16.mxu1 %v5577_v28  ;;  %v5675_v27 = vld [vmem:[%s7705_s0 + $0x140] ss:$76 sps:$4 sm:$0xff]  }
  0xa9   :  { %3253 = vmatprep.subr.bf16.mxu0 %v5582_v29  ;;  %v5684_v28 = vld [vmem:[%s7705_s0 + $0x160] ss:$76 sps:$4 sm:$0xff]   ;;  %v5672_v29 = vld [vmem:[%s7704_s1 + $0x754] ss:$8 sps:$4 sm:$0xff]  }
  0xaa   :  { %2811 = vmatmul.mubr.bf16.gmra.mrb[20].mxu1 %v5601_v32  ;;  %v5667_v32 = vld [vmem:[%s7704_s1 + $0x350] ss:$8 sps:$4 sm:$0xff]  }
  0xab   :  { %3215 = vmatmul.mubr.bf16.gmra.mrb[20].mxu0 %v5602_v33  ;;  %2850 = vmatpush1.bf16.msra.mxu1 %v5575_v30  ;;  %v5691_v30 = vld [vmem:[%s7705_s0 + $0x1dc] ss:$76 sps:$4 sm:$0xff]   ;;  %v5670_v33 = vld [vmem:[%s7704_s1 + $0x750] ss:$8 sps:$4 sm:$0xff]  }
  0xac   :  { %3254 = vmatpush1.bf16.msra.mxu0 %v5580_v31  ;;  %2851 = vmatprep.subr.bf16.mxu1 %v5587_v36  ;;  %v5697_v31 = vld [vmem:[%s7705_s0 + $0x1fc] ss:$76 sps:$4 sm:$0xff]  }
  0xad   :  { %3255 = vmatprep.subr.bf16.mxu0 %v5590_v37  ;;  %2820 = vmatprep.mubr.bf16.mxu1 %v4567_v38  ;;  %v5676_v36 = vld [vmem:[%s7704_s1 + $0x360] ss:$8 sps:$4 sm:$0xff]   ;;  %v5693_v37 = vld [vmem:[%s7705_s0 + $0x1d8] ss:$76 sps:$4 sm:$0xff]  }
  0xae   :  { %3224 = vmatprep.mubr.bf16.mxu0 %v4575_v39  ;;  %v5702_v38 = vld [vmem:[%s7705_s0 + $0x1f8] ss:$76 sps:$4 sm:$0xff]   ;;  %v5681_v39 = vld [vmem:[%s7704_s1 + $0x760] ss:$8 sps:$4 sm:$0xff]  }
  0xaf   :  { %2852 = vmatpush1.bf16.msra.mxu1 %v5585_v40  ;;  %v5687_v40 = vld [vmem:[%s7704_s1 + $0x374] ss:$8 sps:$4 sm:$0xff]  }
  0xb0   :  { %3256 = vmatpush1.bf16.msra.mxu0 %v5588_v41  ;;  %2853 = vmatprep.subr.bf16.mxu1 %v5595_v42  ;;  %v5690_v41 = vld [vmem:[%s7704_s1 + $0x774] ss:$8 sps:$4 sm:$0xff]  }
  0xb1   :  { %3257 = vmatprep.subr.bf16.mxu0 %v5600_v43  ;;  %v5709_v42 = vld [vmem:[%s7705_s0 + $0x274] ss:$76 sps:$4 sm:$0xff]  }
  0xb2   :  { %2821 = vmatmul.mubr.bf16.gmra.mrb[24].mxu1 %v4566_v47  ;;  %v5715_v43 = vld [vmem:[%s7705_s0 + $0x294] ss:$76 sps:$4 sm:$0xff]   ;;  %v5701_v47 = vld [vmem:[%s7704_s1 + $0x784] ss:$8 sps:$4 sm:$0xff]  }
  0xb3   :  { %3225 = vmatmul.mubr.bf16.gmra.mrb[24].mxu0 %v4574_v48  ;;  %2854 = vmatpush1.bf16.msra.mxu1 %v5593_v44  ;;  %v5685_v44 = vld [vmem:[%s7704_s1 + $0x370] ss:$8 sps:$4 sm:$0xff]   ;;  %v5694_v48 = vld [vmem:[%s7704_s1 + $0x380] ss:$8 sps:$4 sm:$0xff]  }
  0xb4   :  { %3258 = vmatpush1.bf16.msra.mxu0 %v5598_v45  ;;  %2855 = vmatprep.subr.bf16.mxu1 %v5605_v46  ;;  %v5688_v45 = vld [vmem:[%s7704_s1 + $0x770] ss:$8 sps:$4 sm:$0xff]   ;;  %v5696_v46 = vld [vmem:[%s7704_s1 + $0x384] ss:$8 sps:$4 sm:$0xff]  }
  0xb5   :  { %3259 = vmatprep.subr.bf16.mxu0 %v5608_v49  ;;  %2861 = vmatprep.mubr.bf16.mxu1 %v5627_v50  ;;  %v5711_v49 = vld [vmem:[%s7705_s0 + $0x270] ss:$76 sps:$4 sm:$0xff]  }
  0xb6   :  { %3265 = vmatprep.mubr.bf16.mxu0 %v5633_v51  ;;  %v5720_v50 = vld [vmem:[%s7705_s0 + $0x290] ss:$76 sps:$4 sm:$0xff]   ;;  %v5699_v51 = vld [vmem:[%s7704_s1 + $0x780] ss:$8 sps:$4 sm:$0xff]  }
  0xb7   :  { %2856 = vmatpush1.bf16.msra.mxu1 %v5603_v52  ;;  %v5705_v52 = vld [vmem:[%s7704_s1 + $0x394] ss:$8 sps:$4 sm:$0xff]  }
  0xb8   :  { %3260 = vmatpush1.bf16.msra.mxu0 %v5606_v53  ;;  %2857 = vmatprep.subr.bf16.mxu1 %v5612_v54  ;;  %v5708_v53 = vld [vmem:[%s7704_s1 + $0x794] ss:$8 sps:$4 sm:$0xff]   ;;  %v5727_v54 = vld [vmem:[%s7705_s0 + $0x30c] ss:$76 sps:$4 sm:$0xff]  }
  0xb9   :  { %3261 = vmatprep.subr.bf16.mxu0 %v5616_v55  ;;  %v5703_v55 = vld [vmem:[%s7704_s1 + $0x390] ss:$8 sps:$4 sm:$0xff]  }
  0xbb   :  { %2858 = vmatpush1.bf16.msra.mxu1 %v5610_v56  ;;  %v5733_v56 = vld [vmem:[%s7705_s0 + $0x32c] ss:$76 sps:$4 sm:$0xff]  }
  0xbc   :  { %3262 = vmatpush1.bf16.msra.mxu0 %v5614_v57  ;;  %2859 = vmatprep.subr.bf16.mxu1 %v5621_v58  ;;  %v5706_v57 = vld [vmem:[%s7704_s1 + $0x790] ss:$8 sps:$4 sm:$0xff]   ;;  %v5714_v58 = vld [vmem:[%s7704_s1 + $0x3a4] ss:$8 sps:$4 sm:$0xff]  }
  0xbd   :  { %3263 = vmatprep.subr.bf16.mxu0 %v5624_v59  ;;  %v5719_v59 = vld [vmem:[%s7704_s1 + $0x7a4] ss:$8 sps:$4 sm:$0xff]  }
  0xbf   :  { %2860 = vmatpush1.bf16.msra.mxu1 %v5619_v60  ;;  %v5729_v60 = vld [vmem:[%s7705_s0 + $0x308] ss:$76 sps:$4 sm:$0xff]  }
  0xc0   :  { %3264 = vmatpush1.bf16.msra.mxu0 %v5622_v61  ;;  %2930 = vmatprep.subr.bf16.mxu1 %v5630_v62  ;;  %v5738_v61 = vld [vmem:[%s7705_s0 + $0x328] ss:$76 sps:$4 sm:$0xff]   ;;  %v149_v62 = vld [vmem:[%s7705_s0 + $0x3a0] sm:$0x11] }
  0xc1   :  { %3334 = vmatprep.subr.bf16.mxu0 %v5636_v0  ;;  %v5712_v0 = vld [vmem:[%s7704_s1 + $0x3a0] ss:$8 sps:$4 sm:$0xff]  }
  0xc2   :  { %2862 = vmatmul.mubr.bf16.vlgmr.msra.gmra.mrb[0].mxu1 %v5625_v63  ;;  %v153_v63 = vld [vmem:[%s7705_s0 + $0x3c0] sm:$0x11] }
  0xc3   :  { %3266 = vmatmul.mubr.bf16.vlgmr.msra.gmra.mrb[0].mxu0 %v5631_v2  ;;  %2931 = vmatpush1.bf16.msra.mxu1 %v5628_v1  ;;  %v5717_v1 = vld [vmem:[%s7704_s1 + $0x7a0] ss:$8 sps:$4 sm:$0xff]   ;;  %v5723_v2 = vld [vmem:[%s7704_s1 + $0x3b4] ss:$8 sps:$4 sm:$0xff]  }
  0xc4   :  { %3335 = vmatpush1.bf16.msra.mxu0 %v5634_v3  ;;  %2932 = vmatprep.subr.bf16.mxu1 %v5639_v4  ;;  %v5726_v3 = vld [vmem:[%s7704_s1 + $0x7b4] ss:$8 sps:$4 sm:$0xff]   ;;  %v4569_v4 = vcombine.high %v149_v62, %v149_v62 }
  0xc5   :  { %3336 = vmatprep.subr.bf16.mxu0 %v5642_v5  ;;  %2871 = vmatprep.mubr.bf16.mxu1 %v5655_v6  ;;  %v4577_v5 = vcombine.high %v153_v63, %v153_v63  ;;  %v5721_v6 = vld [vmem:[%s7704_s1 + $0x3b0] ss:$8 sps:$4 sm:$0xff]  }
  0xc6   :  { %3275 = vmatprep.mubr.bf16.mxu0 %v5661_v7  ;;  %v5724_v7 = vld [vmem:[%s7704_s1 + $0x7b0] ss:$8 sps:$4 sm:$0xff]  }
  0xc7   :  { %2933 = vmatpush1.bf16.msra.mxu1 %v5637_v8  ;;  %v5732_v8 = vld [vmem:[%s7704_s1 + $0x3c4] ss:$8 sps:$4 sm:$0xff]  }
  0xc8   :  { %3337 = vmatpush1.bf16.msra.mxu0 %v5640_v9  ;;  %2934 = vmatprep.subr.bf16.mxu1 %v5645_v10  ;;  %v5737_v9 = vld [vmem:[%s7704_s1 + $0x7c4] ss:$8 sps:$4 sm:$0xff]   ;;  %v5730_v10 = vld [vmem:[%s7704_s1 + $0x3c0] ss:$8 sps:$4 sm:$0xff]  }
  0xc9   :  { %3338 = vmatprep.subr.bf16.mxu0 %v5648_v11  ;;  %v4568_v11 = vcombine.low %v149_v62, %v149_v62  ;;  %v5823_v62 = vld [vmem:[%s7705_s0 + $0x298] ss:$76 sps:$4 sm:$0xff]  }
  0xca   :  { %2872 = vmatmul.mubr.bf16.gmra.mrb[4].mxu1 %v5657_v15  ;;  %v5744_v15 = vld [vmem:[%s7704_s1 + $0x7d4] ss:$8 sps:$4 sm:$0xff]  }
  0xcb   :  { %3276 = vmatmul.mubr.bf16.gmra.mrb[4].mxu0 %v5666_v16  ;;  %2935 = vmatpush1.bf16.msra.mxu1 %v5643_v12  ;;  %v4576_v12 = vcombine.low %v153_v63, %v153_v63  ;;  %v5763_v16 = vld [vmem:[%s7705_s0 + $0x1c] ss:$76 sps:$4 sm:$0xff]  }
  0xcc   :  { %3339 = vmatpush1.bf16.msra.mxu0 %v5646_v13  ;;  %2936 = vmatprep.subr.bf16.mxu1 %v5651_v14  ;;  %v5735_v13 = vld [vmem:[%s7704_s1 + $0x7c0] ss:$8 sps:$4 sm:$0xff]   ;;  %v5741_v14 = vld [vmem:[%s7704_s1 + $0x3d4] ss:$8 sps:$4 sm:$0xff]  }
  0xcd   :  { %3340 = vmatprep.subr.bf16.mxu0 %v5654_v17  ;;  %2881 = vmatprep.mubr.bf16.mxu1 %v5673_v18  ;;  %v5766_v17 = vld [vmem:[%s7705_s0 + $0x3c] ss:$76 sps:$4 sm:$0xff]   ;;  %v5739_v18 = vld [vmem:[%s7704_s1 + $0x3d0] ss:$8 sps:$4 sm:$0xff]  }
  0xce   :  { %3285 = vmatprep.mubr.bf16.mxu0 %v5679_v19  ;;  %v5742_v19 = vld [vmem:[%s7704_s1 + $0x7d0] ss:$8 sps:$4 sm:$0xff]   ;;  %v5812_v63 = vld [vmem:[%s7704_s1 + $0x880] ss:$8 sps:$4 sm:$0xff]  }
  0xcf   :  { %2937 = vmatpush1.bf16.msra.mxu1 %v5649_v20  ;;  %v5749_v20 = vld [vmem:[%s7704_s1 + $0x3e4] ss:$8 sps:$4 sm:$0xff]  }
  0xd0   :  { %3341 = vmatpush1.bf16.msra.mxu0 %v5652_v21  ;;  %2938 = vmatprep.subr.bf16.mxu1 %v5660_v22  ;;  %v5753_v21 = vld [vmem:[%s7704_s1 + $0x7e4] ss:$8 sps:$4 sm:$0xff]   ;;  %v5747_v22 = vld [vmem:[%s7704_s1 + $0x3e0] ss:$8 sps:$4 sm:$0xff]  }
  0xd1   :  { %3342 = vmatprep.subr.bf16.mxu0 %v5665_v23  ;;  %v5751_v23 = vld [vmem:[%s7704_s1 + $0x7e0] ss:$8 sps:$4 sm:$0xff]  }
  0xd2   :  { %2882 = vmatmul.mubr.bf16.gmra.mrb[8].mxu1 %v5675_v27  ;;  %v5758_v27 = vld [vmem:[%s7704_s1 + $0x7f0] ss:$8 sps:$4 sm:$0xff]  }
  0xd3   :  { %3286 = vmatmul.mubr.bf16.gmra.mrb[8].mxu0 %v5684_v28  ;;  %2939 = vmatpush1.bf16.msra.mxu1 %v5658_v24  ;;  %v5757_v24 = vld [vmem:[%s7704_s1 + $0x3f4] ss:$8 sps:$4 sm:$0xff]   ;;  %v5769_v28 = vld [vmem:[%s7704_s1 + $0x804] ss:$8 sps:$4 sm:$0xff]  }
  0xd4   :  { %3343 = vmatpush1.bf16.msra.mxu0 %v5663_v25  ;;  %2940 = vmatprep.subr.bf16.mxu1 %v5669_v26  ;;  %v5760_v25 = vld [vmem:[%s7704_s1 + $0x7f4] ss:$8 sps:$4 sm:$0xff]   ;;  %v5755_v26 = vld [vmem:[%s7704_s1 + $0x3f0] ss:$8 sps:$4 sm:$0xff]  }
  0xd5   :  { %3344 = vmatprep.subr.bf16.mxu0 %v5672_v29  ;;  %2891 = vmatprep.mubr.bf16.mxu1 %v5691_v30  ;;  %v5761_v29 = vld [vmem:[%s7705_s0 + $0x18] ss:$76 sps:$4 sm:$0xff]  }
  0xd6   :  { %3295 = vmatprep.mubr.bf16.mxu0 %v5697_v31  ;;  %v5764_v30 = vld [vmem:[%s7705_s0 + $0x38] ss:$76 sps:$4 sm:$0xff]   ;;  %v5767_v31 = vld [vmem:[%s7704_s1 + $0x800] ss:$8 sps:$4 sm:$0xff]  }
  0xd7   :  { %2941 = vmatpush1.bf16.msra.mxu1 %v5667_v32  ;;  %v5772_v32 = vld [vmem:[%s7704_s1 + $0x814] ss:$8 sps:$4 sm:$0xff]  }
  0xd8   :  { %3345 = vmatpush1.bf16.msra.mxu0 %v5670_v33  ;;  %2942 = vmatprep.subr.bf16.mxu1 %v5678_v34  ;;  %v5773_v33 = vld [vmem:[%s7705_s0 + $0xb4] ss:$76 sps:$4 sm:$0xff]  }
  0xd9   :  { %3346 = vmatprep.subr.bf16.mxu0 %v5683_v35  ;;  %v5784_v34 = vld [vmem:[%s7705_s0 + $0xd4] ss:$76 sps:$4 sm:$0xff]   ;;  %v5770_v35 = vld [vmem:[%s7704_s1 + $0x810] ss:$8 sps:$4 sm:$0xff]  }
  0xda   :  { %2892 = vmatmul.mubr.bf16.gmra.mrb[12].mxu1 %v5693_v37  ;;  %v5775_v37 = vld [vmem:[%s7705_s0 + $0xb0] ss:$76 sps:$4 sm:$0xff]  }
  0xdb   :  { %3296 = vmatmul.mubr.bf16.gmra.mrb[12].mxu0 %v5702_v38  ;;  %2943 = vmatpush1.bf16.msra.mxu1 %v5676_v36  ;;  %v5778_v36 = vld [vmem:[%s7704_s1 + $0x824] ss:$8 sps:$4 sm:$0xff]   ;;  %v5776_v38 = vld [vmem:[%s7704_s1 + $0x820] ss:$8 sps:$4 sm:$0xff]  }
  0xdc   :  { %3347 = vmatpush1.bf16.msra.mxu0 %v5681_v39  ;;  %2944 = vmatprep.subr.bf16.mxu1 %v5687_v40  ;;  %v5781_v39 = vld [vmem:[%s7704_s1 + $0x834] ss:$8 sps:$4 sm:$0xff]  }
  0xdd   :  { %3348 = vmatprep.subr.bf16.mxu0 %v5690_v41  ;;  %2901 = vmatprep.mubr.bf16.mxu1 %v5709_v42  ;;  %v5787_v40 = vld [vmem:[%s7705_s0 + $0xd0] ss:$76 sps:$4 sm:$0xff]   ;;  %v5782_v41 = vld [vmem:[%s7705_s0 + $0x14c] ss:$76 sps:$4 sm:$0xff]  }
  0xde   :  { %3305 = vmatprep.mubr.bf16.mxu0 %v5715_v43  ;;  %v5796_v42 = vld [vmem:[%s7705_s0 + $0x16c] ss:$76 sps:$4 sm:$0xff]  }
  0xdf   :  { %2945 = vmatpush1.bf16.msra.mxu1 %v5685_v44  ;;  %v5779_v43 = vld [vmem:[%s7704_s1 + $0x830] ss:$8 sps:$4 sm:$0xff]   ;;  %v5790_v44 = vld [vmem:[%s7704_s1 + $0x844] ss:$8 sps:$4 sm:$0xff]  }
  0xe0   :  { %3349 = vmatpush1.bf16.msra.mxu0 %v5688_v45  ;;  %2946 = vmatprep.subr.bf16.mxu1 %v5696_v46  ;;  %v5786_v45 = vld [vmem:[%s7705_s0 + $0x148] ss:$76 sps:$4 sm:$0xff]  }
  0xe1   :  { %3350 = vmatprep.subr.bf16.mxu0 %v5701_v47  ;;  %v5788_v46 = vld [vmem:[%s7704_s1 + $0x840] ss:$8 sps:$4 sm:$0xff]  }
  0xe2   :  { %2902 = vmatmul.mubr.bf16.gmra.mrb[16].mxu1 %v5711_v49  ;;  %v5799_v47 = vld [vmem:[%s7705_s0 + $0x168] ss:$76 sps:$4 sm:$0xff]  }
  0xe3   :  { %3306 = vmatmul.mubr.bf16.gmra.mrb[16].mxu0 %v5720_v50  ;;  %2947 = vmatpush1.bf16.msra.mxu1 %v5694_v48  ;;  %v5794_v48 = vld [vmem:[%s7705_s0 + $0x1e4] ss:$76 sps:$4 sm:$0xff]   ;;  %v5793_v49 = vld [vmem:[%s7704_s1 + $0x854] ss:$8 sps:$4 sm:$0xff]  }
  0xe4   :  { %3351 = vmatpush1.bf16.msra.mxu0 %v5699_v51  ;;  %2948 = vmatprep.subr.bf16.mxu1 %v5705_v52  ;;  %v5808_v50 = vld [vmem:[%s7705_s0 + $0x204] ss:$76 sps:$4 sm:$0xff]   ;;  %v5798_v52 = vld [vmem:[%s7705_s0 + $0x1e0] ss:$76 sps:$4 sm:$0xff]  }
  0xe5   :  { %3352 = vmatprep.subr.bf16.mxu0 %v5708_v53  ;;  %2911 = vmatprep.mubr.bf16.mxu1 %v5727_v54  ;;  %v5791_v51 = vld [vmem:[%s7704_s1 + $0x850] ss:$8 sps:$4 sm:$0xff]   ;;  %v5802_v53 = vld [vmem:[%s7704_s1 + $0x864] ss:$8 sps:$4 sm:$0xff]   ;;  %v5800_v54 = vld [vmem:[%s7704_s1 + $0x860] ss:$8 sps:$4 sm:$0xff]  }
  0xe6   :  { %3315 = vmatprep.mubr.bf16.mxu0 %v5733_v56  ;;  %v5811_v56 = vld [vmem:[%s7705_s0 + $0x200] ss:$76 sps:$4 sm:$0xff]  }
  0xe7   :  { %2949 = vmatpush1.bf16.msra.mxu1 %v5703_v55  ;;  %v5806_v55 = vld [vmem:[%s7705_s0 + $0x27c] ss:$76 sps:$4 sm:$0xff]  }
  0xe8   :  { %3353 = vmatpush1.bf16.msra.mxu0 %v5706_v57  ;;  %2950 = vmatprep.subr.bf16.mxu1 %v5714_v58  ;;  %v5805_v57 = vld [vmem:[%s7704_s1 + $0x874] ss:$8 sps:$4 sm:$0xff]  }
  0xe9   :  { %3354 = vmatprep.subr.bf16.mxu0 %v5719_v59  ;;  %v5820_v58 = vld [vmem:[%s7705_s0 + $0x29c] ss:$76 sps:$4 sm:$0xff]   ;;  %v5803_v59 = vld [vmem:[%s7704_s1 + $0x870] ss:$8 sps:$4 sm:$0xff]  }
  0xea   :  { %2912 = vmatmul.mubr.bf16.gmra.mrb[20].mxu1 %v5729_v60  ;;  %v5814_v60 = vld [vmem:[%s7704_s1 + $0x884] ss:$8 sps:$4 sm:$0xff]  }
  0xeb   :  { %3316 = vmatmul.mubr.bf16.gmra.mrb[20].mxu0 %v5738_v61  ;;  %2951 = vmatpush1.bf16.msra.mxu1 %v5712_v0  ;;  %v5810_v61 = vld [vmem:[%s7705_s0 + $0x278] ss:$76 sps:$4 sm:$0xff]   ;;  %v5818_v0 = vld [vmem:[%s7705_s0 + $0x314] ss:$76 sps:$4 sm:$0xff]  }
  0xec   :  { %3355 = vmatpush1.bf16.msra.mxu0 %v5717_v1  ;;  %2952 = vmatprep.subr.bf16.mxu1 %v5723_v2  ;;  %v5817_v1 = vld [vmem:[%s7704_s1 + $0x894] ss:$8 sps:$4 sm:$0xff]  }
  0xed   :  { %3356 = vmatprep.subr.bf16.mxu0 %v5726_v3  ;;  %2921 = vmatprep.mubr.bf16.mxu1 %v4569_v4  ;;  %v5831_v2 = vld [vmem:[%s7705_s0 + $0x334] ss:$76 sps:$4 sm:$0xff]   ;;  %v5815_v3 = vld [vmem:[%s7704_s1 + $0x890] ss:$8 sps:$4 sm:$0xff]   ;;  %v5826_v4 = vld [vmem:[%s7704_s1 + $0x8a4] ss:$8 sps:$4 sm:$0xff]  }
  0xee   :  { %3325 = vmatprep.mubr.bf16.mxu0 %v4577_v5  ;;  %v150_v5 = vld [vmem:[%s7705_s0 + $0x3a8] sm:$0x11] }
  0xef   :  { %2953 = vmatpush1.bf16.msra.mxu1 %v5721_v6  ;;  %v154_v6 = vld [vmem:[%s7705_s0 + $0x3c8] sm:$0x11] }
  0xf0   :  { %3357 = vmatpush1.bf16.msra.mxu0 %v5724_v7  ;;  %2954 = vmatprep.subr.bf16.mxu1 %v5732_v8  ;;  %v5822_v7 = vld [vmem:[%s7705_s0 + $0x310] ss:$76 sps:$4 sm:$0xff]  }
  0xf1   :  { %3358 = vmatprep.subr.bf16.mxu0 %v5737_v9  ;;  %v5834_v8 = vld [vmem:[%s7705_s0 + $0x330] ss:$76 sps:$4 sm:$0xff]   ;;  %v5824_v9 = vld [vmem:[%s7704_s1 + $0x8a0] ss:$8 sps:$4 sm:$0xff]  }
  0xf2   :  { %2922 = vmatmul.mubr.bf16.gmra.mrb[24].mxu1 %v4568_v11  ;;  %v5829_v11 = vld [vmem:[%s7704_s1 + $0x8b4] ss:$8 sps:$4 sm:$0xff]  }
  0xf3   :  { %3326 = vmatmul.mubr.bf16.gmra.mrb[24].mxu0 %v4576_v12  ;;  %2955 = vmatpush1.bf16.msra.mxu1 %v5730_v10  ;;  %v4571_v10 = vcombine.high %v150_v5, %v150_v5  ;;  %v4579_v12 = vcombine.high %v154_v6, %v154_v6 }
  0xf4   :  { %3359 = vmatpush1.bf16.msra.mxu0 %v5735_v13  ;;  %2956 = vmatprep.subr.bf16.mxu1 %v5741_v14  ;;  %v5827_v13 = vld [vmem:[%s7704_s1 + $0x8b0] ss:$8 sps:$4 sm:$0xff]   ;;  %v5837_v14 = vld [vmem:[%s7704_s1 + $0x8c4] ss:$8 sps:$4 sm:$0xff]  }
  0xf5   :  { %3360 = vmatprep.subr.bf16.mxu0 %v5744_v15  ;;  %2962 = vmatprep.mubr.bf16.mxu1 %v5763_v16  ;;  %v4570_v15 = vcombine.low %v150_v5, %v150_v5  ;;  %v4578_v16 = vcombine.low %v154_v6, %v154_v6  ;;  %v5892_v5 = vld [vmem:[%s7705_s0 + $0x340] ss:$76 sps:$4 sm:$0xff]  }
  0xf6   :  { %3366 = vmatprep.mubr.bf16.mxu0 %v5766_v17  ;;  %v5835_v17 = vld [vmem:[%s7704_s1 + $0x8c0] ss:$8 sps:$4 sm:$0xff]   ;;  %v5914_v6 = vld [vmem:[%s7706_s3 + $0x64] ss:$8 sps:$4 sm:$0xff]  }
  0xf7   :  { %2957 = vmatpush1.bf16.msra.mxu1 %v5739_v18  ;;  %v5851_v18 = vld [vmem:[%s7705_s0 + $0x44] ss:$76 sps:$4 sm:$0xff]  }
  0xf8   :  { %3361 = vmatpush1.bf16.msra.mxu0 %v5742_v19  ;;  %2958 = vmatprep.subr.bf16.mxu1 %v5749_v20  ;;  %v5840_v19 = vld [vmem:[%s7704_s1 + $0x8d4] ss:$8 sps:$4 sm:$0xff]   ;;  %v5838_v20 = vld [vmem:[%s7704_s1 + $0x8d0] ss:$8 sps:$4 sm:$0xff]  }
  0xf9   :  { %3362 = vmatprep.subr.bf16.mxu0 %v5753_v21  ;;  %v5845_v21 = vld [vmem:[%s7704_s1 + $0x8e4] ss:$8 sps:$4 sm:$0xff]  }
  0xfb   :  { %2959 = vmatpush1.bf16.msra.mxu1 %v5747_v22  ;;  %v5843_v22 = vld [vmem:[%s7704_s1 + $0x8e0] ss:$8 sps:$4 sm:$0xff]  }
  0xfc   :  { %3363 = vmatpush1.bf16.msra.mxu0 %v5751_v23  ;;  %2960 = vmatprep.subr.bf16.mxu1 %v5757_v24  ;;  %v5848_v23 = vld [vmem:[%s7704_s1 + $0x8f4] ss:$8 sps:$4 sm:$0xff]   ;;  %v5846_v24 = vld [vmem:[%s7704_s1 + $0x8f0] ss:$8 sps:$4 sm:$0xff]  }
  0xfd   :  { %3364 = vmatprep.subr.bf16.mxu0 %v5760_v25  ;;  %v5854_v25 = vld [vmem:[%s7704_s1 + $0x904] ss:$8 sps:$4 sm:$0xff]  }
  0xff   :  { %2961 = vmatpush1.bf16.msra.mxu1 %v5755_v26  ;;  %v5849_v26 = vld [vmem:[%s7705_s0 + $0x40] ss:$76 sps:$4 sm:$0xff]  }
 0x100   :  { %3365 = vmatpush1.bf16.msra.mxu0 %v5758_v27  ;;  %v5852_v27 = vld [vmem:[%s7704_s1 + $0x900] ss:$8 sps:$4 sm:$0xff]  }
 0x101   :  { %3435 = vmatprep.subr.bf16.mxu0 %v5769_v28  ;;  %v5855_v28 = vld [vmem:[%s7705_s0 + $0xdc] ss:$76 sps:$4 sm:$0xff]  }
 0x102   :  { %2963 = vmatmul.mubr.bf16.vlgmr.msra.gmra.mrb[0].mxu1 %v5761_v29  ;;  %v5860_v29 = vld [vmem:[%s7704_s1 + $0x914] ss:$8 sps:$4 sm:$0xff]  }
 0x103   :  { %3367 = vmatmul.mubr.bf16.vlgmr.msra.gmra.mrb[0].mxu0 %v5764_v30  ;;  %2972 = vmatprep.mubr.bf16.mxu1 %v5773_v33  ;;  %v5858_v30 = vld [vmem:[%s7704_s1 + $0x910] ss:$8 sps:$4 sm:$0xff]   ;;  %v5861_v33 = vld [vmem:[%s7705_s0 + $0x174] ss:$76 sps:$4 sm:$0xff]  }
 0x104   :  { %3436 = vmatpush1.bf16.msra.mxu0 %v5767_v31  ;;  %3376 = vmatprep.mubr.bf16.mxu0 %v5784_v34  ;;  %v5866_v31 = vld [vmem:[%s7704_s1 + $0x924] ss:$8 sps:$4 sm:$0xff]   ;;  %v5864_v34 = vld [vmem:[%s7704_s1 + $0x920] ss:$8 sps:$4 sm:$0xff]  }
 0x105   :  { %3437 = vmatprep.subr.bf16.mxu0 %v5772_v32  ;;  %v5857_v32 = vld [vmem:[%s7705_s0 + $0xd8] ss:$76 sps:$4 sm:$0xff]  }
 0x108   :  { %3438 = vmatpush1.bf16.msra.mxu0 %v5770_v35  ;;  %v5872_v35 = vld [vmem:[%s7704_s1 + $0x934] ss:$8 sps:$4 sm:$0xff]  }
 0x109   :  { %3439 = vmatprep.subr.bf16.mxu0 %v5778_v36  ;;  %v5870_v36 = vld [vmem:[%s7704_s1 + $0x930] ss:$8 sps:$4 sm:$0xff]  }
 0x10a   :  { %2973 = vmatmul.mubr.bf16.gmra.mrb[4].mxu1 %v5775_v37  ;;  %v5878_v37 = vld [vmem:[%s7704_s1 + $0x944] ss:$8 sps:$4 sm:$0xff]  }
 0x10b   :  { %3377 = vmatmul.mubr.bf16.gmra.mrb[4].mxu0 %v5787_v40  ;;  %2982 = vmatprep.mubr.bf16.mxu1 %v5782_v41  ;;  %v5876_v40 = vld [vmem:[%s7704_s1 + $0x940] ss:$8 sps:$4 sm:$0xff]   ;;  %v5885_v41 = vld [vmem:[%s7704_s1 + $0x954] ss:$8 sps:$4 sm:$0xff]  }
 0x10c   :  { %3440 = vmatpush1.bf16.msra.mxu0 %v5776_v38  ;;  %3386 = vmatprep.mubr.bf16.mxu0 %v5796_v42  ;;  %v5863_v38 = vld [vmem:[%s7705_s0 + $0x170] ss:$76 sps:$4 sm:$0xff]  }
 0x10d   :  { %3441 = vmatprep.subr.bf16.mxu0 %v5781_v39  ;;  %v5867_v39 = vld [vmem:[%s7705_s0 + $0x20c] ss:$76 sps:$4 sm:$0xff]  }
 0x10e   :  { %v5883_v42 = vld [vmem:[%s7704_s1 + $0x950] ss:$8 sps:$4 sm:$0xff]  }
 0x110   :  { %3442 = vmatpush1.bf16.msra.mxu0 %v5779_v43  ;;  %v5869_v43 = vld [vmem:[%s7705_s0 + $0x208] ss:$76 sps:$4 sm:$0xff]  }
 0x111   :  { %3443 = vmatprep.subr.bf16.mxu0 %v5790_v44  ;;  %v5873_v44 = vld [vmem:[%s7705_s0 + $0x2a4] ss:$76 sps:$4 sm:$0xff]  }
 0x112   :  { %2983 = vmatmul.mubr.bf16.gmra.mrb[8].mxu1 %v5786_v45  ;;  %v5875_v45 = vld [vmem:[%s7705_s0 + $0x2a0] ss:$76 sps:$4 sm:$0xff]  }
 0x113   :  { %3387 = vmatmul.mubr.bf16.gmra.mrb[8].mxu0 %v5799_v47  ;;  %2992 = vmatprep.mubr.bf16.mxu1 %v5794_v48  ;;  %v155_v47 = vld [vmem:[%s7705_s0 + $0x3d0] sm:$0x11]  ;;  %v5881_v48 = vld [vmem:[%s7705_s0 + $0x338] ss:$76 sps:$4 sm:$0xff]  }
 0x114   :  { %3444 = vmatpush1.bf16.msra.mxu0 %v5788_v46  ;;  %3396 = vmatprep.mubr.bf16.mxu0 %v5808_v50  ;;  %v5879_v46 = vld [vmem:[%s7705_s0 + $0x33c] ss:$76 sps:$4 sm:$0xff]   ;;  %v4580_v50 = vcombine.low %v155_v47, %v155_v47 }
 0x115   :  { %3445 = vmatprep.subr.bf16.mxu0 %v5793_v49  ;;  %v4581_v49 = vcombine.high %v155_v47, %v155_v47 }
 0x118   :  { %3446 = vmatpush1.bf16.msra.mxu0 %v5791_v51  ;;  %v5990_v51 = vmov 0  }
 0x119   :  { %3447 = vmatprep.subr.bf16.mxu0 %v5802_v53  ;;  %v5888_v53 = vld [vmem:[%s7705_s0 + $0xe0] ss:$76 sps:$4 sm:$0xff]  }
 0x11a   :  { %2993 = vmatmul.mubr.bf16.gmra.mrb[12].mxu1 %v5798_v52  ;;  %v5887_v52 = vld [vmem:[%s7705_s0 + $0x48] ss:$76 sps:$4 sm:$0xff]  }
 0x11b   :  { %3397 = vmatmul.mubr.bf16.gmra.mrb[12].mxu0 %v5811_v56  ;;  %3002 = vmatprep.mubr.bf16.mxu1 %v5806_v55  ;;  %v5894_v55 = vld [vmem:[%s7706_s3] ss:$8 sps:$4 sm:$0xff]   ;;  %v5896_v56 = vld [vmem:[%s7706_s3 + $0x4] ss:$8 sps:$4 sm:$0xff]  }
 0x11c   :  { %3448 = vmatpush1.bf16.msra.mxu0 %v5800_v54  ;;  %3406 = vmatprep.mubr.bf16.mxu0 %v5820_v58  ;;  %v5889_v54 = vld [vmem:[%s7705_s0 + $0x178] ss:$76 sps:$4 sm:$0xff]   ;;  %v5890_v58 = vld [vmem:[%s7705_s0 + $0x210] ss:$76 sps:$4 sm:$0xff]  }
 0x11d   :  { %3449 = vmatprep.subr.bf16.mxu0 %v5805_v57  ;;  %v5899_v57 = vld [vmem:[%s7706_s3 + $0x14] ss:$8 sps:$4 sm:$0xff]   ;;  %3881 = vmatprep.subr.bf16.mxu1 %v5896_v56  ;;  %v459_v56 = vlaneseq }
 0x11e   :  { %3882 = vmatpush1.bf16.msra.mxu1 %v5894_v55  ;;  %v5944_v55 = vld [vmem:[%s7707_s5 + $0x4] ss:$8 sps:$4 sm:$0xff]  }
 0x11f   :  { %3883 = vmatprep.subr.bf16.mxu1 %v5899_v57  ;;  %v460_v57 = vshrl.u32 %v459_v56, 7 }
 0x120   :  { %3450 = vmatpush1.bf16.msra.mxu0 %v5803_v59  ;;  %v5897_v59 = vld [vmem:[%s7706_s3 + $0x10] ss:$8 sps:$4 sm:$0xff]  }
 0x121   :  { %3451 = vmatprep.subr.bf16.mxu0 %v5814_v60  ;;  %v5902_v60 = vld [vmem:[%s7706_s3 + $0x24] ss:$8 sps:$4 sm:$0xff]  }
 0x122   :  { %3003 = vmatmul.mubr.bf16.gmra.mrb[16].mxu1 %v5810_v61  ;;  %v5900_v61 = vld [vmem:[%s7706_s3 + $0x20] ss:$8 sps:$4 sm:$0xff]  }
 0x123   :  { %3407 = vmatmul.mubr.bf16.gmra.mrb[16].mxu0 %v5823_v62  ;;  %3012 = vmatprep.mubr.bf16.mxu1 %v5818_v0  ;;  %v5905_v62 = vld [vmem:[%s7706_s3 + $0x34] ss:$8 sps:$4 sm:$0xff]   ;;  %v5903_v0 = vld [vmem:[%s7706_s3 + $0x30] ss:$8 sps:$4 sm:$0xff]  }
 0x124   :  { %3452 = vmatpush1.bf16.msra.mxu0 %v5812_v63  ;;  %3416 = vmatprep.mubr.bf16.mxu0 %v5831_v2  ;;  %v5891_v63 = vld [vmem:[%s7705_s0 + $0x2a8] ss:$76 sps:$4 sm:$0xff]  }
 0x125   :  { %3453 = vmatprep.subr.bf16.mxu0 %v5817_v1  ;;  %3884 = vmatpush1.bf16.msra.mxu1 %v5897_v59  ;;  %v5908_v1 = vld [vmem:[%s7706_s3 + $0x44] ss:$8 sps:$4 sm:$0xff]   ;;  %v5906_v2 = vld [vmem:[%s7706_s3 + $0x40] ss:$8 sps:$4 sm:$0xff]  }
 0x126   :  { %3885 = vmatprep.subr.bf16.mxu1 %v5902_v60  ;;  %v457_v59 = vld [vmem:[%s7708_s2] sm:$0x3]  ;;  %v7450_v60 = vsub.s32 1, %v460_v57 }
 0x128   :  { %3454 = vmatpush1.bf16.msra.mxu0 %v5815_v3  ;;  %v5911_v3 = vld [vmem:[%s7706_s3 + $0x54] ss:$8 sps:$4 sm:$0xff]  }
 0x129   :  { %3455 = vmatprep.subr.bf16.mxu0 %v5826_v4  ;;  %3886 = vmatpush1.bf16.msra.mxu1 %v5900_v61  ;;  %v5909_v4 = vld [vmem:[%s7706_s3 + $0x50] ss:$8 sps:$4 sm:$0xff]  }
 0x12a   :  { %3013 = vmatmul.mubr.bf16.gmra.mrb[20].mxu1 %v5822_v7  ;;  %3887 = vmatprep.subr.bf16.mxu1 %v5905_v62  ;;  %v5912_v7 = vld [vmem:[%s7706_s3 + $0x60] ss:$8 sps:$4 sm:$0xff]   ;;  %v7456_v62 = vrot.slane %v457_v59, %v7450_v60 }
 0x12b   :  { %3417 = vmatmul.mubr.bf16.gmra.mrb[20].mxu0 %v5834_v8  ;;  %3022 = vmatprep.mubr.bf16.mxu1 %v4571_v10  ;;  %v5917_v8 = vld [vmem:[%s7706_s3 + $0x74] ss:$8 sps:$4 sm:$0xff]   ;;  %v5893_v10 = vld [vmem:[%s7705_s0 + $0x3d8] ss:$0 sps:$4 sm:$0x11]  }
 0x12c   :  { %3456 = vmatpush1.bf16.msra.mxu0 %v5824_v9  ;;  %3426 = vmatprep.mubr.bf16.mxu0 %v4579_v12  ;;  %v5915_v9 = vld [vmem:[%s7706_s3 + $0x70] ss:$8 sps:$4 sm:$0xff]   ;;  %v5918_v12 = vld [vmem:[%s7706_s3 + $0x80] ss:$8 sps:$4 sm:$0xff]  }
 0x12d   :  { %3457 = vmatprep.subr.bf16.mxu0 %v5829_v11  ;;  %3888 = vmatpush1.bf16.msra.mxu1 %v5903_v0  ;;  %v5920_v11 = vld [vmem:[%s7706_s3 + $0x84] ss:$8 sps:$4 sm:$0xff]  }
 0x12e   :  { %3889 = vmatprep.subr.bf16.mxu1 %v5908_v1 }
 0x130   :  { %3458 = vmatpush1.bf16.msra.mxu0 %v5827_v13  ;;  %v5923_v13 = vld [vmem:[%s7706_s3 + $0x94] ss:$8 sps:$4 sm:$0xff]  }
 0x131   :  { %3459 = vmatprep.subr.bf16.mxu0 %v5837_v14  ;;  %3890 = vmatpush1.bf16.msra.mxu1 %v5906_v2  ;;  %v5921_v14 = vld [vmem:[%s7706_s3 + $0x90] ss:$8 sps:$4 sm:$0xff]  }
 0x132   :  { %3023 = vmatmul.mubr.bf16.gmra.mrb[24].mxu1 %v4570_v15  ;;  %3891 = vmatprep.subr.bf16.mxu1 %v5911_v3  ;;  %v5926_v15 = vld [vmem:[%s7706_s3 + $0xa4] ss:$8 sps:$4 sm:$0xff]  }
 0x133   :  { %3427 = vmatmul.mubr.bf16.gmra.mrb[24].mxu0 %v4578_v16  ;;  %v5924_v16 = vld [vmem:[%s7706_s3 + $0xa0] ss:$8 sps:$4 sm:$0xff]  }
 0x134   :  { %3460 = vmatpush1.bf16.msra.mxu0 %v5835_v17  ;;  %3467 = vmatprep.mubr.bf16.mxu0 %v5851_v18  ;;  %v5929_v17 = vld [vmem:[%s7706_s3 + $0xb4] ss:$8 sps:$4 sm:$0xff]   ;;  %v5927_v18 = vld [vmem:[%s7706_s3 + $0xb0] ss:$8 sps:$4 sm:$0xff]  }
 0x135   :  { %3461 = vmatprep.subr.bf16.mxu0 %v5840_v19  ;;  %3892 = vmatpush1.bf16.msra.mxu1 %v5909_v4  ;;  %v5932_v19 = vld [vmem:[%s7706_s3 + $0xc4] ss:$8 sps:$4 sm:$0xff]  }
 0x136   :  { %3893 = vmatprep.subr.bf16.mxu1 %v5914_v6 }
 0x138   :  { %3462 = vmatpush1.bf16.msra.mxu0 %v5838_v20  ;;  %v5930_v20 = vld [vmem:[%s7706_s3 + $0xc0] ss:$8 sps:$4 sm:$0xff]  }
 0x139   :  { %3463 = vmatprep.subr.bf16.mxu0 %v5845_v21  ;;  %3894 = vmatpush1.bf16.msra.mxu1 %v5912_v7  ;;  %v5935_v21 = vld [vmem:[%s7706_s3 + $0xd4] ss:$8 sps:$4 sm:$0xff]  }
 0x13a   :  { %3895 = vmatprep.subr.bf16.mxu1 %v5917_v8 }
 0x13c   :  { %3464 = vmatpush1.bf16.msra.mxu0 %v5843_v22  ;;  %v5933_v22 = vld [vmem:[%s7706_s3 + $0xd0] ss:$8 sps:$4 sm:$0xff]  }
 0x13d   :  { %3465 = vmatprep.subr.bf16.mxu0 %v5848_v23  ;;  %3896 = vmatpush1.bf16.msra.mxu1 %v5915_v9  ;;  %v5938_v23 = vld [vmem:[%s7706_s3 + $0xe4] ss:$8 sps:$4 sm:$0xff]  }
 0x13e   :  { %3897 = vmatprep.subr.bf16.mxu1 %v5920_v11 }
 0x140   :  { %3466 = vmatpush1.bf16.msra.mxu0 %v5846_v24  ;;  %v5936_v24 = vld [vmem:[%s7706_s3 + $0xe0] ss:$8 sps:$4 sm:$0xff]  }
 0x141   :  { %3536 = vmatprep.subr.bf16.mxu0 %v5854_v25  ;;  %3898 = vmatpush1.bf16.msra.mxu1 %v5918_v12  ;;  %v5941_v25 = vld [vmem:[%s7706_s3 + $0xf4] ss:$8 sps:$4 sm:$0xff]  }
 0x142   :  { %3899 = vmatprep.subr.bf16.mxu1 %v5923_v13 }
 0x143   :  { %3468 = vmatmul.mubr.bf16.vlgmr.msra.gmra.mrb[0].mxu0 %v5849_v26  ;;  %v5939_v26 = vld [vmem:[%s7706_s3 + $0xf0] ss:$8 sps:$4 sm:$0xff]  }
 0x144   :  { %3537 = vmatpush1.bf16.msra.mxu0 %v5852_v27  ;;  %3477 = vmatprep.mubr.bf16.mxu0 %v5855_v28 }
 0x145   :  { %3538 = vmatprep.subr.bf16.mxu0 %v5860_v29  ;;  %3900 = vmatpush1.bf16.msra.mxu1 %v5921_v14 }
 0x146   :  { %3901 = vmatprep.subr.bf16.mxu1 %v5926_v15 }
 0x148   :  { %3539 = vmatpush1.bf16.msra.mxu0 %v5858_v30 }
 0x149   :  { %3540 = vmatprep.subr.bf16.mxu0 %v5866_v31  ;;  %3902 = vmatpush1.bf16.msra.mxu1 %v5924_v16 }
 0x14a   :  { %3903 = vmatprep.subr.bf16.mxu1 %v5929_v17 }
 0x14b   :  { %3478 = vmatmul.mubr.bf16.gmra.mrb[4].mxu0 %v5857_v32 }
 0x14c   :  { %3487 = vmatprep.mubr.bf16.mxu0 %v5861_v33  ;;  %3541 = vmatpush1.bf16.msra.mxu0 %v5864_v34 }
 0x14d   :  { %3542 = vmatprep.subr.bf16.mxu0 %v5872_v35  ;;  %3904 = vmatpush1.bf16.msra.mxu1 %v5927_v18 }
 0x14e   :  { %3905 = vmatprep.subr.bf16.mxu1 %v5932_v19 }
 0x150   :  { %3543 = vmatpush1.bf16.msra.mxu0 %v5870_v36 }
 0x151   :  { %3544 = vmatprep.subr.bf16.mxu0 %v5878_v37  ;;  %3906 = vmatpush1.bf16.msra.mxu1 %v5930_v20  ;;  %v5942_v20 = vld [vmem:[%s7707_s5] ss:$8 sps:$4 sm:$0xff]  }
 0x152   :  { %3907 = vmatprep.subr.bf16.mxu1 %v5935_v21 }
 0x153   :  { %3488 = vmatmul.mubr.bf16.gmra.mrb[8].mxu0 %v5863_v38 }
 0x154   :  { %3497 = vmatprep.mubr.bf16.mxu0 %v5867_v39  ;;  %3545 = vmatpush1.bf16.msra.mxu0 %v5876_v40 }
 0x155   :  { %3546 = vmatprep.subr.bf16.mxu0 %v5885_v41  ;;  %3908 = vmatpush1.bf16.msra.mxu1 %v5933_v22 }
 0x156   :  { %3909 = vmatprep.subr.bf16.mxu1 %v5938_v23 }
 0x158   :  { %3547 = vmatpush1.bf16.msra.mxu0 %v5883_v42 }
 0x159   :  { %3910 = vmatpush1.bf16.msra.mxu1 %v5936_v24  ;;  %v5947_v24 = vld [vmem:[%s7707_s5 + $0x14] ss:$8 sps:$4 sm:$0xff]  }
 0x15a   :  { %3911 = vmatprep.subr.bf16.mxu1 %v5941_v25 }
 0x15b   :  { %3498 = vmatmul.mubr.bf16.gmra.mrb[12].mxu0 %v5869_v43 }
 0x15c   :  { %3507 = vmatprep.mubr.bf16.mxu0 %v5873_v44 }
 0x15d   :  { %3912 = vmatpush1.bf16.msra.mxu1 %v5939_v26 }
 0x15e   :  { %4226 = vmatprep.subr.bf16.mxu1 %v5944_v55 }
 0x163   :  { %3508 = vmatmul.mubr.bf16.gmra.mrb[16].mxu0 %v5875_v45 }
 0x164   :  { %3517 = vmatprep.mubr.bf16.mxu0 %v5879_v46 }
 0x16b   :  { %3518 = vmatmul.mubr.bf16.gmra.mrb[20].mxu0 %v5881_v48 }
 0x16c   :  { %3527 = vmatprep.mubr.bf16.mxu0 %v4581_v49 }
 0x173   :  { %3528 = vmatmul.mubr.bf16.gmra.mrb[24].mxu0 %v4580_v50 }
 0x174   :  { %3568 = vmatprep.mubr.bf16.mxu0 %v5990_v51 }
 0x17b   :  { %4883 = vmatmul.mubr.msk.bf16.vlgmr.msra.gmra.mrb[0].mxu0 %vm2605_vm0, %v5887_v52 }
 0x17c   :  { %3578 = vmatprep.mubr.bf16.mxu0 %v5990_v51 }
 0x183   :  { %4884 = vmatmul.mubr.msk.bf16.gmra.mrb[4].mxu0 %vm2605_vm0, %v5888_v53 }
 0x184   :  { %3588 = vmatprep.mubr.bf16.mxu0 %v5990_v51 }
 0x18b   :  { %4885 = vmatmul.mubr.msk.bf16.gmra.mrb[8].mxu0 %vm2605_vm0, %v5889_v54 }
 0x18c   :  { %3598 = vmatprep.mubr.bf16.mxu0 %v5990_v51 }
 0x193   :  { %4886 = vmatmul.mubr.msk.bf16.gmra.mrb[12].mxu0 %vm2605_vm0, %v5890_v58  ;;  %v7445_v58 = vsub.s32 0, %v460_v57 }
 0x194   :  { %3608 = vmatprep.mubr.bf16.mxu0 %v5990_v51 }
 0x195   :  { %v7453_v61 = vrot.slane %v457_v59, %v7445_v58 }
 0x19b   :  { %4887 = vmatmul.mubr.msk.bf16.gmra.mrb[16].mxu0 %vm2605_vm0, %v5891_v63 }
 0x19c   :  { %3618 = vmatprep.mubr.bf16.mxu0 %v5990_v51 }
 0x1a3   :  { %4888 = vmatmul.mubr.msk.bf16.gmra.mrb[20].mxu0 %vm2605_vm0, %v5892_v5 }
 0x1a4   :  { %3628 = vmatprep.mubr.bf16.mxu0 %v5990_v51 }
 0x1ab   :  { %4889 = vmatmul.mubr.msk.bf16.gmra.mrb[24].mxu0 %vm2605_vm0, %v5893_v10 }
 0x1d5   :  { %v2964_v27 = vpop.f32.mrb[0].mxu1 }
 0x1d6   :  { %v2966_v28 = vpop.f32.mrb[1].mxu1  ;;  %v4980_v63 = vadd.f32 %v2964_v27, %v7453_v61 }
 0x1d7   :  { %v2968_v29 = vpop.f32.mrb[2].mxu1  ;;  %v4982_v0 = vadd.f32 %v2966_v28, %v7456_v62 }
 0x1d8   :  { %v2970_v30 = vpop.f32.mrb[3].mxu1  ;;  %v4984_v2 = vadd.f32 %v2968_v29, %v7453_v61 }
 0x1d9   :  { %v4986_v5 = vadd.f32 %v2970_v30, %v7456_v62 }
 0x1dd   :  { %v2974_v31 = vpop.f32.mrb[4].mxu1 }
 0x1de   :  { %v2976_v32 = vpop.f32.mrb[5].mxu1  ;;  %v4988_v15 = vadd.f32 %v2974_v31, %v7453_v61  ;;  %v5945_v31 = vld [vmem:[%s7707_s5 + $0x10] ss:$8 sps:$4 sm:$0xff]  }
 0x1df   :  { %v2978_v33 = vpop.f32.mrb[6].mxu1  ;;  %v4990_v17 = vadd.f32 %v2976_v32, %v7456_v62 }
 0x1e0   :  { %v2980_v34 = vpop.f32.mrb[7].mxu1  ;;  %v4992_v21 = vadd.f32 %v2978_v33, %v7453_v61 }
 0x1e1   :  { %v4994_v25 = vadd.f32 %v2980_v34, %v7456_v62 }
 0x1e5   :  { %v7406_v35 = vpop.f32.mrb[8].mxu1 }
 0x1e6   :  { %v7408_v36 = vpop.f32.mrb[9].mxu1  ;;  %v4996_v55 = vadd.f32 %v7406_v35, %v7453_v61  ;;  %v5953_v35 = vld [vmem:[%s7707_s5 + $0x34] ss:$8 sps:$4 sm:$0xff]  }
 0x1e7   :  { %v7410_v37 = vpop.f32.mrb[10].mxu1  ;;  %v4998_v57 = vadd.f32 %v7408_v36, %v7456_v62 }
 0x1e8   :  { %v7412_v38 = vpop.f32.mrb[11].mxu1 }
 0x1e9   :  { %v5002_v36 = vadd.f32 %v7412_v38, %v7456_v62 }
 0x1ed   :  { %v7414_v39 = vpop.f32.mrb[12].mxu1 }
 0x1ee   :  { %v7416_v40 = vpop.f32.mrb[13].mxu1 }
 0x1ef   :  { %v7418_v41 = vpop.f32.mrb[14].mxu1 }
 0x1f0   :  { %v7420_v42 = vpop.f32.mrb[15].mxu1 }
 0x1f5   :  { %v7422_v43 = vpop.f32.mrb[16].mxu1 }
 0x1f6   :  { %v7424_v44 = vpop.f32.mrb[17].mxu1 }
 0x1f7   :  { %v7426_v45 = vpop.f32.mrb[18].mxu1 }
 0x1f8   :  { %v7428_v46 = vpop.f32.mrb[19].mxu1 }
 0x1fd   :  { %v7430_v47 = vpop.f32.mrb[20].mxu1 }
 0x1fe   :  { %v7432_v48 = vpop.f32.mrb[21].mxu1 }
 0x1ff   :  { %v7434_v49 = vpop.f32.mrb[22].mxu1 }
 0x200   :  { %v7436_v50 = vpop.f32.mrb[23].mxu1 }
 0x205   :  { %v7438_v51 = vpop.f32.mrb[24].mxu1 }
 0x206   :  { %v7440_v52 = vpop.f32.mrb[25].mxu1 }
 0x207   :  { %v3028_v53 = vpop.f32.mrb[26].mxu1 }
 0x208   :  { %v3029_v54 = vpop.f32.mrb[27].mxu1  ;;  %v5950_v53 = vld [vmem:[%s7707_s5 + $0x24] ss:$8 sps:$4 sm:$0xff]  }
 0x24e   :  { %v3570_v1 = vpop.f32.mrb[0].mxu0 }
 0x24f   :  { %v4981_v3 = vadd.f32 %v4980_v63, %v3570_v1  ;;  %v3572_v4 = vpop.f32.mrb[1].mxu0  ;;  %v5000_v1 = vadd.f32 %v7410_v37, %v7453_v61  ;;  %v5951_v37 = vld [vmem:[%s7707_s5 + $0x30] ss:$8 sps:$4 sm:$0xff]  }
 0x250   :  { %v4983_v6 = vadd.f32 %v4982_v0, %v3572_v4  ;;  %v3574_v7 = vpop.f32.mrb[2].mxu0  ;;  %v5948_v0 = vld [vmem:[%s7707_s5 + $0x20] ss:$8 sps:$4 sm:$0xff]  }
 0x251   :  { %v4985_v8 = vadd.f32 %v4984_v2, %v3574_v7  ;;  %v3576_v9 = vpop.f32.mrb[3].mxu0  ;;  %v3637_v11 = vmax.f32 %v4981_v3, 0.0 }
 0x252   :  { %v4987_v10 = vadd.f32 %v4986_v5, %v3576_v9  ;;  %v3638_v13 = vmax.f32 %v4983_v6, 0.0 }
 0x253   :  { %v3639_v12 = vmax.f32 %v4985_v8, 0.0 }
 0x254   :  { %v3640_v14 = vmax.f32 %v4987_v10, 0.0 }
 0x255   :  { %v3663_v16 = vpack.c.bf16 %v3639_v12, %v3637_v11  ;;  %v5956_v11 = vld [vmem:[%s7707_s5 + $0x44] ss:$8 sps:$4 sm:$0xff]  }
 0x256   :  { %v3664_v18 = vpack.c.bf16 %v3640_v14, %v3638_v13  ;;  %v3580_v19 = vpop.f32.mrb[4].mxu0  ;;  %v5004_v13 = vadd.f32 %v7414_v39, %v7453_v61  ;;  %v5959_v39 = vld [vmem:[%s7707_s5 + $0x54] ss:$8 sps:$4 sm:$0xff]  }
 0x257   :  { %v4989_v22 = vadd.f32 %v4988_v15, %v3580_v19  ;;  %v3582_v23 = vpop.f32.mrb[5].mxu0  ;;  %v5006_v15 = vadd.f32 %v7416_v40, %v7456_v62  ;;  %v5008_v19 = vadd.f32 %v7418_v41, %v7453_v61  ;;  %v5010_v40 = vadd.f32 %v7420_v42, %v7456_v62  ;;  %v5957_v41 = vld [vmem:[%s7707_s5 + $0x50] ss:$8 sps:$4 sm:$0xff]  }
 0x258   :  { %v4991_v26 = vadd.f32 %v4990_v17, %v3582_v23  ;;  %v3584_v27 = vpop.f32.mrb[6].mxu0  ;;  %3913 = vmatprep.mubr.bf16.mxu1 %v3664_v18  ;;  %v5954_v18 = vld [vmem:[%s7707_s5 + $0x40] ss:$8 sps:$4 sm:$0xff]  }
 0x259   :  { %v4993_v28 = vadd.f32 %v4992_v21, %v3584_v27  ;;  %v3586_v29 = vpop.f32.mrb[7].mxu0  ;;  %3914 = vmatmul.mubr.bf16.vlgmr.msra.gmra.mrb[28].mxu1 %v3663_v16  ;;  %v3641_v32 = vmax.f32 %v4989_v22, 0.0 }
 0x25a   :  { %v4995_v30 = vadd.f32 %v4994_v25, %v3586_v29  ;;  %4227 = vmatpush1.bf16.msra.mxu1 %v5942_v20  ;;  %v3642_v34 = vmax.f32 %v4991_v26, 0.0  ;;  %v5962_v29 = vld [vmem:[%s7707_s5 + $0x64] ss:$8 sps:$4 sm:$0xff]  }
 0x25b   :  { %v3643_v33 = vmax.f32 %v4993_v28, 0.0  ;;  %4228 = vmatprep.subr.bf16.mxu1 %v5947_v24 }
 0x25c   :  { %v3644_v54 = vmax.f32 %v4995_v30, 0.0 }
 0x25d   :  { %v3665_v56 = vpack.c.bf16 %v3643_v33, %v3641_v32  ;;  %v5014_v33 = vadd.f32 %v7424_v44, %v7456_v62  ;;  %v5018_v44 = vadd.f32 %v7428_v46, %v7456_v62 }
 0x25e   :  { %v3666_v59 = vpack.c.bf16 %v3644_v54, %v3642_v34  ;;  %v3590_v63 = vpop.f32.mrb[8].mxu0  ;;  %4229 = vmatpush1.bf16.msra.mxu1 %v5945_v31  ;;  %v5012_v31 = vadd.f32 %v7422_v43, %v7453_v61  ;;  %v5960_v54 = vld [vmem:[%s7707_s5 + $0x60] ss:$8 sps:$4 sm:$0xff]   ;;  %v5965_v43 = vld [vmem:[%s7707_s5 + $0x74] ss:$8 sps:$4 sm:$0xff]  }
 0x25f   :  { %v4997_v2 = vadd.f32 %v4996_v55, %v3590_v63  ;;  %v3592_v3 = vpop.f32.mrb[9].mxu0  ;;  %4230 = vmatprep.subr.bf16.mxu1 %v5950_v53  ;;  %v5016_v55 = vadd.f32 %v7426_v45, %v7453_v61  ;;  %v5963_v45 = vld [vmem:[%s7707_s5 + $0x70] ss:$8 sps:$4 sm:$0xff]  }
 0x260   :  { %v4999_v4 = vadd.f32 %v4998_v57, %v3592_v3  ;;  %v3594_v5 = vpop.f32.mrb[10].mxu0  ;;  %3923 = vmatprep.mubr.bf16.mxu1 %v3666_v59 }
 0x261   :  { %v5001_v6 = vadd.f32 %v5000_v1, %v3594_v5  ;;  %v3596_v7 = vpop.f32.mrb[11].mxu0  ;;  %3924 = vmatmul.mubr.bf16.gmra.mrb[32].mxu1 %v3665_v56  ;;  %v3645_v9 = vmax.f32 %v4997_v2, 0.0  ;;  %v5020_v5 = vadd.f32 %v7430_v47, %v7453_v61  ;;  %v5971_v47 = vld [vmem:[%s7707_s5 + $0x94] ss:$8 sps:$4 sm:$0xff]  }
 0x262   :  { %v5003_v8 = vadd.f32 %v5002_v36, %v3596_v7  ;;  %4231 = vmatpush1.bf16.msra.mxu1 %v5948_v0  ;;  %v3646_v38 = vmax.f32 %v4999_v4, 0.0  ;;  %v5968_v36 = vld [vmem:[%s7707_s5 + $0x84] ss:$8 sps:$4 sm:$0xff]   ;;  %v5022_v7 = vadd.f32 %v7432_v48, %v7456_v62  ;;  %v5026_v48 = vadd.f32 %v7436_v50, %v7456_v62 }
 0x263   :  { %v3647_v10 = vmax.f32 %v5001_v6, 0.0  ;;  %4232 = vmatprep.subr.bf16.mxu1 %v5953_v35 }
 0x264   :  { %v3648_v12 = vmax.f32 %v5003_v8, 0.0 }
 0x265   :  { %v3667_v14 = vpack.c.bf16 %v3647_v10, %v3645_v9  ;;  %v5966_v9 = vld [vmem:[%s7707_s5 + $0x80] ss:$8 sps:$4 sm:$0xff]   ;;  %v5024_v10 = vadd.f32 %v7434_v49, %v7453_v61  ;;  %v5969_v49 = vld [vmem:[%s7707_s5 + $0x90] ss:$8 sps:$4 sm:$0xff]  }
 0x266   :  { %v3668_v16 = vpack.c.bf16 %v3648_v12, %v3646_v38  ;;  %v3600_v17 = vpop.f32.mrb[12].mxu0  ;;  %4233 = vmatpush1.bf16.msra.mxu1 %v5951_v37 }
 0x267   :  { %v5005_v20 = vadd.f32 %v5004_v13, %v3600_v17  ;;  %v3602_v21 = vpop.f32.mrb[13].mxu0  ;;  %4234 = vmatprep.subr.bf16.mxu1 %v5956_v11 }
 0x268   :  { %v5007_v22 = vadd.f32 %v5006_v15, %v3602_v21  ;;  %v3604_v23 = vpop.f32.mrb[14].mxu0  ;;  %3933 = vmatprep.mubr.bf16.mxu1 %v3668_v16  ;;  %v5028_v21 = vadd.f32 %v7438_v51, %v7453_v61 }
 0x269   :  { %v5009_v24 = vadd.f32 %v5008_v19, %v3604_v23  ;;  %v3606_v25 = vpop.f32.mrb[15].mxu0  ;;  %3934 = vmatmul.mubr.bf16.gmra.mrb[36].mxu1 %v3667_v14  ;;  %v3649_v27 = vmax.f32 %v5005_v20, 0.0  ;;  %v5974_v19 = vld [vmem:[%s7707_s5 + $0xa4] ss:$8 sps:$4 sm:$0xff]  }
 0x26a   :  { %v5011_v26 = vadd.f32 %v5010_v40, %v3606_v25  ;;  %4235 = vmatpush1.bf16.msra.mxu1 %v5954_v18  ;;  %v3650_v42 = vmax.f32 %v5007_v22, 0.0  ;;  %v5030_v40 = vadd.f32 %v7440_v52, %v7456_v62  ;;  %v5975_v62 = vld [vmem:[%s7707_s5 + $0xb0] ss:$8 sps:$4 sm:$0xff]  }
 0x26b   :  { %v3651_v28 = vmax.f32 %v5009_v24, 0.0  ;;  %4236 = vmatprep.subr.bf16.mxu1 %v5959_v39  ;;  %v5972_v24 = vld [vmem:[%s7707_s5 + $0xa0] ss:$8 sps:$4 sm:$0xff]  }
 0x26c   :  { %v3652_v30 = vmax.f32 %v5011_v26, 0.0 }
 0x26d   :  { %v3669_v32 = vpack.c.bf16 %v3651_v28, %v3649_v27 }
 0x26e   :  { %v3670_v53 = vpack.c.bf16 %v3652_v30, %v3650_v42  ;;  %v3610_v34 = vpop.f32.mrb[16].mxu0  ;;  %4237 = vmatpush1.bf16.msra.mxu1 %v5957_v41  ;;  %v5977_v41 = vld [vmem:[%s7707_s5 + $0xb4] ss:$8 sps:$4 sm:$0xff]   ;;  %v5978_v30 = vld [vmem:[%s7707_s5 + $0xc0] ss:$8 sps:$4 sm:$0xff]  }
 0x26f   :  { %v5013_v56 = vadd.f32 %v5012_v31, %v3610_v34  ;;  %v3612_v57 = vpop.f32.mrb[17].mxu0  ;;  %4238 = vmatprep.subr.bf16.mxu1 %v5962_v29  ;;  %v5980_v29 = vld [vmem:[%s7707_s5 + $0xc4] ss:$8 sps:$4 sm:$0xff]   ;;  %v5984_v34 = vld [vmem:[%s7707_s5 + $0xe0] ss:$8 sps:$4 sm:$0xff]  }
 0x270   :  { %v5015_v59 = vadd.f32 %v5014_v33, %v3612_v57  ;;  %v3614_v63 = vpop.f32.mrb[18].mxu0  ;;  %3943 = vmatprep.mubr.bf16.mxu1 %v3670_v53  ;;  %v5981_v33 = vld [vmem:[%s7707_s5 + $0xd0] ss:$8 sps:$4 sm:$0xff]   ;;  %v5986_v53 = vld [vmem:[%s7707_s5 + $0xe4] ss:$8 sps:$4 sm:$0xff]  }
 0x271   :  { %v5017_v0 = vadd.f32 %v5016_v55, %v3614_v63  ;;  %v3616_v1 = vpop.f32.mrb[19].mxu0  ;;  %3944 = vmatmul.mubr.bf16.gmra.mrb[40].mxu1 %v3669_v32  ;;  %v3653_v3 = vmax.f32 %v5013_v56, 0.0  ;;  %v5983_v32 = vld [vmem:[%s7707_s5 + $0xd4] ss:$8 sps:$4 sm:$0xff]   ;;  %v5987_v55 = vld [vmem:[%s7707_s5 + $0xf0] ss:$8 sps:$4 sm:$0xff]  }
 0x272   :  { %v5019_v2 = vadd.f32 %v5018_v44, %v3616_v1  ;;  %4239 = vmatpush1.bf16.msra.mxu1 %v5960_v54  ;;  %v3654_v46 = vmax.f32 %v5015_v59, 0.0  ;;  %v5989_v54 = vld [vmem:[%s7707_s5 + $0xf4] ss:$8 sps:$4 sm:$0xff]   ;;  %v3709_v56 = vld [vmem:[%s7709_s4] sm:$0x3] }
 0x273   :  { %v3655_v35 = vmax.f32 %v5017_v0, 0.0  ;;  %4240 = vmatprep.subr.bf16.mxu1 %v5965_v43  ;;  %v7599_v57 = vrot.slane %v3709_v56, %v7445_v58  ;;  %v7602_v43 = vrot.slane %v3709_v56, %v7450_v60 }
 0x274   :  { %v3656_v4 = vmax.f32 %v5019_v2, 0.0 }
 0x275   :  { %v3671_v6 = vpack.c.bf16 %v3655_v35, %v3653_v3 }
 0x276   :  { %v3672_v8 = vpack.c.bf16 %v3656_v4, %v3654_v46  ;;  %v3620_v37 = vpop.f32.mrb[20].mxu0  ;;  %4241 = vmatpush1.bf16.msra.mxu1 %v5963_v45 }
 0x277   :  { %v5021_v11 = vadd.f32 %v5020_v5, %v3620_v37  ;;  %v3622_v38 = vpop.f32.mrb[21].mxu0  ;;  %4242 = vmatprep.subr.bf16.mxu1 %v5968_v36 }
 0x278   :  { %v5023_v12 = vadd.f32 %v5022_v7, %v3622_v38  ;;  %v3624_v13 = vpop.f32.mrb[22].mxu0  ;;  %3953 = vmatprep.mubr.bf16.mxu1 %v3672_v8 }
 0x279   :  { %v5025_v14 = vadd.f32 %v5024_v10, %v3624_v13  ;;  %v3626_v15 = vpop.f32.mrb[23].mxu0  ;;  %3954 = vmatmul.mubr.bf16.gmra.mrb[44].mxu1 %v3671_v6  ;;  %v3657_v17 = vmax.f32 %v5021_v11, 0.0 }
 0x27a   :  { %v5027_v16 = vadd.f32 %v5026_v48, %v3626_v15  ;;  %4243 = vmatpush1.bf16.msra.mxu1 %v5966_v9  ;;  %v3658_v50 = vmax.f32 %v5023_v12, 0.0 }
 0x27b   :  { %v3659_v18 = vmax.f32 %v5025_v14, 0.0  ;;  %4244 = vmatprep.subr.bf16.mxu1 %v5971_v47 }
 0x27c   :  { %v3660_v20 = vmax.f32 %v5027_v16, 0.0 }
 0x27d   :  { %v3673_v39 = vpack.c.bf16 %v3659_v18, %v3657_v17 }
 0x27e   :  { %v3674_v22 = vpack.c.bf16 %v3660_v20, %v3658_v50  ;;  %v3630_v23 = vpop.f32.mrb[24].mxu0  ;;  %4245 = vmatpush1.bf16.msra.mxu1 %v5969_v49 }
 0x27f   :  { %v5029_v25 = vadd.f32 %v5028_v21, %v3630_v23  ;;  %v3632_v26 = vpop.f32.mrb[25].mxu0  ;;  %4246 = vmatprep.subr.bf16.mxu1 %v5974_v19 }
 0x280   :  { %v5031_v27 = vadd.f32 %v5030_v40, %v3632_v26  ;;  %v3634_v51 = vpop.f32.mrb[26].mxu0  ;;  %3963 = vmatprep.mubr.bf16.mxu1 %v3674_v22 }
 0x281   :  { %v3635_v61 = vpop.f32.mrb[27].mxu0  ;;  %3964 = vmatmul.mubr.bf16.gmra.mrb[48].mxu1 %v3673_v39  ;;  %v3661_v28 = vmax.f32 %v5029_v25, 0.0 }
 0x282   :  { %v3662_v52 = vmax.f32 %v5031_v27, 0.0  ;;  %4247 = vmatpush1.bf16.msra.mxu1 %v5972_v24 }
 0x283   :  { %4248 = vmatprep.subr.bf16.mxu1 %v5977_v41  ;;  %v3675_v31 = vpack.c.bf16 %v3661_v28, %v3661_v28 }
 0x284   :  { %v3676_v42 = vpack.c.bf16 %v3662_v52, %v3662_v52 }
 0x286   :  { %3973 = vmatprep.mubr.bf16.mxu1 %v3676_v42  ;;  %4249 = vmatpush1.bf16.msra.mxu1 %v5975_v62 }
 0x287   :  { %4250 = vmatprep.subr.bf16.mxu1 %v5980_v29 }
 0x289   :  { %3974 = vmatmul.mubr.bf16.gmra.mrb[52].mxu1 %v3675_v31 }
 0x28a   :  { %4251 = vmatpush1.bf16.msra.mxu1 %v5978_v30 }
 0x28b   :  { %4252 = vmatprep.subr.bf16.mxu1 %v5983_v32 }
 0x28e   :  { %4253 = vmatpush1.bf16.msra.mxu1 %v5981_v33 }
 0x28f   :  { %4254 = vmatprep.subr.bf16.mxu1 %v5986_v53 }
 0x292   :  { %4255 = vmatpush1.bf16.msra.mxu1 %v5984_v34 }
 0x293   :  { %4256 = vmatprep.subr.bf16.mxu1 %v5989_v54 }
 0x296   :  { %4257 = vmatpush1.bf16.msra.mxu1 %v5987_v55 }
 0x32c   :  { %v3915_v44 = vpop.f32.mrb[28].mxu1 }
 0x32d   :  { %v3916_v59 = vadd.f32 %v3915_v44, %v7599_v57  ;;  %v3917_v63 = vpop.f32.mrb[29].mxu1 }
 0x32e   :  { %v3918_v0 = vadd.f32 %v3917_v63, %v7602_v43  ;;  %v3919_v1 = vpop.f32.mrb[30].mxu1 }
 0x32f   :  { %v3920_v2 = vadd.f32 %v3919_v1, %v7599_v57  ;;  %v3921_v45 = vpop.f32.mrb[31].mxu1  ;;  %v3982_v35 = vmax.f32 %v3916_v59, 0.0 }
 0x330   :  { %v3922_v3 = vadd.f32 %v3921_v45, %v7602_v43  ;;  %v3983_v46 = vmax.f32 %v3918_v0, 0.0 }
 0x331   :  { %v3984_v36 = vmax.f32 %v3920_v2, 0.0 }
 0x332   :  { %v3985_v4 = vmax.f32 %v3922_v3, 0.0 }
 0x333   :  { %v4008_v5 = vpack.c.bf16 %v3984_v36, %v3982_v35 }
 0x334   :  { %v4009_v6 = vpack.c.bf16 %v3985_v4, %v3983_v46  ;;  %v3925_v7 = vpop.f32.mrb[32].mxu1 }
 0x335   :  { %v3926_v8 = vadd.f32 %v3925_v7, %v7599_v57  ;;  %v3927_v37 = vpop.f32.mrb[33].mxu1 }
 0x336   :  { %v3928_v9 = vadd.f32 %v3927_v37, %v7602_v43  ;;  %v3929_v10 = vpop.f32.mrb[34].mxu1  ;;  %4258 = vmatprep.mubr.bf16.mxu1 %v4009_v6 }
 0x337   :  { %v3930_v11 = vadd.f32 %v3929_v10, %v7599_v57  ;;  %v3931_v38 = vpop.f32.mrb[35].mxu1  ;;  %4259 = vmatmul.mubr.bf16.vlgmr.msra.gmra.mrb[56].mxu1 %v4008_v5  ;;  %v3986_v48 = vmax.f32 %v3926_v8, 0.0 }
 0x338   :  { %v3932_v47 = vadd.f32 %v3931_v38, %v7602_v43  ;;  %v3987_v13 = vmax.f32 %v3928_v9, 0.0 }
 0x339   :  { %v3988_v12 = vmax.f32 %v3930_v11, 0.0 }
 0x33a   :  { %v3989_v14 = vmax.f32 %v3932_v47, 0.0 }
 0x33b   :  { %v4010_v15 = vpack.c.bf16 %v3988_v12, %v3986_v48 }
 0x33c   :  { %v4011_v16 = vpack.c.bf16 %v3989_v14, %v3987_v13  ;;  %v3935_v49 = vpop.f32.mrb[36].mxu1 }
 0x33d   :  { %v3936_v17 = vadd.f32 %v3935_v49, %v7599_v57  ;;  %v3937_v18 = vpop.f32.mrb[37].mxu1 }
 0x33e   :  { %v3938_v19 = vadd.f32 %v3937_v18, %v7602_v43  ;;  %v3939_v50 = vpop.f32.mrb[38].mxu1  ;;  %4268 = vmatprep.mubr.bf16.mxu1 %v4011_v16 }
 0x33f   :  { %v3940_v20 = vadd.f32 %v3939_v50, %v7599_v57  ;;  %v3941_v21 = vpop.f32.mrb[39].mxu1  ;;  %4269 = vmatmul.mubr.bf16.gmra.mrb[60].mxu1 %v4010_v15  ;;  %v3990_v40 = vmax.f32 %v3936_v17, 0.0 }
 0x340   :  { %v3942_v39 = vadd.f32 %v3941_v21, %v7602_v43  ;;  %v3991_v23 = vmax.f32 %v3938_v19, 0.0  ;;  %v4054_v21 = vld [vmem:[%s7710_s6] sm:$0x3] }
 0x341   :  { %v3992_v22 = vmax.f32 %v3940_v20, 0.0 }
 0x342   :  { %v3993_v24 = vmax.f32 %v3942_v39, 0.0  ;;  %v7634_v39 = vrot.slane %v4054_v21, %v7445_v58 }
 0x343   :  { %v4012_v25 = vpack.c.bf16 %v3992_v22, %v3990_v40 }
 0x344   :  { %v4013_v26 = vpack.c.bf16 %v3993_v24, %v3991_v23  ;;  %v3945_v41 = vpop.f32.mrb[40].mxu1 }
 0x345   :  { %v3946_v27 = vadd.f32 %v3945_v41, %v7599_v57  ;;  %v3947_v51 = vpop.f32.mrb[41].mxu1 }
 0x346   :  { %v3948_v61 = vadd.f32 %v3947_v51, %v7602_v43  ;;  %v3949_v52 = vpop.f32.mrb[42].mxu1  ;;  %4278 = vmatprep.mubr.bf16.mxu1 %v4013_v26 }
 0x347   :  { %v3950_v62 = vadd.f32 %v3949_v52, %v7599_v57  ;;  %v3951_v28 = vpop.f32.mrb[43].mxu1  ;;  %4279 = vmatmul.mubr.bf16.gmra.mrb[64].mxu1 %v4012_v25  ;;  %v3994_v42 = vmax.f32 %v3946_v27, 0.0 }
 0x348   :  { %v3952_v29 = vadd.f32 %v3951_v28, %v7602_v43  ;;  %v3995_v31 = vmax.f32 %v3948_v61, 0.0 }
 0x349   :  { %v3996_v30 = vmax.f32 %v3950_v62, 0.0 }
 0x34a   :  { %v3997_v32 = vmax.f32 %v3952_v29, 0.0 }
 0x34b   :  { %v4014_v33 = vpack.c.bf16 %v3996_v30, %v3994_v42 }
 0x34c   :  { %v4015_v53 = vpack.c.bf16 %v3997_v32, %v3995_v31  ;;  %v3955_v34 = vpop.f32.mrb[44].mxu1 }
 0x34d   :  { %v3956_v54 = vadd.f32 %v3955_v34, %v7599_v57  ;;  %v3957_v55 = vpop.f32.mrb[45].mxu1 }
 0x34e   :  { %v3958_v56 = vadd.f32 %v3957_v55, %v7602_v43  ;;  %v3959_v44 = vpop.f32.mrb[46].mxu1  ;;  %4288 = vmatprep.mubr.bf16.mxu1 %v4015_v53 }
 0x34f   :  { %v3960_v59 = vadd.f32 %v3959_v44, %v7599_v57  ;;  %v3961_v63 = vpop.f32.mrb[47].mxu1  ;;  %4289 = vmatmul.mubr.bf16.gmra.mrb[68].mxu1 %v4014_v33  ;;  %v3998_v1 = vmax.f32 %v3956_v54, 0.0 }
 0x350   :  { %v3962_v0 = vadd.f32 %v3961_v63, %v7602_v43  ;;  %v3999_v45 = vmax.f32 %v3958_v56, 0.0 }
 0x351   :  { %v4000_v2 = vmax.f32 %v3960_v59, 0.0 }
 0x352   :  { %v4001_v3 = vmax.f32 %v3962_v0, 0.0 }
 0x353   :  { %v4016_v35 = vpack.c.bf16 %v4000_v2, %v3998_v1 }
 0x354   :  { %v4017_v36 = vpack.c.bf16 %v4001_v3, %v3999_v45  ;;  %v3965_v46 = vpop.f32.mrb[48].mxu1 }
 0x355   :  { %v3966_v4 = vadd.f32 %v3965_v46, %v7599_v57  ;;  %v3967_v5 = vpop.f32.mrb[49].mxu1 }
 0x356   :  { %v3968_v6 = vadd.f32 %v3967_v5, %v7602_v43  ;;  %v3969_v7 = vpop.f32.mrb[50].mxu1  ;;  %4298 = vmatprep.mubr.bf16.mxu1 %v4017_v36 }
 0x357   :  { %v3970_v8 = vadd.f32 %v3969_v7, %v7599_v57  ;;  %v3971_v37 = vpop.f32.mrb[51].mxu1  ;;  %4299 = vmatmul.mubr.bf16.gmra.mrb[72].mxu1 %v4016_v35  ;;  %v4002_v10 = vmax.f32 %v3966_v4, 0.0 }
 0x358   :  { %v3972_v9 = vadd.f32 %v3971_v37, %v7602_v43  ;;  %v4003_v38 = vmax.f32 %v3968_v6, 0.0 }
 0x359   :  { %v4004_v11 = vmax.f32 %v3970_v8, 0.0 }
 0x35a   :  { %v4005_v47 = vmax.f32 %v3972_v9, 0.0 }
 0x35b   :  { %v4018_v48 = vpack.c.bf16 %v4004_v11, %v4002_v10 }
 0x35c   :  { %v4019_v12 = vpack.c.bf16 %v4005_v47, %v4003_v38  ;;  %v3975_v13 = vpop.f32.mrb[52].mxu1 }
 0x35d   :  { %v3976_v14 = vadd.f32 %v3975_v13, %v7599_v57  ;;  %v3977_v15 = vpop.f32.mrb[53].mxu1  ;;  %v7637_v57 = vrot.slane %v4054_v21, %v7450_v60 }
 0x35e   :  { %v3978_v16 = vadd.f32 %v3977_v15, %v7602_v43  ;;  %v3979_v49 = vpop.f32.mrb[54].mxu1  ;;  %4308 = vmatprep.mubr.bf16.mxu1 %v4019_v12 }
 0x35f   :  { %v3980_v17 = vpop.f32.mrb[55].mxu1  ;;  %4309 = vmatmul.mubr.bf16.gmra.mrb[76].mxu1 %v4018_v48  ;;  %v4006_v19 = vmax.f32 %v3976_v14, 0.0 }
 0x360   :  { %v4007_v18 = vmax.f32 %v3978_v16, 0.0 }
 0x361   :  { %v4020_v20 = vpack.c.bf16 %v4006_v19, %v4006_v19 }
 0x362   :  { %v4021_v50 = vpack.c.bf16 %v4007_v18, %v4007_v18 }
 0x364   :  { %4318 = vmatprep.mubr.bf16.mxu1 %v4021_v50 }
 0x367   :  { %4319 = vmatmul.mubr.bf16.gmra.mrb[80].mxu1 %v4020_v20 }
 0x40a   :  { %v4260_v43 = vpop.f32.mrb[56].mxu1 }
 0x40b   :  { %v4261_v40 = vadd.f32 %v4260_v43, %v7634_v39  ;;  %v4262_v22 = vpop.f32.mrb[57].mxu1 }
 0x40c   :  { %v4263_v23 = vadd.f32 %v4262_v22, %v7637_v57  ;;  %v4264_v24 = vpop.f32.mrb[58].mxu1 }
 0x40d   :  { %v4327_v25 = vmax.f32 %v4261_v40, 0.0  ;;  %v4265_v26 = vadd.f32 %v4264_v24, %v7634_v39  ;;  %v4266_v41 = vpop.f32.mrb[59].mxu1 }
 0x40e   :  { %v4328_v27 = vmax.f32 %v4263_v23, 0.0  ;;  %v4267_v51 = vadd.f32 %v4266_v41, %v7637_v57 }
 0x40f   :  { %v4329_v61 = vmax.f32 %v4265_v26, 0.0 }
 0x410   :  { %v4967_v58 = vpack.c.bf16 %v4328_v27, %v4327_v25  ;;  %v4330_v52 = vmax.f32 %v4267_v51, 0.0 }
 0x412   :  { %4433 = vst [vmem:[%s7711_s7] sm:$0xff] %v4967_v58  ;;  %v4968_v60 = vpack.c.bf16 %v4330_v52, %v4329_v61  ;;  %v4270_v62 = vpop.f32.mrb[60].mxu1 }
 0x413   :  { %v4271_v28 = vadd.f32 %v4270_v62, %v7634_v39  ;;  %v4272_v29 = vpop.f32.mrb[61].mxu1 }
 0x414   :  { %4434 = vst [vmem:[%s7711_s7 + $0x8] sm:$0xff] %v4968_v60  ;;  %v4273_v42 = vadd.f32 %v4272_v29, %v7637_v57  ;;  %v4274_v30 = vpop.f32.mrb[62].mxu1 }
 0x415   :  { %v4331_v31 = vmax.f32 %v4271_v28, 0.0  ;;  %v4275_v32 = vadd.f32 %v4274_v30, %v7634_v39  ;;  %v4276_v33 = vpop.f32.mrb[63].mxu1 }
 0x416   :  { %v4332_v53 = vmax.f32 %v4273_v42, 0.0  ;;  %v4277_v34 = vadd.f32 %v4276_v33, %v7637_v57 }
 0x417   :  { %v4333_v54 = vmax.f32 %v4275_v32, 0.0 }
 0x418   :  { %v4969_v55 = vpack.c.bf16 %v4332_v53, %v4331_v31  ;;  %v4334_v56 = vmax.f32 %v4277_v34, 0.0 }
 0x41a   :  { %4435 = vst [vmem:[%s7711_s7 + $0x10] sm:$0xff] %v4969_v55  ;;  %v4970_v44 = vpack.c.bf16 %v4334_v56, %v4333_v54  ;;  %v4280_v59 = vpop.f32.mrb[64].mxu1 }
 0x41b   :  { %v4281_v63 = vadd.f32 %v4280_v59, %v7634_v39  ;;  %v4282_v0 = vpop.f32.mrb[65].mxu1 }
 0x41c   :  { %4436 = vst [vmem:[%s7711_s7 + $0x18] sm:$0xff] %v4970_v44  ;;  %v4283_v1 = vadd.f32 %v4282_v0, %v7637_v57  ;;  %v4284_v2 = vpop.f32.mrb[66].mxu1 }
 0x41d   :  { %v4335_v45 = vmax.f32 %v4281_v63, 0.0  ;;  %v4285_v3 = vadd.f32 %v4284_v2, %v7634_v39  ;;  %v4286_v35 = vpop.f32.mrb[67].mxu1 }
 0x41e   :  { %v4336_v36 = vmax.f32 %v4283_v1, 0.0  ;;  %v4287_v46 = vadd.f32 %v4286_v35, %v7637_v57 }
 0x41f   :  { %v4337_v4 = vmax.f32 %v4285_v3, 0.0 }
 0x420   :  { %v4971_v5 = vpack.c.bf16 %v4336_v36, %v4335_v45  ;;  %v4338_v6 = vmax.f32 %v4287_v46, 0.0 }
 0x422   :  { %4437 = vst [vmem:[%s7711_s7 + $0x20] sm:$0xff] %v4971_v5  ;;  %v4972_v7 = vpack.c.bf16 %v4338_v6, %v4337_v4  ;;  %v4290_v8 = vpop.f32.mrb[68].mxu1 }
 0x423   :  { %v4291_v37 = vadd.f32 %v4290_v8, %v7634_v39  ;;  %v4292_v9 = vpop.f32.mrb[69].mxu1 }
 0x424   :  { %4438 = vst [vmem:[%s7711_s7 + $0x28] sm:$0xff] %v4972_v7  ;;  %v4293_v10 = vadd.f32 %v4292_v9, %v7637_v57  ;;  %v4294_v11 = vpop.f32.mrb[70].mxu1 }
 0x425   :  { %v4339_v38 = vmax.f32 %v4291_v37, 0.0  ;;  %v4295_v47 = vadd.f32 %v4294_v11, %v7634_v39  ;;  %v4296_v48 = vpop.f32.mrb[71].mxu1 }
 0x426   :  { %v4340_v12 = vmax.f32 %v4293_v10, 0.0  ;;  %v4297_v13 = vadd.f32 %v4296_v48, %v7637_v57 }
 0x427   :  { %v4341_v14 = vmax.f32 %v4295_v47, 0.0 }
 0x428   :  { %v4973_v15 = vpack.c.bf16 %v4340_v12, %v4339_v38  ;;  %v4342_v16 = vmax.f32 %v4297_v13, 0.0 }
 0x42a   :  { %4439 = vst [vmem:[%s7711_s7 + $0x30] sm:$0xff] %v4973_v15  ;;  %v4974_v49 = vpack.c.bf16 %v4342_v16, %v4341_v14  ;;  %v4300_v17 = vpop.f32.mrb[72].mxu1 }
 0x42b   :  { %v4301_v18 = vadd.f32 %v4300_v17, %v7634_v39  ;;  %v4302_v19 = vpop.f32.mrb[73].mxu1 }
 0x42c   :  { %4440 = vst [vmem:[%s7711_s7 + $0x38] sm:$0xff] %v4974_v49  ;;  %v4303_v50 = vadd.f32 %v4302_v19, %v7637_v57  ;;  %v4304_v20 = vpop.f32.mrb[74].mxu1 }
 0x42d   :  { %v4343_v21 = vmax.f32 %v4301_v18, 0.0  ;;  %v4305_v43 = vadd.f32 %v4304_v20, %v7634_v39  ;;  %v4306_v40 = vpop.f32.mrb[75].mxu1 }
 0x42e   :  { %v4344_v22 = vmax.f32 %v4303_v50, 0.0  ;;  %v4307_v23 = vadd.f32 %v4306_v40, %v7637_v57 }
 0x42f   :  { %v4345_v24 = vmax.f32 %v4305_v43, 0.0 }
 0x430   :  { %v4975_v25 = vpack.c.bf16 %v4344_v22, %v4343_v21  ;;  %v4346_v26 = vmax.f32 %v4307_v23, 0.0 }
 0x432   :  { %4441 = vst [vmem:[%s7711_s7 + $0x40] sm:$0xff] %v4975_v25  ;;  %v4976_v41 = vpack.c.bf16 %v4346_v26, %v4345_v24  ;;  %v4310_v27 = vpop.f32.mrb[76].mxu1 }
 0x433   :  { %v4311_v51 = vadd.f32 %v4310_v27, %v7634_v39  ;;  %v4312_v61 = vpop.f32.mrb[77].mxu1 }
 0x434   :  { %4442 = vst [vmem:[%s7711_s7 + $0x48] sm:$0xff] %v4976_v41  ;;  %v4313_v58 = vadd.f32 %v4312_v61, %v7637_v57  ;;  %v4314_v52 = vpop.f32.mrb[78].mxu1 }
 0x435   :  { %v4347_v60 = vmax.f32 %v4311_v51, 0.0  ;;  %v4315_v62 = vadd.f32 %v4314_v52, %v7634_v39  ;;  %v4316_v28 = vpop.f32.mrb[79].mxu1 }
 0x436   :  { %v4348_v29 = vmax.f32 %v4313_v58, 0.0  ;;  %v4317_v42 = vadd.f32 %v4316_v28, %v7637_v57 }
 0x437   :  { %v4349_v30 = vmax.f32 %v4315_v62, 0.0 }
 0x438   :  { %v4977_v31 = vpack.c.bf16 %v4348_v29, %v4347_v60  ;;  %v4350_v32 = vmax.f32 %v4317_v42, 0.0 }
 0x43a   :  { %4443 = vst [vmem:[%s7711_s7 + $0x50] sm:$0xff] %v4977_v31  ;;  %v4978_v33 = vpack.c.bf16 %v4350_v32, %v4349_v30  ;;  %v4320_v53 = vpop.f32.mrb[80].mxu1 }
 0x43b   :  { %v4321_v34 = vadd.f32 %v4320_v53, %v7634_v39  ;;  %v4322_v54 = vpop.f32.mrb[81].mxu1 }
 0x43c   :  { %4444 = vst [vmem:[%s7711_s7 + $0x58] sm:$0xff] %v4978_v33  ;;  %v4323_v55 = vadd.f32 %v4322_v54, %v7637_v57  ;;  %v4324_v56 = vpop.f32.mrb[82].mxu1 }
 0x43d   :  { %v4351_v44 = vmax.f32 %v4321_v34, 0.0  ;;  %v4325_v59 = vpop.f32.mrb[83].mxu1 }
 0x43e   :  { %v4352_v63 = vmax.f32 %v4323_v55, 0.0 }
 0x440   :  { %v4979_v0 = vpack.c.bf16 %v4352_v63, %v4351_v44 }
 0x442   :  { %4445 = vst [vmem:[%s7711_s7 + $0x60] sm:$0x11] %v4979_v0 }

// kernel: nin_forward.10
= control target key start
LH: loop header
LB: loop body
LE: loop exit
PB: predicated region body
PF: predicated region fallthrough
CT: control target
= control target key end

     0   :  { %vm52_vm0 = vcmask 1040384   ;;  %vm53_vm1 = vcmask 1044484   ;;  %s222_s0 = inlined_call_operand.vmem [shape: bf16[9,18,256], index: 0, kind: input, shape index: {}]   ;;  %s223_s1 = inlined_call_operand.vmem [shape: bf16[18,256], index: 1, kind: output, shape index: {}]  }
   0x1   :  { %v9_v0 = vld [vmem:[%s222_s0] sm:$0xff]  ;;  %v12_v1 = vld [vmem:[%s222_s0 + $0x18] sm:$0xff]  ;;  %v15_v2 = vld [vmem:[%s222_s0 + $0x30] sm:$0xff] }
   0x2   :  { %v18_v3 = vld [vmem:[%s222_s0 + $0x48] sm:$0xff]  ;;  %v21_v4 = vld [vmem:[%s222_s0 + $0x60] sm:$0xff]  ;;  %v24_v5 = vld [vmem:[%s222_s0 + $0x78] sm:$0xff]  ;;  %v36_v6 = vmax.bf16 %v15_v2, %v9_v0 }
   0x3   :  { %v27_v7 = vld [vmem:[%s222_s0 + $0x90] sm:$0xff]  ;;  %v30_v8 = vld [vmem:[%s222_s0 + $0xa8] sm:$0xff]  ;;  %v33_v9 = vld [vmem:[%s222_s0 + $0xc0] sm:$0xff]  ;;  %v37_v10 = vmax.bf16 %v18_v3, %v12_v1 }
   0x4   :  { %v38_v11 = vmax.bf16 %v36_v6, %v21_v4  ;;  %v10_v12 = vld [vmem:[%s222_s0 + $0x8] sm:$0xff]  ;;  %v13_v13 = vld [vmem:[%s222_s0 + $0x20] sm:$0xff]  ;;  %v16_v14 = vld [vmem:[%s222_s0 + $0x38] sm:$0xff] }
   0x5   :  { %v39_v15 = vmax.bf16 %v37_v10, %v24_v5  ;;  %v19_v16 = vld [vmem:[%s222_s0 + $0x50] sm:$0xff]  ;;  %v22_v17 = vld [vmem:[%s222_s0 + $0x68] sm:$0xff]  ;;  %v25_v18 = vld [vmem:[%s222_s0 + $0x80] sm:$0xff]  ;;  %v44_v19 = vmax.bf16 %v16_v14, %v10_v12 }
   0x6   :  { %v40_v20 = vmax.bf16 %v38_v11, %v27_v7  ;;  %v28_v21 = vld [vmem:[%s222_s0 + $0x98] sm:$0xff]  ;;  %v45_v22 = vmax.bf16 %v19_v16, %v13_v13  ;;  %v31_v24 = vld [vmem:[%s222_s0 + $0xb0] sm:$0xff]  ;;  %v34_v25 = vld [vmem:[%s222_s0 + $0xc8] sm:$0xff] }
   0x7   :  { %v41_v23 = vmax.bf16 %v39_v15, %v30_v8  ;;  %v46_v26 = vmax.bf16 %v44_v19, %v22_v17  ;;  %v11_v27 = vld [vmem:[%s222_s0 + $0x10] sm:$0x11]  ;;  %v14_v30 = vld [vmem:[%s222_s0 + $0x28] sm:$0x11]  ;;  %v17_v31 = vld [vmem:[%s222_s0 + $0x40] sm:$0x11] }
   0x8   :  { %v42_v28 = vmax.bf16 %v40_v20, %v33_v9  ;;  %v47_v29 = vmax.bf16 %v45_v22, %v25_v18  ;;  %v20_v32 = vld [vmem:[%s222_s0 + $0x58] sm:$0x11]  ;;  %v23_v34 = vld [vmem:[%s222_s0 + $0x70] sm:$0x11]  ;;  %v26_v35 = vld [vmem:[%s222_s0 + $0x88] sm:$0x11] }
   0x9   :  { %v48_v33 = vmax.bf16 %v46_v26, %v28_v21  ;;  %v29_v36 = vld [vmem:[%s222_s0 + $0xa0] sm:$0x11]  ;;  %v32_v39 = vld [vmem:[%s222_s0 + $0xb8] sm:$0x11]  ;;  %v35_v40 = vld [vmem:[%s222_s0 + $0xd0] sm:$0x11] }
   0xa   :  { %v43_v37 = vmax.bf16 %v42_v28, %v41_v23  ;;  %v49_v38 = vmax.bf16 %v47_v29, %v31_v24  ;;  %vm191_vm2 = vmor %vm53_vm1, %vm52_vm0 }
   0xb   :  { %v50_v42 = vmax.bf16 %v48_v33, %v34_v25  ;;  %v57_v43 = vsel %vm191_vm2, %v11_v27, 4286644096  ;;  %v60_v44 = vsel %vm191_vm2, %v14_v30, 4286644096  ;;  %v63_v45 = vsel %vm191_vm2, %v17_v31, 4286644096 }
   0xc   :  { %91 = vst [vmem:[%s223_s1] sm:$0xff] %v43_v37  ;;  %v65_v46 = vmax.bf16 %v63_v45, %v57_v43  ;;  %v67_v47 = vsel %vm191_vm2, %v20_v32, 4286644096  ;;  %v71_v48 = vsel %vm191_vm2, %v23_v34, 4286644096  ;;  %v75_v49 = vsel %vm191_vm2, %v26_v35, 4286644096 }
   0xd   :  { %v51_v50 = vmax.bf16 %v50_v42, %v49_v38  ;;  %v69_v51 = vmax.bf16 %v67_v47, %v60_v44  ;;  %v79_v52 = vsel %vm191_vm2, %v29_v36, 4286644096  ;;  %v83_v54 = vsel %vm191_vm2, %v32_v39, 4286644096 }
   0xe   :  { %v73_v53 = vmax.bf16 %v71_v48, %v65_v46  ;;  %v87_v56 = vsel %vm191_vm2, %v35_v40, 4286644096 }
   0xf   :  { %92 = vst [vmem:[%s223_s1 + $0x8] sm:$0xff] %v51_v50  ;;  %v77_v55 = vmax.bf16 %v75_v49, %v69_v51 }
  0x10   :  { %v81_v57 = vmax.bf16 %v79_v52, %v73_v53 }
  0x11   :  { %v85_v58 = vmax.bf16 %v83_v54, %v77_v55 }
  0x12   :  { %v89_v59 = vmax.bf16 %v87_v56, %v81_v57 }
  0x14   :  { %v90_v60 = vmax.bf16 %v89_v59, %v85_v58 }
  0x16   :  { %93 = vst [vmem:[%s223_s1 + $0x10] sm:$0x11] %v90_v60 }

// kernel: nin_forward.12
= control target key start
LH: loop header
LB: loop body
LE: loop exit
PB: predicated region body
PF: predicated region fallthrough
CT: control target
= control target key end

     0   :  { %vm18_vm0 = vcmask 1040384   ;;  %vm19_vm1 = vcmask 1041409   ;;  %vm21_vm2 = vcmask 1042434   ;;  %s104_s0 = inlined_call_operand.vmem [shape: bf16[9,2,384], index: 0, kind: input, shape index: {}]   ;;  %s105_s1 = inlined_call_operand.vmem [shape: bf16[2,384], index: 1, kind: output, shape index: {}]  }
   0x1   :  { %v9_v0 = vld [vmem:[%s104_s0] sm:$0x7]  ;;  %v10_v1 = vld [vmem:[%s104_s0 + $0x3] sm:$0x7]  ;;  %v11_v2 = vld [vmem:[%s104_s0 + $0x6] sm:$0x7] }
   0x2   :  { %v12_v3 = vld [vmem:[%s104_s0 + $0x9] sm:$0x7]  ;;  %v13_v4 = vld [vmem:[%s104_s0 + $0xc] sm:$0x7]  ;;  %v14_v5 = vld [vmem:[%s104_s0 + $0xf] sm:$0x7] }
   0x3   :  { %v15_v6 = vld [vmem:[%s104_s0 + $0x12] sm:$0x7]  ;;  %vm20_vm3 = vmor %vm19_vm1, %vm18_vm0  ;;  %v16_v7 = vld [vmem:[%s104_s0 + $0x15] sm:$0x7] }
   0x4   :  { %v17_v8 = vld [vmem:[%s104_s0 + $0x18] sm:$0x7]  ;;  %vm22_vm4 = vmor %vm21_vm2, %vm20_vm3 }
   0x5   :  { %v25_v9 = vsel %vm22_vm4, %v9_v0, 4286644096  ;;  %v28_v10 = vsel %vm22_vm4, %v10_v1, 4286644096  ;;  %v31_v11 = vsel %vm22_vm4, %v11_v2, 4286644096 }
   0x6   :  { %v34_v12 = vsel %vm22_vm4, %v12_v3, 4286644096  ;;  %v37_v13 = vsel %vm22_vm4, %v13_v4, 4286644096  ;;  %v41_v14 = vsel %vm22_vm4, %v14_v5, 4286644096 }
   0x7   :  { %v39_v15 = vmax.bf16 %v37_v13, %v25_v9  ;;  %v43_v16 = vmax.bf16 %v41_v14, %v28_v10  ;;  %v45_v17 = vsel %vm22_vm4, %v15_v6, 4286644096  ;;  %v49_v18 = vsel %vm22_vm4, %v16_v7, 4286644096 }
   0x8   :  { %v47_v19 = vmax.bf16 %v45_v17, %v31_v11  ;;  %v51_v20 = vmax.bf16 %v49_v18, %v34_v12  ;;  %v53_v21 = vsel %vm22_vm4, %v17_v8, 4286644096 }
   0x9   :  { %v55_v22 = vmax.bf16 %v53_v21, %v39_v15 }
   0xa   :  { %v57_v23 = vmax.bf16 %v51_v20, %v47_v19 }
   0xb   :  { %v56_v24 = vmax.bf16 %v55_v22, %v43_v16 }
   0xd   :  { %v58_v25 = vmax.bf16 %v57_v23, %v56_v24 }
   0xf   :  { %59 = vst [vmem:[%s105_s1] sm:$0x7] %v58_v25 }

// kernel: nin_forward.13
= control target key start
LH: loop header
LB: loop body
LE: loop exit
PB: predicated region body
PF: predicated region fallthrough
CT: control target
= control target key end

     0   :  { %v479_v27 = vlaneseq  ;;  %v3642_v35 = vmov 1966171168   ;;  %vm3644_vm0 = vmmov 0   ;;  %s4482_s0 = inlined_call_operand.vmem [shape: bf16[2,3456], index: 0, kind: input, shape index: {}]   ;;  %s4483_s1 = inlined_call_operand.vmem [shape: bf16[3456,128], index: 1, kind: input, shape index: {}]   ;;  %s4484_s2 = inlined_call_operand.vmem [shape: f32[1,128], index: 2, kind: input, shape index: {}]   ;;  %s4485_s3 = inlined_call_operand.vmem [shape: bf16[128,128], index: 3, kind: input, shape index: {}]   ;;  %s4486_s4 = inlined_call_operand.vmem [shape: f32[1,128], index: 4, kind: input, shape index: {}]   ;;  %s4487_s5 = inlined_call_operand.vmem [shape: bf16[128,128], index: 5, kind: input, shape index: {}]   ;;  %s4488_s6 = inlined_call_operand.vmem [shape: f32[1,128], index: 6, kind: input, shape index: {}]   ;;  %s4489_s7 = inlined_call_operand.hbm [shape: f32[2,128], index: 7, kind: output, shape index: {}]  }
   0x1   :  { %v3383_v0 = vld [vmem:[%s4483_s1 + $0x40] sm:$0xff]   ;;  %v3387_v4 = vld [vmem:[%s4483_s1 + $0x48] sm:$0xff]   ;;  %v3391_v8 = vld [vmem:[%s4483_s1 + $0x50] sm:$0xff]   ;;  %v477_v36 = vunpack.c.l.s4 %v3642_v35 }
   0x2   :  { %v3384_v1 = vld [vmem:[%s4483_s1] sm:$0xff]   ;;  %3006 = vmatprep.subr.bf16.mxu0 %v3383_v0  ;;  %v3388_v5 = vld [vmem:[%s4483_s1 + $0x8] sm:$0xff]   ;;  %v3392_v9 = vld [vmem:[%s4483_s1 + $0x10] sm:$0xff]   ;;  %v480_v32 = vshrl.u32 %v479_v27, 7 }
   0x3   :  { %v3385_v2 = vld [vmem:[%s4483_s1 + $0xc0] sm:$0xff]   ;;  %3007 = vmatpush3.bf16.msra.mxu0 %v3384_v1  ;;  %v3389_v6 = vld [vmem:[%s4483_s1 + $0xc8] sm:$0xff]   ;;  %v3393_v10 = vld [vmem:[%s4483_s1 + $0xd0] sm:$0xff]   ;;  %v478_v39 = vunpack.c.0.s8 %v477_v36 }
   0x4   :  { %v3386_v3 = vld [vmem:[%s4483_s1 + $0x80] sm:$0xff]   ;;  %3028 = vmatprep.subr.bf16.mxu1 %v3385_v2  ;;  %3008 = vmatprep.subr.bf16.mxu0 %v3387_v4  ;;  %v3390_v7 = vld [vmem:[%s4483_s1 + $0x88] sm:$0xff]   ;;  %v3394_v11 = vld [vmem:[%s4483_s1 + $0x90] sm:$0xff]  }
   0x5   :  { %3029 = vmatpush3.bf16.msra.mxu1 %v3386_v3  ;;  %v3395_v12 = vld [vmem:[%s4483_s1 + $0x58] sm:$0xff]   ;;  %v3399_v16 = vld [vmem:[%s4483_s1 + $0x60] sm:$0xff]   ;;  %v3403_v20 = vld [vmem:[%s4483_s1 + $0x68] sm:$0xff]   ;;  %v3791_v41 = vsub.s32 %v478_v39, %v480_v32 }
   0x6   :  { %3030 = vmatprep.subr.bf16.mxu1 %v3389_v6  ;;  %v3396_v13 = vld [vmem:[%s4483_s1 + $0x18] sm:$0xff]   ;;  %v3400_v17 = vld [vmem:[%s4483_s1 + $0x20] sm:$0xff]   ;;  %v3404_v21 = vld [vmem:[%s4483_s1 + $0x28] sm:$0xff]  }
   0x7   :  { %3009 = vmatpush3.bf16.msra.mxu0 %v3388_v5  ;;  %v3397_v14 = vld [vmem:[%s4483_s1 + $0xd8] sm:$0xff]   ;;  %v3401_v18 = vld [vmem:[%s4483_s1 + $0xe0] sm:$0xff]   ;;  %v3405_v22 = vld [vmem:[%s4483_s1 + $0xe8] sm:$0xff]  }
   0x8   :  { %3010 = vmatprep.subr.bf16.mxu0 %v3391_v8  ;;  %v3398_v15 = vld [vmem:[%s4483_s1 + $0x98] sm:$0xff]   ;;  %v3402_v19 = vld [vmem:[%s4483_s1 + $0xa0] sm:$0xff]   ;;  %v3406_v23 = vld [vmem:[%s4483_s1 + $0xa8] sm:$0xff]  }
   0x9   :  { %3031 = vmatpush3.bf16.msra.mxu1 %v3390_v7  ;;  %v3407_v24 = vld [vmem:[%s4483_s1 + $0x70] sm:$0xff]   ;;  %v3411_v29 = vld [vmem:[%s4483_s1 + $0x78] sm:$0xff]   ;;  %v28_v33 = vld [vmem:[%s4482_s0] sm:$0xff] }
   0xa   :  { %3032 = vmatprep.subr.bf16.mxu1 %v3393_v10  ;;  %v3408_v25 = vld [vmem:[%s4483_s1 + $0x30] sm:$0xff]   ;;  %v3412_v30 = vld [vmem:[%s4483_s1 + $0x38] sm:$0xff]   ;;  %v3416_v37 = vld [vmem:[%s4483_s1 + $0x140] sm:$0xff]   ;;  %v475_v38 = vcombine.high %v28_v33, %v28_v33  ;;  %v482_v42 = vrot.slane %v28_v33, %v3791_v41 }
   0xb   :  { %3011 = vmatpush3.bf16.msra.mxu0 %v3392_v9  ;;  %v3409_v26 = vld [vmem:[%s4483_s1 + $0xf0] sm:$0xff]   ;;  %v3413_v31 = vld [vmem:[%s4483_s1 + $0xf8] sm:$0xff]   ;;  %v3418_v40 = vld [vmem:[%s4483_s1 + $0x1c0] sm:$0xff]  }
   0xc   :  { %3012 = vmatprep.subr.bf16.mxu0 %v3395_v12  ;;  %v3410_v28 = vld [vmem:[%s4483_s1 + $0xb0] sm:$0xff]   ;;  %v3415_v34 = vld [vmem:[%s4483_s1 + $0xb8] sm:$0xff]   ;;  %v3795_v43 = vrot.slane %v475_v38, %v3791_v41  ;;  %v490_v44 = vcombine.high %v482_v42, %v482_v42  ;;  %v498_v45 = vrot.slane %v482_v42, %v3791_v41  ;;  %v3417_v48 = vld [vmem:[%s4483_s1 + $0x100] sm:$0xff]  }
   0xd   :  { %3033 = vmatpush3.bf16.msra.mxu1 %v3394_v11  ;;  %v3420_v51 = vld [vmem:[%s4483_s1 + $0x148] sm:$0xff]   ;;  %v3419_v53 = vld [vmem:[%s4483_s1 + $0x180] sm:$0xff]   ;;  %v3424_v57 = vld [vmem:[%s4483_s1 + $0x150] sm:$0xff]  }
   0xe   :  { %3034 = vmatprep.subr.bf16.mxu1 %v3397_v14  ;;  %v491_v46 = vcombine.high %v3795_v43, %v3795_v43  ;;  %v512_v47 = vrot.slane %v490_v44, %v3791_v41  ;;  %v520_v50 = vcombine.high %v498_v45, %v498_v45  ;;  %v3422_v54 = vld [vmem:[%s4483_s1 + $0x1c8] sm:$0xff]   ;;  %v3426_v59 = vld [vmem:[%s4483_s1 + $0x1d0] sm:$0xff]   ;;  %v3428_v61 = vld [vmem:[%s4483_s1 + $0x158] sm:$0xff]  }
   0xf   :  { %3013 = vmatpush3.bf16.msra.mxu0 %v3396_v13  ;;  %v3421_v56 = vld [vmem:[%s4483_s1 + $0x108] sm:$0xff]   ;;  %v3425_v60 = vld [vmem:[%s4483_s1 + $0x110] sm:$0xff]   ;;  %v3430_v63 = vld [vmem:[%s4483_s1 + $0x1d8] sm:$0xff]  }
  0x10   :  { %3014 = vmatprep.subr.bf16.mxu0 %v3399_v16  ;;  %v519_v49 = vrot.slane %v491_v46, %v3791_v41  ;;  %2000 = vmatprep.mubr.bf16.mxu0 %v512_v47  ;;  %v522_v52 = vcombine.high %v512_v47, %v512_v47  ;;  %v3423_v58 = vld [vmem:[%s4483_s1 + $0x188] sm:$0xff]   ;;  %v3427_v62 = vld [vmem:[%s4483_s1 + $0x190] sm:$0xff]   ;;  %v3429_v0 = vld [vmem:[%s4483_s1 + $0x118] sm:$0xff]  }
  0x11   :  { %3035 = vmatpush3.bf16.msra.mxu1 %v3398_v15  ;;  %v3432_v1 = vld [vmem:[%s4483_s1 + $0x160] sm:$0xff]   ;;  %v3431_v2 = vld [vmem:[%s4483_s1 + $0x198] sm:$0xff]   ;;  %v3436_v5 = vld [vmem:[%s4483_s1 + $0x168] sm:$0xff]  }
  0x12   :  { %3036 = vmatprep.subr.bf16.mxu1 %v3401_v18  ;;  %v523_v55 = vcombine.high %v519_v49, %v519_v49  ;;  %2040 = vmatprep.mubr.bf16.mxu1 %v522_v52  ;;  %v3434_v3 = vld [vmem:[%s4483_s1 + $0x1e0] sm:$0xff]   ;;  %v3438_v7 = vld [vmem:[%s4483_s1 + $0x1e8] sm:$0xff]   ;;  %v3440_v9 = vld [vmem:[%s4483_s1 + $0x170] sm:$0xff]  }
  0x13   :  { %3015 = vmatpush3.bf16.msra.mxu0 %v3400_v17  ;;  %v3433_v4 = vld [vmem:[%s4483_s1 + $0x120] sm:$0xff]   ;;  %v3437_v8 = vld [vmem:[%s4483_s1 + $0x128] sm:$0xff]   ;;  %v3442_v11 = vld [vmem:[%s4483_s1 + $0x1f0] sm:$0xff]   ;;  %v505_v17 = vrot.slane %v3795_v43, %v3791_v41 }
  0x14   :  { %3016 = vmatprep.subr.bf16.mxu0 %v3403_v20  ;;  %v3435_v6 = vld [vmem:[%s4483_s1 + $0x1a0] sm:$0xff]   ;;  %v3439_v10 = vld [vmem:[%s4483_s1 + $0x1a8] sm:$0xff]   ;;  %v3441_v12 = vld [vmem:[%s4483_s1 + $0x130] sm:$0xff]  }
  0x15   :  { %3037 = vmatpush3.bf16.msra.mxu1 %v3402_v19  ;;  %v3444_v13 = vld [vmem:[%s4483_s1 + $0x178] sm:$0xff]   ;;  %v3443_v14 = vld [vmem:[%s4483_s1 + $0x1b0] sm:$0xff]   ;;  %v3448_v18 = vld [vmem:[%s4483_s1 + $0x240] sm:$0xff]  }
  0x16   :  { %3038 = vmatprep.subr.bf16.mxu1 %v3405_v22  ;;  %v3446_v15 = vld [vmem:[%s4483_s1 + $0x1f8] sm:$0xff]   ;;  %v3450_v20 = vld [vmem:[%s4483_s1 + $0x2c0] sm:$0xff]   ;;  %v521_v22 = vcombine.high %v505_v17, %v505_v17  ;;  %v3456_v27 = vld [vmem:[%s4483_s1 + $0x250] sm:$0xff]  }
  0x17   :  { %3017 = vmatpush3.bf16.msra.mxu0 %v3404_v21  ;;  %v3445_v16 = vld [vmem:[%s4483_s1 + $0x138] sm:$0xff]   ;;  %v3449_v21 = vld [vmem:[%s4483_s1 + $0x200] sm:$0xff]   ;;  %v3459_v32 = vld [vmem:[%s4483_s1 + $0x290] sm:$0xff]  }
  0x18   :  { %3018 = vmatprep.subr.bf16.mxu0 %v3407_v24  ;;  %v3447_v19 = vld [vmem:[%s4483_s1 + $0x1b8] sm:$0xff]   ;;  %v3451_v24 = vld [vmem:[%s4483_s1 + $0x280] sm:$0xff]   ;;  %v3468_v39 = vld [vmem:[%s4483_s1 + $0x268] sm:$0xff]  }
  0x19   :  { %3039 = vmatpush3.bf16.msra.mxu1 %v3406_v23  ;;  %v3452_v23 = vld [vmem:[%s4483_s1 + $0x248] sm:$0xff]   ;;  %v3462_v33 = vld [vmem:[%s4483_s1 + $0x2d8] sm:$0xff]   ;;  %v3464_v35 = vld [vmem:[%s4483_s1 + $0x260] sm:$0xff]  }
  0x1a   :  { %3040 = vmatprep.subr.bf16.mxu1 %v3409_v26  ;;  %v3453_v26 = vld [vmem:[%s4483_s1 + $0x208] sm:$0xff]   ;;  %v3463_v36 = vld [vmem:[%s4483_s1 + $0x298] sm:$0xff]   ;;  %v3465_v38 = vld [vmem:[%s4483_s1 + $0x220] sm:$0xff]  }
  0x1b   :  { %3019 = vmatpush3.bf16.msra.mxu0 %v3408_v25  ;;  %v3454_v25 = vld [vmem:[%s4483_s1 + $0x2c8] sm:$0xff]   ;;  %v3472_v44 = vld [vmem:[%s4483_s1 + $0x270] sm:$0xff]  }
  0x1c   :  { %3020 = vmatprep.subr.bf16.mxu0 %v3411_v29  ;;  %v3458_v29 = vld [vmem:[%s4483_s1 + $0x2d0] sm:$0xff]   ;;  %v3470_v42 = vld [vmem:[%s4483_s1 + $0x2e8] sm:$0xff]  }
  0x1d   :  { %3041 = vmatpush3.bf16.msra.mxu1 %v3410_v28  ;;  %v3455_v28 = vld [vmem:[%s4483_s1 + $0x288] sm:$0xff]  }
  0x1e   :  { %3042 = vmatprep.subr.bf16.mxu1 %v3413_v31  ;;  %v3460_v31 = vld [vmem:[%s4483_s1 + $0x258] sm:$0xff]   ;;  %v3469_v43 = vld [vmem:[%s4483_s1 + $0x228] sm:$0xff]  }
  0x1f   :  { %3021 = vmatpush3.bf16.msra.mxu0 %v3412_v30  ;;  %v3457_v30 = vld [vmem:[%s4483_s1 + $0x210] sm:$0xff]   ;;  %v3471_v46 = vld [vmem:[%s4483_s1 + $0x2a8] sm:$0xff]  }
  0x20   :  { %3050 = vmatprep.subr.bf16.mxu0 %v3416_v37  ;;  %v3466_v37 = vld [vmem:[%s4483_s1 + $0x2e0] sm:$0xff]  }
  0x21   :  { %3043 = vmatpush3.bf16.msra.mxu1 %v3415_v34  ;;  %v3461_v34 = vld [vmem:[%s4483_s1 + $0x218] sm:$0xff]  }
  0x22   :  { %3072 = vmatprep.subr.bf16.mxu1 %v3418_v40  ;;  %2001 = vmatmul.mubr.bf16.vlgmr.msra.gmra.mrb[0].mxu0 %v498_v45  ;;  %v3467_v40 = vld [vmem:[%s4483_s1 + $0x2a0] sm:$0xff]   ;;  %v29_v45 = vld [vmem:[%s4482_s0 + $0x8] sm:$0xff] }
  0x23   :  { %3051 = vmatpush3.bf16.msra.mxu0 %v3417_v48  ;;  %2080 = vmatprep.mubr.bf16.mxu0 %v519_v49  ;;  %v531_v47 = vrot.slane %v29_v45, %v3791_v41  ;;  %v524_v48 = vcombine.high %v29_v45, %v29_v45  ;;  %v3474_v49 = vld [vmem:[%s4483_s1 + $0x2f0] sm:$0xff]  }
  0x24   :  { %2041 = vmatmul.mubr.bf16.vlgmr.msra.gmra.mrb[0].mxu1 %v520_v50  ;;  %3052 = vmatprep.subr.bf16.mxu0 %v3420_v51  ;;  %v3473_v50 = vld [vmem:[%s4483_s1 + $0x230] sm:$0xff]  }
  0x25   :  { %3073 = vmatpush3.bf16.msra.mxu1 %v3419_v53  ;;  %2120 = vmatprep.mubr.bf16.mxu1 %v523_v55  ;;  %v539_v51 = vcombine.high %v531_v47, %v531_v47  ;;  %v3980_v52 = vrot.slane %v524_v48, %v3791_v41  ;;  %v3476_v53 = vld [vmem:[%s4483_s1 + $0x278] sm:$0xff]   ;;  %v3523_v45 = vld [vmem:[%s4483_s1 + $0x4d0] sm:$0xff]  }
  0x26   :  { %3074 = vmatprep.subr.bf16.mxu1 %v3422_v54  ;;  %v3475_v54 = vld [vmem:[%s4483_s1 + $0x2b0] sm:$0xff]  }
  0x27   :  { %3053 = vmatpush3.bf16.msra.mxu0 %v3421_v56  ;;  %v561_v55 = vrot.slane %v539_v51, %v3791_v41  ;;  %v540_v56 = vcombine.high %v3980_v52, %v3980_v52  ;;  %v3524_v48 = vld [vmem:[%s4483_s1 + $0x490] sm:$0xff]   ;;  %v3529_v51 = vld [vmem:[%s4483_s1 + $0x460] sm:$0xff]  }
  0x28   :  { %3054 = vmatprep.subr.bf16.mxu0 %v3424_v57  ;;  %v3478_v57 = vld [vmem:[%s4483_s1 + $0x2f8] sm:$0xff]  }
  0x29   :  { %3075 = vmatpush3.bf16.msra.mxu1 %v3423_v58  ;;  %v3477_v58 = vld [vmem:[%s4483_s1 + $0x238] sm:$0xff]  }
  0x2a   :  { %3076 = vmatprep.subr.bf16.mxu1 %v3426_v59  ;;  %v571_v59 = vcombine.high %v561_v55, %v561_v55 }
  0x2b   :  { %3055 = vmatpush3.bf16.msra.mxu0 %v3425_v60  ;;  %v547_v60 = vrot.slane %v531_v47, %v3791_v41  ;;  %v3525_v47 = vld [vmem:[%s4483_s1 + $0x458] sm:$0xff]  }
  0x2c   :  { %3056 = vmatprep.subr.bf16.mxu0 %v3428_v61  ;;  %v3480_v61 = vld [vmem:[%s4483_s1 + $0x340] sm:$0xff]  }
  0x2d   :  { %3077 = vmatpush3.bf16.msra.mxu1 %v3427_v62  ;;  %v3479_v62 = vld [vmem:[%s4483_s1 + $0x2b8] sm:$0xff]  }
  0x2e   :  { %3078 = vmatprep.subr.bf16.mxu1 %v3430_v63  ;;  %v568_v63 = vrot.slane %v540_v56, %v3791_v41  ;;  %v3532_v56 = vld [vmem:[%s4483_s1 + $0x4a0] sm:$0xff]  }
  0x2f   :  { %3057 = vmatpush3.bf16.msra.mxu0 %v3429_v0  ;;  %v3482_v0 = vld [vmem:[%s4483_s1 + $0x3c0] sm:$0xff]  }
  0x30   :  { %3058 = vmatprep.subr.bf16.mxu0 %v3432_v1  ;;  %v3481_v1 = vld [vmem:[%s4483_s1 + $0x300] sm:$0xff]  }
  0x31   :  { %3079 = vmatpush3.bf16.msra.mxu1 %v3431_v2  ;;  %v569_v2 = vcombine.high %v547_v60, %v547_v60 }
  0x32   :  { %3080 = vmatprep.subr.bf16.mxu1 %v3434_v3  ;;  %v3484_v3 = vld [vmem:[%s4483_s1 + $0x348] sm:$0xff]  }
  0x33   :  { %3059 = vmatpush3.bf16.msra.mxu0 %v3433_v4  ;;  %v3483_v4 = vld [vmem:[%s4483_s1 + $0x380] sm:$0xff]  }
  0x34   :  { %3060 = vmatprep.subr.bf16.mxu0 %v3436_v5  ;;  %v572_v5 = vcombine.high %v568_v63, %v568_v63 }
  0x35   :  { %3081 = vmatpush3.bf16.msra.mxu1 %v3435_v6  ;;  %v3486_v6 = vld [vmem:[%s4483_s1 + $0x3c8] sm:$0xff]  }
  0x36   :  { %3082 = vmatprep.subr.bf16.mxu1 %v3438_v7  ;;  %v3485_v7 = vld [vmem:[%s4483_s1 + $0x308] sm:$0xff]  }
  0x37   :  { %3061 = vmatpush3.bf16.msra.mxu0 %v3437_v8  ;;  %v3488_v8 = vld [vmem:[%s4483_s1 + $0x350] sm:$0xff]  }
  0x38   :  { %3062 = vmatprep.subr.bf16.mxu0 %v3440_v9  ;;  %v3487_v9 = vld [vmem:[%s4483_s1 + $0x388] sm:$0xff]  }
  0x39   :  { %3083 = vmatpush3.bf16.msra.mxu1 %v3439_v10  ;;  %v3490_v10 = vld [vmem:[%s4483_s1 + $0x3d0] sm:$0xff]  }
  0x3a   :  { %3084 = vmatprep.subr.bf16.mxu1 %v3442_v11  ;;  %v3489_v11 = vld [vmem:[%s4483_s1 + $0x310] sm:$0xff]  }
  0x3b   :  { %3063 = vmatpush3.bf16.msra.mxu0 %v3441_v12  ;;  %v3492_v12 = vld [vmem:[%s4483_s1 + $0x358] sm:$0xff]  }
  0x3c   :  { %3064 = vmatprep.subr.bf16.mxu0 %v3444_v13  ;;  %v3491_v13 = vld [vmem:[%s4483_s1 + $0x390] sm:$0xff]  }
  0x3d   :  { %3085 = vmatpush3.bf16.msra.mxu1 %v3443_v14  ;;  %v3494_v14 = vld [vmem:[%s4483_s1 + $0x3d8] sm:$0xff]  }
  0x3e   :  { %3086 = vmatprep.subr.bf16.mxu1 %v3446_v15  ;;  %v3493_v15 = vld [vmem:[%s4483_s1 + $0x318] sm:$0xff]  }
  0x3f   :  { %3065 = vmatpush3.bf16.msra.mxu0 %v3445_v16  ;;  %v3496_v16 = vld [vmem:[%s4483_s1 + $0x360] sm:$0xff]  }
  0x40   :  { %3094 = vmatprep.subr.bf16.mxu0 %v3448_v18  ;;  %v3498_v18 = vld [vmem:[%s4483_s1 + $0x3e0] sm:$0xff]  }
  0x41   :  { %3087 = vmatpush3.bf16.msra.mxu1 %v3447_v19  ;;  %v3497_v19 = vld [vmem:[%s4483_s1 + $0x320] sm:$0xff]  }
  0x42   :  { %2081 = vmatmul.mubr.bf16.vlgmr.msra.gmra.mrb[4].mxu0 %v505_v17  ;;  %3116 = vmatprep.subr.bf16.mxu1 %v3450_v20  ;;  %v3495_v17 = vld [vmem:[%s4483_s1 + $0x398] sm:$0xff]   ;;  %v3500_v20 = vld [vmem:[%s4483_s1 + $0x368] sm:$0xff]  }
  0x43   :  { %3095 = vmatpush3.bf16.msra.mxu0 %v3449_v21  ;;  %2160 = vmatprep.mubr.bf16.mxu0 %v561_v55  ;;  %v3499_v21 = vld [vmem:[%s4483_s1 + $0x3a0] sm:$0xff]   ;;  %v3533_v55 = vld [vmem:[%s4483_s1 + $0x468] sm:$0xff]  }
  0x44   :  { %2121 = vmatmul.mubr.bf16.vlgmr.msra.gmra.mrb[4].mxu1 %v521_v22  ;;  %3096 = vmatprep.subr.bf16.mxu0 %v3452_v23  ;;  %v3502_v22 = vld [vmem:[%s4483_s1 + $0x3e8] sm:$0xff]  }
  0x45   :  { %3117 = vmatpush3.bf16.msra.mxu1 %v3451_v24  ;;  %2200 = vmatprep.mubr.bf16.mxu1 %v571_v59  ;;  %v3501_v23 = vld [vmem:[%s4483_s1 + $0x328] sm:$0xff]   ;;  %v3504_v24 = vld [vmem:[%s4483_s1 + $0x370] sm:$0xff]  }
  0x46   :  { %3118 = vmatprep.subr.bf16.mxu1 %v3454_v25  ;;  %v3503_v25 = vld [vmem:[%s4483_s1 + $0x3a8] sm:$0xff]   ;;  %v3537_v59 = vld [vmem:[%s4483_s1 + $0x470] sm:$0xff]  }
  0x47   :  { %3097 = vmatpush3.bf16.msra.mxu0 %v3453_v26  ;;  %v3506_v26 = vld [vmem:[%s4483_s1 + $0x3f0] sm:$0xff]  }
  0x48   :  { %3098 = vmatprep.subr.bf16.mxu0 %v3456_v27  ;;  %v3505_v27 = vld [vmem:[%s4483_s1 + $0x330] sm:$0xff]  }
  0x49   :  { %3119 = vmatpush3.bf16.msra.mxu1 %v3455_v28  ;;  %v3508_v28 = vld [vmem:[%s4483_s1 + $0x378] sm:$0xff]  }
  0x4a   :  { %3120 = vmatprep.subr.bf16.mxu1 %v3458_v29  ;;  %v3507_v29 = vld [vmem:[%s4483_s1 + $0x3b0] sm:$0xff]  }
  0x4b   :  { %3099 = vmatpush3.bf16.msra.mxu0 %v3457_v30  ;;  %v3510_v30 = vld [vmem:[%s4483_s1 + $0x3f8] sm:$0xff]  }
  0x4c   :  { %3100 = vmatprep.subr.bf16.mxu0 %v3460_v31  ;;  %v3509_v31 = vld [vmem:[%s4483_s1 + $0x338] sm:$0xff]  }
  0x4d   :  { %3121 = vmatpush3.bf16.msra.mxu1 %v3459_v32  ;;  %v554_v32 = vrot.slane %v3980_v52, %v3791_v41  ;;  %v3528_v52 = vld [vmem:[%s4483_s1 + $0x498] sm:$0xff]  }
  0x4e   :  { %3122 = vmatprep.subr.bf16.mxu1 %v3462_v33  ;;  %v3513_v33 = vld [vmem:[%s4483_s1 + $0x440] sm:$0xff]  }
  0x4f   :  { %3101 = vmatpush3.bf16.msra.mxu0 %v3461_v34  ;;  %v3512_v34 = vld [vmem:[%s4483_s1 + $0x3b8] sm:$0xff]  }
  0x50   :  { %3102 = vmatprep.subr.bf16.mxu0 %v3464_v35  ;;  %v3515_v35 = vld [vmem:[%s4483_s1 + $0x4c0] sm:$0xff]  }
  0x51   :  { %3123 = vmatpush3.bf16.msra.mxu1 %v3463_v36  ;;  %v3514_v36 = vld [vmem:[%s4483_s1 + $0x400] sm:$0xff]  }
  0x52   :  { %3124 = vmatprep.subr.bf16.mxu1 %v3466_v37  ;;  %v570_v37 = vcombine.high %v554_v32, %v554_v32 }
  0x53   :  { %3103 = vmatpush3.bf16.msra.mxu0 %v3465_v38  ;;  %v3517_v38 = vld [vmem:[%s4483_s1 + $0x448] sm:$0xff]  }
  0x54   :  { %3104 = vmatprep.subr.bf16.mxu0 %v3468_v39  ;;  %v3516_v39 = vld [vmem:[%s4483_s1 + $0x480] sm:$0xff]  }
  0x55   :  { %3125 = vmatpush3.bf16.msra.mxu1 %v3467_v40  ;;  %v3519_v40 = vld [vmem:[%s4483_s1 + $0x4c8] sm:$0xff]  }
  0x56   :  { %3126 = vmatprep.subr.bf16.mxu1 %v3470_v42  ;;  %v3518_v42 = vld [vmem:[%s4483_s1 + $0x408] sm:$0xff]  }
  0x57   :  { %3105 = vmatpush3.bf16.msra.mxu0 %v3469_v43  ;;  %v3521_v43 = vld [vmem:[%s4483_s1 + $0x450] sm:$0xff]  }
  0x58   :  { %3106 = vmatprep.subr.bf16.mxu0 %v3472_v44  ;;  %v3520_v44 = vld [vmem:[%s4483_s1 + $0x488] sm:$0xff]  }
  0x59   :  { %3127 = vmatpush3.bf16.msra.mxu1 %v3471_v46  ;;  %v3522_v46 = vld [vmem:[%s4483_s1 + $0x410] sm:$0xff]  }
  0x5a   :  { %3128 = vmatprep.subr.bf16.mxu1 %v3474_v49  ;;  %v3527_v49 = vld [vmem:[%s4483_s1 + $0x4d8] sm:$0xff]  }
  0x5b   :  { %3107 = vmatpush3.bf16.msra.mxu0 %v3473_v50  ;;  %v3526_v50 = vld [vmem:[%s4483_s1 + $0x418] sm:$0xff]  }
  0x5c   :  { %3108 = vmatprep.subr.bf16.mxu0 %v3476_v53  ;;  %v3531_v53 = vld [vmem:[%s4483_s1 + $0x4e0] sm:$0xff]  }
  0x5d   :  { %3129 = vmatpush3.bf16.msra.mxu1 %v3475_v54  ;;  %v3530_v54 = vld [vmem:[%s4483_s1 + $0x420] sm:$0xff]  }
  0x5e   :  { %3130 = vmatprep.subr.bf16.mxu1 %v3478_v57  ;;  %v3535_v57 = vld [vmem:[%s4483_s1 + $0x4e8] sm:$0xff]  }
  0x5f   :  { %3109 = vmatpush3.bf16.msra.mxu0 %v3477_v58  ;;  %v3534_v58 = vld [vmem:[%s4483_s1 + $0x428] sm:$0xff]  }
  0x60   :  { %3138 = vmatprep.subr.bf16.mxu0 %v3480_v61  ;;  %v3536_v61 = vld [vmem:[%s4483_s1 + $0x4a8] sm:$0xff]  }
  0x61   :  { %3131 = vmatpush3.bf16.msra.mxu1 %v3479_v62 }
  0x62   :  { %2161 = vmatmul.mubr.bf16.vlgmr.msra.gmra.mrb[8].mxu0 %v547_v60  ;;  %3160 = vmatprep.subr.bf16.mxu1 %v3482_v0  ;;  %v30_v60 = vld [vmem:[%s4482_s0 + $0x10] sm:$0xff] }
  0x63   :  { %3139 = vmatpush3.bf16.msra.mxu0 %v3481_v1  ;;  %2240 = vmatprep.mubr.bf16.mxu0 %v568_v63  ;;  %v580_v62 = vrot.slane %v30_v60, %v3791_v41  ;;  %v573_v63 = vcombine.high %v30_v60, %v30_v60  ;;  %v3539_v0 = vld [vmem:[%s4483_s1 + $0x4f0] sm:$0xff]   ;;  %v3587_v60 = vld [vmem:[%s4483_s1 + $0x658] sm:$0xff]  }
  0x64   :  { %2201 = vmatmul.mubr.bf16.vlgmr.msra.gmra.mrb[8].mxu1 %v569_v2  ;;  %3140 = vmatprep.subr.bf16.mxu0 %v3484_v3  ;;  %v3538_v1 = vld [vmem:[%s4483_s1 + $0x430] sm:$0xff]  }
  0x65   :  { %3161 = vmatpush3.bf16.msra.mxu1 %v3483_v4  ;;  %2280 = vmatprep.mubr.bf16.mxu1 %v572_v5  ;;  %v588_v2 = vcombine.high %v580_v62, %v580_v62  ;;  %v4186_v3 = vrot.slane %v573_v63, %v3791_v41  ;;  %v3541_v4 = vld [vmem:[%s4483_s1 + $0x478] sm:$0xff]   ;;  %v3540_v5 = vld [vmem:[%s4483_s1 + $0x4b0] sm:$0xff]  }
  0x66   :  { %3162 = vmatprep.subr.bf16.mxu1 %v3486_v6  ;;  %v3589_v63 = vld [vmem:[%s4483_s1 + $0x698] sm:$0xff]  }
  0x67   :  { %3141 = vmatpush3.bf16.msra.mxu0 %v3485_v7  ;;  %v610_v6 = vrot.slane %v588_v2, %v3791_v41  ;;  %v589_v7 = vcombine.high %v4186_v3, %v4186_v3  ;;  %v3591_v2 = vld [vmem:[%s4483_s1 + $0x620] sm:$0xff]  }
  0x68   :  { %3142 = vmatprep.subr.bf16.mxu0 %v3488_v8  ;;  %v3543_v8 = vld [vmem:[%s4483_s1 + $0x4f8] sm:$0xff]  }
  0x69   :  { %3163 = vmatpush3.bf16.msra.mxu1 %v3487_v9  ;;  %v3542_v9 = vld [vmem:[%s4483_s1 + $0x438] sm:$0xff]  }
  0x6a   :  { %3164 = vmatprep.subr.bf16.mxu1 %v3490_v10  ;;  %v620_v10 = vcombine.high %v610_v6, %v610_v6 }
  0x6b   :  { %3143 = vmatpush3.bf16.msra.mxu0 %v3489_v11  ;;  %v596_v11 = vrot.slane %v580_v62, %v3791_v41  ;;  %v3588_v62 = vld [vmem:[%s4483_s1 + $0x618] sm:$0xff]  }
  0x6c   :  { %3144 = vmatprep.subr.bf16.mxu0 %v3492_v12  ;;  %v3545_v12 = vld [vmem:[%s4483_s1 + $0x540] sm:$0xff]  }
  0x6d   :  { %3165 = vmatpush3.bf16.msra.mxu1 %v3491_v13  ;;  %v3544_v13 = vld [vmem:[%s4483_s1 + $0x4b8] sm:$0xff]  }
  0x6e   :  { %3166 = vmatprep.subr.bf16.mxu1 %v3494_v14  ;;  %v617_v14 = vrot.slane %v589_v7, %v3791_v41  ;;  %v3594_v7 = vld [vmem:[%s4483_s1 + $0x628] sm:$0xff]  }
  0x6f   :  { %3145 = vmatpush3.bf16.msra.mxu0 %v3493_v15  ;;  %v3547_v15 = vld [vmem:[%s4483_s1 + $0x5c0] sm:$0xff]  }
  0x70   :  { %3146 = vmatprep.subr.bf16.mxu0 %v3496_v16  ;;  %v3546_v16 = vld [vmem:[%s4483_s1 + $0x500] sm:$0xff]  }
  0x71   :  { %3167 = vmatpush3.bf16.msra.mxu1 %v3495_v17  ;;  %v618_v17 = vcombine.high %v596_v11, %v596_v11 }
  0x72   :  { %3168 = vmatprep.subr.bf16.mxu1 %v3498_v18  ;;  %v3549_v18 = vld [vmem:[%s4483_s1 + $0x548] sm:$0xff]  }
  0x73   :  { %3147 = vmatpush3.bf16.msra.mxu0 %v3497_v19  ;;  %v3548_v19 = vld [vmem:[%s4483_s1 + $0x580] sm:$0xff]  }
  0x74   :  { %3148 = vmatprep.subr.bf16.mxu0 %v3500_v20  ;;  %v621_v20 = vcombine.high %v617_v14, %v617_v14 }
  0x75   :  { %3169 = vmatpush3.bf16.msra.mxu1 %v3499_v21  ;;  %v3551_v21 = vld [vmem:[%s4483_s1 + $0x5c8] sm:$0xff]  }
  0x76   :  { %3170 = vmatprep.subr.bf16.mxu1 %v3502_v22  ;;  %v3550_v22 = vld [vmem:[%s4483_s1 + $0x508] sm:$0xff]  }
  0x77   :  { %3149 = vmatpush3.bf16.msra.mxu0 %v3501_v23  ;;  %v3553_v23 = vld [vmem:[%s4483_s1 + $0x550] sm:$0xff]  }
  0x78   :  { %3150 = vmatprep.subr.bf16.mxu0 %v3504_v24  ;;  %v3552_v24 = vld [vmem:[%s4483_s1 + $0x588] sm:$0xff]  }
  0x79   :  { %3171 = vmatpush3.bf16.msra.mxu1 %v3503_v25  ;;  %v3555_v25 = vld [vmem:[%s4483_s1 + $0x5d0] sm:$0xff]  }
  0x7a   :  { %3172 = vmatprep.subr.bf16.mxu1 %v3506_v26  ;;  %v3554_v26 = vld [vmem:[%s4483_s1 + $0x510] sm:$0xff]  }
  0x7b   :  { %3151 = vmatpush3.bf16.msra.mxu0 %v3505_v27  ;;  %v3557_v27 = vld [vmem:[%s4483_s1 + $0x558] sm:$0xff]  }
  0x7c   :  { %3152 = vmatprep.subr.bf16.mxu0 %v3508_v28  ;;  %v3556_v28 = vld [vmem:[%s4483_s1 + $0x590] sm:$0xff]  }
  0x7d   :  { %3173 = vmatpush3.bf16.msra.mxu1 %v3507_v29  ;;  %v3559_v29 = vld [vmem:[%s4483_s1 + $0x5d8] sm:$0xff]  }
  0x7e   :  { %3174 = vmatprep.subr.bf16.mxu1 %v3510_v30  ;;  %v3558_v30 = vld [vmem:[%s4483_s1 + $0x518] sm:$0xff]  }
  0x7f   :  { %3153 = vmatpush3.bf16.msra.mxu0 %v3509_v31  ;;  %v3561_v31 = vld [vmem:[%s4483_s1 + $0x560] sm:$0xff]  }
  0x80   :  { %3182 = vmatprep.subr.bf16.mxu0 %v3513_v33  ;;  %v3563_v33 = vld [vmem:[%s4483_s1 + $0x5e0] sm:$0xff]  }
  0x81   :  { %3175 = vmatpush3.bf16.msra.mxu1 %v3512_v34  ;;  %v3562_v34 = vld [vmem:[%s4483_s1 + $0x520] sm:$0xff]  }
  0x82   :  { %2241 = vmatmul.mubr.bf16.vlgmr.msra.gmra.mrb[12].mxu0 %v554_v32  ;;  %3204 = vmatprep.subr.bf16.mxu1 %v3515_v35  ;;  %v3560_v32 = vld [vmem:[%s4483_s1 + $0x598] sm:$0xff]   ;;  %v3565_v35 = vld [vmem:[%s4483_s1 + $0x568] sm:$0xff]  }
  0x83   :  { %3183 = vmatpush3.bf16.msra.mxu0 %v3514_v36  ;;  %2320 = vmatprep.mubr.bf16.mxu0 %v610_v6  ;;  %v3564_v36 = vld [vmem:[%s4483_s1 + $0x5a0] sm:$0xff]  }
  0x84   :  { %2281 = vmatmul.mubr.bf16.vlgmr.msra.gmra.mrb[12].mxu1 %v570_v37  ;;  %3184 = vmatprep.subr.bf16.mxu0 %v3517_v38  ;;  %v3567_v37 = vld [vmem:[%s4483_s1 + $0x5e8] sm:$0xff]  }
  0x85   :  { %3205 = vmatpush3.bf16.msra.mxu1 %v3516_v39  ;;  %2360 = vmatprep.mubr.bf16.mxu1 %v620_v10  ;;  %v3566_v38 = vld [vmem:[%s4483_s1 + $0x528] sm:$0xff]   ;;  %v3569_v39 = vld [vmem:[%s4483_s1 + $0x570] sm:$0xff]  }
  0x86   :  { %3206 = vmatprep.subr.bf16.mxu1 %v3519_v40  ;;  %v3568_v40 = vld [vmem:[%s4483_s1 + $0x5a8] sm:$0xff]   ;;  %v3597_v10 = vld [vmem:[%s4483_s1 + $0x630] sm:$0xff]  }
  0x87   :  { %3185 = vmatpush3.bf16.msra.mxu0 %v3518_v42  ;;  %v3571_v42 = vld [vmem:[%s4483_s1 + $0x5f0] sm:$0xff]  }
  0x88   :  { %3186 = vmatprep.subr.bf16.mxu0 %v3521_v43  ;;  %v3570_v43 = vld [vmem:[%s4483_s1 + $0x530] sm:$0xff]  }
  0x89   :  { %3207 = vmatpush3.bf16.msra.mxu1 %v3520_v44  ;;  %v3573_v44 = vld [vmem:[%s4483_s1 + $0x578] sm:$0xff]  }
  0x8a   :  { %3208 = vmatprep.subr.bf16.mxu1 %v3523_v45  ;;  %v3572_v45 = vld [vmem:[%s4483_s1 + $0x5b0] sm:$0xff]  }
  0x8b   :  { %3187 = vmatpush3.bf16.msra.mxu0 %v3522_v46  ;;  %v3575_v46 = vld [vmem:[%s4483_s1 + $0x5f8] sm:$0xff]  }
  0x8c   :  { %3188 = vmatprep.subr.bf16.mxu0 %v3525_v47  ;;  %v3574_v47 = vld [vmem:[%s4483_s1 + $0x538] sm:$0xff]  }
  0x8d   :  { %3209 = vmatpush3.bf16.msra.mxu1 %v3524_v48  ;;  %v603_v48 = vrot.slane %v4186_v3, %v3791_v41  ;;  %v3593_v3 = vld [vmem:[%s4483_s1 + $0x668] sm:$0xff]  }
  0x8e   :  { %3210 = vmatprep.subr.bf16.mxu1 %v3527_v49  ;;  %v3578_v49 = vld [vmem:[%s4483_s1 + $0x640] sm:$0xff]  }
  0x8f   :  { %3189 = vmatpush3.bf16.msra.mxu0 %v3526_v50  ;;  %v3577_v50 = vld [vmem:[%s4483_s1 + $0x5b8] sm:$0xff]  }
  0x90   :  { %3190 = vmatprep.subr.bf16.mxu0 %v3529_v51  ;;  %v3579_v51 = vld [vmem:[%s4483_s1 + $0x600] sm:$0xff]  }
  0x91   :  { %3211 = vmatpush3.bf16.msra.mxu1 %v3528_v52  ;;  %v619_v52 = vcombine.high %v603_v48, %v603_v48 }
  0x92   :  { %3212 = vmatprep.subr.bf16.mxu1 %v3531_v53  ;;  %v3581_v53 = vld [vmem:[%s4483_s1 + $0x648] sm:$0xff]  }
  0x93   :  { %3191 = vmatpush3.bf16.msra.mxu0 %v3530_v54  ;;  %v3580_v54 = vld [vmem:[%s4483_s1 + $0x680] sm:$0xff]  }
  0x94   :  { %3192 = vmatprep.subr.bf16.mxu0 %v3533_v55  ;;  %v3643_v55 = vmov 0.0  }
  0x95   :  { %3213 = vmatpush3.bf16.msra.mxu1 %v3532_v56  ;;  %v3582_v56 = vld [vmem:[%s4483_s1 + $0x608] sm:$0xff]  }
  0x96   :  { %3214 = vmatprep.subr.bf16.mxu1 %v3535_v57  ;;  %v3584_v57 = vld [vmem:[%s4483_s1 + $0x650] sm:$0xff]  }
  0x97   :  { %3193 = vmatpush3.bf16.msra.mxu0 %v3534_v58  ;;  %v3583_v58 = vld [vmem:[%s4483_s1 + $0x688] sm:$0xff]  }
  0x98   :  { %3194 = vmatprep.subr.bf16.mxu0 %v3537_v59  ;;  %v3585_v59 = vld [vmem:[%s4483_s1 + $0x610] sm:$0xff]  }
  0x99   :  { %3215 = vmatpush3.bf16.msra.mxu1 %v3536_v61  ;;  %v3586_v61 = vld [vmem:[%s4483_s1 + $0x690] sm:$0xff]  }
  0x9a   :  { %3216 = vmatprep.subr.bf16.mxu1 %v3539_v0  ;;  %v3590_v0 = vld [vmem:[%s4483_s1 + $0x660] sm:$0xff]  }
  0x9b   :  { %3195 = vmatpush3.bf16.msra.mxu0 %v3538_v1  ;;  %v2771_v1 = vld.sshfl [vmem:[%s4482_s0 + $0x18] sm:$0x13 pattern:$0x75316420] }
  0x9c   :  { %3196 = vmatprep.subr.bf16.mxu0 %v3541_v4  ;;  %v629_v4 = vcombine.high %v2771_v1, %v2771_v1 }
  0x9d   :  { %3217 = vmatpush3.bf16.msra.mxu1 %v3540_v5  ;;  %v3592_v5 = vld [vmem:[%s4483_s1 + $0x6a0] sm:$0xff]  }
  0x9e   :  { %3218 = vmatprep.subr.bf16.mxu1 %v3543_v8  ;;  %v643_v6 = vrot.slane %v629_v4, %v3791_v41  ;;  %v3596_v8 = vld [vmem:[%s4483_s1 + $0x670] sm:$0xff]  }
  0x9f   :  { %3197 = vmatpush3.bf16.msra.mxu0 %v3542_v9  ;;  %v3595_v9 = vld [vmem:[%s4483_s1 + $0x6a8] sm:$0xff]  }
  0xa0   :  { %3226 = vmatprep.subr.bf16.mxu0 %v3545_v12  ;;  %v3598_v12 = vld [vmem:[%s4483_s1 + $0x6b0] sm:$0xff]  }
  0xa1   :  { %3219 = vmatpush3.bf16.msra.mxu1 %v3544_v13 }
  0xa2   :  { %2321 = vmatmul.mubr.bf16.vlgmr.msra.gmra.mrb[16].mxu0 %v596_v11  ;;  %3248 = vmatprep.subr.bf16.mxu1 %v3547_v15  ;;  %v3599_v11 = vld [vmem:[%s4483_s1 + $0x678] sm:$0xff]  }
  0xa3   :  { %3227 = vmatpush3.bf16.msra.mxu0 %v3546_v16  ;;  %2400 = vmatprep.mubr.bf16.mxu0 %v617_v14 }
  0xa4   :  { %2361 = vmatmul.mubr.bf16.vlgmr.msra.gmra.mrb[16].mxu1 %v618_v17  ;;  %3228 = vmatprep.subr.bf16.mxu0 %v3549_v18 }
  0xa5   :  { %3249 = vmatpush3.bf16.msra.mxu1 %v3548_v19  ;;  %2440 = vmatprep.mubr.bf16.mxu1 %v621_v20 }
  0xa6   :  { %3250 = vmatprep.subr.bf16.mxu1 %v3551_v21 }
  0xa7   :  { %3229 = vmatpush3.bf16.msra.mxu0 %v3550_v22 }
  0xa8   :  { %3230 = vmatprep.subr.bf16.mxu0 %v3553_v23 }
  0xa9   :  { %3251 = vmatpush3.bf16.msra.mxu1 %v3552_v24 }
  0xaa   :  { %3252 = vmatprep.subr.bf16.mxu1 %v3555_v25 }
  0xab   :  { %3231 = vmatpush3.bf16.msra.mxu0 %v3554_v26 }
  0xac   :  { %3232 = vmatprep.subr.bf16.mxu0 %v3557_v27 }
  0xad   :  { %3253 = vmatpush3.bf16.msra.mxu1 %v3556_v28 }
  0xae   :  { %3254 = vmatprep.subr.bf16.mxu1 %v3559_v29 }
  0xaf   :  { %3233 = vmatpush3.bf16.msra.mxu0 %v3558_v30 }
  0xb0   :  { %3234 = vmatprep.subr.bf16.mxu0 %v3561_v31 }
  0xb1   :  { %3255 = vmatpush3.bf16.msra.mxu1 %v3560_v32 }
  0xb2   :  { %3256 = vmatprep.subr.bf16.mxu1 %v3563_v33 }
  0xb3   :  { %3235 = vmatpush3.bf16.msra.mxu0 %v3562_v34 }
  0xb4   :  { %3236 = vmatprep.subr.bf16.mxu0 %v3565_v35 }
  0xb5   :  { %3257 = vmatpush3.bf16.msra.mxu1 %v3564_v36 }
  0xb6   :  { %3258 = vmatprep.subr.bf16.mxu1 %v3567_v37 }
  0xb7   :  { %3237 = vmatpush3.bf16.msra.mxu0 %v3566_v38 }
  0xb8   :  { %3238 = vmatprep.subr.bf16.mxu0 %v3569_v39 }
  0xb9   :  { %3259 = vmatpush3.bf16.msra.mxu1 %v3568_v40 }
  0xba   :  { %3260 = vmatprep.subr.bf16.mxu1 %v3571_v42 }
  0xbb   :  { %3239 = vmatpush3.bf16.msra.mxu0 %v3570_v43 }
  0xbc   :  { %3240 = vmatprep.subr.bf16.mxu0 %v3573_v44 }
  0xbd   :  { %3261 = vmatpush3.bf16.msra.mxu1 %v3572_v45 }
  0xbe   :  { %3262 = vmatprep.subr.bf16.mxu1 %v3575_v46 }
  0xbf   :  { %3241 = vmatpush3.bf16.msra.mxu0 %v3574_v47 }
  0xc0   :  { %3270 = vmatprep.subr.bf16.mxu0 %v3578_v49 }
  0xc1   :  { %3263 = vmatpush3.bf16.msra.mxu1 %v3577_v50 }
  0xc2   :  { %2401 = vmatmul.mubr.bf16.vlgmr.msra.gmra.mrb[20].mxu0 %v603_v48  ;;  %3319 = vmatprep.subr.bf16.mxu1 %v3643_v55 }
  0xc3   :  { %3271 = vmatpush3.bf16.msra.mxu0 %v3579_v51  ;;  %2480 = vmatprep.mubr.bf16.mxu0 %v643_v6 }
  0xc4   :  { %2441 = vmatmul.mubr.bf16.vlgmr.msra.gmra.mrb[20].mxu1 %v619_v52  ;;  %3272 = vmatprep.subr.bf16.mxu0 %v3581_v53 }
  0xc5   :  { %3320 = vmatpush3.bf16.msra.mxu1 %v3580_v54  ;;  %3335 = vmatprep.mubr.msk.bf16.mxu1 %vm3644_vm0, %v3643_v55 }
  0xc6   :  { %3321 = vmatprep.subr.bf16.mxu1 %v3643_v55 }
  0xc7   :  { %3273 = vmatpush3.bf16.msra.mxu0 %v3582_v56 }
  0xc8   :  { %3274 = vmatprep.subr.bf16.mxu0 %v3584_v57 }
  0xc9   :  { %3322 = vmatpush3.bf16.msra.mxu1 %v3583_v58 }
  0xca   :  { %3323 = vmatprep.subr.bf16.mxu1 %v3643_v55 }
  0xcb   :  { %3275 = vmatpush3.bf16.msra.mxu0 %v3585_v59 }
  0xcc   :  { %3276 = vmatprep.subr.bf16.mxu0 %v3587_v60 }
  0xcd   :  { %3324 = vmatpush3.bf16.msra.mxu1 %v3586_v61 }
  0xce   :  { %3325 = vmatprep.subr.bf16.mxu1 %v3643_v55 }
  0xcf   :  { %3277 = vmatpush3.bf16.msra.mxu0 %v3588_v62 }
  0xd0   :  { %3278 = vmatprep.subr.bf16.mxu0 %v3590_v0 }
  0xd1   :  { %3326 = vmatpush3.bf16.msra.mxu1 %v3589_v63 }
  0xd2   :  { %3327 = vmatprep.subr.bf16.mxu1 %v3643_v55 }
  0xd3   :  { %3279 = vmatpush3.bf16.msra.mxu0 %v3591_v2 }
  0xd4   :  { %3280 = vmatprep.subr.bf16.mxu0 %v3593_v3 }
  0xd5   :  { %3328 = vmatpush3.bf16.msra.mxu1 %v3592_v5 }
  0xd6   :  { %3329 = vmatprep.subr.bf16.mxu1 %v3643_v55 }
  0xd7   :  { %3281 = vmatpush3.bf16.msra.mxu0 %v3594_v7 }
  0xd8   :  { %3282 = vmatprep.subr.bf16.mxu0 %v3596_v8 }
  0xd9   :  { %3330 = vmatpush3.bf16.msra.mxu1 %v3595_v9 }
  0xda   :  { %12 = vsyncpa [#allocation3], 0  ;;  %3331 = vmatprep.subr.bf16.mxu1 %v3643_v55  ;;  %v3600_v13 = vld [vmem:[%s4483_s1 + $0x638] sm:$0xff]   ;;  %v636_v14 = vrot.slane %v2771_v1, %v3791_v41  ;;  %v2770_v17 = vld [vmem:[%s4484_s2] ss:$0 sm:$0xff]  ;;  %s3645_s11 = smov [#allocation2]  }
  0xdb   :  { %3283 = vmatpush3.bf16.msra.mxu0 %v3597_v10  ;;  %v3601_v15 = vld [vmem:[%s4483_s1 + $0x6b8] sm:$0xff]   ;;  %v3602_v42 = vld [vmem:[%s4485_s3] sm:$0xff]   ;;  %v3603_v43 = vld [vmem:[%s4485_s3 + $0x8] sm:$0xff]  }
  0xdc   :  { %3284 = vmatprep.subr.bf16.mxu0 %v3599_v11  ;;  %v644_v16 = vcombine.high %v636_v14, %v636_v14  ;;  %v3604_v44 = vld [vmem:[%s4485_s3 + $0x10] sm:$0xff]   ;;  %v3605_v45 = vld [vmem:[%s4485_s3 + $0x18] sm:$0xff]   ;;  %v3606_v46 = vld [vmem:[%s4485_s3 + $0x20] sm:$0xff]  }
  0xdd   :  { %3332 = vmatpush3.bf16.msra.mxu1 %v3598_v12  ;;  %v3607_v47 = vld [vmem:[%s4485_s3 + $0x28] sm:$0xff]   ;;  %v3608_v56 = vld [vmem:[%s4485_s3 + $0x30] sm:$0xff]   ;;  %v3609_v62 = vld [vmem:[%s4485_s3 + $0x38] sm:$0xff]  }
  0xde   :  { %3333 = vmatprep.subr.bf16.mxu1 %v3643_v55  ;;  %v3610_v63 = vld [vmem:[%s4487_s5] sm:$0xff]   ;;  %v3611_v0 = vld [vmem:[%s4487_s5 + $0x8] sm:$0xff]   ;;  %v3612_v1 = vld [vmem:[%s4487_s5 + $0x10] sm:$0xff]  }
  0xdf   :  { %3285 = vmatpush3.bf16.msra.mxu0 %v3600_v13  ;;  %v3613_v2 = vld [vmem:[%s4487_s5 + $0x18] sm:$0xff]   ;;  %v3614_v3 = vld [vmem:[%s4487_s5 + $0x20] sm:$0xff]   ;;  %v3615_v4 = vld [vmem:[%s4487_s5 + $0x28] sm:$0xff]  }
  0xe0   :  { %3339 = vmatprep.subr.bf16.mxu0 %v3643_v55 }
  0xe1   :  { %3334 = vmatpush3.bf16.msra.mxu1 %v3601_v15 }
  0xe2   :  { %2481 = vmatmul.mubr.bf16.vlgmr.msra.gmra.mrb[24].mxu0 %v636_v14  ;;  %3359 = vmatprep.subr.bf16.mxu1 %v3643_v55 }
  0xe3   :  { %3355 = vmatprep.mubr.msk.bf16.mxu0 %vm3644_vm0, %v3643_v55  ;;  %3340 = vmatpush3.bf16.msra.mxu0 %v3602_v42 }
  0xe4   :  { %3336 = vmatmul.mubr.bf16.vlgmr.msra.gmra.mrb[24].mxu1 %v644_v16  ;;  %3341 = vmatprep.subr.bf16.mxu0 %v3643_v55 }
  0xe5   :  { %3375 = vmatprep.mubr.msk.bf16.mxu1 %vm3644_vm0, %v3643_v55  ;;  %3360 = vmatpush3.bf16.msra.mxu1 %v3610_v63 }
  0xe6   :  { %3361 = vmatprep.subr.bf16.mxu1 %v3643_v55 }
  0xe7   :  { %3342 = vmatpush3.bf16.msra.mxu0 %v3603_v43 }
  0xe8   :  { %3343 = vmatprep.subr.bf16.mxu0 %v3643_v55 }
  0xe9   :  { %3362 = vmatpush3.bf16.msra.mxu1 %v3611_v0 }
  0xea   :  { %3363 = vmatprep.subr.bf16.mxu1 %v3643_v55 }
  0xeb   :  { %3344 = vmatpush3.bf16.msra.mxu0 %v3604_v44 }
  0xec   :  { %3345 = vmatprep.subr.bf16.mxu0 %v3643_v55 }
  0xed   :  { %3364 = vmatpush3.bf16.msra.mxu1 %v3612_v1 }
  0xee   :  { %3365 = vmatprep.subr.bf16.mxu1 %v3643_v55 }
  0xef   :  { %3346 = vmatpush3.bf16.msra.mxu0 %v3605_v45 }
  0xf0   :  { %3347 = vmatprep.subr.bf16.mxu0 %v3643_v55 }
  0xf1   :  { %3366 = vmatpush3.bf16.msra.mxu1 %v3613_v2 }
  0xf2   :  { %3367 = vmatprep.subr.bf16.mxu1 %v3643_v55 }
  0xf3   :  { %3348 = vmatpush3.bf16.msra.mxu0 %v3606_v46 }
  0xf4   :  { %3349 = vmatprep.subr.bf16.mxu0 %v3643_v55 }
  0xf5   :  { %v3022_v41 = vpop.f32.mrb[0].mxu0  ;;  %3368 = vmatpush3.bf16.msra.mxu1 %v3614_v3 }
  0xf6   :  { %v3023_v18 = vpop.f32.mrb[1].mxu0  ;;  %3369 = vmatprep.subr.bf16.mxu1 %v3643_v55 }
  0xf7   :  { %v3024_v19 = vadd.f32 %v3023_v18, %v3022_v41  ;;  %v3025_v20 = vpop.f32.mrb[2].mxu0  ;;  %v3044_v21 = vpop.f32.mrb[0].mxu1  ;;  %3350 = vmatpush3.bf16.msra.mxu0 %v3607_v47 }
  0xf8   :  { %v3026_v22 = vpop.f32.mrb[3].mxu0  ;;  %v3045_v23 = vpop.f32.mrb[1].mxu1  ;;  %3351 = vmatprep.subr.bf16.mxu0 %v3643_v55 }
  0xf9   :  { %v2003_v24 = vadd.f32 %v3024_v19, %v2770_v17  ;;  %v3046_v25 = vadd.f32 %v3045_v23, %v3044_v21  ;;  %v3047_v26 = vpop.f32.mrb[2].mxu1  ;;  %3370 = vmatpush3.bf16.msra.mxu1 %v3615_v4 }
  0xfa   :  { %v3048_v27 = vpop.f32.mrb[3].mxu1  ;;  %3371 = vmatprep.subr.bf16.mxu1 %v3643_v55 }
  0xfb   :  { %v2043_v28 = vadd.f32 %v3046_v25, %v2003_v24  ;;  %3352 = vmatpush3.bf16.msra.mxu0 %v3608_v56  ;;  %v3617_v56 = vld [vmem:[%s4487_s5 + $0x38] sm:$0xff]  }
  0xfc   :  { %3353 = vmatprep.subr.bf16.mxu0 %v3643_v55 }
  0xff   :  { %3354 = vmatpush3.bf16.msra.mxu0 %v3609_v62 }
 0x115   :  { %v3066_v29 = vpop.f32.mrb[4].mxu0 }
 0x116   :  { %v3067_v30 = vpop.f32.mrb[5].mxu0 }
 0x117   :  { %v3068_v31 = vadd.f32 %v3067_v30, %v3066_v29  ;;  %v3069_v32 = vpop.f32.mrb[6].mxu0  ;;  %v3088_v33 = vpop.f32.mrb[4].mxu1 }
 0x118   :  { %v3070_v34 = vpop.f32.mrb[7].mxu0  ;;  %v3089_v35 = vpop.f32.mrb[5].mxu1 }
 0x119   :  { %v2083_v36 = vadd.f32 %v3068_v31, %v2043_v28  ;;  %v3090_v37 = vadd.f32 %v3089_v35, %v3088_v33  ;;  %v3091_v38 = vpop.f32.mrb[6].mxu1 }
 0x11a   :  { %v3092_v39 = vpop.f32.mrb[7].mxu1 }
 0x11b   :  { %v2123_v40 = vadd.f32 %v3090_v37, %v2083_v36 }
 0x135   :  { %v3110_v48 = vpop.f32.mrb[8].mxu0 }
 0x136   :  { %v3111_v49 = vpop.f32.mrb[9].mxu0 }
 0x137   :  { %v3112_v50 = vadd.f32 %v3111_v49, %v3110_v48  ;;  %v3113_v51 = vpop.f32.mrb[10].mxu0  ;;  %v3132_v52 = vpop.f32.mrb[8].mxu1 }
 0x138   :  { %v3114_v53 = vpop.f32.mrb[11].mxu0  ;;  %v3133_v54 = vpop.f32.mrb[9].mxu1 }
 0x139   :  { %v2163_v57 = vadd.f32 %v3112_v50, %v2123_v40  ;;  %v3134_v58 = vadd.f32 %v3133_v54, %v3132_v52  ;;  %v3135_v59 = vpop.f32.mrb[10].mxu1  ;;  %v3616_v54 = vld [vmem:[%s4487_s5 + $0x30] sm:$0xff]   ;;  %s2762_s5 = sshll.u32 %s3645_s11, 4  ;;  %s2763_s5 = int_to_ptr.vmem [resolvable:$true] %s2762_s5 }
 0x13a   :  { %v3136_v60 = vpop.f32.mrb[11].mxu1  ;;  %3372 = vmatpush3.bf16.msra.mxu1 %v3616_v54  ;;  %p3623_p1 = scmp.lt.s32.totalorder %s2763_s5, %s2763_s5 }
 0x13b   :  { %v2203_v61 = vadd.f32 %v3134_v58, %v2163_v57  ;;  %3373 = vmatprep.subr.bf16.mxu1 %v3643_v55  ;;  %v2988_v57 = vld [vmem:[%s4486_s4] ss:$0 sm:$0xff]  ;;  %s3618_s4 = scalar_lea.vmem %s2763_s5, 32 }
 0x13c   :  { %v2997_v55 = vld [vmem:[%s4488_s6] ss:$0 sm:$0xff]  ;;  %p3619_p0 = scmp.ne.s32.totalorder %s2763_s5, %s3618_s4  ;;  %p3624_p2 = scmp.lt.s32.totalorder %s3618_s4, %s3618_s4 }
 0x13e   :  { %3374 = vmatpush3.bf16.msra.mxu1 %v3617_v56  ;;  %p3625_p3 = por %p3624_p2, %p3623_p1 }
 0x140   :  { %p3626_p4 = pnand %p3625_p3, %p3619_p0 }
 0x155   :  { %v3154_v5 = vpop.f32.mrb[12].mxu0 }
 0x156   :  { %v3155_v6 = vpop.f32.mrb[13].mxu0 }
 0x157   :  { %v3156_v7 = vadd.f32 %v3155_v6, %v3154_v5  ;;  %v3157_v8 = vpop.f32.mrb[14].mxu0  ;;  %v3176_v9 = vpop.f32.mrb[12].mxu1 }
 0x158   :  { %v3158_v10 = vpop.f32.mrb[15].mxu0  ;;  %v3177_v11 = vpop.f32.mrb[13].mxu1 }
 0x159   :  { %v2243_v12 = vadd.f32 %v3156_v7, %v2203_v61  ;;  %v3178_v13 = vadd.f32 %v3177_v11, %v3176_v9  ;;  %v3179_v14 = vpop.f32.mrb[14].mxu1 }
 0x15a   :  { %v3180_v15 = vpop.f32.mrb[15].mxu1 }
 0x15b   :  { %v2283_v16 = vadd.f32 %v3178_v13, %v2243_v12 }
 0x175   :  { %v3198_v41 = vpop.f32.mrb[16].mxu0 }
 0x176   :  { %v3199_v17 = vpop.f32.mrb[17].mxu0 }
 0x177   :  { %v3200_v18 = vadd.f32 %v3199_v17, %v3198_v41  ;;  %v3201_v19 = vpop.f32.mrb[18].mxu0  ;;  %v3220_v20 = vpop.f32.mrb[16].mxu1 }
 0x178   :  { %v3202_v21 = vpop.f32.mrb[19].mxu0  ;;  %v3221_v22 = vpop.f32.mrb[17].mxu1 }
 0x179   :  { %v2323_v23 = vadd.f32 %v3200_v18, %v2283_v16  ;;  %v3222_v24 = vadd.f32 %v3221_v22, %v3220_v20  ;;  %v3223_v25 = vpop.f32.mrb[18].mxu1 }
 0x17a   :  { %v3224_v26 = vpop.f32.mrb[19].mxu1 }
 0x17b   :  { %v2363_v27 = vadd.f32 %v3222_v24, %v2323_v23 }
 0x195   :  { %v3242_v28 = vpop.f32.mrb[20].mxu0 }
 0x196   :  { %v3243_v29 = vpop.f32.mrb[21].mxu0 }
 0x197   :  { %v3244_v30 = vadd.f32 %v3243_v29, %v3242_v28  ;;  %v3245_v31 = vpop.f32.mrb[22].mxu0  ;;  %v3264_v32 = vpop.f32.mrb[20].mxu1 }
 0x198   :  { %v3246_v33 = vpop.f32.mrb[23].mxu0  ;;  %v3265_v34 = vpop.f32.mrb[21].mxu1 }
 0x199   :  { %v2403_v35 = vadd.f32 %v3244_v30, %v2363_v27  ;;  %v3266_v36 = vadd.f32 %v3265_v34, %v3264_v32  ;;  %v3267_v37 = vpop.f32.mrb[22].mxu1 }
 0x19a   :  { %v3268_v38 = vpop.f32.mrb[23].mxu1 }
 0x19b   :  { %v2443_v39 = vadd.f32 %v3266_v36, %v2403_v35 }
 0x1b5   :  { %v3286_v40 = vpop.f32.mrb[24].mxu0 }
 0x1b6   :  { %v3287_v42 = vpop.f32.mrb[25].mxu0 }
 0x1b7   :  { %v3288_v43 = vadd.f32 %v3287_v42, %v3286_v40  ;;  %v3289_v44 = vpop.f32.mrb[26].mxu0  ;;  %v2522_v45 = vpop.f32.mrb[24].mxu1 }
 0x1b8   :  { %v3290_v46 = vpop.f32.mrb[27].mxu0  ;;  %v3337_v47 = vpop.f32.mrb[25].mxu1 }
 0x1b9   :  { %v2483_v48 = vadd.f32 %v3288_v43, %v2443_v39  ;;  %v2525_v49 = vpop.f32.mrb[26].mxu1 }
 0x1ba   :  { %v3338_v50 = vpop.f32.mrb[27].mxu1 }
 0x1bb   :  { %v2523_v51 = vadd.f32 %v2522_v45, %v2483_v48 }
 0x1bd   :  { %v2528_v52 = vmax.f32 %v2523_v51, 0.0 }
 0x1bf   :  { %v2529_v53 = vpack.c.bf16 %v2528_v52, %v2528_v52 }
 0x1c1   :  { %3356 = vmatmul.mubr.bf16.vlgmr.msra.gmra.mrb[28].mxu0 %v2529_v53 }
 0x294   :  { %v2635_v58 = vpop.f32.mrb[28].mxu0 }
 0x295   :  { %v2636_v59 = vadd.f32 %v2988_v57, %v2635_v58  ;;  %v3357_v60 = vpop.f32.mrb[29].mxu0 }
 0x296   :  { %v2638_v61 = vpop.f32.mrb[30].mxu0 }
 0x297   :  { %v2641_v62 = vmax.f32 %v2636_v59, 0.0  ;;  %v3358_v63 = vpop.f32.mrb[31].mxu0 }
 0x299   :  { %v2642_v0 = vpack.c.bf16 %v2641_v62, %v2641_v62 }
 0x29b   :  { %3376 = vmatmul.mubr.bf16.vlgmr.msra.gmra.mrb[28].mxu1 %v2642_v0 }
 0x36e   :  { %v2748_v1 = vpop.f32.mrb[28].mxu1 }
 0x36f   :  { %v2749_v2 = vadd.f32 %v2997_v55, %v2748_v1  ;;  %v3377_v3 = vpop.f32.mrb[29].mxu1 }
 0x370   :  { %v2751_v4 = vpop.f32.mrb[30].mxu1 }
 0x371   :  { %v2754_v5 = vmax.f32 %v2749_v2, 0.0  ;;  %v3378_v6 = vpop.f32.mrb[31].mxu1 }
 0x373   :  { %2755 = vst [vmem:[#allocation2] sm:$0x3] %v2754_v5 }
 0x374   :  { %3629 = shalt.err (!%p3626_p4)
}
 0x375   :  { %s3630_s6 = scalar_lea.hbm %s4489_s7, 32 }
 0x376   :  { %p3631_p5 = scmp.ne.s32.totalorder %s4489_s7, %s3630_s6  ;;  %p3634_p6 = scmp.lt.u32.totalorder %s3630_s6, %s4489_s7 }
 0x378   :  { %p3636_p7 = pnand %p3634_p6, %p3631_p5 }
 0x37a   :  { %3639 = shalt.err (!%p3636_p7)
}
 0x37b   :  { %2765 = dma.vmem_to_hbm [thread:$0]  %s2763_s5, 32, %s4489_s7, [#allocation3]  }
 0x37c   :  { %3640 = dma.done.wait [#allocation3], 32  }
 0x37d   :  { %3641 = vsyncadd [#allocation3], 4294967264 }
 0x37e   :  { %2769 = vsyncpa [#allocation3], 1 }

// kernel: nin_forward.11
= control target key start
LH: loop header
LB: loop body
LE: loop exit
PB: predicated region body
PF: predicated region fallthrough
CT: control target
= control target key end

     0   :  { %s9468_s1 = inlined_call_operand.vmem [shape: bf16[2304,384], index: 1, kind: input, shape index: {}]   ;;  %s9469_s0 = inlined_call_operand.vmem [shape: bf16[18,2304], index: 0, kind: input, shape index: {}]   ;;  %s9470_s2 = inlined_call_operand.vmem [shape: f32[1,384], index: 2, kind: input, shape index: {}]   ;;  %s9471_s3 = inlined_call_operand.vmem [shape: bf16[384,384], index: 3, kind: input, shape index: {}]   ;;  %s9472_s5 = inlined_call_operand.vmem [shape: bf16[384,384], index: 5, kind: input, shape index: {}]   ;;  %s9473_s4 = inlined_call_operand.vmem [shape: f32[1,384], index: 4, kind: input, shape index: {}]   ;;  %s9474_s6 = inlined_call_operand.vmem [shape: f32[1,384], index: 6, kind: input, shape index: {}]   ;;  %s9475_s7 = inlined_call_operand.vmem [shape: bf16[18,384], index: 7, kind: output, shape index: {}]  }
   0x1   :  { %v6558_v0 = vld [vmem:[%s9468_s1 + $0x4] ss:$12 sps:$4 sm:$0xff]   ;;  %v6560_v1 = vld [vmem:[%s9468_s1] ss:$12 sps:$4 sm:$0xff]   ;;  %v6561_v2 = vld [vmem:[%s9468_s1 + $0x1c] ss:$12 sps:$4 sm:$0xff]  }
   0x2   :  { %3104 = vmatprep.subr.bf16.mxu0 %v6558_v0  ;;  %v6563_v3 = vld [vmem:[%s9468_s1 + $0x18] ss:$12 sps:$4 sm:$0xff]   ;;  %v6564_v4 = vld [vmem:[%s9468_s1 + $0x34] ss:$12 sps:$4 sm:$0xff]   ;;  %v6566_v5 = vld [vmem:[%s9468_s1 + $0x30] ss:$12 sps:$4 sm:$0xff]  }
   0x3   :  { %3105 = vmatpush1.bf16.msra.mxu0 %v6560_v1  ;;  %v6567_v6 = vld [vmem:[%s9468_s1 + $0x4c] ss:$12 sps:$4 sm:$0xff]   ;;  %v6569_v7 = vld [vmem:[%s9468_s1 + $0x48] ss:$12 sps:$4 sm:$0xff]   ;;  %v6570_v8 = vld [vmem:[%s9468_s1 + $0x64] ss:$12 sps:$4 sm:$0xff]  }
   0x4   :  { %3106 = vmatprep.subr.bf16.mxu0 %v6561_v2  ;;  %v6572_v9 = vld [vmem:[%s9468_s1 + $0x60] ss:$12 sps:$4 sm:$0xff]   ;;  %v6573_v10 = vld [vmem:[%s9468_s1 + $0x7c] ss:$12 sps:$4 sm:$0xff]   ;;  %v6575_v11 = vld [vmem:[%s9468_s1 + $0x78] ss:$12 sps:$4 sm:$0xff]  }
   0x5   :  { %v6576_v12 = vld [vmem:[%s9468_s1 + $0x94] ss:$12 sps:$4 sm:$0xff]   ;;  %v6608_v13 = vld [vmem:[%s9469_s0 + $0x4] ss:$72 sps:$4 sm:$0xff]   ;;  %v6578_v14 = vld [vmem:[%s9468_s1 + $0x90] ss:$12 sps:$4 sm:$0xff]  }
   0x6   :  { %v6579_v15 = vld [vmem:[%s9468_s1 + $0xac] ss:$12 sps:$4 sm:$0xff]   ;;  %3136 = vmatprep.mubr.bf16.mxu0 %v6608_v13  ;;  %3595 = vmatprep.mubr.bf16.mxu1 %v6608_v13  ;;  %v6581_v16 = vld [vmem:[%s9468_s1 + $0xa8] ss:$12 sps:$4 sm:$0xff]   ;;  %v6582_v17 = vld [vmem:[%s9468_s1 + $0xc4] ss:$12 sps:$4 sm:$0xff]  }
   0x7   :  { %3107 = vmatpush1.bf16.msra.mxu0 %v6563_v3  ;;  %v6621_v18 = vld [vmem:[%s9468_s1 + $0xc8] ss:$12 sps:$4 sm:$0xff]   ;;  %v6584_v20 = vld [vmem:[%s9468_s1 + $0xc0] ss:$12 sps:$4 sm:$0xff]   ;;  %v6587_v24 = vld [vmem:[%s9468_s1 + $0xd8] ss:$12 sps:$4 sm:$0xff]  }
   0x8   :  { %3108 = vmatprep.subr.bf16.mxu0 %v6564_v4  ;;  %v6622_v19 = vld [vmem:[%s9468_s1 + $0x8] ss:$12 sps:$4 sm:$0xff]   ;;  %6091 = vmatprep.subr.bf16.mxu1 %v6621_v18  ;;  %v6626_v22 = vld [vmem:[%s9468_s1 + $0xe0] ss:$12 sps:$4 sm:$0xff]   ;;  %v6631_v26 = vld [vmem:[%s9468_s1 + $0xf8] ss:$12 sps:$4 sm:$0xff]  }
   0x9   :  { %v6585_v21 = vld [vmem:[%s9468_s1 + $0xdc] ss:$12 sps:$4 sm:$0xff]   ;;  %6092 = vmatpush3.bf16.msra.mxu1 %v6622_v19  ;;  %v6627_v23 = vld [vmem:[%s9468_s1 + $0x20] ss:$12 sps:$4 sm:$0xff]   ;;  %v6632_v27 = vld [vmem:[%s9468_s1 + $0x38] ss:$12 sps:$4 sm:$0xff]  }
   0xa   :  { %v6588_v25 = vld [vmem:[%s9468_s1 + $0xf4] ss:$12 sps:$4 sm:$0xff]   ;;  %6093 = vmatprep.subr.bf16.mxu1 %v6626_v22  ;;  %v6590_v28 = vld [vmem:[%s9468_s1 + $0xf0] ss:$12 sps:$4 sm:$0xff]   ;;  %v6591_v31 = vld [vmem:[%s9468_s1 + $0x10c] ss:$12 sps:$4 sm:$0xff]  }
   0xb   :  { %3109 = vmatpush1.bf16.msra.mxu0 %v6566_v5  ;;  %v6636_v29 = vld [vmem:[%s9468_s1 + $0x110] ss:$12 sps:$4 sm:$0xff]   ;;  %v6593_v32 = vld [vmem:[%s9468_s1 + $0x108] ss:$12 sps:$4 sm:$0xff]   ;;  %v6646_v36 = vld [vmem:[%s9468_s1 + $0x140] ss:$12 sps:$4 sm:$0xff]  }
   0xc   :  { %3110 = vmatprep.subr.bf16.mxu0 %v6567_v6  ;;  %v6637_v30 = vld [vmem:[%s9468_s1 + $0x50] ss:$12 sps:$4 sm:$0xff]   ;;  %v6641_v33 = vld [vmem:[%s9468_s1 + $0x128] ss:$12 sps:$4 sm:$0xff]   ;;  %v6596_v37 = vld [vmem:[%s9468_s1 + $0x120] ss:$12 sps:$4 sm:$0xff]  }
   0xd   :  { %6094 = vmatpush3.bf16.msra.mxu1 %v6627_v23  ;;  %v6642_v34 = vld [vmem:[%s9468_s1 + $0x68] ss:$12 sps:$4 sm:$0xff]   ;;  %v6594_v35 = vld [vmem:[%s9468_s1 + $0x124] ss:$12 sps:$4 sm:$0xff]   ;;  %v6647_v39 = vld [vmem:[%s9468_s1 + $0x80] ss:$12 sps:$4 sm:$0xff]  }
   0xe   :  { %6095 = vmatprep.subr.bf16.mxu1 %v6631_v26  ;;  %v6597_v38 = vld [vmem:[%s9468_s1 + $0x13c] ss:$12 sps:$4 sm:$0xff]   ;;  %v6651_v40 = vld [vmem:[%s9468_s1 + $0x158] ss:$12 sps:$4 sm:$0xff]   ;;  %v6600_v42 = vld [vmem:[%s9468_s1 + $0x154] ss:$12 sps:$4 sm:$0xff]  }
   0xf   :  { %3111 = vmatpush1.bf16.msra.mxu0 %v6569_v7  ;;  %v6599_v41 = vld [vmem:[%s9468_s1 + $0x138] ss:$12 sps:$4 sm:$0xff]   ;;  %v6656_v44 = vld [vmem:[%s9468_s1 + $0x170] ss:$12 sps:$4 sm:$0xff]   ;;  %v6661_v48 = vld [vmem:[%s9468_s1 + $0x248] ss:$12 sps:$4 sm:$0xff]  }
  0x10   :  { %3112 = vmatprep.subr.bf16.mxu0 %v6570_v8  ;;  %v6652_v43 = vld [vmem:[%s9468_s1 + $0x98] ss:$12 sps:$4 sm:$0xff]   ;;  %v6602_v45 = vld [vmem:[%s9468_s1 + $0x150] ss:$12 sps:$4 sm:$0xff]   ;;  %v6605_v49 = vld [vmem:[%s9468_s1 + $0x168] ss:$12 sps:$4 sm:$0xff]  }
  0x11   :  { %6096 = vmatpush3.bf16.msra.mxu1 %v6632_v27  ;;  %v6603_v46 = vld [vmem:[%s9468_s1 + $0x16c] ss:$12 sps:$4 sm:$0xff]   ;;  %v6657_v47 = vld [vmem:[%s9468_s1 + $0xb0] ss:$12 sps:$4 sm:$0xff]   ;;  %v6606_v50 = vld [vmem:[%s9469_s0] ss:$72 sps:$4 sm:$0xff]  }
  0x12   :  { %6097 = vmatprep.subr.bf16.mxu1 %v6636_v29  ;;  %v6611_v51 = vld [vmem:[%s9468_s1 + $0x184] ss:$12 sps:$4 sm:$0xff]   ;;  %v6662_v52 = vld [vmem:[%s9468_s1 + $0x188] ss:$12 sps:$4 sm:$0xff]   ;;  %v6666_v53 = vld [vmem:[%s9468_s1 + $0x260] ss:$12 sps:$4 sm:$0xff]  }
  0x13   :  { %3113 = vmatpush1.bf16.msra.mxu0 %v6572_v9  ;;  %v6609_v54 = vld [vmem:[%s9468_s1 + $0x180] ss:$12 sps:$4 sm:$0xff]   ;;  %v45_v56 = vld [vmem:[%s9469_s0 + $0x90] sm:$0x11]  ;;  %v6614_v57 = vld [vmem:[%s9468_s1 + $0x19c] ss:$12 sps:$4 sm:$0xff]  }
  0x14   :  { %3114 = vmatprep.subr.bf16.mxu0 %v6573_v10  ;;  %v6667_v55 = vld [vmem:[%s9468_s1 + $0x1a0] ss:$12 sps:$4 sm:$0xff]   ;;  %v6671_v58 = vld [vmem:[%s9468_s1 + $0x278] ss:$12 sps:$4 sm:$0xff]   ;;  %v5486_v59 = vcombine.high %v45_v56, %v45_v56  ;;  %v5485_v63 = vcombine.low %v45_v56, %v45_v56  ;;  %v6678_v0 = vld [vmem:[%s9468_s1 + $0x290] ss:$12 sps:$4 sm:$0xff]  }
  0x15   :  { %6098 = vmatpush3.bf16.msra.mxu1 %v6637_v30  ;;  %v6612_v60 = vld [vmem:[%s9468_s1 + $0x198] ss:$12 sps:$4 sm:$0xff]   ;;  %v6617_v61 = vld [vmem:[%s9468_s1 + $0x1b4] ss:$12 sps:$4 sm:$0xff]   ;;  %v6615_v1 = vld [vmem:[%s9468_s1 + $0x1b0] ss:$12 sps:$4 sm:$0xff]  }
  0x16   :  { %6099 = vmatprep.subr.bf16.mxu1 %v6641_v33  ;;  %v6672_v62 = vld [vmem:[%s9468_s1 + $0x1b8] ss:$12 sps:$4 sm:$0xff]   ;;  %v6679_v2 = vld [vmem:[%s9468_s1 + $0x1d0] ss:$12 sps:$4 sm:$0xff]   ;;  %v6687_v3 = vld [vmem:[%s9469_s0 + $0xc] ss:$72 sps:$4 sm:$0xff]  }
  0x17   :  { %3115 = vmatpush1.bf16.msra.mxu0 %v6575_v11  ;;  %v6620_v4 = vld [vmem:[%s9468_s1 + $0x1cc] ss:$12 sps:$4 sm:$0xff]   ;;  %v6683_v5 = vld [vmem:[%s9468_s1 + $0x2a8] ss:$12 sps:$4 sm:$0xff]   ;;  %v6625_v7 = vld [vmem:[%s9468_s1 + $0x1e4] ss:$12 sps:$4 sm:$0xff]  }
  0x18   :  { %3116 = vmatprep.subr.bf16.mxu0 %v6576_v12  ;;  %v6618_v6 = vld [vmem:[%s9468_s1 + $0x1c8] ss:$12 sps:$4 sm:$0xff]   ;;  %v6691_v9 = vld [vmem:[%s9468_s1 + $0x2c0] ss:$12 sps:$4 sm:$0xff]   ;;  %v6696_v13 = vld [vmem:[%s9468_s1 + $0x2d8] ss:$12 sps:$4 sm:$0xff]  }
  0x19   :  { %6100 = vmatpush3.bf16.msra.mxu1 %v6642_v34  ;;  %v6684_v8 = vld [vmem:[%s9468_s1 + $0x1e8] ss:$12 sps:$4 sm:$0xff]   ;;  %v6623_v10 = vld [vmem:[%s9468_s1 + $0x1e0] ss:$12 sps:$4 sm:$0xff]   ;;  %v6633_v18 = vld [vmem:[%s9468_s1 + $0x210] ss:$12 sps:$4 sm:$0xff]  }
  0x1a   :  { %6101 = vmatprep.subr.bf16.mxu1 %v6646_v36  ;;  %v6630_v11 = vld [vmem:[%s9468_s1 + $0x1fc] ss:$12 sps:$4 sm:$0xff]   ;;  %v6692_v12 = vld [vmem:[%s9468_s1 + $0x200] ss:$12 sps:$4 sm:$0xff]   ;;  %v6645_v23 = vld [vmem:[%s9468_s1 + $0x244] ss:$12 sps:$4 sm:$0xff]  }
  0x1b   :  { %3117 = vmatpush1.bf16.msra.mxu0 %v6578_v14  ;;  %v6628_v14 = vld [vmem:[%s9468_s1 + $0x1f8] ss:$12 sps:$4 sm:$0xff]   ;;  %v6638_v22 = vld [vmem:[%s9468_s1 + $0x228] ss:$12 sps:$4 sm:$0xff]   ;;  %v6711_v26 = vld [vmem:[%s9468_s1 + $0x3e0] ss:$12 sps:$4 sm:$0xff]  }
  0x1c   :  { %3118 = vmatprep.subr.bf16.mxu0 %v6579_v15  ;;  %v6635_v15 = vld [vmem:[%s9468_s1 + $0x214] ss:$12 sps:$4 sm:$0xff]   ;;  %v6640_v19 = vld [vmem:[%s9468_s1 + $0x22c] ss:$12 sps:$4 sm:$0xff]   ;;  %v6721_v34 = vld [vmem:[%s9468_s1 + $0x410] ss:$12 sps:$4 sm:$0xff]  }
  0x1d   :  { %6102 = vmatpush3.bf16.msra.mxu1 %v6647_v39  ;;  %v6643_v27 = vld [vmem:[%s9468_s1 + $0x240] ss:$12 sps:$4 sm:$0xff]   ;;  %v6716_v30 = vld [vmem:[%s9468_s1 + $0x3f8] ss:$12 sps:$4 sm:$0xff]   ;;  %v6726_v39 = vld [vmem:[%s9468_s1 + $0x428] ss:$12 sps:$4 sm:$0xff]  }
  0x1e   :  { %6103 = vmatprep.subr.bf16.mxu1 %v6651_v40  ;;  %v6712_v29 = vld [vmem:[%s9468_s1 + $0x320] ss:$12 sps:$4 sm:$0xff]   ;;  %v6717_v33 = vld [vmem:[%s9468_s1 + $0x338] ss:$12 sps:$4 sm:$0xff]  }
  0x1f   :  { %3119 = vmatpush1.bf16.msra.mxu0 %v6581_v16  ;;  %v6697_v16 = vld [vmem:[%s9468_s1 + $0x218] ss:$12 sps:$4 sm:$0xff]  }
  0x20   :  { %3120 = vmatprep.subr.bf16.mxu0 %v6582_v17  ;;  %v6701_v17 = vld [vmem:[%s9468_s1 + $0x2f0] ss:$12 sps:$4 sm:$0xff]   ;;  %v6660_v36 = vld [vmem:[%s9468_s1 + $0x28c] ss:$12 sps:$4 sm:$0xff]  }
  0x21   :  { %6104 = vmatpush3.bf16.msra.mxu1 %v6652_v43  ;;  %v6665_v43 = vld [vmem:[%s9468_s1 + $0x2a4] ss:$12 sps:$4 sm:$0xff]   ;;  %v6682_v56 = vld [vmem:[%s9468_s1 + $0x2ec] ss:$12 sps:$4 sm:$0xff]  }
  0x22   :  { %6105 = vmatprep.subr.bf16.mxu1 %v6656_v44  ;;  %v6727_v44 = vld [vmem:[%s9468_s1 + $0x368] ss:$12 sps:$4 sm:$0xff]  }
  0x23   :  { %3121 = vmatpush1.bf16.msra.mxu0 %v6584_v20  ;;  %v6702_v20 = vld [vmem:[%s9468_s1 + $0x230] ss:$12 sps:$4 sm:$0xff]  }
  0x24   :  { %3122 = vmatprep.subr.bf16.mxu0 %v6585_v21  ;;  %v6706_v21 = vld [vmem:[%s9468_s1 + $0x3c8] ss:$12 sps:$4 sm:$0xff]  }
  0x25   :  { %6106 = vmatpush3.bf16.msra.mxu1 %v6657_v47  ;;  %v6670_v47 = vld [vmem:[%s9468_s1 + $0x2bc] ss:$12 sps:$4 sm:$0xff]  }
  0x26   :  { %6119 = vmatprep.subr.bf16.mxu1 %v6661_v48  ;;  %v6732_v48 = vld [vmem:[%s9468_s1 + $0x380] ss:$12 sps:$4 sm:$0xff]  }
  0x27   :  { %3123 = vmatpush1.bf16.msra.mxu0 %v6587_v24  ;;  %v6707_v24 = vld [vmem:[%s9468_s1 + $0x308] ss:$12 sps:$4 sm:$0xff]  }
  0x28   :  { %3124 = vmatprep.subr.bf16.mxu0 %v6588_v25  ;;  %3596 = vmatmul.mubr.bf16.vlgmr.msra.gmra.mrb[0].mxu1 %v6606_v50  ;;  %v7685_v25 = vld [vmem:[%s9469_s0 + $0x8] ss:$72 sps:$4 sm:$0xff]  }
  0x29   :  { %6120 = vmatpush3.bf16.msra.mxu1 %v6662_v52  ;;  %3603 = vmatprep.mubr.bf16.mxu1 %v5486_v59  ;;  %v6676_v52 = vld [vmem:[%s9468_s1 + $0x2d4] ss:$12 sps:$4 sm:$0xff]  }
  0x2a   :  { %6121 = vmatprep.subr.bf16.mxu1 %v6666_v53  ;;  %v6739_v53 = vld [vmem:[%s9468_s1 + $0x398] ss:$12 sps:$4 sm:$0xff]  }
  0x2b   :  { %3125 = vmatpush1.bf16.msra.mxu0 %v6590_v28  ;;  %v6650_v28 = vld [vmem:[%s9468_s1 + $0x25c] ss:$12 sps:$4 sm:$0xff]  }
  0x2c   :  { %3126 = vmatprep.subr.bf16.mxu0 %v6591_v31  ;;  %v6648_v31 = vld [vmem:[%s9468_s1 + $0x258] ss:$12 sps:$4 sm:$0xff]  }
  0x2d   :  { %6122 = vmatpush3.bf16.msra.mxu1 %v6667_v55  ;;  %v6674_v55 = vld [vmem:[%s9468_s1 + $0x2d0] ss:$12 sps:$4 sm:$0xff]  }
  0x2e   :  { %6123 = vmatprep.subr.bf16.mxu1 %v6671_v58  ;;  %v6751_v58 = vld [vmem:[%s9468_s1 + $0x548] ss:$12 sps:$4 sm:$0xff]  }
  0x2f   :  { %3127 = vmatpush1.bf16.msra.mxu0 %v6593_v32  ;;  %v6655_v32 = vld [vmem:[%s9468_s1 + $0x274] ss:$12 sps:$4 sm:$0xff]  }
  0x30   :  { %3128 = vmatprep.subr.bf16.mxu0 %v6594_v35  ;;  %3604 = vmatmul.mubr.bf16.gmra.mrb[4].mxu1 %v5485_v63  ;;  %v6653_v35 = vld [vmem:[%s9468_s1 + $0x270] ss:$12 sps:$4 sm:$0xff]  }
  0x31   :  { %6124 = vmatpush3.bf16.msra.mxu1 %v6672_v62  ;;  %3643 = vmatprep.mubr.bf16.mxu1 %v6687_v3  ;;  %v6690_v62 = vld [vmem:[%s9468_s1 + $0x304] ss:$12 sps:$4 sm:$0xff]  }
  0x32   :  { %6125 = vmatprep.subr.bf16.mxu1 %v6678_v0  ;;  %v6688_v0 = vld [vmem:[%s9468_s1 + $0x300] ss:$12 sps:$4 sm:$0xff]  }
  0x33   :  { %3129 = vmatpush1.bf16.msra.mxu0 %v6596_v37  ;;  %v6722_v37 = vld [vmem:[%s9468_s1 + $0x350] ss:$12 sps:$4 sm:$0xff]  }
  0x34   :  { %3130 = vmatprep.subr.bf16.mxu0 %v6597_v38  ;;  %v46_v38 = vld [vmem:[%s9469_s0 + $0x98] sm:$0x11] }
  0x35   :  { %6126 = vmatpush3.bf16.msra.mxu1 %v6679_v2  ;;  %v7730_v40 = vcombine.high %v46_v38, %v46_v38  ;;  %v6757_v2 = vld [vmem:[%s9468_s1 + $0x4a0] ss:$12 sps:$4 sm:$0xff]  }
  0x36   :  { %6127 = vmatprep.subr.bf16.mxu1 %v6683_v5  ;;  %v6700_v5 = vld [vmem:[%s9468_s1 + $0x334] ss:$12 sps:$4 sm:$0xff]  }
  0x37   :  { %3131 = vmatpush1.bf16.msra.mxu0 %v6599_v41  ;;  %v7732_v41 = vcombine.low %v46_v38, %v46_v38  ;;  %v6735_v38 = vld [vmem:[%s9468_s1 + $0x3dc] ss:$12 sps:$4 sm:$0xff]  }
  0x38   :  { %3132 = vmatprep.subr.bf16.mxu0 %v6600_v42  ;;  %v6658_v42 = vld [vmem:[%s9468_s1 + $0x288] ss:$12 sps:$4 sm:$0xff]  }
  0x39   :  { %6128 = vmatpush3.bf16.msra.mxu1 %v6684_v8  ;;  %v6766_v8 = vld [vmem:[%s9468_s1 + $0x590] ss:$12 sps:$4 sm:$0xff]  }
  0x3a   :  { %6129 = vmatprep.subr.bf16.mxu1 %v6691_v9 }
  0x3b   :  { %3133 = vmatpush1.bf16.msra.mxu0 %v6602_v45  ;;  %v6731_v45 = vld [vmem:[%s9468_s1 + $0x440] ss:$12 sps:$4 sm:$0xff]  }
  0x3c   :  { %3134 = vmatprep.subr.bf16.mxu0 %v6603_v46  ;;  %v6663_v46 = vld [vmem:[%s9468_s1 + $0x2a0] ss:$12 sps:$4 sm:$0xff]  }
  0x3d   :  { %6130 = vmatpush3.bf16.msra.mxu1 %v6692_v12  ;;  %v6705_v12 = vld [vmem:[%s9468_s1 + $0x34c] ss:$12 sps:$4 sm:$0xff]  }
  0x3e   :  { %6131 = vmatprep.subr.bf16.mxu1 %v6696_v13  ;;  %v6767_v13 = vld [vmem:[%s9468_s1 + $0x4d0] ss:$12 sps:$4 sm:$0xff]  }
  0x3f   :  { %3135 = vmatpush1.bf16.msra.mxu0 %v6605_v49  ;;  %v7760_v49 = vld [vmem:[%s9469_s0 + $0x14] ss:$72 sps:$4 sm:$0xff]  }
  0x40   :  { %3155 = vmatprep.subr.bf16.mxu0 %v6611_v51  ;;  %v6668_v51 = vld [vmem:[%s9468_s1 + $0x2b8] ss:$12 sps:$4 sm:$0xff]  }
  0x41   :  { %6132 = vmatpush3.bf16.msra.mxu1 %v6697_v16  ;;  %v6710_v16 = vld [vmem:[%s9468_s1 + $0x364] ss:$12 sps:$4 sm:$0xff]  }
  0x42   :  { %3137 = vmatmul.mubr.bf16.vlgmr.msra.gmra.mrb[0].mxu0 %v6606_v50  ;;  %6133 = vmatprep.subr.bf16.mxu1 %v6701_v17  ;;  %v6737_v50 = vld [vmem:[%s9468_s1 + $0x458] ss:$12 sps:$4 sm:$0xff]   ;;  %v6772_v17 = vld [vmem:[%s9468_s1 + $0x4e8] ss:$12 sps:$4 sm:$0xff]  }
  0x43   :  { %3156 = vmatpush1.bf16.msra.mxu0 %v6609_v54  ;;  %3146 = vmatprep.mubr.bf16.mxu0 %v5486_v59  ;;  %v6743_v54 = vld [vmem:[%s9468_s1 + $0x470] ss:$12 sps:$4 sm:$0xff]   ;;  %v6680_v59 = vld [vmem:[%s9468_s1 + $0x2e8] ss:$12 sps:$4 sm:$0xff]  }
  0x44   :  { %3157 = vmatprep.subr.bf16.mxu0 %v6614_v57  ;;  %v6744_v57 = vld [vmem:[%s9468_s1 + $0x3b0] ss:$12 sps:$4 sm:$0xff]  }
  0x45   :  { %6134 = vmatpush3.bf16.msra.mxu1 %v6702_v20  ;;  %v6708_v20 = vld [vmem:[%s9468_s1 + $0x360] ss:$12 sps:$4 sm:$0xff]  }
  0x46   :  { %6147 = vmatprep.subr.bf16.mxu1 %v6706_v21  ;;  %v6715_v21 = vld [vmem:[%s9468_s1 + $0x37c] ss:$12 sps:$4 sm:$0xff]  }
  0x47   :  { %3158 = vmatpush1.bf16.msra.mxu0 %v6612_v60  ;;  %v7796_v60 = vld [vmem:[%s9469_s0 + $0x10] ss:$72 sps:$4 sm:$0xff]  }
  0x48   :  { %3159 = vmatprep.subr.bf16.mxu0 %v6617_v61  ;;  %3644 = vmatmul.mubr.bf16.vlgmr.msra.gmra.mrb[8].mxu1 %v7685_v25  ;;  %v6752_v61 = vld [vmem:[%s9468_s1 + $0x488] ss:$12 sps:$4 sm:$0xff]  }
  0x49   :  { %6148 = vmatpush3.bf16.msra.mxu1 %v6707_v24  ;;  %3651 = vmatprep.mubr.bf16.mxu1 %v7730_v40  ;;  %v6713_v24 = vld [vmem:[%s9468_s1 + $0x378] ss:$12 sps:$4 sm:$0xff]  }
  0x4a   :  { %3147 = vmatmul.mubr.bf16.gmra.mrb[4].mxu0 %v5485_v63  ;;  %6149 = vmatprep.subr.bf16.mxu1 %v6711_v26  ;;  %v6756_v63 = vld [vmem:[%s9468_s1 + $0x560] ss:$12 sps:$4 sm:$0xff]   ;;  %v6784_v26 = vld [vmem:[%s9468_s1 + $0x518] ss:$12 sps:$4 sm:$0xff]  }
  0x4b   :  { %3160 = vmatpush1.bf16.msra.mxu0 %v6615_v1  ;;  %3187 = vmatprep.mubr.bf16.mxu0 %v6687_v3  ;;  %v6695_v1 = vld [vmem:[%s9468_s1 + $0x31c] ss:$12 sps:$4 sm:$0xff]   ;;  %v6761_v3 = vld [vmem:[%s9468_s1 + $0x578] ss:$12 sps:$4 sm:$0xff]  }
  0x4c   :  { %3161 = vmatprep.subr.bf16.mxu0 %v6620_v4  ;;  %v6693_v4 = vld [vmem:[%s9468_s1 + $0x318] ss:$12 sps:$4 sm:$0xff]  }
  0x4d   :  { %6150 = vmatpush3.bf16.msra.mxu1 %v6712_v29  ;;  %v6789_v29 = vld [vmem:[%s9468_s1 + $0x530] ss:$12 sps:$4 sm:$0xff]  }
  0x4e   :  { %6151 = vmatprep.subr.bf16.mxu1 %v6716_v30  ;;  %v6725_v30 = vld [vmem:[%s9468_s1 + $0x3ac] ss:$12 sps:$4 sm:$0xff]  }
  0x4f   :  { %3162 = vmatpush1.bf16.msra.mxu0 %v6618_v6  ;;  %v6762_v6 = vld [vmem:[%s9468_s1 + $0x4b8] ss:$12 sps:$4 sm:$0xff]  }
  0x50   :  { %3163 = vmatprep.subr.bf16.mxu0 %v6625_v7  ;;  %3652 = vmatmul.mubr.bf16.gmra.mrb[12].mxu1 %v7732_v41  ;;  %v47_v7 = vld [vmem:[%s9469_s0 + $0xa0] sm:$0x11] }
  0x51   :  { %6152 = vmatpush3.bf16.msra.mxu1 %v6717_v33  ;;  %3691 = vmatprep.mubr.bf16.mxu1 %v7760_v49  ;;  %v7836_v9 = vcombine.high %v47_v7, %v47_v7  ;;  %v6730_v33 = vld [vmem:[%s9468_s1 + $0x3c4] ss:$12 sps:$4 sm:$0xff]  }
  0x52   :  { %6153 = vmatprep.subr.bf16.mxu1 %v6721_v34  ;;  %v7920_v34 = vld [vmem:[%s9469_s0 + $0x18] ss:$72 sps:$4 sm:$0xff]  }
  0x53   :  { %3164 = vmatpush1.bf16.msra.mxu0 %v6623_v10  ;;  %v7839_v10 = vcombine.low %v47_v7, %v47_v7  ;;  %v6775_v7 = vld [vmem:[%s9468_s1 + $0x484] ss:$12 sps:$4 sm:$0xff]  }
  0x54   :  { %3165 = vmatprep.subr.bf16.mxu0 %v6630_v11  ;;  %v6698_v11 = vld [vmem:[%s9468_s1 + $0x330] ss:$12 sps:$4 sm:$0xff]  }
  0x55   :  { %6154 = vmatpush3.bf16.msra.mxu1 %v6722_v37  ;;  %v6728_v37 = vld [vmem:[%s9468_s1 + $0x3c0] ss:$12 sps:$4 sm:$0xff]  }
  0x56   :  { %6155 = vmatprep.subr.bf16.mxu1 %v6726_v39  ;;  %v6802_v39 = vld [vmem:[%s9468_s1 + $0x620] ss:$12 sps:$4 sm:$0xff]  }
  0x57   :  { %3166 = vmatpush1.bf16.msra.mxu0 %v6628_v14  ;;  %v6771_v14 = vld [vmem:[%s9468_s1 + $0x5a8] ss:$12 sps:$4 sm:$0xff]  }
  0x58   :  { %3167 = vmatprep.subr.bf16.mxu0 %v6635_v15  ;;  %v6703_v15 = vld [vmem:[%s9468_s1 + $0x348] ss:$12 sps:$4 sm:$0xff]  }
  0x59   :  { %6156 = vmatpush3.bf16.msra.mxu1 %v6727_v44  ;;  %v6742_v44 = vld [vmem:[%s9468_s1 + $0x3f4] ss:$12 sps:$4 sm:$0xff]  }
  0x5a   :  { %6157 = vmatprep.subr.bf16.mxu1 %v6731_v45 }
  0x5b   :  { %3168 = vmatpush1.bf16.msra.mxu0 %v6633_v18  ;;  %v7868_v18 = vld [vmem:[%s9469_s0 + $0x1c] ss:$72 sps:$4 sm:$0xff]  }
  0x5c   :  { %3169 = vmatprep.subr.bf16.mxu0 %v6640_v19  ;;  %v6776_v19 = vld [vmem:[%s9468_s1 + $0x5c0] ss:$12 sps:$4 sm:$0xff]  }
  0x5d   :  { %6158 = vmatpush3.bf16.msra.mxu1 %v6732_v48  ;;  %v6740_v48 = vld [vmem:[%s9468_s1 + $0x3f0] ss:$12 sps:$4 sm:$0xff]  }
  0x5e   :  { %6159 = vmatprep.subr.bf16.mxu1 %v6737_v50  ;;  %v6812_v50 = vld [vmem:[%s9468_s1 + $0x650] ss:$12 sps:$4 sm:$0xff]  }
  0x5f   :  { %3170 = vmatpush1.bf16.msra.mxu0 %v6638_v22  ;;  %v6777_v22 = vld [vmem:[%s9468_s1 + $0x500] ss:$12 sps:$4 sm:$0xff]  }
  0x60   :  { %3171 = vmatprep.subr.bf16.mxu0 %v6645_v23  ;;  %v6782_v23 = vld [vmem:[%s9468_s1 + $0x5d8] ss:$12 sps:$4 sm:$0xff]  }
  0x61   :  { %6160 = vmatpush3.bf16.msra.mxu1 %v6739_v53  ;;  %v6745_v53 = vld [vmem:[%s9468_s1 + $0x408] ss:$12 sps:$4 sm:$0xff]  }
  0x62   :  { %6161 = vmatprep.subr.bf16.mxu1 %v6743_v54  ;;  %v6755_v54 = vld [vmem:[%s9468_s1 + $0x424] ss:$12 sps:$4 sm:$0xff]  }
  0x63   :  { %3172 = vmatpush1.bf16.msra.mxu0 %v6643_v27  ;;  %v6788_v27 = vld [vmem:[%s9468_s1 + $0x5f0] ss:$12 sps:$4 sm:$0xff]  }
  0x64   :  { %3173 = vmatprep.subr.bf16.mxu0 %v6650_v28  ;;  %v6718_v28 = vld [vmem:[%s9468_s1 + $0x390] ss:$12 sps:$4 sm:$0xff]  }
  0x65   :  { %6162 = vmatpush3.bf16.msra.mxu1 %v6744_v57  ;;  %v6753_v57 = vld [vmem:[%s9468_s1 + $0x420] ss:$12 sps:$4 sm:$0xff]  }
  0x66   :  { %6175 = vmatprep.subr.bf16.mxu1 %v6751_v58  ;;  %v6760_v58 = vld [vmem:[%s9468_s1 + $0x43c] ss:$12 sps:$4 sm:$0xff]  }
  0x67   :  { %3174 = vmatpush1.bf16.msra.mxu0 %v6648_v31  ;;  %v6796_v31 = vld [vmem:[%s9468_s1 + $0x6c8] ss:$12 sps:$4 sm:$0xff]  }
  0x68   :  { %3175 = vmatprep.subr.bf16.mxu0 %v6655_v32  ;;  %3692 = vmatmul.mubr.bf16.vlgmr.msra.gmra.mrb[16].mxu1 %v7796_v60  ;;  %v6723_v32 = vld [vmem:[%s9468_s1 + $0x3a8] ss:$12 sps:$4 sm:$0xff]  }
  0x69   :  { %6176 = vmatpush3.bf16.msra.mxu1 %v6752_v61  ;;  %3699 = vmatprep.mubr.bf16.mxu1 %v7836_v9  ;;  %v6827_v61 = vld [vmem:[%s9468_s1 + $0x758] ss:$12 sps:$4 sm:$0xff]  }
  0x6a   :  { %6177 = vmatprep.subr.bf16.mxu1 %v6756_v63  ;;  %v6765_v63 = vld [vmem:[%s9468_s1 + $0x454] ss:$12 sps:$4 sm:$0xff]  }
  0x6b   :  { %3176 = vmatpush1.bf16.msra.mxu0 %v6653_v35  ;;  %v6797_v35 = vld [vmem:[%s9468_s1 + $0x608] ss:$12 sps:$4 sm:$0xff]  }
  0x6c   :  { %3177 = vmatprep.subr.bf16.mxu0 %v6660_v36  ;;  %v6801_v36 = vld [vmem:[%s9468_s1 + $0x6e0] ss:$12 sps:$4 sm:$0xff]  }
  0x6d   :  { %6178 = vmatpush3.bf16.msra.mxu1 %v6757_v2  ;;  %v6763_v2 = vld [vmem:[%s9468_s1 + $0x450] ss:$12 sps:$4 sm:$0xff]  }
  0x6e   :  { %6179 = vmatprep.subr.bf16.mxu1 %v6761_v3  ;;  %v6834_v3 = vld [vmem:[%s9468_s1 + $0x6b0] ss:$12 sps:$4 sm:$0xff]  }
  0x6f   :  { %3178 = vmatpush1.bf16.msra.mxu0 %v6658_v42 }
  0x70   :  { %3179 = vmatprep.subr.bf16.mxu0 %v6665_v43  ;;  %3700 = vmatmul.mubr.bf16.gmra.mrb[20].mxu1 %v7839_v10  ;;  %v6733_v43 = vld [vmem:[%s9468_s1 + $0x3d8] ss:$12 sps:$4 sm:$0xff]  }
  0x71   :  { %6180 = vmatpush3.bf16.msra.mxu1 %v6762_v6  ;;  %3739 = vmatprep.mubr.bf16.mxu1 %v7868_v18  ;;  %v6768_v6 = vld [vmem:[%s9468_s1 + $0x468] ss:$12 sps:$4 sm:$0xff]  }
  0x72   :  { %6181 = vmatprep.subr.bf16.mxu1 %v6766_v8  ;;  %v6838_v8 = vld [vmem:[%s9469_s0 + $0x20] ss:$72 sps:$4 sm:$0xff]  }
  0x73   :  { %3180 = vmatpush1.bf16.msra.mxu0 %v6663_v46  ;;  %v6807_v46 = vld [vmem:[%s9468_s1 + $0x638] ss:$12 sps:$4 sm:$0xff]  }
  0x74   :  { %3181 = vmatprep.subr.bf16.mxu0 %v6670_v47  ;;  %v6811_v47 = vld [vmem:[%s9468_s1 + $0x710] ss:$12 sps:$4 sm:$0xff]  }
  0x75   :  { %6182 = vmatpush3.bf16.msra.mxu1 %v6767_v13  ;;  %v49_v13 = vld [vmem:[%s9469_s0 + $0xb0] sm:$0x11] }
  0x76   :  { %6183 = vmatprep.subr.bf16.mxu1 %v6771_v14  ;;  %v8046_v14 = vcombine.high %v49_v13, %v49_v13 }
  0x77   :  { %3182 = vmatpush1.bf16.msra.mxu0 %v6668_v51  ;;  %v7974_v51 = vld [vmem:[%s9469_s0 + $0x24] ss:$72 sps:$4 sm:$0xff]  }
  0x78   :  { %3183 = vmatprep.subr.bf16.mxu0 %v6676_v52  ;;  %v6816_v52 = vld [vmem:[%s9468_s1 + $0x728] ss:$12 sps:$4 sm:$0xff]  }
  0x79   :  { %6184 = vmatpush3.bf16.msra.mxu1 %v6772_v17  ;;  %v6847_v17 = vld [vmem:[%s9468_s1 + $0x7a0] ss:$12 sps:$4 sm:$0xff]  }
  0x7a   :  { %6185 = vmatprep.subr.bf16.mxu1 %v6776_v19  ;;  %v6851_v19 = vld [vmem:[%s9468_s1 + $0x878] ss:$12 sps:$4 sm:$0xff]  }
  0x7b   :  { %3184 = vmatpush1.bf16.msra.mxu0 %v6674_v55  ;;  %v6817_v55 = vld [vmem:[%s9468_s1 + $0x668] ss:$12 sps:$4 sm:$0xff]  }
  0x7c   :  { %3185 = vmatprep.subr.bf16.mxu0 %v6682_v56  ;;  %v6821_v56 = vld [vmem:[%s9468_s1 + $0x740] ss:$12 sps:$4 sm:$0xff]  }
  0x7d   :  { %6186 = vmatpush3.bf16.msra.mxu1 %v6777_v22  ;;  %v8068_v22 = vcombine.low %v49_v13, %v49_v13  ;;  %v6917_v13 = vld [vmem:[%s9468_s1 + $0xa58] ss:$12 sps:$4 sm:$0xff]  }
  0x7e   :  { %6187 = vmatprep.subr.bf16.mxu1 %v6782_v23  ;;  %v6852_v23 = vld [vmem:[%s9468_s1 + $0x7b8] ss:$12 sps:$4 sm:$0xff]  }
  0x7f   :  { %3186 = vmatpush1.bf16.msra.mxu0 %v6680_v59  ;;  %v6822_v59 = vld [vmem:[%s9468_s1 + $0x680] ss:$12 sps:$4 sm:$0xff]  }
  0x80   :  { %3206 = vmatprep.subr.bf16.mxu0 %v6690_v62  ;;  %v6758_v62 = vld [vmem:[%s9468_s1 + $0x438] ss:$12 sps:$4 sm:$0xff]  }
  0x81   :  { %6188 = vmatpush3.bf16.msra.mxu1 %v6784_v26  ;;  %v6792_v26 = vld [vmem:[%s9468_s1 + $0x4cc] ss:$12 sps:$4 sm:$0xff]  }
  0x82   :  { %3188 = vmatmul.mubr.bf16.vlgmr.msra.gmra.mrb[0].mxu0 %v7685_v25  ;;  %v6720_v25 = vld [vmem:[%s9468_s1 + $0x394] ss:$12 sps:$4 sm:$0xff]   ;;  %6189 = vmatprep.subr.bf16.mxu1 %v6788_v27 }
  0x83   :  { %3207 = vmatpush1.bf16.msra.mxu0 %v6688_v0  ;;  %3197 = vmatprep.mubr.bf16.mxu0 %v7730_v40  ;;  %v48_v40 = vld [vmem:[%s9469_s0 + $0xa8] sm:$0x11]  ;;  %v6829_v0 = vld [vmem:[%s9468_s1 + $0x698] ss:$12 sps:$4 sm:$0xff]  }
  0x84   :  { %3208 = vmatprep.subr.bf16.mxu0 %v6695_v1  ;;  %v7944_v42 = vcombine.high %v48_v40, %v48_v40  ;;  %v7953_v45 = vcombine.low %v48_v40, %v48_v40  ;;  %v6833_v1 = vld [vmem:[%s9468_s1 + $0x770] ss:$12 sps:$4 sm:$0xff]   ;;  %v6861_v27 = vld [vmem:[%s9468_s1 + $0x8a8] ss:$12 sps:$4 sm:$0xff]  }
  0x85   :  { %6190 = vmatpush3.bf16.msra.mxu1 %v6789_v29  ;;  %v6800_v29 = vld [vmem:[%s9468_s1 + $0x4e4] ss:$12 sps:$4 sm:$0xff]  }
  0x86   :  { %6203 = vmatprep.subr.bf16.mxu1 %v6796_v31  ;;  %v6866_v31 = vld [vmem:[%s9468_s1 + $0x8c0] ss:$12 sps:$4 sm:$0xff]   ;;  %v6879_v40 = vld [vmem:[%s9468_s1 + $0x830] ss:$12 sps:$4 sm:$0xff]  }
  0x87   :  { %3209 = vmatpush1.bf16.msra.mxu0 %v6693_v4  ;;  %v6770_v4 = vld [vmem:[%s9468_s1 + $0x46c] ss:$12 sps:$4 sm:$0xff]  }
  0x88   :  { %3210 = vmatprep.subr.bf16.mxu0 %v6700_v5  ;;  %3740 = vmatmul.mubr.bf16.vlgmr.msra.gmra.mrb[24].mxu1 %v7920_v34  ;;  %v6841_v5 = vld [vmem:[%s9468_s1 + $0x848] ss:$12 sps:$4 sm:$0xff]  }
  0x89   :  { %6204 = vmatpush3.bf16.msra.mxu1 %v6797_v35  ;;  %3747 = vmatprep.mubr.bf16.mxu1 %v7944_v42  ;;  %v6872_v35 = vld [vmem:[%s9468_s1 + $0x8d8] ss:$12 sps:$4 sm:$0xff]  }
  0x8a   :  { %3198 = vmatmul.mubr.bf16.gmra.mrb[4].mxu0 %v7732_v41  ;;  %6205 = vmatprep.subr.bf16.mxu1 %v6801_v36  ;;  %v6806_v41 = vld [vmem:[%s9468_s1 + $0x6f8] ss:$12 sps:$4 sm:$0xff]  }
  0x8b   :  { %3211 = vmatpush1.bf16.msra.mxu0 %v6698_v11  ;;  %3238 = vmatprep.mubr.bf16.mxu0 %v7760_v49  ;;  %v6747_v49 = vld [vmem:[%s9468_s1 + $0x40c] ss:$12 sps:$4 sm:$0xff]   ;;  %v6842_v11 = vld [vmem:[%s9468_s1 + $0x788] ss:$12 sps:$4 sm:$0xff]  }
  0x8c   :  { %3212 = vmatprep.subr.bf16.mxu0 %v6705_v12  ;;  %v6846_v12 = vld [vmem:[%s9468_s1 + $0x860] ss:$12 sps:$4 sm:$0xff]   ;;  %v6874_v36 = vld [vmem:[%s9468_s1 + $0x818] ss:$12 sps:$4 sm:$0xff]  }
  0x8d   :  { %6206 = vmatpush3.bf16.msra.mxu1 %v6802_v39  ;;  %v6808_v39 = vld [vmem:[%s9468_s1 + $0x510] ss:$12 sps:$4 sm:$0xff]  }
  0x8e   :  { %6207 = vmatprep.subr.bf16.mxu1 %v6806_v41  ;;  %v6815_v41 = vld [vmem:[%s9468_s1 + $0x52c] ss:$12 sps:$4 sm:$0xff]  }
  0x8f   :  { %3213 = vmatpush1.bf16.msra.mxu0 %v6703_v15  ;;  %v6773_v15 = vld [vmem:[%s9468_s1 + $0x480] ss:$12 sps:$4 sm:$0xff]  }
  0x90   :  { %3214 = vmatprep.subr.bf16.mxu0 %v6710_v16  ;;  %3748 = vmatmul.mubr.bf16.gmra.mrb[28].mxu1 %v7953_v45  ;;  %v6780_v16 = vld [vmem:[%s9468_s1 + $0x49c] ss:$12 sps:$4 sm:$0xff]  }
  0x91   :  { %6208 = vmatpush3.bf16.msra.mxu1 %v6807_v46  ;;  %3787 = vmatprep.mubr.bf16.mxu1 %v7974_v51  ;;  %v6883_v46 = vld [vmem:[%s9469_s0 + $0x28] ss:$72 sps:$4 sm:$0xff]  }
  0x92   :  { %6209 = vmatprep.subr.bf16.mxu1 %v6811_v47  ;;  %v50_v47 = vld [vmem:[%s9469_s0 + $0xb8] sm:$0x11] }
  0x93   :  { %3215 = vmatpush1.bf16.msra.mxu0 %v6708_v20  ;;  %v6778_v20 = vld [vmem:[%s9468_s1 + $0x498] ss:$12 sps:$4 sm:$0xff]  }
  0x94   :  { %3216 = vmatprep.subr.bf16.mxu0 %v6715_v21  ;;  %v6787_v21 = vld [vmem:[%s9468_s1 + $0x4b4] ss:$12 sps:$4 sm:$0xff]  }
  0x95   :  { %6210 = vmatpush3.bf16.msra.mxu1 %v6812_v50  ;;  %v6891_v50 = vld [vmem:[%s9468_s1 + $0x9e0] ss:$12 sps:$4 sm:$0xff]  }
  0x96   :  { %6211 = vmatprep.subr.bf16.mxu1 %v6816_v52  ;;  %v8161_v52 = vcombine.high %v50_v47, %v50_v47 }
  0x97   :  { %3217 = vmatpush1.bf16.msra.mxu0 %v6713_v24  ;;  %v6885_v24 = vld [vmem:[%s9469_s0 + $0x2c] ss:$72 sps:$4 sm:$0xff]  }
  0x98   :  { %3218 = vmatprep.subr.bf16.mxu0 %v6720_v25  ;;  %v6785_v25 = vld [vmem:[%s9468_s1 + $0x4b0] ss:$12 sps:$4 sm:$0xff]  }
  0x99   :  { %6212 = vmatpush3.bf16.msra.mxu1 %v6817_v55  ;;  %v6825_v55 = vld [vmem:[%s9468_s1 + $0x55c] ss:$12 sps:$4 sm:$0xff]  }
  0x9a   :  { %6213 = vmatprep.subr.bf16.mxu1 %v6821_v56  ;;  %v6896_v56 = vld [vmem:[%s9468_s1 + $0x9f8] ss:$12 sps:$4 sm:$0xff]  }
  0x9b   :  { %3219 = vmatpush1.bf16.msra.mxu0 %v6718_v28  ;;  %v6790_v28 = vld [vmem:[%s9468_s1 + $0x4c8] ss:$12 sps:$4 sm:$0xff]  }
  0x9c   :  { %3220 = vmatprep.subr.bf16.mxu0 %v6725_v30  ;;  %v6862_v30 = vld [vmem:[%s9468_s1 + $0x7e8] ss:$12 sps:$4 sm:$0xff]  }
  0x9d   :  { %6214 = vmatpush3.bf16.msra.mxu1 %v6822_v59  ;;  %v6832_v59 = vld [vmem:[%s9468_s1 + $0x574] ss:$12 sps:$4 sm:$0xff]  }
  0x9e   :  { %6215 = vmatprep.subr.bf16.mxu1 %v6827_v61  ;;  %v6897_v61 = vld [vmem:[%s9468_s1 + $0x938] ss:$12 sps:$4 sm:$0xff]  }
  0x9f   :  { %3221 = vmatpush1.bf16.msra.mxu0 %v6723_v32  ;;  %v6798_v32 = vld [vmem:[%s9468_s1 + $0x4e0] ss:$12 sps:$4 sm:$0xff]  }
  0xa0   :  { %3222 = vmatprep.subr.bf16.mxu0 %v6730_v33  ;;  %v6867_v33 = vld [vmem:[%s9468_s1 + $0x800] ss:$12 sps:$4 sm:$0xff]  }
  0xa1   :  { %6216 = vmatpush3.bf16.msra.mxu1 %v6829_v0  ;;  %v8196_v0 = vld [vmem:[%s9469_s0 + $0x34] ss:$72 sps:$4 sm:$0xff]  }
  0xa2   :  { %6217 = vmatprep.subr.bf16.mxu1 %v6833_v1  ;;  %v6837_v1 = vld [vmem:[%s9468_s1 + $0x58c] ss:$12 sps:$4 sm:$0xff]  }
  0xa3   :  { %3223 = vmatpush1.bf16.msra.mxu0 %v6728_v37  ;;  %v6810_v37 = vld [vmem:[%s9468_s1 + $0x514] ss:$12 sps:$4 sm:$0xff]  }
  0xa4   :  { %3224 = vmatprep.subr.bf16.mxu0 %v6735_v38  ;;  %v6878_v38 = vld [vmem:[%s9468_s1 + $0x8f0] ss:$12 sps:$4 sm:$0xff]  }
  0xa5   :  { %6218 = vmatpush3.bf16.msra.mxu1 %v6834_v3  ;;  %v6906_v3 = vld [vmem:[%s9468_s1 + $0xa28] ss:$12 sps:$4 sm:$0xff]  }
  0xa6   :  { %6231 = vmatprep.subr.bf16.mxu1 %v6841_v5  ;;  %v6845_v5 = vld [vmem:[%s9468_s1 + $0x5a4] ss:$12 sps:$4 sm:$0xff]  }
  0xa7   :  { %3225 = vmatpush1.bf16.msra.mxu0 %v6733_v43  ;;  %v6886_v43 = vld [vmem:[%s9468_s1 + $0x9c8] ss:$12 sps:$4 sm:$0xff]  }
  0xa8   :  { %3226 = vmatprep.subr.bf16.mxu0 %v6742_v44  ;;  %3788 = vmatmul.mubr.bf16.vlgmr.msra.gmra.mrb[32].mxu1 %v6838_v8  ;;  %v6813_v44 = vld [vmem:[%s9468_s1 + $0x528] ss:$12 sps:$4 sm:$0xff]   ;;  %v6843_v8 = vld [vmem:[%s9468_s1 + $0x5a0] ss:$12 sps:$4 sm:$0xff]  }
  0xa9   :  { %6232 = vmatpush3.bf16.msra.mxu1 %v6842_v11  ;;  %3795 = vmatprep.mubr.bf16.mxu1 %v8046_v14  ;;  %v6850_v11 = vld [vmem:[%s9468_s1 + $0x5bc] ss:$12 sps:$4 sm:$0xff]  }
  0xaa   :  { %6233 = vmatprep.subr.bf16.mxu1 %v6846_v12  ;;  %v6912_v12 = vld [vmem:[%s9468_s1 + $0x980] ss:$12 sps:$4 sm:$0xff]  }
  0xab   :  { %3227 = vmatpush1.bf16.msra.mxu0 %v6740_v48  ;;  %v6820_v48 = vld [vmem:[%s9468_s1 + $0x544] ss:$12 sps:$4 sm:$0xff]  }
  0xac   :  { %3228 = vmatprep.subr.bf16.mxu0 %v6747_v49  ;;  %v6887_v49 = vld [vmem:[%s9468_s1 + $0x908] ss:$12 sps:$4 sm:$0xff]  }
  0xad   :  { %6234 = vmatpush3.bf16.msra.mxu1 %v6847_v17  ;;  %v6855_v17 = vld [vmem:[%s9468_s1 + $0x5d4] ss:$12 sps:$4 sm:$0xff]  }
  0xae   :  { %6235 = vmatprep.subr.bf16.mxu1 %v6851_v19  ;;  %v6923_v19 = vld [vmem:[%s9468_s1 + $0xa70] ss:$12 sps:$4 sm:$0xff]  }
  0xaf   :  { %3229 = vmatpush1.bf16.msra.mxu0 %v6745_v53  ;;  %v6818_v53 = vld [vmem:[%s9468_s1 + $0x540] ss:$12 sps:$4 sm:$0xff]  }
  0xb0   :  { %3230 = vmatprep.subr.bf16.mxu0 %v6755_v54  ;;  %3796 = vmatmul.mubr.bf16.gmra.mrb[36].mxu1 %v8068_v22  ;;  %v6892_v54 = vld [vmem:[%s9468_s1 + $0x920] ss:$12 sps:$4 sm:$0xff]  }
  0xb1   :  { %6236 = vmatpush3.bf16.msra.mxu1 %v6852_v23  ;;  %3835 = vmatprep.mubr.bf16.mxu1 %v6885_v24  ;;  %v6924_v23 = vld [vmem:[%s9468_s1 + $0x9b0] ss:$12 sps:$4 sm:$0xff]  }
  0xb2   :  { %v6928_v24 = vld [vmem:[%s9469_s0 + $0x30] ss:$72 sps:$4 sm:$0xff]  }
  0xb3   :  { %3231 = vmatpush1.bf16.msra.mxu0 %v6753_v57  ;;  %v6823_v57 = vld [vmem:[%s9468_s1 + $0x558] ss:$12 sps:$4 sm:$0xff]  }
  0xb4   :  { %3232 = vmatprep.subr.bf16.mxu0 %v6760_v58  ;;  %v8179_v58 = vcombine.low %v50_v47, %v50_v47  ;;  %v6888_v47 = vld [vmem:[%s9468_s1 + $0x660] ss:$12 sps:$4 sm:$0xff]  }
  0xb7   :  { %3233 = vmatpush1.bf16.msra.mxu0 %v6758_v62  ;;  %v6901_v62 = vld [vmem:[%s9468_s1 + $0xa10] ss:$12 sps:$4 sm:$0xff]  }
  0xb8   :  { %3234 = vmatprep.subr.bf16.mxu0 %v6765_v63  ;;  %v6830_v63 = vld [vmem:[%s9468_s1 + $0x570] ss:$12 sps:$4 sm:$0xff]  }
  0xbb   :  { %3235 = vmatpush1.bf16.msra.mxu0 %v6763_v2  ;;  %v6902_v2 = vld [vmem:[%s9468_s1 + $0x950] ss:$12 sps:$4 sm:$0xff]  }
  0xbc   :  { %3236 = vmatprep.subr.bf16.mxu0 %v6770_v4  ;;  %v6835_v4 = vld [vmem:[%s9468_s1 + $0x588] ss:$12 sps:$4 sm:$0xff]  }
  0xbf   :  { %3237 = vmatpush1.bf16.msra.mxu0 %v6768_v6  ;;  %v6907_v6 = vld [vmem:[%s9468_s1 + $0x968] ss:$12 sps:$4 sm:$0xff]  }
  0xc0   :  { %3257 = vmatprep.subr.bf16.mxu0 %v6775_v7  ;;  %v6911_v7 = vld [vmem:[%s9468_s1 + $0xa40] ss:$12 sps:$4 sm:$0xff]  }
  0xc2   :  { %3239 = vmatmul.mubr.bf16.vlgmr.msra.gmra.mrb[0].mxu0 %v7796_v60  ;;  %v6856_v60 = vld [vmem:[%s9468_s1 + $0x890] ss:$12 sps:$4 sm:$0xff]  }
  0xc3   :  { %3258 = vmatpush1.bf16.msra.mxu0 %v6773_v15  ;;  %3248 = vmatprep.mubr.bf16.mxu0 %v7836_v9  ;;  %v6857_v9 = vld [vmem:[%s9468_s1 + $0x7d0] ss:$12 sps:$4 sm:$0xff]   ;;  %v6848_v15 = vld [vmem:[%s9468_s1 + $0x5b8] ss:$12 sps:$4 sm:$0xff]  }
  0xc4   :  { %3259 = vmatprep.subr.bf16.mxu0 %v6780_v16  ;;  %6237 = vmatprep.subr.bf16.mxu1 %v6856_v60  ;;  %v6919_v16 = vld [vmem:[%s9468_s1 + $0x998] ss:$12 sps:$4 sm:$0xff]   ;;  %v6931_v60 = vld [vmem:[%s9468_s1 + $0xb48] ss:$12 sps:$4 sm:$0xff]  }
  0xc5   :  { %6238 = vmatpush3.bf16.msra.mxu1 %v6857_v9  ;;  %v6932_v9 = vld [vmem:[%s9468_s1 + $0xa88] ss:$12 sps:$4 sm:$0xff]  }
  0xc6   :  { %6239 = vmatprep.subr.bf16.mxu1 %v6861_v27  ;;  %v6865_v27 = vld [vmem:[%s9468_s1 + $0x604] ss:$12 sps:$4 sm:$0xff]  }
  0xc7   :  { %3260 = vmatpush1.bf16.msra.mxu0 %v6778_v20  ;;  %v6853_v20 = vld [vmem:[%s9468_s1 + $0x5d0] ss:$12 sps:$4 sm:$0xff]  }
  0xc8   :  { %3261 = vmatprep.subr.bf16.mxu0 %v6787_v21  ;;  %v6860_v21 = vld [vmem:[%s9468_s1 + $0x5ec] ss:$12 sps:$4 sm:$0xff]  }
  0xc9   :  { %6240 = vmatpush3.bf16.msra.mxu1 %v6862_v30 }
  0xca   :  { %3249 = vmatmul.mubr.bf16.gmra.mrb[4].mxu0 %v7839_v10  ;;  %v6805_v10 = vld [vmem:[%s9468_s1 + $0x4fc] ss:$12 sps:$4 sm:$0xff]   ;;  %6241 = vmatprep.subr.bf16.mxu1 %v6866_v31 }
  0xcb   :  { %3262 = vmatpush1.bf16.msra.mxu0 %v6785_v25  ;;  %3289 = vmatprep.mubr.bf16.mxu0 %v7868_v18  ;;  %v6803_v18 = vld [vmem:[%s9468_s1 + $0x4f8] ss:$12 sps:$4 sm:$0xff]   ;;  %v6870_v31 = vld [vmem:[%s9468_s1 + $0x61c] ss:$12 sps:$4 sm:$0xff]  }
  0xcc   :  { %3263 = vmatprep.subr.bf16.mxu0 %v6792_v26  ;;  %v51_v25 = vld [vmem:[%s9469_s0 + $0xc0] sm:$0x11]  ;;  %v6858_v26 = vld [vmem:[%s9468_s1 + $0x5e8] ss:$12 sps:$4 sm:$0xff]  }
  0xcd   :  { %6242 = vmatpush3.bf16.msra.mxu1 %v6867_v33  ;;  %v8278_v30 = vcombine.high %v51_v25, %v51_v25  ;;  %v6868_v33 = vld [vmem:[%s9468_s1 + $0x618] ss:$12 sps:$4 sm:$0xff]  }
  0xce   :  { %6243 = vmatprep.subr.bf16.mxu1 %v6872_v35  ;;  %v8294_v35 = vcombine.low %v51_v25, %v51_v25  ;;  %v6997_v25 = vld [vmem:[%s9468_s1 + $0xc68] ss:$12 sps:$4 sm:$0xff]  }
  0xcf   :  { %3264 = vmatpush1.bf16.msra.mxu0 %v6790_v28  ;;  %v6936_v28 = vld [vmem:[%s9468_s1 + $0xb60] ss:$12 sps:$4 sm:$0xff]  }
  0xd0   :  { %3265 = vmatprep.subr.bf16.mxu0 %v6800_v29  ;;  %v6863_v29 = vld [vmem:[%s9468_s1 + $0x600] ss:$12 sps:$4 sm:$0xff]  }
  0xd1   :  { %6244 = vmatpush3.bf16.msra.mxu1 %v6874_v36  ;;  %v6942_v36 = vld [vmem:[%s9468_s1 + $0xab8] ss:$12 sps:$4 sm:$0xff]  }
  0xd2   :  { %6245 = vmatprep.subr.bf16.mxu1 %v6878_v38  ;;  %v6875_v38 = vld [vmem:[%s9468_s1 + $0x630] ss:$12 sps:$4 sm:$0xff]  }
  0xd3   :  { %3266 = vmatpush1.bf16.msra.mxu0 %v6798_v32  ;;  %v6937_v32 = vld [vmem:[%s9468_s1 + $0xaa0] ss:$12 sps:$4 sm:$0xff]  }
  0xd4   :  { %3267 = vmatprep.subr.bf16.mxu0 %v6805_v10  ;;  %v6941_v10 = vld [vmem:[%s9468_s1 + $0xb78] ss:$12 sps:$4 sm:$0xff]  }
  0xd5   :  { %6246 = vmatpush3.bf16.msra.mxu1 %v6879_v40  ;;  %v6951_v40 = vld [vmem:[%s9468_s1 + $0xba8] ss:$12 sps:$4 sm:$0xff]  }
  0xd6   :  { %6259 = vmatprep.subr.bf16.mxu1 %v6886_v43  ;;  %v6890_v43 = vld [vmem:[%s9468_s1 + $0x664] ss:$12 sps:$4 sm:$0xff]  }
  0xd7   :  { %3268 = vmatpush1.bf16.msra.mxu0 %v6803_v18  ;;  %v6877_v18 = vld [vmem:[%s9468_s1 + $0x634] ss:$12 sps:$4 sm:$0xff]  }
  0xd8   :  { %3269 = vmatprep.subr.bf16.mxu0 %v6810_v37  ;;  %3836 = vmatmul.mubr.bf16.vlgmr.msra.gmra.mrb[40].mxu1 %v6883_v46  ;;  %v6975_v37 = vld [vmem:[%s9469_s0 + $0x3c] ss:$72 sps:$4 sm:$0xff]   ;;  %v6956_v46 = vld [vmem:[%s9468_s1 + $0xbc0] ss:$12 sps:$4 sm:$0xff]  }
  0xd9   :  { %6260 = vmatpush3.bf16.msra.mxu1 %v6887_v49  ;;  %3843 = vmatprep.mubr.bf16.mxu1 %v8161_v52  ;;  %v6893_v49 = vld [vmem:[%s9468_s1 + $0x678] ss:$12 sps:$4 sm:$0xff]  }
  0xda   :  { %6261 = vmatprep.subr.bf16.mxu1 %v6891_v50  ;;  %v6964_v50 = vld [vmem:[%s9468_s1 + $0xb18] ss:$12 sps:$4 sm:$0xff]  }
  0xdb   :  { %3270 = vmatpush1.bf16.msra.mxu0 %v6808_v39  ;;  %v6882_v39 = vld [vmem:[%s9468_s1 + $0x64c] ss:$12 sps:$4 sm:$0xff]  }
  0xdc   :  { %3271 = vmatprep.subr.bf16.mxu0 %v6815_v41  ;;  %v6880_v41 = vld [vmem:[%s9468_s1 + $0x648] ss:$12 sps:$4 sm:$0xff]  }
  0xdd   :  { %6262 = vmatpush3.bf16.msra.mxu1 %v6892_v54  ;;  %v6968_v54 = vld [vmem:[%s9468_s1 + $0xbf0] ss:$12 sps:$4 sm:$0xff]  }
  0xde   :  { %6263 = vmatprep.subr.bf16.mxu1 %v6896_v56  ;;  %v6905_v56 = vld [vmem:[%s9468_s1 + $0x6ac] ss:$12 sps:$4 sm:$0xff]  }
  0xdf   :  { %3272 = vmatpush1.bf16.msra.mxu0 %v6813_v44  ;;  %v6952_v44 = vld [vmem:[%s9468_s1 + $0xae8] ss:$12 sps:$4 sm:$0xff]  }
  0xe0   :  { %3273 = vmatprep.subr.bf16.mxu0 %v6820_v48  ;;  %3844 = vmatmul.mubr.bf16.gmra.mrb[44].mxu1 %v8179_v58  ;;  %v6895_v48 = vld [vmem:[%s9468_s1 + $0x67c] ss:$12 sps:$4 sm:$0xff]  }
  0xe1   :  { %6264 = vmatpush3.bf16.msra.mxu1 %v6897_v61  ;;  %3883 = vmatprep.mubr.bf16.mxu1 %v8196_v0  ;;  %v6903_v61 = vld [vmem:[%s9468_s1 + $0x6a8] ss:$12 sps:$4 sm:$0xff]  }
  0xe2   :  { %6265 = vmatprep.subr.bf16.mxu1 %v6901_v62  ;;  %v6973_v62 = vld [vmem:[%s9469_s0 + $0x38] ss:$72 sps:$4 sm:$0xff]  }
  0xe3   :  { %3274 = vmatpush1.bf16.msra.mxu0 %v6818_v53  ;;  %v6900_v53 = vld [vmem:[%s9468_s1 + $0x694] ss:$12 sps:$4 sm:$0xff]  }
  0xe4   :  { %3275 = vmatprep.subr.bf16.mxu0 %v6825_v55  ;;  %v6898_v55 = vld [vmem:[%s9468_s1 + $0x690] ss:$12 sps:$4 sm:$0xff]  }
  0xe5   :  { %6266 = vmatpush3.bf16.msra.mxu1 %v6902_v2  ;;  %v6977_v2 = vld [vmem:[%s9468_s1 + $0xc08] ss:$12 sps:$4 sm:$0xff]  }
  0xe6   :  { %6267 = vmatprep.subr.bf16.mxu1 %v6906_v3  ;;  %v6981_v3 = vld [vmem:[%s9468_s1 + $0xce0] ss:$12 sps:$4 sm:$0xff]  }
  0xe7   :  { %3276 = vmatpush1.bf16.msra.mxu0 %v6823_v57  ;;  %v6969_v57 = vld [vmem:[%s9468_s1 + $0xb30] ss:$12 sps:$4 sm:$0xff]  }
  0xe8   :  { %3277 = vmatprep.subr.bf16.mxu0 %v6832_v59  ;;  %v6976_v59 = vld [vmem:[%s9468_s1 + $0xcc8] ss:$12 sps:$4 sm:$0xff]  }
  0xe9   :  { %6268 = vmatpush3.bf16.msra.mxu1 %v6907_v6  ;;  %v6915_v6 = vld [vmem:[%s9468_s1 + $0x6dc] ss:$12 sps:$4 sm:$0xff]  }
  0xea   :  { %6269 = vmatprep.subr.bf16.mxu1 %v6911_v7  ;;  %v6982_v7 = vld [vmem:[%s9468_s1 + $0xc20] ss:$12 sps:$4 sm:$0xff]  }
  0xeb   :  { %3278 = vmatpush1.bf16.msra.mxu0 %v6830_v63  ;;  %v52_v63 = vld [vmem:[%s9469_s0 + $0xc8] sm:$0x11] }
  0xec   :  { %3279 = vmatprep.subr.bf16.mxu0 %v6837_v1  ;;  %v6910_v1 = vld [vmem:[%s9468_s1 + $0x6c4] ss:$12 sps:$4 sm:$0xff]  }
  0xed   :  { %6270 = vmatpush3.bf16.msra.mxu1 %v6912_v12  ;;  %v6922_v12 = vld [vmem:[%s9468_s1 + $0x6f4] ss:$12 sps:$4 sm:$0xff]  }
  0xee   :  { %6271 = vmatprep.subr.bf16.mxu1 %v6917_v13  ;;  %v8411_v13 = vcombine.low %v52_v63, %v52_v63 }
  0xef   :  { %3280 = vmatpush1.bf16.msra.mxu0 %v6835_v4  ;;  %v8390_v4 = vcombine.high %v52_v63, %v52_v63  ;;  %v7005_v63 = vld [vmem:[%s9468_s1 + $0x85c] ss:$12 sps:$4 sm:$0xff]  }
  0xf0   :  { %3281 = vmatprep.subr.bf16.mxu0 %v6845_v5  ;;  %v6908_v5 = vld [vmem:[%s9468_s1 + $0x6c0] ss:$12 sps:$4 sm:$0xff]  }
  0xf1   :  { %6272 = vmatpush3.bf16.msra.mxu1 %v6919_v16  ;;  %v6991_v16 = vld [vmem:[%s9468_s1 + $0xd10] ss:$12 sps:$4 sm:$0xff]  }
  0xf2   :  { %6273 = vmatprep.subr.bf16.mxu1 %v6923_v19  ;;  %v6920_v19 = vld [vmem:[%s9468_s1 + $0x6f0] ss:$12 sps:$4 sm:$0xff]  }
  0xf3   :  { %3282 = vmatpush1.bf16.msra.mxu0 %v6843_v8  ;;  %v6986_v8 = vld [vmem:[%s9468_s1 + $0xcf8] ss:$12 sps:$4 sm:$0xff]  }
  0xf4   :  { %3283 = vmatprep.subr.bf16.mxu0 %v6850_v11  ;;  %v6913_v11 = vld [vmem:[%s9468_s1 + $0x6d8] ss:$12 sps:$4 sm:$0xff]  }
  0xf5   :  { %6274 = vmatpush3.bf16.msra.mxu1 %v6924_v23  ;;  %v6996_v23 = vld [vmem:[%s9468_s1 + $0xd28] ss:$12 sps:$4 sm:$0xff]  }
  0xf6   :  { %6287 = vmatprep.subr.bf16.mxu1 %v6931_v60  ;;  %v6925_v60 = vld [vmem:[%s9468_s1 + $0x708] ss:$12 sps:$4 sm:$0xff]  }
  0xf7   :  { %3284 = vmatpush1.bf16.msra.mxu0 %v6848_v15  ;;  %v6987_v15 = vld [vmem:[%s9468_s1 + $0xc38] ss:$12 sps:$4 sm:$0xff]  }
  0xf8   :  { %3285 = vmatprep.subr.bf16.mxu0 %v6855_v17  ;;  %3884 = vmatmul.mubr.bf16.vlgmr.msra.gmra.mrb[48].mxu1 %v6928_v24  ;;  %v7020_v17 = vld [vmem:[%s9469_s0 + $0x44] ss:$72 sps:$4 sm:$0xff]  }
  0xf9   :  { %6288 = vmatpush3.bf16.msra.mxu1 %v6932_v9  ;;  %3891 = vmatprep.mubr.bf16.mxu1 %v8278_v30  ;;  %v6935_v24 = vld [vmem:[%s9468_s1 + $0x724] ss:$12 sps:$4 sm:$0xff]   ;;  %v6933_v9 = vld [vmem:[%s9468_s1 + $0x720] ss:$12 sps:$4 sm:$0xff]  }
  0xfa   :  { %6289 = vmatprep.subr.bf16.mxu1 %v6936_v28  ;;  %v7002_v28 = vld [vmem:[%s9468_s1 + $0xc80] ss:$12 sps:$4 sm:$0xff]  }
  0xfb   :  { %3286 = vmatpush1.bf16.msra.mxu0 %v6853_v20  ;;  %v6927_v20 = vld [vmem:[%s9468_s1 + $0x70c] ss:$12 sps:$4 sm:$0xff]  }
  0xfc   :  { %3287 = vmatprep.subr.bf16.mxu0 %v6860_v21  ;;  %v6992_v21 = vld [vmem:[%s9468_s1 + $0xc50] ss:$12 sps:$4 sm:$0xff]  }
  0xfd   :  { %6290 = vmatpush3.bf16.msra.mxu1 %v6937_v32  ;;  %v6945_v32 = vld [vmem:[%s9468_s1 + $0x754] ss:$12 sps:$4 sm:$0xff]  }
  0xfe   :  { %6291 = vmatprep.subr.bf16.mxu1 %v6941_v10  ;;  %v7009_v10 = vld [vmem:[%s9468_s1 + $0xc98] ss:$12 sps:$4 sm:$0xff]  }
  0xff   :  { %3288 = vmatpush1.bf16.msra.mxu0 %v6858_v26  ;;  %v7001_v26 = vld [vmem:[%s9468_s1 + $0xd40] ss:$12 sps:$4 sm:$0xff]  }
 0x100   :  { %3308 = vmatprep.subr.bf16.mxu0 %v6865_v27  ;;  %3892 = vmatmul.mubr.bf16.gmra.mrb[52].mxu1 %v8294_v35  ;;  %v6940_v27 = vld [vmem:[%s9468_s1 + $0x73c] ss:$12 sps:$4 sm:$0xff]  }
 0x101   :  { %6292 = vmatpush3.bf16.msra.mxu1 %v6942_v36  ;;  %3931 = vmatprep.mubr.bf16.mxu1 %v6975_v37  ;;  %v6950_v36 = vld [vmem:[%s9468_s1 + $0x76c] ss:$12 sps:$4 sm:$0xff]   ;;  %v53_v37 = vld [vmem:[%s9469_s0 + $0xd0] sm:$0x11] }
 0x102   :  { %3290 = vmatmul.mubr.bf16.vlgmr.msra.gmra.mrb[0].mxu0 %v7920_v34  ;;  %v6946_v34 = vld [vmem:[%s9468_s1 + $0xb90] ss:$12 sps:$4 sm:$0xff]  }
 0x103   :  { %3309 = vmatpush1.bf16.msra.mxu0 %v6863_v29  ;;  %3299 = vmatprep.mubr.bf16.mxu0 %v7944_v42  ;;  %v6947_v42 = vld [vmem:[%s9468_s1 + $0xad0] ss:$12 sps:$4 sm:$0xff]   ;;  %v7008_v29 = vld [vmem:[%s9468_s1 + $0xd58] ss:$12 sps:$4 sm:$0xff]  }
 0x104   :  { %3310 = vmatprep.subr.bf16.mxu0 %v6870_v31  ;;  %6293 = vmatprep.subr.bf16.mxu1 %v6946_v34  ;;  %v6938_v31 = vld [vmem:[%s9468_s1 + $0x738] ss:$12 sps:$4 sm:$0xff]   ;;  %v7014_v34 = vld [vmem:[%s9468_s1 + $0xcb0] ss:$12 sps:$4 sm:$0xff]  }
 0x105   :  { %6294 = vmatpush3.bf16.msra.mxu1 %v6947_v42  ;;  %v6955_v42 = vld [vmem:[%s9468_s1 + $0x784] ss:$12 sps:$4 sm:$0xff]  }
 0x106   :  { %6295 = vmatprep.subr.bf16.mxu1 %v6951_v40  ;;  %v8492_v40 = vcombine.high %v53_v37, %v53_v37 }
 0x107   :  { %3311 = vmatpush1.bf16.msra.mxu0 %v6868_v33  ;;  %v7013_v33 = vld [vmem:[%s9468_s1 + $0xd70] ss:$12 sps:$4 sm:$0xff]  }
 0x108   :  { %3312 = vmatprep.subr.bf16.mxu0 %v6877_v18  ;;  %v6943_v18 = vld [vmem:[%s9468_s1 + $0x750] ss:$12 sps:$4 sm:$0xff]  }
 0x109   :  { %6296 = vmatpush3.bf16.msra.mxu1 %v6952_v44  ;;  %v7371_v44 = vld [vmem:[%s9469_s0 + $0x20] ss:$72 sps:$4 sm:$0xff]  }
 0x10a   :  { %3300 = vmatmul.mubr.bf16.gmra.mrb[4].mxu0 %v7953_v45  ;;  %v6957_v45 = vld [vmem:[%s9468_s1 + $0xb00] ss:$12 sps:$4 sm:$0xff]   ;;  %6297 = vmatprep.subr.bf16.mxu1 %v6956_v46  ;;  %v8504_v46 = vcombine.low %v53_v37, %v53_v37 }
 0x10b   :  { %3313 = vmatpush1.bf16.msra.mxu0 %v6875_v38  ;;  %3340 = vmatprep.mubr.bf16.mxu0 %v7974_v51  ;;  %v6962_v51 = vld [vmem:[%s9468_s1 + $0xbd8] ss:$12 sps:$4 sm:$0xff]   ;;  %v7018_v38 = vld [vmem:[%s9469_s0 + $0x40] ss:$72 sps:$4 sm:$0xff]  }
 0x10c   :  { %3314 = vmatprep.subr.bf16.mxu0 %v6882_v39  ;;  %v6948_v39 = vld [vmem:[%s9468_s1 + $0x768] ss:$12 sps:$4 sm:$0xff]   ;;  %v7046_v37 = vld [vmem:[%s9468_s1 + $0x94c] ss:$12 sps:$4 sm:$0xff]  }
 0x10d   :  { %6298 = vmatpush3.bf16.msra.mxu1 %v6957_v45  ;;  %v6967_v45 = vld [vmem:[%s9468_s1 + $0x7b4] ss:$12 sps:$4 sm:$0xff]  }
 0x10e   :  { %6299 = vmatprep.subr.bf16.mxu1 %v6962_v51  ;;  %v6972_v51 = vld [vmem:[%s9468_s1 + $0x7cc] ss:$12 sps:$4 sm:$0xff]  }
 0x10f   :  { %3315 = vmatpush1.bf16.msra.mxu0 %v6880_v41  ;;  %v6953_v41 = vld [vmem:[%s9468_s1 + $0x780] ss:$12 sps:$4 sm:$0xff]  }
 0x110   :  { %3316 = vmatprep.subr.bf16.mxu0 %v6890_v43  ;;  %v6960_v43 = vld [vmem:[%s9468_s1 + $0x79c] ss:$12 sps:$4 sm:$0xff]  }
 0x111   :  { %6300 = vmatpush3.bf16.msra.mxu1 %v6964_v50  ;;  %v6980_v50 = vld [vmem:[%s9468_s1 + $0x7e4] ss:$12 sps:$4 sm:$0xff]  }
 0x112   :  { %6301 = vmatprep.subr.bf16.mxu1 %v6968_v54  ;;  %v6983_v54 = vld [vmem:[%s9468_s1 + $0x7f8] ss:$12 sps:$4 sm:$0xff]  }
 0x113   :  { %3317 = vmatpush1.bf16.msra.mxu0 %v6888_v47  ;;  %v6958_v47 = vld [vmem:[%s9468_s1 + $0x798] ss:$12 sps:$4 sm:$0xff]  }
 0x114   :  { %3318 = vmatprep.subr.bf16.mxu0 %v6895_v48  ;;  %v6965_v48 = vld [vmem:[%s9468_s1 + $0x7b0] ss:$12 sps:$4 sm:$0xff]  }
 0x115   :  { %6302 = vmatpush3.bf16.msra.mxu1 %v6969_v57  ;;  %v6995_v57 = vld [vmem:[%s9468_s1 + $0x82c] ss:$12 sps:$4 sm:$0xff]  }
 0x116   :  { %6315 = vmatprep.subr.bf16.mxu1 %v6976_v59  ;;  %v6993_v59 = vld [vmem:[%s9468_s1 + $0x828] ss:$12 sps:$4 sm:$0xff]  }
 0x117   :  { %3319 = vmatpush1.bf16.msra.mxu0 %v6893_v49  ;;  %v7372_v49 = vld [vmem:[%s9469_s0 + $0x2c] ss:$72 sps:$4 sm:$0xff]  }
 0x118   :  { %3320 = vmatprep.subr.bf16.mxu0 %v6900_v53  ;;  %3932 = vmatmul.mubr.bf16.vlgmr.msra.gmra.mrb[56].mxu1 %v6973_v62  ;;  %v6985_v53 = vld [vmem:[%s9468_s1 + $0x7fc] ss:$12 sps:$4 sm:$0xff]   ;;  %v6998_v62 = vld [vmem:[%s9468_s1 + $0x840] ss:$12 sps:$4 sm:$0xff]  }
 0x119   :  { %6316 = vmatpush3.bf16.msra.mxu1 %v6977_v2  ;;  %3939 = vmatprep.mubr.bf16.mxu1 %v8390_v4  ;;  %v7012_v2 = vld [vmem:[%s9468_s1 + $0x874] ss:$12 sps:$4 sm:$0xff]  }
 0x11a   :  { %6317 = vmatprep.subr.bf16.mxu1 %v6981_v3  ;;  %v7010_v3 = vld [vmem:[%s9468_s1 + $0x870] ss:$12 sps:$4 sm:$0xff]  }
 0x11b   :  { %3321 = vmatpush1.bf16.msra.mxu0 %v6898_v55  ;;  %v6990_v55 = vld [vmem:[%s9468_s1 + $0x814] ss:$12 sps:$4 sm:$0xff]  }
 0x11c   :  { %3322 = vmatprep.subr.bf16.mxu0 %v6905_v56  ;;  %v6988_v56 = vld [vmem:[%s9468_s1 + $0x810] ss:$12 sps:$4 sm:$0xff]  }
 0x11d   :  { %6318 = vmatpush3.bf16.msra.mxu1 %v6982_v7  ;;  %v7023_v7 = vld [vmem:[%s9468_s1 + $0x8a4] ss:$12 sps:$4 sm:$0xff]  }
 0x11e   :  { %6319 = vmatprep.subr.bf16.mxu1 %v6986_v8  ;;  %v7021_v8 = vld [vmem:[%s9468_s1 + $0x8a0] ss:$12 sps:$4 sm:$0xff]  }
 0x11f   :  { %3323 = vmatpush1.bf16.msra.mxu0 %v6903_v61  ;;  %v7000_v61 = vld [vmem:[%s9468_s1 + $0x844] ss:$12 sps:$4 sm:$0xff]  }
 0x120   :  { %3324 = vmatprep.subr.bf16.mxu0 %v6910_v1  ;;  %3940 = vmatmul.mubr.bf16.gmra.mrb[60].mxu1 %v8411_v13  ;;  %v7003_v1 = vld [vmem:[%s9468_s1 + $0x858] ss:$12 sps:$4 sm:$0xff]  }
 0x121   :  { %6320 = vmatpush3.bf16.msra.mxu1 %v6987_v15  ;;  %3979 = vmatprep.mubr.bf16.mxu1 %v7020_v17  ;;  %v7029_v15 = vld [vmem:[%s9468_s1 + $0x8d4] ss:$12 sps:$4 sm:$0xff]   ;;  %v7032_v17 = vld [vmem:[%s9468_s1 + $0x8ec] ss:$12 sps:$4 sm:$0xff]  }
 0x122   :  { %6321 = vmatprep.subr.bf16.mxu1 %v6991_v16  ;;  %v7027_v16 = vld [vmem:[%s9468_s1 + $0x8d0] ss:$12 sps:$4 sm:$0xff]  }
 0x123   :  { %3325 = vmatpush1.bf16.msra.mxu0 %v6908_v5  ;;  %v7017_v5 = vld [vmem:[%s9468_s1 + $0x88c] ss:$12 sps:$4 sm:$0xff]  }
 0x124   :  { %3326 = vmatprep.subr.bf16.mxu0 %v6915_v6  ;;  %v7015_v6 = vld [vmem:[%s9468_s1 + $0x888] ss:$12 sps:$4 sm:$0xff]  }
 0x125   :  { %6322 = vmatpush3.bf16.msra.mxu1 %v6992_v21  ;;  %v7033_v21 = vld [vmem:[%s9468_s1 + $0x900] ss:$12 sps:$4 sm:$0xff]  }
 0x126   :  { %6323 = vmatprep.subr.bf16.mxu1 %v6996_v23  ;;  %v7038_v23 = vld [vmem:[%s9468_s1 + $0x91c] ss:$12 sps:$4 sm:$0xff]  }
 0x127   :  { %3327 = vmatpush1.bf16.msra.mxu0 %v6913_v11  ;;  %v7026_v11 = vld [vmem:[%s9468_s1 + $0x8bc] ss:$12 sps:$4 sm:$0xff]  }
 0x128   :  { %3328 = vmatprep.subr.bf16.mxu0 %v6922_v12  ;;  %v7024_v12 = vld [vmem:[%s9468_s1 + $0x8b8] ss:$12 sps:$4 sm:$0xff]  }
 0x129   :  { %6324 = vmatpush3.bf16.msra.mxu1 %v6997_v25  ;;  %v7036_v25 = vld [vmem:[%s9468_s1 + $0x918] ss:$12 sps:$4 sm:$0xff]  }
 0x12a   :  { %6325 = vmatprep.subr.bf16.mxu1 %v7001_v26  ;;  %v632_v26 = vlaneseq }
 0x12b   :  { %3329 = vmatpush1.bf16.msra.mxu0 %v6920_v19  ;;  %v7030_v19 = vld [vmem:[%s9468_s1 + $0x8e8] ss:$12 sps:$4 sm:$0xff]  }
 0x12c   :  { %3330 = vmatprep.subr.bf16.mxu0 %v6927_v20  ;;  %v7035_v20 = vld [vmem:[%s9468_s1 + $0x904] ss:$12 sps:$4 sm:$0xff]  }
 0x12d   :  { %6326 = vmatpush3.bf16.msra.mxu1 %v7002_v28 }
 0x12e   :  { %6327 = vmatprep.subr.bf16.mxu1 %v7008_v29 }
 0x12f   :  { %3331 = vmatpush1.bf16.msra.mxu0 %v6925_v60  ;;  %v6107_v60 = vpop.f32.mrb[0].mxu1 }
 0x130   :  { %3332 = vmatprep.subr.bf16.mxu0 %v6935_v24  ;;  %v7373_v24 = vld [vmem:[%s9469_s0 + $0x28] ss:$72 sps:$4 sm:$0xff]  }
 0x131   :  { %6328 = vmatpush3.bf16.msra.mxu1 %v7009_v10  ;;  %v630_v10 = vld [vmem:[%s9470_s2] sm:$0x7] }
 0x132   :  { %6329 = vmatprep.subr.bf16.mxu1 %v7013_v33 }
 0x133   :  { %3333 = vmatpush1.bf16.msra.mxu0 %v6933_v9  ;;  %v6108_v9 = vpop.f32.mrb[1].mxu1 }
 0x134   :  { %3334 = vmatprep.subr.bf16.mxu0 %v6940_v27  ;;  %v7043_v27 = vld [vmem:[%s9468_s1 + $0x934] ss:$12 sps:$4 sm:$0xff]   ;;  %v6109_v28 = vadd.f32 %v6108_v9, %v6107_v60  ;;  %v6110_v29 = vpop.f32.mrb[2].mxu1 }
 0x135   :  { %6330 = vmatpush3.bf16.msra.mxu1 %v7014_v34 }
 0x137   :  { %3335 = vmatpush1.bf16.msra.mxu0 %v6938_v31  ;;  %v8618_v31 = vshrl.u32 %v632_v26, 7  ;;  %v7056_v26 = vld [vmem:[%s9468_s1 + $0x9a8] ss:$12 sps:$4 sm:$0xff]  }
 0x138   :  { %3336 = vmatprep.subr.bf16.mxu0 %v6945_v32  ;;  %3980 = vmatmul.mubr.bf16.vlgmr.msra.gmra.mrb[64].mxu1 %v7018_v38  ;;  %v6111_v32 = vpop.f32.mrb[3].mxu1 }
 0x139   :  { %3987 = vmatprep.mubr.bf16.mxu1 %v8492_v40  ;;  %v6112_v33 = vadd.f32 %v6111_v32, %v6110_v29 }
 0x13b   :  { %3337 = vmatpush1.bf16.msra.mxu0 %v6943_v18  ;;  %v6113_v18 = vpop.f32.mrb[4].mxu1 }
 0x13c   :  { %3338 = vmatprep.subr.bf16.mxu0 %v6950_v36  ;;  %v8627_v36 = vsub.s32 2, %v8618_v31  ;;  %v6114_v34 = vpop.f32.mrb[5].mxu1 }
 0x13d   :  { %v6115_v38 = vadd.f32 %v6114_v34, %v6113_v18 }
 0x13f   :  { %3339 = vmatpush1.bf16.msra.mxu0 %v6948_v39  ;;  %v6116_v39 = vpop.f32.mrb[6].mxu1 }
 0x140   :  { %3359 = vmatprep.subr.bf16.mxu0 %v6955_v42  ;;  %3988 = vmatmul.mubr.bf16.gmra.mrb[68].mxu1 %v8504_v46  ;;  %v643_v42 = vrot.slane %v630_v10, %v8627_v36 }
 0x142   :  { %3341 = vmatmul.mubr.bf16.vlgmr.msra.gmra.mrb[0].mxu0 %v7371_v44  ;;  %v7044_v44 = vld [vmem:[%s9468_s1 + $0x948] ss:$12 sps:$4 sm:$0xff]  }
 0x143   :  { %3360 = vmatpush1.bf16.msra.mxu0 %v6953_v41  ;;  %3350 = vmatprep.mubr.bf16.mxu0 %v8046_v14  ;;  %v6970_v14 = vld [vmem:[%s9468_s1 + $0x7c8] ss:$12 sps:$4 sm:$0xff]   ;;  %v6117_v41 = vpop.f32.mrb[7].mxu1 }
 0x144   :  { %3361 = vmatprep.subr.bf16.mxu0 %v6960_v43  ;;  %v6135_v43 = vpop.f32.mrb[8].mxu1 }
 0x147   :  { %3362 = vmatpush1.bf16.msra.mxu0 %v6958_v47  ;;  %v3598_v47 = vadd.f32 %v6109_v28, %v643_v42 }
 0x148   :  { %3363 = vmatprep.subr.bf16.mxu0 %v6967_v45  ;;  %v6136_v45 = vpop.f32.mrb[9].mxu1 }
 0x14a   :  { %3351 = vmatmul.mubr.bf16.gmra.mrb[4].mxu0 %v8068_v22  ;;  %v6978_v22 = vld [vmem:[%s9468_s1 + $0x7e0] ss:$12 sps:$4 sm:$0xff]  }
 0x14b   :  { %3364 = vmatpush1.bf16.msra.mxu0 %v6965_v48  ;;  %3391 = vmatprep.mubr.bf16.mxu0 %v7372_v49  ;;  %v7049_v48 = vld [vmem:[%s9468_s1 + $0x964] ss:$12 sps:$4 sm:$0xff]   ;;  %v6138_v49 = vpop.f32.mrb[10].mxu1 }
 0x14c   :  { %3365 = vmatprep.subr.bf16.mxu0 %v6972_v51  ;;  %v3601_v51 = vadd.f32 %v6112_v33, %v643_v42 }
 0x14f   :  { %3366 = vmatpush1.bf16.msra.mxu0 %v6970_v14  ;;  %v6137_v14 = vadd.f32 %v6136_v45, %v6135_v43 }
 0x150   :  { %3367 = vmatprep.subr.bf16.mxu0 %v6980_v50  ;;  %v6139_v50 = vpop.f32.mrb[11].mxu1 }
 0x153   :  { %3368 = vmatpush1.bf16.msra.mxu0 %v6978_v22  ;;  %v3646_v22 = vadd.f32 %v6137_v14, %v3598_v47  ;;  %v7062_v47 = vld [vmem:[%s9468_s1 + $0x9d8] ss:$12 sps:$4 sm:$0xff]  }
 0x154   :  { %3369 = vmatprep.subr.bf16.mxu0 %v6985_v53  ;;  %v6140_v53 = vadd.f32 %v6139_v50, %v6138_v49 }
 0x157   :  { %3370 = vmatpush1.bf16.msra.mxu0 %v6983_v54  ;;  %v6141_v54 = vpop.f32.mrb[12].mxu1 }
 0x158   :  { %3371 = vmatprep.subr.bf16.mxu0 %v6990_v55  ;;  %v6142_v55 = vpop.f32.mrb[13].mxu1 }
 0x15b   :  { %3372 = vmatpush1.bf16.msra.mxu0 %v6988_v56  ;;  %v7052_v56 = vld [vmem:[%s9468_s1 + $0x97c] ss:$12 sps:$4 sm:$0xff]  }
 0x15c   :  { %3373 = vmatprep.subr.bf16.mxu0 %v6995_v57  ;;  %v3649_v57 = vadd.f32 %v6140_v53, %v3601_v51  ;;  %v7065_v53 = vld [vmem:[%s9468_s1 + $0x9f0] ss:$12 sps:$4 sm:$0xff]  }
 0x15f   :  { %3374 = vmatpush1.bf16.msra.mxu0 %v6993_v59  ;;  %v6143_v59 = vadd.f32 %v6142_v55, %v6141_v54 }
 0x160   :  { %3375 = vmatprep.subr.bf16.mxu0 %v7000_v61  ;;  %v6144_v61 = vpop.f32.mrb[14].mxu1 }
 0x163   :  { %3376 = vmatpush1.bf16.msra.mxu0 %v6998_v62  ;;  %v6145_v62 = vpop.f32.mrb[15].mxu1 }
 0x164   :  { %3377 = vmatprep.subr.bf16.mxu0 %v7005_v63  ;;  %v7068_v62 = vld [vmem:[%s9468_s1 + $0xa08] ss:$12 sps:$4 sm:$0xff]  }
 0x167   :  { %3378 = vmatpush1.bf16.msra.mxu0 %v7003_v1  ;;  %v6163_v1 = vpop.f32.mrb[16].mxu1 }
 0x168   :  { %3379 = vmatprep.subr.bf16.mxu0 %v7012_v2  ;;  %v7050_v2 = vld [vmem:[%s9468_s1 + $0x978] ss:$12 sps:$4 sm:$0xff]  }
 0x16b   :  { %3380 = vmatpush1.bf16.msra.mxu0 %v7010_v3  ;;  %v6164_v3 = vpop.f32.mrb[17].mxu1 }
 0x16c   :  { %3381 = vmatprep.subr.bf16.mxu0 %v7017_v5  ;;  %v7055_v5 = vld [vmem:[%s9468_s1 + $0x994] ss:$12 sps:$4 sm:$0xff]  }
 0x16f   :  { %3382 = vmatpush1.bf16.msra.mxu0 %v7015_v6  ;;  %v6165_v6 = vadd.f32 %v6164_v3, %v6163_v1  ;;  %v7071_v1 = vld [vmem:[%s9468_s1 + $0xa20] ss:$12 sps:$4 sm:$0xff]  }
 0x170   :  { %3383 = vmatprep.subr.bf16.mxu0 %v7023_v7  ;;  %v6166_v7 = vpop.f32.mrb[18].mxu1 }
 0x173   :  { %3384 = vmatpush1.bf16.msra.mxu0 %v7021_v8  ;;  %v6167_v8 = vpop.f32.mrb[19].mxu1 }
 0x174   :  { %3385 = vmatprep.subr.bf16.mxu0 %v7026_v11  ;;  %v3694_v11 = vadd.f32 %v6165_v6, %v3646_v22  ;;  %v7074_v6 = vld [vmem:[%s9468_s1 + $0xa38] ss:$12 sps:$4 sm:$0xff]  }
 0x177   :  { %3386 = vmatpush1.bf16.msra.mxu0 %v7024_v12  ;;  %v6168_v12 = vadd.f32 %v6167_v8, %v6166_v7 }
 0x178   :  { %3387 = vmatprep.subr.bf16.mxu0 %v7029_v15  ;;  %v6169_v15 = vpop.f32.mrb[20].mxu1 }
 0x17b   :  { %3388 = vmatpush1.bf16.msra.mxu0 %v7027_v16  ;;  %v7053_v16 = vld [vmem:[%s9468_s1 + $0x990] ss:$12 sps:$4 sm:$0xff]  }
 0x17c   :  { %3389 = vmatprep.subr.bf16.mxu0 %v7032_v17  ;;  %v6170_v17 = vpop.f32.mrb[21].mxu1 }
 0x17f   :  { %3390 = vmatpush1.bf16.msra.mxu0 %v7030_v19  ;;  %v7058_v19 = vld [vmem:[%s9468_s1 + $0x9ac] ss:$12 sps:$4 sm:$0xff]  }
 0x180   :  { %3410 = vmatprep.subr.bf16.mxu0 %v7035_v20  ;;  %v3697_v20 = vadd.f32 %v6168_v12, %v3649_v57 }
 0x182   :  { %3392 = vmatmul.mubr.bf16.vlgmr.msra.gmra.mrb[0].mxu0 %v7373_v24 }
 0x183   :  { %3411 = vmatpush1.bf16.msra.mxu0 %v7033_v21  ;;  %3401 = vmatprep.mubr.bf16.mxu0 %v8161_v52  ;;  %v7041_v52 = vld [vmem:[%s9468_s1 + $0x930] ss:$12 sps:$4 sm:$0xff]   ;;  %v6171_v21 = vadd.f32 %v6170_v17, %v6169_v15 }
 0x184   :  { %3412 = vmatprep.subr.bf16.mxu0 %v7038_v23  ;;  %v6172_v23 = vpop.f32.mrb[22].mxu1  ;;  %v7077_v17 = vld [vmem:[%s9468_s1 + $0xa50] ss:$12 sps:$4 sm:$0xff]  }
 0x185   :  { %v6173_v60 = vpop.f32.mrb[23].mxu1 }
 0x186   :  { %v7080_v60 = vld [vmem:[%s9468_s1 + $0xa68] ss:$12 sps:$4 sm:$0xff]  }
 0x187   :  { %3413 = vmatpush1.bf16.msra.mxu0 %v7036_v25  ;;  %v6191_v25 = vpop.f32.mrb[24].mxu1 }
 0x188   :  { %3414 = vmatprep.subr.bf16.mxu0 %v7043_v27  ;;  %v6192_v9 = vpop.f32.mrb[25].mxu1  ;;  %v7061_v27 = vld [vmem:[%s9468_s1 + $0x9c4] ss:$12 sps:$4 sm:$0xff]  }
 0x189   :  { %v6193_v28 = vadd.f32 %v6192_v9, %v6191_v25  ;;  %v6194_v29 = vpop.f32.mrb[26].mxu1 }
 0x18a   :  { %3402 = vmatmul.mubr.bf16.gmra.mrb[4].mxu0 %v8179_v58  ;;  %v3606_v58 = vadd.f32 %v6115_v38, %v643_v42  ;;  %v6195_v32 = vpop.f32.mrb[27].mxu1 }
 0x18b   :  { %3415 = vmatpush1.bf16.msra.mxu0 %v7041_v52  ;;  %3442 = vmatprep.mubr.bf16.mxu0 %v8196_v0  ;;  %v7047_v0 = vld [vmem:[%s9468_s1 + $0x960] ss:$12 sps:$4 sm:$0xff]   ;;  %v3742_v10 = vadd.f32 %v6193_v28, %v3694_v11  ;;  %v6196_v33 = vadd.f32 %v6195_v32, %v6194_v29  ;;  %v6197_v18 = vpop.f32.mrb[28].mxu1  ;;  %v7088_v29 = vld [vmem:[%s9468_s1 + $0xa9c] ss:$12 sps:$4 sm:$0xff]  }
 0x18c   :  { %3416 = vmatprep.subr.bf16.mxu0 %v7046_v37  ;;  %v3654_v63 = vadd.f32 %v6143_v59, %v3606_v58  ;;  %v7059_v52 = vld [vmem:[%s9468_s1 + $0x9c0] ss:$12 sps:$4 sm:$0xff]   ;;  %v6198_v34 = vpop.f32.mrb[29].mxu1  ;;  %v7064_v37 = vld [vmem:[%s9468_s1 + $0x9dc] ss:$12 sps:$4 sm:$0xff]  }
 0x18d   :  { %v3745_v38 = vadd.f32 %v6196_v33, %v3697_v20  ;;  %v6199_v39 = vadd.f32 %v6198_v34, %v6197_v18  ;;  %v6200_v42 = vpop.f32.mrb[30].mxu1  ;;  %v7079_v11 = vld [vmem:[%s9468_s1 + $0xa54] ss:$12 sps:$4 sm:$0xff]   ;;  %v7082_v20 = vld [vmem:[%s9468_s1 + $0xa6c] ss:$12 sps:$4 sm:$0xff]  }
 0x18e   :  { %v3702_v24 = vadd.f32 %v6171_v21, %v3654_v63  ;;  %v6201_v41 = vpop.f32.mrb[31].mxu1  ;;  %v7073_v63 = vld [vmem:[%s9468_s1 + $0xa24] ss:$12 sps:$4 sm:$0xff]   ;;  %v7083_v28 = vld [vmem:[%s9468_s1 + $0xa80] ss:$12 sps:$4 sm:$0xff]  }
 0x18f   :  { %3417 = vmatpush1.bf16.msra.mxu0 %v7044_v44  ;;  %v6219_v44 = vpop.f32.mrb[32].mxu1  ;;  %v7374_v32 = vld [vmem:[%s9469_s0 + $0x30] ss:$72 sps:$4 sm:$0xff]   ;;  %v7091_v33 = vld [vmem:[%s9468_s1 + $0xab4] ss:$12 sps:$4 sm:$0xff]  }
 0x190   :  { %3418 = vmatprep.subr.bf16.mxu0 %v7049_v48  ;;  %v3750_v43 = vadd.f32 %v6199_v39, %v3702_v24  ;;  %v6220_v45 = vpop.f32.mrb[33].mxu1  ;;  %v7067_v48 = vld [vmem:[%s9468_s1 + $0x9f4] ss:$12 sps:$4 sm:$0xff]   ;;  %v7089_v18 = vld [vmem:[%s9468_s1 + $0xab0] ss:$12 sps:$4 sm:$0xff]  }
 0x191   :  { %v6221_v51 = vadd.f32 %v6220_v45, %v6219_v44  ;;  %v6222_v14 = vpop.f32.mrb[34].mxu1  ;;  %v7092_v34 = vld [vmem:[%s9468_s1 + $0xac8] ss:$12 sps:$4 sm:$0xff]   ;;  %v7181_v39 = vld [vmem:[%s9471_s3 + $0x4] ss:$12 sps:$4 sm:$0xff]  }
 0x192   :  { %v6223_v49 = vpop.f32.mrb[35].mxu1  ;;  %v7184_v42 = vld [vmem:[%s9471_s3 + $0x1c] ss:$12 sps:$4 sm:$0xff]   ;;  %4507 = vmatprep.subr.bf16.mxu1 %v7181_v39  ;;  %v7187_v44 = vld [vmem:[%s9471_s3 + $0x34] ss:$12 sps:$4 sm:$0xff]  }
 0x193   :  { %3419 = vmatpush1.bf16.msra.mxu0 %v7047_v0  ;;  %v3790_v50 = vadd.f32 %v6221_v51, %v3742_v10  ;;  %v6224_v58 = vadd.f32 %v6223_v49, %v6222_v14  ;;  %v6225_v22 = vpop.f32.mrb[36].mxu1  ;;  %v7070_v0 = vld [vmem:[%s9468_s1 + $0xa0c] ss:$12 sps:$4 sm:$0xff]   ;;  %v7100_v41 = vld [vmem:[%s9468_s1 + $0xafc] ss:$12 sps:$4 sm:$0xff]  }
 0x194   :  { %3420 = vmatprep.subr.bf16.mxu0 %v7052_v56  ;;  %v6226_v54 = vpop.f32.mrb[37].mxu1  ;;  %v7086_v10 = vld [vmem:[%s9468_s1 + $0xa98] ss:$12 sps:$4 sm:$0xff]  }
 0x195   :  { %v3793_v55 = vadd.f32 %v6224_v58, %v3745_v38  ;;  %v6227_v56 = vadd.f32 %v6226_v54, %v6225_v22  ;;  %v6228_v57 = vpop.f32.mrb[38].mxu1  ;;  %v7179_v38 = vld [vmem:[%s9471_s3] ss:$12 sps:$4 sm:$0xff]   ;;  %v7098_v45 = vld [vmem:[%s9468_s1 + $0xaf8] ss:$12 sps:$4 sm:$0xff]  }
 0x196   :  { %v6229_v59 = vpop.f32.mrb[39].mxu1  ;;  %4508 = vmatpush1.bf16.msra.mxu1 %v7179_v38  ;;  %v7190_v22 = vld [vmem:[%s9471_s3 + $0x4c] ss:$12 sps:$4 sm:$0xff]   ;;  %v7188_v57 = vld [vmem:[%s9471_s3 + $0x48] ss:$12 sps:$4 sm:$0xff]  }
 0x197   :  { %3421 = vmatpush1.bf16.msra.mxu0 %v7050_v2  ;;  %v3798_v61 = vadd.f32 %v6227_v56, %v3750_v43  ;;  %v7076_v2 = vld [vmem:[%s9468_s1 + $0xa3c] ss:$12 sps:$4 sm:$0xff]   ;;  %v7182_v43 = vld [vmem:[%s9471_s3 + $0x18] ss:$12 sps:$4 sm:$0xff]   ;;  %4509 = vmatprep.subr.bf16.mxu1 %v7184_v42 }
 0x198   :  { %3422 = vmatprep.subr.bf16.mxu0 %v7055_v5  ;;  %v7193_v59 = vld [vmem:[%s9471_s3 + $0x64] ss:$12 sps:$4 sm:$0xff]   ;;  %v7214_v38 = vld [vmem:[%s9471_s3 + $0x10c] ss:$12 sps:$4 sm:$0xff]  }
 0x19a   :  { %4510 = vmatpush1.bf16.msra.mxu1 %v7182_v43 }
 0x19b   :  { %3423 = vmatpush1.bf16.msra.mxu0 %v7053_v16  ;;  %4511 = vmatprep.subr.bf16.mxu1 %v7187_v44  ;;  %v7125_v44 = vld [vmem:[%s9468_s1 + $0xbd0] ss:$12 sps:$4 sm:$0xff]  }
 0x19c   :  { %3424 = vmatprep.subr.bf16.mxu0 %v7058_v19 }
 0x19f   :  { %3425 = vmatpush1.bf16.msra.mxu0 %v7056_v26  ;;  %v7085_v26 = vld [vmem:[%s9468_s1 + $0xa84] ss:$12 sps:$4 sm:$0xff]  }
 0x1a0   :  { %3426 = vmatprep.subr.bf16.mxu0 %v7061_v27 }
 0x1a3   :  { %3427 = vmatpush1.bf16.msra.mxu0 %v7059_v52  ;;  %v7094_v52 = vld [vmem:[%s9468_s1 + $0xacc] ss:$12 sps:$4 sm:$0xff]  }
 0x1a4   :  { %3428 = vmatprep.subr.bf16.mxu0 %v7064_v37  ;;  %v7375_v37 = vld [vmem:[%s9469_s0 + $0x3c] ss:$72 sps:$4 sm:$0xff]  }
 0x1a7   :  { %3429 = vmatpush1.bf16.msra.mxu0 %v7062_v47 }
 0x1a8   :  { %3430 = vmatprep.subr.bf16.mxu0 %v7067_v48  ;;  %v7103_v48 = vld [vmem:[%s9468_s1 + $0xb14] ss:$12 sps:$4 sm:$0xff]  }
 0x1ab   :  { %3431 = vmatpush1.bf16.msra.mxu0 %v7065_v53  ;;  %v6247_v3 = vpop.f32.mrb[40].mxu1 }
 0x1ac   :  { %3432 = vmatprep.subr.bf16.mxu0 %v7070_v0  ;;  %v6248_v5 = vpop.f32.mrb[41].mxu1  ;;  %v7101_v0 = vld [vmem:[%s9468_s1 + $0xb10] ss:$12 sps:$4 sm:$0xff]  }
 0x1ad   :  { %v6249_v7 = vadd.f32 %v6248_v5, %v6247_v3  ;;  %v6250_v8 = vpop.f32.mrb[42].mxu1  ;;  %v7191_v5 = vld [vmem:[%s9471_s3 + $0x60] ss:$12 sps:$4 sm:$0xff]  }
 0x1ae   :  { %v6251_v12 = vpop.f32.mrb[43].mxu1 }
 0x1af   :  { %3433 = vmatpush1.bf16.msra.mxu0 %v7068_v62  ;;  %v8701_v15 = vadd.f32 %v6249_v7, %v3790_v50  ;;  %v6252_v16 = vadd.f32 %v6251_v12, %v6250_v8  ;;  %v7185_v50 = vld [vmem:[%s9471_s3 + $0x30] ss:$12 sps:$4 sm:$0xff]   ;;  %v7104_v62 = vld [vmem:[%s9468_s1 + $0xb28] ss:$12 sps:$4 sm:$0xff]   ;;  %v7107_v8 = vld [vmem:[%s9468_s1 + $0xb40] ss:$12 sps:$4 sm:$0xff]  }
 0x1b0   :  { %3434 = vmatprep.subr.bf16.mxu0 %v7073_v63  ;;  %4512 = vmatpush1.bf16.msra.mxu1 %v7185_v50  ;;  %v7109_v63 = vld [vmem:[%s9468_s1 + $0xb44] ss:$12 sps:$4 sm:$0xff]   ;;  %v7196_v7 = vld [vmem:[%s9471_s3 + $0x7c] ss:$12 sps:$4 sm:$0xff]  }
 0x1b1   :  { %v8706_v19 = vadd.f32 %v6252_v16, %v3793_v55  ;;  %v7106_v55 = vld [vmem:[%s9468_s1 + $0xb2c] ss:$12 sps:$4 sm:$0xff]   ;;  %4513 = vmatprep.subr.bf16.mxu1 %v7190_v22  ;;  %v7199_v16 = vld [vmem:[%s9471_s3 + $0x94] ss:$12 sps:$4 sm:$0xff]  }
 0x1b2   :  { %v7194_v12 = vld [vmem:[%s9471_s3 + $0x78] ss:$12 sps:$4 sm:$0xff]   ;;  %v7128_v50 = vld [vmem:[%s9468_s1 + $0xbe8] ss:$12 sps:$4 sm:$0xff]  }
 0x1b3   :  { %3435 = vmatpush1.bf16.msra.mxu0 %v7071_v1  ;;  %v6253_v21 = vpop.f32.mrb[44].mxu1 }
 0x1b4   :  { %3436 = vmatprep.subr.bf16.mxu0 %v7076_v2  ;;  %v6254_v23 = vpop.f32.mrb[45].mxu1  ;;  %4514 = vmatpush1.bf16.msra.mxu1 %v7188_v57  ;;  %v7131_v57 = vld [vmem:[%s9468_s1 + $0xc00] ss:$12 sps:$4 sm:$0xff]  }
 0x1b5   :  { %v6255_v24 = vadd.f32 %v6254_v23, %v6253_v21  ;;  %v6256_v25 = vpop.f32.mrb[46].mxu1  ;;  %4515 = vmatprep.subr.bf16.mxu1 %v7193_v59  ;;  %v7202_v21 = vld [vmem:[%s9471_s3 + $0xac] ss:$12 sps:$4 sm:$0xff]   ;;  %v7113_v23 = vld [vmem:[%s9468_s1 + $0xb70] ss:$12 sps:$4 sm:$0xff]  }
 0x1b6   :  { %v6257_v9 = vpop.f32.mrb[47].mxu1  ;;  %v7205_v25 = vld [vmem:[%s9471_s3 + $0xc4] ss:$12 sps:$4 sm:$0xff]   ;;  %v7136_v59 = vld [vmem:[%s9468_s1 + $0xc1c] ss:$12 sps:$4 sm:$0xff]  }
 0x1b7   :  { %3437 = vmatpush1.bf16.msra.mxu0 %v7074_v6  ;;  %v8717_v27 = vadd.f32 %v6255_v24, %v3798_v61  ;;  %v7118_v24 = vld [vmem:[%s9468_s1 + $0xb8c] ss:$12 sps:$4 sm:$0xff]  }
 0x1b8   :  { %3438 = vmatprep.subr.bf16.mxu0 %v7079_v11  ;;  %4516 = vmatpush1.bf16.msra.mxu1 %v7191_v5  ;;  %v7203_v9 = vld [vmem:[%s9471_s3 + $0xc0] ss:$12 sps:$4 sm:$0xff]  }
 0x1b9   :  { %4517 = vmatprep.subr.bf16.mxu1 %v7196_v7  ;;  %v7377_v5 = vld [vmem:[%s9469_s0 + $0x44] ss:$72 sps:$4 sm:$0xff]   ;;  %v7148_v7 = vld [vmem:[%s9468_s1 + $0xc7c] ss:$12 sps:$4 sm:$0xff]  }
 0x1bb   :  { %3439 = vmatpush1.bf16.msra.mxu0 %v7077_v17  ;;  %v7110_v17 = vld [vmem:[%s9468_s1 + $0xb58] ss:$12 sps:$4 sm:$0xff]  }
 0x1bc   :  { %3440 = vmatprep.subr.bf16.mxu0 %v7082_v20  ;;  %v7115_v20 = vld [vmem:[%s9468_s1 + $0xb74] ss:$12 sps:$4 sm:$0xff]   ;;  %4518 = vmatpush1.bf16.msra.mxu1 %v7194_v12  ;;  %v7146_v12 = vld [vmem:[%s9468_s1 + $0xc78] ss:$12 sps:$4 sm:$0xff]  }
 0x1bd   :  { %4519 = vmatprep.subr.bf16.mxu1 %v7199_v16 }
 0x1bf   :  { %3441 = vmatpush1.bf16.msra.mxu0 %v7080_v60  ;;  %v7200_v60 = vld [vmem:[%s9471_s3 + $0xa8] ss:$12 sps:$4 sm:$0xff]  }
 0x1c0   :  { %3461 = vmatprep.subr.bf16.mxu0 %v7085_v26  ;;  %v7116_v26 = vld [vmem:[%s9468_s1 + $0xb88] ss:$12 sps:$4 sm:$0xff]  }
 0x1c2   :  { %3443 = vmatmul.mubr.bf16.vlgmr.msra.gmra.mrb[0].mxu0 %v7374_v32  ;;  %v7206_v32 = vld [vmem:[%s9471_s3 + $0xd8] ss:$12 sps:$4 sm:$0xff]  }
 0x1c3   :  { %3462 = vmatpush1.bf16.msra.mxu0 %v7083_v28  ;;  %3452 = vmatprep.mubr.bf16.mxu0 %v8278_v30  ;;  %v7097_v30 = vld [vmem:[%s9468_s1 + $0xae4] ss:$12 sps:$4 sm:$0xff]   ;;  %v7208_v28 = vld [vmem:[%s9471_s3 + $0xdc] ss:$12 sps:$4 sm:$0xff]  }
 0x1c4   :  { %3463 = vmatprep.subr.bf16.mxu0 %v7088_v29  ;;  %v7119_v29 = vld [vmem:[%s9468_s1 + $0xba0] ss:$12 sps:$4 sm:$0xff]  }
 0x1c7   :  { %3464 = vmatpush1.bf16.msra.mxu0 %v7086_v10  ;;  %v7124_v10 = vld [vmem:[%s9468_s1 + $0xbbc] ss:$12 sps:$4 sm:$0xff]  }
 0x1c8   :  { %3465 = vmatprep.subr.bf16.mxu0 %v7091_v33  ;;  %v7211_v33 = vld [vmem:[%s9471_s3 + $0xf4] ss:$12 sps:$4 sm:$0xff]  }
 0x1ca   :  { %3453 = vmatmul.mubr.bf16.gmra.mrb[4].mxu0 %v8294_v35  ;;  %v7095_v35 = vld [vmem:[%s9468_s1 + $0xae0] ss:$12 sps:$4 sm:$0xff]  }
 0x1cb   :  { %3466 = vmatpush1.bf16.msra.mxu0 %v7089_v18  ;;  %3493 = vmatprep.mubr.bf16.mxu0 %v7375_v37  ;;  %v6275_v47 = vpop.f32.mrb[48].mxu1  ;;  %v7122_v18 = vld [vmem:[%s9468_s1 + $0xbb8] ss:$12 sps:$4 sm:$0xff]  }
 0x1cc   :  { %3467 = vmatprep.subr.bf16.mxu0 %v7094_v52  ;;  %v6276_v51 = vpop.f32.mrb[49].mxu1 }
 0x1cd   :  { %v6277_v14 = vadd.f32 %v6276_v51, %v6275_v47  ;;  %v6278_v49 = vpop.f32.mrb[50].mxu1  ;;  %v7217_v51 = vld [vmem:[%s9471_s3 + $0x124] ss:$12 sps:$4 sm:$0xff]  }
 0x1ce   :  { %v6279_v58 = vpop.f32.mrb[51].mxu1 }
 0x1cf   :  { %3468 = vmatpush1.bf16.msra.mxu0 %v7092_v34  ;;  %v8785_v53 = vadd.f32 %v6277_v14, %v8701_v15  ;;  %v6280_v54 = vadd.f32 %v6279_v58, %v6278_v49  ;;  %v7112_v15 = vld [vmem:[%s9468_s1 + $0xb5c] ss:$12 sps:$4 sm:$0xff]  }
 0x1d0   :  { %3469 = vmatprep.subr.bf16.mxu0 %v7097_v30  ;;  %v7209_v34 = vld [vmem:[%s9471_s3 + $0xf0] ss:$12 sps:$4 sm:$0xff]   ;;  %v7127_v30 = vld [vmem:[%s9468_s1 + $0xbd4] ss:$12 sps:$4 sm:$0xff]  }
 0x1d1   :  { %v8794_v56 = vadd.f32 %v6280_v54, %v8706_v19  ;;  %v7197_v19 = vld [vmem:[%s9471_s3 + $0x90] ss:$12 sps:$4 sm:$0xff]  }
 0x1d2   :  { %4520 = vmatpush1.bf16.msra.mxu1 %v7197_v19  ;;  %v7133_v54 = vld [vmem:[%s9468_s1 + $0xc04] ss:$12 sps:$4 sm:$0xff]  }
 0x1d3   :  { %3470 = vmatpush1.bf16.msra.mxu0 %v7095_v35  ;;  %v6281_v61 = vpop.f32.mrb[52].mxu1  ;;  %4521 = vmatprep.subr.bf16.mxu1 %v7202_v21 }
 0x1d4   :  { %3471 = vmatprep.subr.bf16.mxu0 %v7100_v41  ;;  %v6282_v1 = vpop.f32.mrb[53].mxu1 }
 0x1d5   :  { %v6283_v2 = vadd.f32 %v6282_v1, %v6281_v61  ;;  %v6284_v3 = vpop.f32.mrb[54].mxu1  ;;  %v7218_v61 = vld [vmem:[%s9471_s3 + $0x138] ss:$12 sps:$4 sm:$0xff]   ;;  %v7139_v1 = vld [vmem:[%s9468_s1 + $0xc34] ss:$12 sps:$4 sm:$0xff]  }
 0x1d6   :  { %v6285_v6 = vpop.f32.mrb[55].mxu1  ;;  %4522 = vmatpush1.bf16.msra.mxu1 %v7200_v60  ;;  %v7142_v3 = vld [vmem:[%s9468_s1 + $0xc4c] ss:$12 sps:$4 sm:$0xff]  }
 0x1d7   :  { %3472 = vmatpush1.bf16.msra.mxu0 %v7098_v45  ;;  %v8818_v11 = vadd.f32 %v6283_v2, %v8717_v27  ;;  %v7121_v27 = vld [vmem:[%s9468_s1 + $0xba4] ss:$12 sps:$4 sm:$0xff]   ;;  %4523 = vmatprep.subr.bf16.mxu1 %v7205_v25  ;;  %v7212_v45 = vld [vmem:[%s9471_s3 + $0x108] ss:$12 sps:$4 sm:$0xff]   ;;  %v7154_v25 = vld [vmem:[%s9468_s1 + $0xcac] ss:$12 sps:$4 sm:$0xff]  }
 0x1d8   :  { %3473 = vmatprep.subr.bf16.mxu0 %v7103_v48  ;;  %v7130_v48 = vld [vmem:[%s9468_s1 + $0xbec] ss:$12 sps:$4 sm:$0xff]   ;;  %v7137_v2 = vld [vmem:[%s9468_s1 + $0xc30] ss:$12 sps:$4 sm:$0xff]  }
 0x1d9   :  { %v7145_v6 = vld [vmem:[%s9468_s1 + $0xc64] ss:$12 sps:$4 sm:$0xff]  }
 0x1da   :  { %4524 = vmatpush1.bf16.msra.mxu1 %v7203_v9 }
 0x1db   :  { %3474 = vmatpush1.bf16.msra.mxu0 %v7101_v0  ;;  %4525 = vmatprep.subr.bf16.mxu1 %v7208_v28  ;;  %v7152_v28 = vld [vmem:[%s9468_s1 + $0xca8] ss:$12 sps:$4 sm:$0xff]  }
 0x1dc   :  { %3475 = vmatprep.subr.bf16.mxu0 %v7106_v55  ;;  %v7220_v55 = vld [vmem:[%s9471_s3 + $0x13c] ss:$12 sps:$4 sm:$0xff]  }
 0x1de   :  { %4526 = vmatpush1.bf16.msra.mxu1 %v7206_v32 }
 0x1df   :  { %3476 = vmatpush1.bf16.msra.mxu0 %v7104_v62  ;;  %4527 = vmatprep.subr.bf16.mxu1 %v7211_v33  ;;  %v7376_v62 = vld [vmem:[%s9469_s0 + $0x38] ss:$72 sps:$4 sm:$0xff]   ;;  %v7157_v33 = vld [vmem:[%s9468_s1 + $0xcc4] ss:$12 sps:$4 sm:$0xff]  }
 0x1e0   :  { %3477 = vmatprep.subr.bf16.mxu0 %v7109_v63  ;;  %v7134_v63 = vld [vmem:[%s9468_s1 + $0xc18] ss:$12 sps:$4 sm:$0xff]  }
 0x1e2   :  { %4528 = vmatpush1.bf16.msra.mxu1 %v7209_v34  ;;  %v7155_v34 = vld [vmem:[%s9468_s1 + $0xcc0] ss:$12 sps:$4 sm:$0xff]  }
 0x1e3   :  { %3478 = vmatpush1.bf16.msra.mxu0 %v7107_v8  ;;  %4529 = vmatprep.subr.bf16.mxu1 %v7214_v38  ;;  %v7163_v38 = vld [vmem:[%s9468_s1 + $0xcf4] ss:$12 sps:$4 sm:$0xff]  }
 0x1e4   :  { %3479 = vmatprep.subr.bf16.mxu0 %v7112_v15 }
 0x1e6   :  { %4530 = vmatpush1.bf16.msra.mxu1 %v7212_v45  ;;  %v7175_v45 = vld [vmem:[%s9468_s1 + $0xd54] ss:$12 sps:$4 sm:$0xff]  }
 0x1e7   :  { %3480 = vmatpush1.bf16.msra.mxu0 %v7110_v17  ;;  %4531 = vmatprep.subr.bf16.mxu1 %v7217_v51  ;;  %v7151_v17 = vld [vmem:[%s9468_s1 + $0xc94] ss:$12 sps:$4 sm:$0xff]   ;;  %v7178_v51 = vld [vmem:[%s9468_s1 + $0xd6c] ss:$12 sps:$4 sm:$0xff]  }
 0x1e8   :  { %3481 = vmatprep.subr.bf16.mxu0 %v7115_v20 }
 0x1eb   :  { %3482 = vmatpush1.bf16.msra.mxu0 %v7113_v23  ;;  %v6303_v52 = vpop.f32.mrb[56].mxu1  ;;  %v7149_v23 = vld [vmem:[%s9468_s1 + $0xc90] ss:$12 sps:$4 sm:$0xff]  }
 0x1ec   :  { %3483 = vmatprep.subr.bf16.mxu0 %v7118_v24  ;;  %v6304_v37 = vpop.f32.mrb[57].mxu1 }
 0x1ed   :  { %v6305_v39 = vadd.f32 %v6304_v37, %v6303_v52  ;;  %v6306_v42 = vpop.f32.mrb[58].mxu1  ;;  %v7158_v37 = vld [vmem:[%s9468_s1 + $0xcd8] ss:$12 sps:$4 sm:$0xff]  }
 0x1ee   :  { %v6307_v35 = vpop.f32.mrb[59].mxu1 }
 0x1ef   :  { %3484 = vmatpush1.bf16.msra.mxu0 %v7116_v26  ;;  %v8890_v41 = vadd.f32 %v6305_v39, %v8785_v53  ;;  %v6308_v43 = vadd.f32 %v6307_v35, %v6306_v42  ;;  %v7215_v53 = vld [vmem:[%s9471_s3 + $0x120] ss:$12 sps:$4 sm:$0xff]   ;;  %v7161_v39 = vld [vmem:[%s9468_s1 + $0xcf0] ss:$12 sps:$4 sm:$0xff]   ;;  %v7164_v35 = vld [vmem:[%s9468_s1 + $0xd08] ss:$12 sps:$4 sm:$0xff]  }
 0x1f0   :  { %3485 = vmatprep.subr.bf16.mxu0 %v7121_v27  ;;  %4532 = vmatpush1.bf16.msra.mxu1 %v7215_v53  ;;  %v7166_v42 = vld [vmem:[%s9468_s1 + $0xd0c] ss:$12 sps:$4 sm:$0xff]   ;;  %v9051_v53 = vsub.s32 0, %v8618_v31 }
 0x1f1   :  { %v8896_v47 = vadd.f32 %v6308_v43, %v8794_v56  ;;  %4533 = vmatprep.subr.bf16.mxu1 %v7220_v55  ;;  %v7167_v43 = vld [vmem:[%s9468_s1 + $0xd20] ss:$12 sps:$4 sm:$0xff]  }
 0x1f3   :  { %3486 = vmatpush1.bf16.msra.mxu0 %v7119_v29  ;;  %v6309_v14 = vpop.f32.mrb[60].mxu1 }
 0x1f4   :  { %3487 = vmatprep.subr.bf16.mxu0 %v7124_v10  ;;  %v6310_v49 = vpop.f32.mrb[61].mxu1  ;;  %4534 = vmatpush1.bf16.msra.mxu1 %v7218_v61 }
 0x1f5   :  { %v6311_v58 = vadd.f32 %v6310_v49, %v6309_v14  ;;  %v6312_v22 = vpop.f32.mrb[62].mxu1  ;;  %v7176_v14 = vld [vmem:[%s9468_s1 + $0xd68] ss:$12 sps:$4 sm:$0xff]  }
 0x1f6   :  { %v6313_v0 = vpop.f32.mrb[63].mxu1  ;;  %v7378_v49 = vld [vmem:[%s9469_s0 + $0x40] ss:$72 sps:$4 sm:$0xff]   ;;  %v7226_v22 = vld [vmem:[%s9471_s3 + $0x16c] ss:$12 sps:$4 sm:$0xff]  }
 0x1f7   :  { %3488 = vmatpush1.bf16.msra.mxu0 %v7122_v18  ;;  %v3942_v56 = vadd.f32 %v6311_v58, %v8818_v11  ;;  %v7221_v58 = vld [vmem:[%s9471_s3 + $0x150] ss:$12 sps:$4 sm:$0xff]   ;;  %v7379_v0 = vld [vmem:[%s9470_s2] sm:$0x7] }
 0x1f8   :  { %3489 = vmatprep.subr.bf16.mxu0 %v7127_v30  ;;  %v7160_v30 = vld [vmem:[%s9468_s1 + $0xcdc] ss:$12 sps:$4 sm:$0xff]   ;;  %v635_v55 = vrot.slane %v7379_v0, %v9051_v53 }
 0x1fb   :  { %3490 = vmatpush1.bf16.msra.mxu0 %v7125_v44  ;;  %v7172_v44 = vld [vmem:[%s9468_s1 + $0xd3c] ss:$12 sps:$4 sm:$0xff]  }
 0x1fc   :  { %3491 = vmatprep.subr.bf16.mxu0 %v7130_v48  ;;  %v7173_v48 = vld [vmem:[%s9468_s1 + $0xd50] ss:$12 sps:$4 sm:$0xff]  }
 0x1ff   :  { %3492 = vmatpush1.bf16.msra.mxu0 %v7128_v50  ;;  %v7223_v50 = vld [vmem:[%s9471_s3 + $0x154] ss:$12 sps:$4 sm:$0xff]  }
 0x200   :  { %3512 = vmatprep.subr.bf16.mxu0 %v7133_v54  ;;  %4535 = vmatprep.subr.bf16.mxu1 %v7223_v50  ;;  %v9054_v54 = vsub.s32 1, %v8618_v31  ;;  %v7261_v50 = vld [vmem:[%s9471_s3 + $0x140] ss:$12 sps:$4 sm:$0xff]  }
 0x201   :  { %4536 = vmatpush1.bf16.msra.mxu1 %v7221_v58  ;;  %v7262_v58 = vld [vmem:[%s9471_s3 + $0x80] ss:$12 sps:$4 sm:$0xff]  }
 0x202   :  { %3494 = vmatmul.mubr.bf16.vlgmr.msra.gmra.mrb[0].mxu0 %v7376_v62  ;;  %4537 = vmatprep.subr.bf16.mxu1 %v7226_v22  ;;  %v7263_v22 = vld [vmem:[%s9471_s3 + $0x158] ss:$12 sps:$4 sm:$0xff]  }
 0x203   :  { %3513 = vmatpush1.bf16.msra.mxu0 %v7131_v57  ;;  %3503 = vmatprep.mubr.bf16.mxu0 %v8390_v4  ;;  %v7140_v4 = vld [vmem:[%s9468_s1 + $0xc48] ss:$12 sps:$4 sm:$0xff]  }
 0x204   :  { %3514 = vmatprep.subr.bf16.mxu0 %v7136_v59 }
 0x207   :  { %3515 = vmatpush1.bf16.msra.mxu0 %v7134_v63 }
 0x208   :  { %3516 = vmatprep.subr.bf16.mxu0 %v7139_v1 }
 0x20a   :  { %3504 = vmatmul.mubr.bf16.gmra.mrb[4].mxu0 %v8411_v13  ;;  %v7143_v13 = vld [vmem:[%s9468_s1 + $0xc60] ss:$12 sps:$4 sm:$0xff]  }
 0x20b   :  { %3517 = vmatpush1.bf16.msra.mxu0 %v7137_v2  ;;  %3544 = vmatprep.mubr.bf16.mxu0 %v7377_v5  ;;  %v6331_v8 = vpop.f32.mrb[64].mxu1 }
 0x20c   :  { %3518 = vmatprep.subr.bf16.mxu0 %v7142_v3  ;;  %v6332_v11 = vpop.f32.mrb[65].mxu1 }
 0x20d   :  { %v6333_v15 = vadd.f32 %v6332_v11, %v6331_v8  ;;  %v6334_v16 = vpop.f32.mrb[66].mxu1  ;;  %v7227_v11 = vld [vmem:[%s9471_s3 + $0x180] ss:$12 sps:$4 sm:$0xff]  }
 0x20e   :  { %v6335_v19 = vpop.f32.mrb[67].mxu1 }
 0x20f   :  { %3519 = vmatpush1.bf16.msra.mxu0 %v7140_v4  ;;  %v3982_v20 = vadd.f32 %v6333_v15, %v8890_v41  ;;  %v6336_v21 = vadd.f32 %v6335_v19, %v6334_v16  ;;  %v7169_v41 = vld [vmem:[%s9468_s1 + $0xd24] ss:$12 sps:$4 sm:$0xff]  }
 0x210   :  { %3520 = vmatprep.subr.bf16.mxu0 %v7145_v6 }
 0x211   :  { %v3997_v60 = vmax.f32 %v3982_v20, 0.0  ;;  %v3985_v24 = vadd.f32 %v6336_v21, %v8896_v47  ;;  %v7170_v47 = vld [vmem:[%s9468_s1 + $0xd38] ss:$12 sps:$4 sm:$0xff]  }
 0x213   :  { %3521 = vmatpush1.bf16.msra.mxu0 %v7143_v13  ;;  %v4000_v26 = vmax.f32 %v3985_v24, 0.0  ;;  %v6337_v9 = vpop.f32.mrb[68].mxu1  ;;  %v7235_v24 = vld [vmem:[%s9471_s3 + $0x1b4] ss:$12 sps:$4 sm:$0xff]  }
 0x214   :  { %3522 = vmatprep.subr.bf16.mxu0 %v7148_v7  ;;  %v6338_v27 = vpop.f32.mrb[69].mxu1 }
 0x215   :  { %v8978_v29 = vpack.c.bf16 %v4000_v26, %v3997_v60  ;;  %v6339_v32 = vadd.f32 %v6338_v27, %v6337_v9  ;;  %v6340_v10 = vpop.f32.mrb[70].mxu1  ;;  %v7230_v60 = vld [vmem:[%s9471_s3 + $0x198] ss:$12 sps:$4 sm:$0xff]   ;;  %v7233_v26 = vld [vmem:[%s9471_s3 + $0x1b0] ss:$12 sps:$4 sm:$0xff]  }
 0x216   :  { %v6341_v18 = vpop.f32.mrb[71].mxu1  ;;  %v7238_v9 = vld [vmem:[%s9471_s3 + $0x1cc] ss:$12 sps:$4 sm:$0xff]   ;;  %v7380_v10 = vmov 0  }
 0x217   :  { %3523 = vmatpush1.bf16.msra.mxu0 %v7146_v12  ;;  %v8983_v52 = vadd.f32 %v6339_v32, %v3942_v56  ;;  %v639_v56 = vrot.slane %v7379_v0, %v9054_v54  ;;  %v7232_v12 = vld [vmem:[%s9471_s3 + $0x19c] ss:$12 sps:$4 sm:$0xff]   ;;  %v7241_v32 = vld [vmem:[%s9471_s3 + $0x1e4] ss:$12 sps:$4 sm:$0xff]  }
 0x218   :  { %3524 = vmatprep.subr.bf16.mxu0 %v7151_v17  ;;  %v7244_v18 = vld [vmem:[%s9471_s3 + $0x1fc] ss:$12 sps:$4 sm:$0xff]  }
 0x219   :  { %v7266_v0 = vld [vmem:[%s9471_s3 + $0xb0] ss:$12 sps:$4 sm:$0xff]  }
 0x21b   :  { %3525 = vmatpush1.bf16.msra.mxu0 %v7149_v23 }
 0x21c   :  { %3526 = vmatprep.subr.bf16.mxu0 %v7154_v25 }
 0x21f   :  { %3527 = vmatpush1.bf16.msra.mxu0 %v7152_v28  ;;  %v7236_v28 = vld [vmem:[%s9471_s3 + $0x1c8] ss:$12 sps:$4 sm:$0xff]  }
 0x220   :  { %3528 = vmatprep.subr.bf16.mxu0 %v7157_v33  ;;  %v7239_v33 = vld [vmem:[%s9471_s3 + $0x1e0] ss:$12 sps:$4 sm:$0xff]  }
 0x223   :  { %3529 = vmatpush1.bf16.msra.mxu0 %v7155_v34  ;;  %v7242_v34 = vld [vmem:[%s9471_s3 + $0x1f8] ss:$12 sps:$4 sm:$0xff]  }
 0x224   :  { %3530 = vmatprep.subr.bf16.mxu0 %v7160_v30  ;;  %v7247_v30 = vld [vmem:[%s9471_s3 + $0x214] ss:$12 sps:$4 sm:$0xff]  }
 0x227   :  { %3531 = vmatpush1.bf16.msra.mxu0 %v7158_v37  ;;  %v7245_v37 = vld [vmem:[%s9471_s3 + $0x210] ss:$12 sps:$4 sm:$0xff]  }
 0x228   :  { %3532 = vmatprep.subr.bf16.mxu0 %v7163_v38  ;;  %v7250_v38 = vld [vmem:[%s9471_s3 + $0x22c] ss:$12 sps:$4 sm:$0xff]  }
 0x22b   :  { %3533 = vmatpush1.bf16.msra.mxu0 %v7161_v39  ;;  %v7248_v39 = vld [vmem:[%s9471_s3 + $0x228] ss:$12 sps:$4 sm:$0xff]  }
 0x22c   :  { %3534 = vmatprep.subr.bf16.mxu0 %v7166_v42  ;;  %v7251_v42 = vld [vmem:[%s9471_s3 + $0xc8] ss:$12 sps:$4 sm:$0xff]  }
 0x22f   :  { %3535 = vmatpush1.bf16.msra.mxu0 %v7164_v35  ;;  %v7252_v35 = vld [vmem:[%s9471_s3 + $0x8] ss:$12 sps:$4 sm:$0xff]  }
 0x230   :  { %3536 = vmatprep.subr.bf16.mxu0 %v7169_v41  ;;  %v7253_v41 = vld [vmem:[%s9471_s3 + $0xe0] ss:$12 sps:$4 sm:$0xff]  }
 0x233   :  { %3537 = vmatpush1.bf16.msra.mxu0 %v7167_v43  ;;  %v7254_v43 = vld [vmem:[%s9471_s3 + $0x20] ss:$12 sps:$4 sm:$0xff]  }
 0x234   :  { %3538 = vmatprep.subr.bf16.mxu0 %v7172_v44  ;;  %v4003_v44 = vmax.f32 %v8983_v52, 0.0  ;;  %v7258_v52 = vld [vmem:[%s9471_s3 + $0x50] ss:$12 sps:$4 sm:$0xff]  }
 0x237   :  { %3539 = vmatpush1.bf16.msra.mxu0 %v7170_v47  ;;  %v7255_v47 = vld [vmem:[%s9471_s3 + $0xf8] ss:$12 sps:$4 sm:$0xff]  }
 0x238   :  { %3540 = vmatprep.subr.bf16.mxu0 %v7175_v45  ;;  %v7256_v45 = vld [vmem:[%s9471_s3 + $0x38] ss:$12 sps:$4 sm:$0xff]  }
 0x23b   :  { %3541 = vmatpush1.bf16.msra.mxu0 %v7173_v48  ;;  %v4009_v48 = vpack.c.bf16 %v4003_v44, %v4003_v44  ;;  %v7346_v44 = vld [vmem:[%s9472_s5 + $0x200] ss:$12 sps:$4 sm:$0xff]  }
 0x23c   :  { %3542 = vmatprep.subr.bf16.mxu0 %v7178_v51  ;;  %v7257_v51 = vld [vmem:[%s9471_s3 + $0x110] ss:$12 sps:$4 sm:$0xff]  }
 0x23f   :  { %3543 = vmatpush1.bf16.msra.mxu0 %v7176_v14  ;;  %v7259_v14 = vld [vmem:[%s9471_s3 + $0x128] ss:$12 sps:$4 sm:$0xff]  }
 0x242   :  { %3545 = vmatmul.mubr.bf16.vlgmr.msra.gmra.mrb[0].mxu0 %v7378_v49  ;;  %v7260_v49 = vld [vmem:[%s9471_s3 + $0x68] ss:$12 sps:$4 sm:$0xff]  }
 0x243   :  { %3554 = vmatprep.mubr.bf16.mxu0 %v8492_v40  ;;  %v7224_v40 = vld [vmem:[%s9471_s3 + $0x168] ss:$12 sps:$4 sm:$0xff]  }
 0x244   :  { %4538 = vmatpush1.bf16.msra.mxu1 %v7224_v40  ;;  %v7264_v40 = vld [vmem:[%s9471_s3 + $0x98] ss:$12 sps:$4 sm:$0xff]  }
 0x24a   :  { %3555 = vmatmul.mubr.bf16.gmra.mrb[4].mxu0 %v8504_v46  ;;  %v7229_v46 = vld [vmem:[%s9471_s3 + $0x184] ss:$12 sps:$4 sm:$0xff]  }
 0x24b   :  { %4558 = vmatprep.subr.bf16.mxu1 %v7229_v46  ;;  %v7265_v46 = vld [vmem:[%s9471_s3 + $0x170] ss:$12 sps:$4 sm:$0xff]  }
 0x315   :  { %v3546_v57 = vpop.f32.mrb[0].mxu0 }
 0x316   :  { %v6459_v59 = vadd.f32 %v3546_v57, %v635_v55  ;;  %v3548_v61 = vpop.f32.mrb[1].mxu0  ;;  %v7269_v57 = vld [vmem:[%s9471_s3 + $0x1b8] ss:$12 sps:$4 sm:$0xff]  }
 0x317   :  { %v6460_v62 = vadd.f32 %v3548_v61, %v639_v56  ;;  %v3550_v63 = vpop.f32.mrb[2].mxu0  ;;  %v7271_v61 = vld [vmem:[%s9471_s3 + $0x1e8] ss:$12 sps:$4 sm:$0xff]  }
 0x318   :  { %v6461_v1 = vadd.f32 %v3550_v63, %v635_v55  ;;  %v3552_v2 = vpop.f32.mrb[3].mxu0  ;;  %v3995_v3 = vmax.f32 %v6459_v59, 0.0  ;;  %v7270_v59 = vld [vmem:[%s9471_s3 + $0x1d0] ss:$12 sps:$4 sm:$0xff]   ;;  %v7273_v63 = vld [vmem:[%s9471_s3 + $0x218] ss:$12 sps:$4 sm:$0xff]  }
 0x319   :  { %v6462_v4 = vadd.f32 %v3552_v2, %v639_v56  ;;  %v3996_v31 = vmax.f32 %v6460_v62, 0.0  ;;  %v7272_v62 = vld [vmem:[%s9471_s3 + $0x200] ss:$12 sps:$4 sm:$0xff]  }
 0x31a   :  { %v3998_v5 = vmax.f32 %v6461_v1, 0.0  ;;  %v7277_v1 = vld [vmem:[%s9472_s5 + $0x4] ss:$12 sps:$4 sm:$0xff]   ;;  %v7275_v2 = vld [vmem:[%s9472_s5] ss:$12 sps:$4 sm:$0xff]  }
 0x31b   :  { %v3999_v6 = vmax.f32 %v6462_v4, 0.0  ;;  %v7278_v4 = vld [vmem:[%s9472_s5 + $0x18] ss:$12 sps:$4 sm:$0xff]  }
 0x31c   :  { %v9061_v13 = vpack.c.bf16 %v3998_v5, %v3995_v3  ;;  %v7280_v3 = vld [vmem:[%s9472_s5 + $0x1c] ss:$12 sps:$4 sm:$0xff]   ;;  %v7283_v5 = vld [vmem:[%s9472_s5 + $0x34] ss:$12 sps:$4 sm:$0xff]  }
 0x31d   :  { %v9063_v7 = vpack.c.bf16 %v3999_v6, %v3996_v31  ;;  %v3556_v8 = vpop.f32.mrb[4].mxu0  ;;  %v7281_v31 = vld [vmem:[%s9472_s5 + $0x30] ss:$12 sps:$4 sm:$0xff]   ;;  %v7286_v6 = vld [vmem:[%s9472_s5 + $0x4c] ss:$12 sps:$4 sm:$0xff]  }
 0x31e   :  { %v6463_v15 = vadd.f32 %v3556_v8, %v635_v55  ;;  %v3558_v16 = vpop.f32.mrb[5].mxu0  ;;  %v7267_v55 = vld [vmem:[%s9471_s3 + $0x188] ss:$12 sps:$4 sm:$0xff]   ;;  %v7287_v8 = vld [vmem:[%s9472_s5 + $0x60] ss:$12 sps:$4 sm:$0xff]  }
 0x31f   :  { %v6464_v17 = vadd.f32 %v3558_v16, %v639_v56  ;;  %v3560_v19 = vpop.f32.mrb[6].mxu0  ;;  %4539 = vmatprep.mubr.bf16.mxu1 %v9063_v7  ;;  %v7268_v56 = vld [vmem:[%s9471_s3 + $0x1a0] ss:$12 sps:$4 sm:$0xff]   ;;  %v7293_v16 = vld [vmem:[%s9472_s5 + $0x90] ss:$12 sps:$4 sm:$0xff]  }
 0x320   :  { %v3561_v20 = vpop.f32.mrb[7].mxu0  ;;  %4540 = vmatmul.mubr.bf16.vlgmr.msra.gmra.mrb[72].mxu1 %v9061_v13  ;;  %v4001_v21 = vmax.f32 %v6463_v15, 0.0  ;;  %v7295_v15 = vld [vmem:[%s9472_s5 + $0x94] ss:$12 sps:$4 sm:$0xff]  }
 0x321   :  { %v4002_v23 = vmax.f32 %v6464_v17, 0.0  ;;  %4559 = vmatpush1.bf16.msra.mxu1 %v7227_v11  ;;  %v7292_v11 = vld [vmem:[%s9472_s5 + $0x7c] ss:$12 sps:$4 sm:$0xff]   ;;  %v7298_v17 = vld [vmem:[%s9472_s5 + $0xac] ss:$12 sps:$4 sm:$0xff]  }
 0x322   :  { %4560 = vmatprep.subr.bf16.mxu1 %v7232_v12  ;;  %v9088_v27 = vpack.c.bf16 %v4001_v21, %v4001_v21  ;;  %v7290_v12 = vld [vmem:[%s9472_s5 + $0x78] ss:$12 sps:$4 sm:$0xff]   ;;  %v7296_v19 = vld [vmem:[%s9472_s5 + $0xa8] ss:$12 sps:$4 sm:$0xff]   ;;  %v7299_v21 = vld [vmem:[%s9472_s5 + $0xc0] ss:$12 sps:$4 sm:$0xff]  }
 0x323   :  { %v9079_v25 = vpack.c.bf16 %v4002_v23, %v4002_v23  ;;  %v7301_v20 = vld [vmem:[%s9472_s5 + $0xc4] ss:$12 sps:$4 sm:$0xff]   ;;  %v7304_v23 = vld [vmem:[%s9472_s5 + $0xdc] ss:$12 sps:$4 sm:$0xff]  }
 0x325   :  { %4561 = vmatpush1.bf16.msra.mxu1 %v7230_v60  ;;  %4549 = vmatprep.mubr.bf16.mxu1 %v9079_v25  ;;  %v7302_v60 = vld [vmem:[%s9472_s5 + $0xd8] ss:$12 sps:$4 sm:$0xff]  }
 0x326   :  { %4562 = vmatprep.subr.bf16.mxu1 %v7235_v24  ;;  %v7307_v24 = vld [vmem:[%s9472_s5 + $0xf4] ss:$12 sps:$4 sm:$0xff]  }
 0x328   :  { %4550 = vmatmul.mubr.bf16.gmra.mrb[76].mxu1 %v9088_v27 }
 0x329   :  { %4563 = vmatpush1.bf16.msra.mxu1 %v7233_v26  ;;  %4590 = vmatprep.mubr.bf16.mxu1 %v7380_v10  ;;  %v7310_v26 = vld [vmem:[%s9472_s5 + $0x10c] ss:$12 sps:$4 sm:$0xff]  }
 0x32a   :  { %4564 = vmatprep.subr.bf16.mxu1 %v7238_v9  ;;  %v7308_v9 = vld [vmem:[%s9472_s5 + $0x108] ss:$12 sps:$4 sm:$0xff]  }
 0x32d   :  { %4565 = vmatpush1.bf16.msra.mxu1 %v7236_v28  ;;  %v7311_v28 = vld [vmem:[%s9472_s5 + $0x120] ss:$12 sps:$4 sm:$0xff]  }
 0x32e   :  { %4566 = vmatprep.subr.bf16.mxu1 %v7241_v32  ;;  %v7316_v32 = vld [vmem:[%s9472_s5 + $0x13c] ss:$12 sps:$4 sm:$0xff]  }
 0x331   :  { %4567 = vmatpush1.bf16.msra.mxu1 %v7239_v33  ;;  %v7314_v33 = vld [vmem:[%s9472_s5 + $0x138] ss:$12 sps:$4 sm:$0xff]  }
 0x332   :  { %4568 = vmatprep.subr.bf16.mxu1 %v7244_v18  ;;  %v7319_v18 = vld [vmem:[%s9472_s5 + $0x154] ss:$12 sps:$4 sm:$0xff]  }
 0x335   :  { %4569 = vmatpush1.bf16.msra.mxu1 %v7242_v34  ;;  %v7317_v34 = vld [vmem:[%s9472_s5 + $0x150] ss:$12 sps:$4 sm:$0xff]  }
 0x336   :  { %4570 = vmatprep.subr.bf16.mxu1 %v7247_v30  ;;  %v7322_v30 = vld [vmem:[%s9472_s5 + $0x16c] ss:$12 sps:$4 sm:$0xff]  }
 0x339   :  { %4571 = vmatpush1.bf16.msra.mxu1 %v7245_v37  ;;  %v7320_v37 = vld [vmem:[%s9472_s5 + $0x168] ss:$12 sps:$4 sm:$0xff]  }
 0x33a   :  { %4572 = vmatprep.subr.bf16.mxu1 %v7250_v38  ;;  %v7325_v38 = vld [vmem:[%s9472_s5 + $0x184] ss:$12 sps:$4 sm:$0xff]  }
 0x33d   :  { %4573 = vmatpush1.bf16.msra.mxu1 %v7248_v39  ;;  %v7326_v39 = vld [vmem:[%s9472_s5 + $0x188] ss:$12 sps:$4 sm:$0xff]  }
 0x33e   :  { %6343 = vmatprep.subr.bf16.mxu1 %v7251_v42  ;;  %6439 = vmatprep.subr.bf16.mxu0 %v7326_v39  ;;  %v7330_v42 = vld [vmem:[%s9472_s5 + $0x1a0] ss:$12 sps:$4 sm:$0xff]  }
 0x33f   :  { %6440 = vmatpush3.bf16.msra.mxu0 %v7326_v39 }
 0x340   :  { %4591 = vmatmul.mubr.bf16.vlgmr.msra.gmra.mrb[72].mxu1 %v8978_v29  ;;  %6441 = vmatprep.subr.bf16.mxu0 %v7330_v42 }
 0x341   :  { %6344 = vmatpush3.bf16.msra.mxu1 %v7252_v35  ;;  %4600 = vmatprep.mubr.bf16.mxu1 %v7380_v10  ;;  %v7334_v35 = vld [vmem:[%s9472_s5 + $0x1b8] ss:$12 sps:$4 sm:$0xff]  }
 0x342   :  { %6345 = vmatprep.subr.bf16.mxu1 %v7253_v41  ;;  %v7338_v41 = vld [vmem:[%s9472_s5 + $0x1d0] ss:$12 sps:$4 sm:$0xff]  }
 0x343   :  { %6442 = vmatpush3.bf16.msra.mxu0 %v7330_v42 }
 0x344   :  { %6443 = vmatprep.subr.bf16.mxu0 %v7334_v35 }
 0x345   :  { %6346 = vmatpush3.bf16.msra.mxu1 %v7254_v43  ;;  %v7342_v43 = vld [vmem:[%s9472_s5 + $0x1e8] ss:$12 sps:$4 sm:$0xff]  }
 0x346   :  { %6347 = vmatprep.subr.bf16.mxu1 %v7255_v47  ;;  %v7350_v47 = vld [vmem:[%s9472_s5 + $0x218] ss:$12 sps:$4 sm:$0xff]  }
 0x347   :  { %6444 = vmatpush3.bf16.msra.mxu0 %v7334_v35 }
 0x348   :  { %4601 = vmatmul.mubr.bf16.gmra.mrb[76].mxu1 %v4009_v48  ;;  %6445 = vmatprep.subr.bf16.mxu0 %v7338_v41 }
 0x349   :  { %6348 = vmatpush3.bf16.msra.mxu1 %v7256_v45  ;;  %4641 = vmatprep.mubr.bf16.mxu1 %v9063_v7  ;;  %v7289_v7 = vld [vmem:[%s9472_s5 + $0x64] ss:$12 sps:$4 sm:$0xff]  }
 0x34a   :  { %6349 = vmatprep.subr.bf16.mxu1 %v7257_v51  ;;  %v7354_v45 = vld [vmem:[%s9472_s5 + $0x230] ss:$12 sps:$4 sm:$0xff]  }
 0x34b   :  { %6446 = vmatpush3.bf16.msra.mxu0 %v7338_v41 }
 0x34c   :  { %6447 = vmatprep.subr.bf16.mxu0 %v7342_v43 }
 0x34d   :  { %6350 = vmatpush3.bf16.msra.mxu1 %v7258_v52 }
 0x34e   :  { %6351 = vmatprep.subr.bf16.mxu1 %v7259_v14 }
 0x34f   :  { %6448 = vmatpush3.bf16.msra.mxu0 %v7342_v43 }
 0x350   :  { %6449 = vmatprep.subr.bf16.mxu0 %v7346_v44 }
 0x351   :  { %6352 = vmatpush3.bf16.msra.mxu1 %v7260_v49 }
 0x352   :  { %6353 = vmatprep.subr.bf16.mxu1 %v7261_v50 }
 0x353   :  { %6450 = vmatpush3.bf16.msra.mxu0 %v7346_v44 }
 0x354   :  { %6451 = vmatprep.subr.bf16.mxu0 %v7350_v47 }
 0x355   :  { %6354 = vmatpush3.bf16.msra.mxu1 %v7262_v58 }
 0x356   :  { %6355 = vmatprep.subr.bf16.mxu1 %v7263_v22 }
 0x357   :  { %6452 = vmatpush3.bf16.msra.mxu0 %v7350_v47 }
 0x358   :  { %6453 = vmatprep.subr.bf16.mxu0 %v7354_v45 }
 0x359   :  { %6356 = vmatpush3.bf16.msra.mxu1 %v7264_v40 }
 0x35a   :  { %6357 = vmatprep.subr.bf16.mxu1 %v7265_v46 }
 0x35b   :  { %6454 = vmatpush3.bf16.msra.mxu0 %v7354_v45 }
 0x35d   :  { %6358 = vmatpush3.bf16.msra.mxu1 %v7266_v0 }
 0x35e   :  { %6419 = vmatprep.subr.bf16.mxu1 %v7267_v55 }
 0x360   :  { %4642 = vmatmul.mubr.bf16.vlgmr.msra.gmra.mrb[80].mxu1 %v9061_v13  ;;  %v7284_v13 = vld [vmem:[%s9472_s5 + $0x48] ss:$12 sps:$4 sm:$0xff]  }
 0x361   :  { %4649 = vmatprep.mubr.bf16.mxu1 %v9079_v25  ;;  %6420 = vmatpush3.bf16.msra.mxu1 %v7267_v55  ;;  %v7305_v25 = vld [vmem:[%s9472_s5 + $0xf0] ss:$12 sps:$4 sm:$0xff]  }
 0x362   :  { %6421 = vmatprep.subr.bf16.mxu1 %v7268_v56 }
 0x365   :  { %6422 = vmatpush3.bf16.msra.mxu1 %v7268_v56 }
 0x366   :  { %6423 = vmatprep.subr.bf16.mxu1 %v7269_v57 }
 0x368   :  { %4650 = vmatmul.mubr.bf16.gmra.mrb[84].mxu1 %v9088_v27  ;;  %v7313_v27 = vld [vmem:[%s9472_s5 + $0x124] ss:$12 sps:$4 sm:$0xff]  }
 0x369   :  { %6424 = vmatpush3.bf16.msra.mxu1 %v7269_v57  ;;  %6435 = vmatprep.mubr.bf16.mxu1 %v8978_v29  ;;  %v7274_v29 = vld [vmem:[%s9471_s3 + $0x230] ss:$12 sps:$4 sm:$0xff]  }
 0x36a   :  { %6425 = vmatprep.subr.bf16.mxu1 %v7270_v59 }
 0x36d   :  { %6426 = vmatpush3.bf16.msra.mxu1 %v7270_v59 }
 0x36e   :  { %6427 = vmatprep.subr.bf16.mxu1 %v7271_v61 }
 0x371   :  { %6428 = vmatpush3.bf16.msra.mxu1 %v7271_v61 }
 0x372   :  { %6429 = vmatprep.subr.bf16.mxu1 %v7272_v62 }
 0x375   :  { %6430 = vmatpush3.bf16.msra.mxu1 %v7272_v62 }
 0x376   :  { %6431 = vmatprep.subr.bf16.mxu1 %v7273_v63 }
 0x379   :  { %6432 = vmatpush3.bf16.msra.mxu1 %v7273_v63 }
 0x37a   :  { %6433 = vmatprep.subr.bf16.mxu1 %v7274_v29 }
 0x37d   :  { %6434 = vmatpush3.bf16.msra.mxu1 %v7274_v29  ;;  %v7323_v29 = vld [vmem:[%s9472_s5 + $0x180] ss:$12 sps:$4 sm:$0xff]  }
 0x37e   :  { %5217 = vmatprep.subr.bf16.mxu1 %v7277_v1 }
 0x380   :  { %6436 = vmatmul.mubr.bf16.vlgmr.msra.gmra.mrb[88].mxu1 %v4009_v48  ;;  %v9325_v48 = vld [vmem:[%s9473_s4] sm:$0x7] }
 0x381   :  { %5218 = vmatpush1.bf16.msra.mxu1 %v7275_v2  ;;  %v4111_v51 = vrot.slane %v9325_v48, %v9051_v53  ;;  %v4115_v52 = vrot.slane %v9325_v48, %v9054_v54  ;;  %v4119_v35 = vrot.slane %v9325_v48, %v8627_v36  ;;  %v7357_v48 = vld [vmem:[%s9472_s5 + $0xe0] ss:$12 sps:$4 sm:$0xff]  }
 0x382   :  { %5219 = vmatprep.subr.bf16.mxu1 %v7280_v3  ;;  %v7329_v3 = vld [vmem:[%s9472_s5 + $0x19c] ss:$12 sps:$4 sm:$0xff]  }
 0x385   :  { %5220 = vmatpush1.bf16.msra.mxu1 %v7278_v4 }
 0x386   :  { %5221 = vmatprep.subr.bf16.mxu1 %v7283_v5 }
 0x389   :  { %5222 = vmatpush1.bf16.msra.mxu1 %v7281_v31 }
 0x38a   :  { %5223 = vmatprep.subr.bf16.mxu1 %v7286_v6 }
 0x38d   :  { %5224 = vmatpush1.bf16.msra.mxu1 %v7284_v13  ;;  %v7327_v13 = vld [vmem:[%s9472_s5 + $0x198] ss:$12 sps:$4 sm:$0xff]  }
 0x38e   :  { %5225 = vmatprep.subr.bf16.mxu1 %v7289_v7 }
 0x391   :  { %5226 = vmatpush1.bf16.msra.mxu1 %v7287_v8  ;;  %v7333_v8 = vld [vmem:[%s9472_s5 + $0x1b4] ss:$12 sps:$4 sm:$0xff]  }
 0x392   :  { %5227 = vmatprep.subr.bf16.mxu1 %v7292_v11 }
 0x395   :  { %5228 = vmatpush1.bf16.msra.mxu1 %v7290_v12  ;;  %v7331_v12 = vld [vmem:[%s9472_s5 + $0x1b0] ss:$12 sps:$4 sm:$0xff]  }
 0x396   :  { %5229 = vmatprep.subr.bf16.mxu1 %v7295_v15 }
 0x399   :  { %5230 = vmatpush1.bf16.msra.mxu1 %v7293_v16  ;;  %v7337_v16 = vld [vmem:[%s9472_s5 + $0x1cc] ss:$12 sps:$4 sm:$0xff]  }
 0x39a   :  { %5231 = vmatprep.subr.bf16.mxu1 %v7298_v17  ;;  %v7335_v17 = vld [vmem:[%s9472_s5 + $0x1c8] ss:$12 sps:$4 sm:$0xff]  }
 0x39d   :  { %5232 = vmatpush1.bf16.msra.mxu1 %v7296_v19  ;;  %v7341_v19 = vld [vmem:[%s9472_s5 + $0x1e4] ss:$12 sps:$4 sm:$0xff]  }
 0x39e   :  { %5233 = vmatprep.subr.bf16.mxu1 %v7301_v20  ;;  %v7339_v20 = vld [vmem:[%s9472_s5 + $0x1e0] ss:$12 sps:$4 sm:$0xff]  }
 0x3a1   :  { %5234 = vmatpush1.bf16.msra.mxu1 %v7299_v21  ;;  %v7345_v21 = vld [vmem:[%s9472_s5 + $0x1fc] ss:$12 sps:$4 sm:$0xff]  }
 0x3a2   :  { %5235 = vmatprep.subr.bf16.mxu1 %v7304_v23  ;;  %v7343_v23 = vld [vmem:[%s9472_s5 + $0x1f8] ss:$12 sps:$4 sm:$0xff]  }
 0x3a5   :  { %5236 = vmatpush1.bf16.msra.mxu1 %v7302_v60  ;;  %v7349_v60 = vld [vmem:[%s9472_s5 + $0x214] ss:$12 sps:$4 sm:$0xff]  }
 0x3a6   :  { %5237 = vmatprep.subr.bf16.mxu1 %v7307_v24 }
 0x3a9   :  { %5238 = vmatpush1.bf16.msra.mxu1 %v7305_v25  ;;  %v7347_v25 = vld [vmem:[%s9472_s5 + $0x210] ss:$12 sps:$4 sm:$0xff]  }
 0x3aa   :  { %5239 = vmatprep.subr.bf16.mxu1 %v7310_v26 }
 0x3ad   :  { %5240 = vmatpush1.bf16.msra.mxu1 %v7308_v9  ;;  %v7353_v9 = vld [vmem:[%s9472_s5 + $0x22c] ss:$12 sps:$4 sm:$0xff]  }
 0x3ae   :  { %5241 = vmatprep.subr.bf16.mxu1 %v7313_v27 }
 0x3b1   :  { %5242 = vmatpush1.bf16.msra.mxu1 %v7311_v28 }
 0x3b2   :  { %5243 = vmatprep.subr.bf16.mxu1 %v7316_v32 }
 0x3b5   :  { %5244 = vmatpush1.bf16.msra.mxu1 %v7314_v33 }
 0x3b6   :  { %5245 = vmatprep.subr.bf16.mxu1 %v7319_v18  ;;  %v7351_v18 = vld [vmem:[%s9472_s5 + $0x228] ss:$12 sps:$4 sm:$0xff]  }
 0x3b9   :  { %5246 = vmatpush1.bf16.msra.mxu1 %v7317_v34  ;;  %v7355_v34 = vld [vmem:[%s9472_s5 + $0xc8] ss:$12 sps:$4 sm:$0xff]  }
 0x3ba   :  { %5247 = vmatprep.subr.bf16.mxu1 %v7322_v30 }
 0x3bd   :  { %5248 = vmatpush1.bf16.msra.mxu1 %v7320_v37 }
 0x3be   :  { %5268 = vmatprep.subr.bf16.mxu1 %v7325_v38 }
 0x413   :  { %v4592_v14 = vpop.f32.mrb[72].mxu1 }
 0x414   :  { %v6465_v49 = vadd.f32 %v4592_v14, %v4111_v51  ;;  %v4594_v50 = vpop.f32.mrb[73].mxu1 }
 0x415   :  { %v6466_v58 = vadd.f32 %v4594_v50, %v4115_v52  ;;  %v4596_v22 = vpop.f32.mrb[74].mxu1 }
 0x416   :  { %v6467_v40 = vadd.f32 %v4596_v22, %v4111_v51  ;;  %v4598_v46 = vpop.f32.mrb[75].mxu1  ;;  %v4705_v55 = vmax.f32 %v6465_v49, 0.0 }
 0x417   :  { %v6468_v0 = vadd.f32 %v4598_v46, %v4115_v52  ;;  %v4706_v57 = vmax.f32 %v6466_v58, 0.0  ;;  %v7356_v46 = vld [vmem:[%s9472_s5 + $0x8] ss:$12 sps:$4 sm:$0xff]  }
 0x418   :  { %v4708_v56 = vmax.f32 %v6467_v40, 0.0 }
 0x419   :  { %v4709_v59 = vmax.f32 %v6468_v0, 0.0 }
 0x41a   :  { %v9331_v61 = vpack.c.bf16 %v4708_v56, %v4705_v55  ;;  %v7358_v56 = vld [vmem:[%s9472_s5 + $0x20] ss:$12 sps:$4 sm:$0xff]  }
 0x41b   :  { %v9333_v62 = vpack.c.bf16 %v4709_v59, %v4706_v57  ;;  %v4602_v63 = vpop.f32.mrb[76].mxu1  ;;  %v7359_v57 = vld [vmem:[%s9472_s5 + $0xf8] ss:$12 sps:$4 sm:$0xff]  }
 0x41c   :  { %v6469_v1 = vadd.f32 %v4602_v63, %v4111_v51  ;;  %v4604_v2 = vpop.f32.mrb[77].mxu1  ;;  %v7360_v59 = vld [vmem:[%s9472_s5 + $0x38] ss:$12 sps:$4 sm:$0xff]   ;;  %v7361_v63 = vld [vmem:[%s9472_s5 + $0x110] ss:$12 sps:$4 sm:$0xff]  }
 0x41d   :  { %v6470_v4 = vadd.f32 %v4604_v2, %v4115_v52  ;;  %v4606_v5 = vpop.f32.mrb[78].mxu1  ;;  %5249 = vmatprep.mubr.bf16.mxu1 %v9333_v62  ;;  %v7365_v2 = vld [vmem:[%s9472_s5 + $0x140] ss:$12 sps:$4 sm:$0xff]  }
 0x41e   :  { %v4607_v31 = vpop.f32.mrb[79].mxu1  ;;  %5250 = vmatmul.mubr.bf16.vlgmr.msra.gmra.mrb[92].mxu1 %v9331_v61  ;;  %v4711_v7 = vmax.f32 %v6469_v1, 0.0  ;;  %v7364_v1 = vld [vmem:[%s9472_s5 + $0x68] ss:$12 sps:$4 sm:$0xff]   ;;  %v7369_v5 = vld [vmem:[%s9472_s5 + $0x170] ss:$12 sps:$4 sm:$0xff]  }
 0x41f   :  { %v4712_v6 = vmax.f32 %v6470_v4, 0.0  ;;  %5269 = vmatpush1.bf16.msra.mxu1 %v7323_v29  ;;  %v7363_v29 = vld [vmem:[%s9472_s5 + $0x128] ss:$12 sps:$4 sm:$0xff]   ;;  %v7368_v4 = vld [vmem:[%s9472_s5 + $0x98] ss:$12 sps:$4 sm:$0xff]  }
 0x420   :  { %5270 = vmatprep.subr.bf16.mxu1 %v7329_v3  ;;  %v9355_v15 = vpack.c.bf16 %v4711_v7, %v4711_v7  ;;  %v7367_v3 = vld [vmem:[%s9472_s5 + $0x158] ss:$12 sps:$4 sm:$0xff]   ;;  %v7370_v31 = vld [vmem:[%s9472_s5 + $0xb0] ss:$12 sps:$4 sm:$0xff]  }
 0x421   :  { %v9349_v11 = vpack.c.bf16 %v4712_v6, %v4712_v6  ;;  %v4816_v6 = vld [vmem:[%s9474_s6] sm:$0x7] }
 0x422   :  { %v4825_v7 = vrot.slane %v4816_v6, %v9054_v54 }
 0x423   :  { %5259 = vmatprep.mubr.bf16.mxu1 %v9349_v11  ;;  %5271 = vmatpush1.bf16.msra.mxu1 %v7327_v13  ;;  %v4821_v13 = vrot.slane %v4816_v6, %v9051_v53 }
 0x424   :  { %5272 = vmatprep.subr.bf16.mxu1 %v7333_v8 }
 0x426   :  { %5260 = vmatmul.mubr.bf16.gmra.mrb[96].mxu1 %v9355_v15 }
 0x427   :  { %5273 = vmatpush1.bf16.msra.mxu1 %v7331_v12  ;;  %5300 = vmatprep.mubr.bf16.mxu1 %v7380_v10 }
 0x428   :  { %5274 = vmatprep.subr.bf16.mxu1 %v7337_v16 }
 0x42b   :  { %5275 = vmatpush1.bf16.msra.mxu1 %v7335_v17 }
 0x42c   :  { %5276 = vmatprep.subr.bf16.mxu1 %v7341_v19 }
 0x42f   :  { %5277 = vmatpush1.bf16.msra.mxu1 %v7339_v20 }
 0x430   :  { %5278 = vmatprep.subr.bf16.mxu1 %v7345_v21 }
 0x433   :  { %v6359_v24 = vpop.f32.mrb[80].mxu1  ;;  %5279 = vmatpush1.bf16.msra.mxu1 %v7343_v23 }
 0x434   :  { %v6360_v26 = vpop.f32.mrb[81].mxu1  ;;  %5280 = vmatprep.subr.bf16.mxu1 %v7349_v60 }
 0x435   :  { %v6361_v27 = vadd.f32 %v6360_v26, %v6359_v24  ;;  %v6362_v28 = vpop.f32.mrb[82].mxu1 }
 0x436   :  { %v6363_v32 = vpop.f32.mrb[83].mxu1 }
 0x437   :  { %v6364_v33 = vadd.f32 %v6363_v32, %v6362_v28  ;;  %5281 = vmatpush1.bf16.msra.mxu1 %v7347_v25  ;;  %v4644_v44 = vadd.f32 %v6361_v27, %v4119_v35 }
 0x438   :  { %5282 = vmatprep.subr.bf16.mxu1 %v7353_v9 }
 0x439   :  { %v4647_v14 = vadd.f32 %v6364_v33, %v4119_v35 }
 0x43b   :  { %v6365_v30 = vpop.f32.mrb[84].mxu1  ;;  %5283 = vmatpush1.bf16.msra.mxu1 %v7351_v18 }
 0x43c   :  { %v6366_v37 = vpop.f32.mrb[85].mxu1  ;;  %6381 = vmatprep.subr.bf16.mxu1 %v7355_v34 }
 0x43d   :  { %v6367_v38 = vadd.f32 %v6366_v37, %v6365_v30  ;;  %v6368_v39 = vpop.f32.mrb[86].mxu1 }
 0x43e   :  { %v6369_v42 = vpop.f32.mrb[87].mxu1 }
 0x43f   :  { %v4652_v41 = vadd.f32 %v6367_v38, %v4119_v35  ;;  %v4829_v42 = vrot.slane %v4816_v6, %v8627_v36 }
 0x453   :  { %v6437_v43 = vpop.f32.mrb[88].mxu1 }
 0x454   :  { %v4700_v47 = vadd.f32 %v6437_v43, %v4652_v41  ;;  %v4691_v45 = vpop.f32.mrb[89].mxu1 }
 0x455   :  { %v4692_v51 = vadd.f32 %v4691_v45, %v4644_v44  ;;  %v6438_v52 = vpop.f32.mrb[90].mxu1 }
 0x456   :  { %v4694_v49 = vpop.f32.mrb[91].mxu1  ;;  %v4713_v58 = vmax.f32 %v4700_v47, 0.0 }
 0x457   :  { %v4695_v50 = vadd.f32 %v4694_v49, %v4647_v14  ;;  %v4707_v22 = vmax.f32 %v4692_v51, 0.0 }
 0x458   :  { %v4719_v55 = vpack.c.bf16 %v4713_v58, %v4713_v58 }
 0x459   :  { %v4710_v40 = vmax.f32 %v4695_v50, 0.0 }
 0x45b   :  { %v4716_v0 = vpack.c.bf16 %v4710_v40, %v4707_v22 }
 0x45d   :  { %5301 = vmatmul.mubr.bf16.vlgmr.msra.gmra.mrb[92].mxu1 %v4716_v0  ;;  %6455 = vmatprep.mubr.bf16.mxu0 %v4716_v0 }
 0x45e   :  { %6382 = vmatpush3.bf16.msra.mxu1 %v7356_v46  ;;  %6456 = vmatmul.mubr.bf16.vlgmr.msra.gmra.mrb[8].mxu0 %v4719_v55 }
 0x45f   :  { %6383 = vmatprep.subr.bf16.mxu1 %v7357_v48  ;;  %5310 = vmatprep.mubr.bf16.mxu1 %v7380_v10  ;;  %v7362_v10 = vld [vmem:[%s9472_s5 + $0x50] ss:$12 sps:$4 sm:$0xff]  }
 0x462   :  { %6384 = vmatpush3.bf16.msra.mxu1 %v7358_v56 }
 0x463   :  { %6385 = vmatprep.subr.bf16.mxu1 %v7359_v57 }
 0x465   :  { %5311 = vmatmul.mubr.bf16.gmra.mrb[96].mxu1 %v4719_v55 }
 0x466   :  { %6386 = vmatpush3.bf16.msra.mxu1 %v7360_v59  ;;  %5351 = vmatprep.mubr.bf16.mxu1 %v9333_v62  ;;  %v7366_v62 = vld [vmem:[%s9472_s5 + $0x80] ss:$12 sps:$4 sm:$0xff]  }
 0x467   :  { %6387 = vmatprep.subr.bf16.mxu1 %v7361_v63 }
 0x46a   :  { %6388 = vmatpush3.bf16.msra.mxu1 %v7362_v10 }
 0x46b   :  { %6389 = vmatprep.subr.bf16.mxu1 %v7363_v29 }
 0x46e   :  { %6390 = vmatpush3.bf16.msra.mxu1 %v7364_v1 }
 0x46f   :  { %6391 = vmatprep.subr.bf16.mxu1 %v7365_v2 }
 0x472   :  { %6392 = vmatpush3.bf16.msra.mxu1 %v7366_v62 }
 0x473   :  { %6393 = vmatprep.subr.bf16.mxu1 %v7367_v3 }
 0x476   :  { %6394 = vmatpush3.bf16.msra.mxu1 %v7368_v4 }
 0x477   :  { %6395 = vmatprep.subr.bf16.mxu1 %v7369_v5 }
 0x47a   :  { %6396 = vmatpush3.bf16.msra.mxu1 %v7370_v31 }
 0x47d   :  { %5352 = vmatmul.mubr.bf16.vlgmr.msra.gmra.mrb[100].mxu1 %v9331_v61 }
 0x47e   :  { %5359 = vmatprep.mubr.bf16.mxu1 %v9349_v11 }
 0x485   :  { %5360 = vmatmul.mubr.bf16.gmra.mrb[104].mxu1 %v9355_v15 }
 0x530   :  { %v5302_v8 = vpop.f32.mrb[92].mxu1 }
 0x531   :  { %v6471_v12 = vadd.f32 %v5302_v8, %v4821_v13  ;;  %v5304_v16 = vpop.f32.mrb[93].mxu1  ;;  %v6457_v17 = vpop.f32.mrb[8].mxu0 }
 0x532   :  { %v6472_v19 = vadd.f32 %v5304_v16, %v4825_v7  ;;  %v5306_v20 = vpop.f32.mrb[94].mxu1  ;;  %v5401_v21 = vpop.f32.mrb[9].mxu0 }
 0x533   :  { %v5415_v61 = vmax.f32 %v6471_v12, 0.0  ;;  %v6473_v23 = vadd.f32 %v5306_v20, %v4821_v13  ;;  %v5308_v11 = vpop.f32.mrb[95].mxu1  ;;  %v6458_v60 = vpop.f32.mrb[10].mxu0 }
 0x534   :  { %v5416_v15 = vmax.f32 %v6472_v19, 0.0  ;;  %v6474_v24 = vadd.f32 %v5308_v11, %v4825_v7  ;;  %v5404_v25 = vpop.f32.mrb[11].mxu0 }
 0x535   :  { %v5418_v26 = vmax.f32 %v6473_v23, 0.0 }
 0x536   :  { %v6085_v9 = vpack.c.bf16 %v5416_v15, %v5415_v61  ;;  %v5419_v27 = vmax.f32 %v6474_v24, 0.0 }
 0x538   :  { %5457 = vst [vmem:[%s9475_s7] sm:$0xff] %v6085_v9  ;;  %v6087_v53 = vpack.c.bf16 %v5419_v27, %v5418_v26  ;;  %v5312_v54 = vpop.f32.mrb[96].mxu1 }
 0x539   :  { %v6475_v28 = vadd.f32 %v5312_v54, %v4821_v13  ;;  %v5314_v32 = vpop.f32.mrb[97].mxu1 }
 0x53a   :  { %5459 = vst [vmem:[%s9475_s7 + $0xc] sm:$0xff] %v6087_v53  ;;  %v6476_v33 = vadd.f32 %v5314_v32, %v4825_v7  ;;  %v5316_v18 = vpop.f32.mrb[98].mxu1 }
 0x53b   :  { %v5421_v34 = vmax.f32 %v6475_v28, 0.0  ;;  %v5317_v30 = vpop.f32.mrb[99].mxu1 }
 0x53c   :  { %v5422_v37 = vmax.f32 %v6476_v33, 0.0 }
 0x53e   :  { %v6089_v38 = vpack.c.bf16 %v5422_v37, %v5421_v34 }
 0x540   :  { %5461 = vst [vmem:[%s9475_s7 + $0x18] sm:$0x11] %v6089_v38 }
 0x550   :  { %v6397_v39 = vpop.f32.mrb[100].mxu1 }
 0x551   :  { %v6398_v35 = vpop.f32.mrb[101].mxu1 }
 0x552   :  { %v6399_v41 = vadd.f32 %v6398_v35, %v6397_v39  ;;  %v6400_v43 = vpop.f32.mrb[102].mxu1 }
 0x553   :  { %v6401_v44 = vpop.f32.mrb[103].mxu1 }
 0x554   :  { %v5354_v47 = vadd.f32 %v6399_v41, %v4829_v42  ;;  %v6402_v45 = vadd.f32 %v6401_v44, %v6400_v43 }
 0x556   :  { %v5402_v51 = vadd.f32 %v5401_v21, %v5354_v47  ;;  %v5357_v52 = vadd.f32 %v6402_v45, %v4829_v42 }
 0x558   :  { %v5417_v14 = vmax.f32 %v5402_v51, 0.0  ;;  %v5405_v49 = vadd.f32 %v5404_v25, %v5357_v52  ;;  %v6403_v50 = vpop.f32.mrb[104].mxu1 }
 0x559   :  { %v6404_v58 = vpop.f32.mrb[105].mxu1 }
 0x55a   :  { %v6086_v22 = vpack.c.bf16 %v5417_v14, %v5417_v14  ;;  %v5420_v40 = vmax.f32 %v5405_v49, 0.0  ;;  %v6405_v46 = vadd.f32 %v6404_v58, %v6403_v50  ;;  %v6406_v0 = vpop.f32.mrb[106].mxu1 }
 0x55b   :  { %v6407_v48 = vpop.f32.mrb[107].mxu1 }
 0x55c   :  { %5458 = vst [vmem:[%s9475_s7 + $0x8] sm:$0xf] %v6086_v22  ;;  %v6088_v36 = vpack.c.bf16 %v5420_v40, %v5420_v40  ;;  %v5362_v55 = vadd.f32 %v6405_v46, %v4829_v42 }
 0x55e   :  { %5460 = vst [vmem:[%s9475_s7 + $0x14] sm:$0xf] %v6088_v36  ;;  %v5410_v56 = vadd.f32 %v6457_v17, %v5362_v55 }
 0x560   :  { %v5423_v57 = vmax.f32 %v5410_v56, 0.0 }
 0x562   :  { %v6090_v59 = vpack.c.bf16 %v5423_v57, %v5423_v57 }
 0x564   :  { %5462 = vst [vmem:[%s9475_s7 + $0x20] sm:$0x1] %v6090_v59 }

</bundles_post_ra>
